<compile_context>
chip_gen: v5e
topology: v5e:2x2
jax: 0.10.0
libtpu: 0.0.40
codegen_flags: <defaults>
</compile_context>

<pallas_src>
import functools

import jax
import jax.numpy as jnp
from jax.experimental import pallas as pl
from jax.experimental.pallas import tpu as pltpu


def _attn_kernel(recip_ref, q_ref, k_ref, v_ref, o_ref, *, compute_dtype):
    # recip_ref: SMEM (1, 1) f32 scalar = 1 / inv_scale_factor
    # q_ref (TB, M, D) ; k_ref (TB, N, D) ; v_ref (TB, N, Dv) ; o_ref (TB, M, Dv)
    recip = recip_ref[0, 0]
    q = q_ref[...]
    k = k_ref[...]
    v = v_ref[...]

    # Cast to the MXU compute dtype in-VMEM (no separate XLA cast pass in HBM).
    if q.dtype != jnp.dtype(compute_dtype):
        q = q.astype(compute_dtype)
        k = k.astype(compute_dtype)
        v = v.astype(compute_dtype)

    # qk = q @ k^T -> (TB, M, N), contracted over D on the MXU, f32 accumulation.
    # (einsum 'bmd,bnd->bmn' keeps both operands lane-dense along D.)
    s = jnp.einsum("bmd,bnd->bmn", q, k, preferred_element_type=jnp.float32)
    # scale: multiply by the precomputed reciprocal instead of a vector divide
    s = s * recip

    # numerically-stable softmax over the last axis (f32 math)
    m = jnp.max(s, axis=-1, keepdims=True)
    e = jnp.exp(s - m)
    denom = jnp.sum(e, axis=-1, keepdims=True)
    p = e * pl.reciprocal(denom, approx=False)   # reciprocal only on (TB, M, 1)

    # TODO(synk): dropout_p is treated as 0.0 (inference/eval dropout == identity);
    # a training-mode dropout would use pltpu.prng_seed / prng_random_bits here.

    # out = p @ v -> (TB, M, Dv); cast p to the compute dtype so the second
    # matmul also runs at the fast MXU rate, f32 accumulation.
    out = jnp.einsum("bmn,bnd->bmd", p.astype(v.dtype), v,
                     preferred_element_type=jnp.float32)
    o_ref[...] = out.astype(o_ref.dtype)


def _num_tensorcores_per_chip():
    """Best-effort TensorCore-per-chip count (v7x/v4/v5p = 2, v5e/v6e = 1)."""
    try:
        kind = (getattr(jax.devices()[0], "device_kind", "") or "").lower()
    except Exception:
        return 1
    for tag in ("v7", "7x", "v4", "v5p"):
        if tag in kind:
            return 2
    return 1


def _choose_block_heads(BL, M, N, D, Dv, in_dtype, num_cores,
                        budget_bytes=8 * 1024 * 1024):
    """Pick how many (B,L) heads to process per grid step."""
    in_bytes = jnp.dtype(in_dtype).itemsize
    per_head = (
        2 * (M * D + N * D + N * Dv) * in_bytes   # double-buffered inputs
        + 2 * M * Dv * 4                          # double-buffered f32 output
        + 4 * M * N * 4                           # f32 score/exp/prob intermediates
    )
    cap = max(1, budget_bytes // per_head)
    # On multi-TensorCore chips keep >= num_cores grid steps so every core
    # gets work; on single-TC chips prefer one big step (no per-step overhead).
    if num_cores > 1:
        cap = min(cap, max(1, BL // num_cores))
    tb = 1
    for d in range(1, BL + 1):
        if d <= cap and BL % d == 0:
            tb = d
    return tb


def attention_forward(query, key, value, inv_scale_factor, *,
                      compute_dtype=jnp.bfloat16, block_heads=None,
                      out_dtype=None):
    """query (B,L,M,D), key (B,L,N,D), value (B,L,N,Dv), inv_scale (1,1,1)."""
    B, L, M, D = query.shape
    _, _, N, Dk = key.shape
    _, _, Nv, Dv = value.shape
    assert Dk == D and Nv == N

    BL = B * L
    out_dtype = query.dtype if out_dtype is None else jnp.dtype(out_dtype)

    # No wrapper-side dtype cast: the kernel casts in VMEM. Leading-dim reshape
    # is free (no copy / no extra HBM pass).
    q = query.reshape(BL, M, D)
    k = key.reshape(BL, N, D)
    v = value.reshape(BL, N, Dv)
    # precompute 1/inv_scale once; the kernel multiplies (no per-step vector divide)
    recip = (1.0 / inv_scale_factor.astype(jnp.float32)).reshape(1, 1)

    num_cores = _num_tensorcores_per_chip()
    TB = block_heads if block_heads is not None else _choose_block_heads(
        BL, M, N, D, Dv, q.dtype, num_cores)
    assert BL % TB == 0
    grid = (BL // TB,)

    in_itemsize = jnp.dtype(q.dtype).itemsize
    cost = pl.CostEstimate(
        flops=2 * BL * M * N * (D + Dv),          # both matmuls
        transcendentals=BL * M * N,               # exp in softmax
        bytes_accessed=(BL * (M * D + N * D + N * Dv) * in_itemsize
                        + BL * M * Dv * out_dtype.itemsize),
    )

    kernel = functools.partial(_attn_kernel, compute_dtype=compute_dtype)

    out = pl.pallas_call(
        kernel,
        out_shape=jax.ShapeDtypeStruct((BL, M, Dv), out_dtype),
        grid=grid,
        in_specs=[
            pl.BlockSpec(memory_space=pltpu.MemorySpace.SMEM),      # 1/inv_scale
            pl.BlockSpec((TB, M, D), lambda i: (i, 0, 0)),          # query
            pl.BlockSpec((TB, N, D), lambda i: (i, 0, 0)),          # key
            pl.BlockSpec((TB, N, Dv), lambda i: (i, 0, 0)),         # value
        ],
        out_specs=pl.BlockSpec((TB, M, Dv), lambda i: (i, 0, 0)),
        compiler_params=pltpu.CompilerParams(
            dimension_semantics=("parallel",),
            vmem_limit_bytes=32 * 1024 * 1024,   # explicit, safe on v5e/v6e/v7x
        ),
        cost_estimate=cost,
    )(recip, q, k, v)

    return out.reshape(B, L, M, Dv)


def reference_forward(query, key, value, inv_scale_factor, p_dtype=None):
    qk = jnp.matmul(query, jnp.swapaxes(key, -1, -2))
    scaled = qk / inv_scale_factor
    p = jax.nn.softmax(scaled, axis=-1)
    if p_dtype is not None:
        p = p.astype(p_dtype).astype(jnp.float32)
    return jnp.matmul(p, value)


if __name__ == "__main__":
    # Small shapes consistent with the module: B=1, q_len=kv_len=8,
    # query rows M=128, head dim D=128, key/value rows N=64, value dim Dv=128.
    B, L, M, D, N, Dv = 1, 8, 128, 128, 64, 128

    key0 = jax.random.PRNGKey(0)
    kq, kk, kv, ks = jax.random.split(key0, 4)
    query = jax.random.normal(kq, (B, L, M, D), dtype=jnp.float32)
    key_t = jax.random.normal(kk, (B, L, N, D), dtype=jnp.float32)
    value = jax.random.normal(kv, (B, L, N, Dv), dtype=jnp.float32)
    # positive inv_scale_factor for a well-conditioned softmax
    inv_scale_factor = jnp.abs(jax.random.normal(ks, (1, 1, 1), jnp.float32)) + 0.5

    # --- optimized bf16-MXU path (default; cast happens inside the kernel) ---
    out = attention_forward(query, key_t, value, inv_scale_factor)
    out = jax.block_until_ready(out)
    assert out.shape == (B, L, M, Dv)
    # compare against a reference computed on the same bf16-quantized inputs
    # (f32 math) so only accumulation-order noise remains
    cd = jnp.bfloat16
    ref_q = reference_forward(query.astype(cd).astype(jnp.float32),
                              key_t.astype(cd).astype(jnp.float32),
                              value.astype(cd).astype(jnp.float32),
                              inv_scale_factor, p_dtype=cd)
    assert jnp.allclose(out, ref_q, atol=2e-3, rtol=2e-3), \
        float(jnp.max(jnp.abs(out - ref_q)))

    # --- exact f32 semantics of the original module ---
    out_f32 = attention_forward(query, key_t, value, inv_scale_factor,
                                compute_dtype=jnp.float32)
    out_f32 = jax.block_until_ready(out_f32)
    ref = reference_forward(query, key_t, value, inv_scale_factor)
    assert jnp.allclose(out_f32, ref, atol=5e-4, rtol=5e-4), \
        float(jnp.max(jnp.abs(out_f32 - ref)))

    print("KERNEL_OK")
</pallas_src>

<mosaic_0001>
module attributes {stable_mosaic.version = 11 : i64} {
  func.func @_attn_kernel(%arg0: i32, %arg1: memref<1x1xf32, #tpu.memory_space<smem>>, %arg2: memref<8x128x128xf32, #tpu.memory_space<vmem>>, %arg3: memref<8x64x128xf32, #tpu.memory_space<vmem>>, %arg4: memref<8x64x128xf32, #tpu.memory_space<vmem>>, %arg5: memref<8x128x128xf32, #tpu.memory_space<vmem>>) attributes {dimension_semantics = [#tpu.dimension_semantics<parallel>], iteration_bounds = array<i64: 1>, scalar_prefetch = 0 : i64, scratch_operands = 0 : i64, tpu.core_type = #tpu.core_type<tc>, window_params = [{transform_indices = @transform_0, window_bounds = array<i64: 1, 1>}, {transform_indices = @transform_1, window_bounds = array<i64: 8, 128, 128>}, {transform_indices = @transform_2, window_bounds = array<i64: 8, 64, 128>}, {transform_indices = @transform_3, window_bounds = array<i64: 8, 64, 128>}, {transform_indices = @transform_4, window_bounds = array<i64: 8, 128, 128>}]} {
    %c0 = arith.constant 0 : index
    %c0_0 = arith.constant 0 : index
    %0 = memref.load %arg1[%c0, %c0_0] : memref<1x1xf32, #tpu.memory_space<smem>>
    %c0_1 = arith.constant 0 : index
    %c0_2 = arith.constant 0 : index
    %c0_3 = arith.constant 0 : index
    %1 = vector.load %arg2[%c0_1, %c0_2, %c0_3] : memref<8x128x128xf32, #tpu.memory_space<vmem>>, vector<8x128x128xf32>
    %c0_4 = arith.constant 0 : index
    %c0_5 = arith.constant 0 : index
    %c0_6 = arith.constant 0 : index
    %2 = vector.load %arg3[%c0_4, %c0_5, %c0_6] : memref<8x64x128xf32, #tpu.memory_space<vmem>>, vector<8x64x128xf32>
    %c0_7 = arith.constant 0 : index
    %c0_8 = arith.constant 0 : index
    %c0_9 = arith.constant 0 : index
    %3 = vector.load %arg4[%c0_7, %c0_8, %c0_9] : memref<8x64x128xf32, #tpu.memory_space<vmem>>, vector<8x64x128xf32>
    %4 = arith.truncf %1 : vector<8x128x128xf32> to vector<8x128x128xbf16>
    %5 = arith.truncf %2 : vector<8x64x128xf32> to vector<8x64x128xbf16>
    %6 = arith.truncf %3 : vector<8x64x128xf32> to vector<8x64x128xbf16>
    "tpu.trace_start"() <{level = 10 : i32, message = "bmd,bnd->bmn"}> : () -> ()
    %cst = arith.constant dense<0.000000e+00> : vector<8x128x64xf32>
    %7 = tpu.matmul %4, %5, %cst {dimension_numbers = #tpu.dot_dimension_numbers<[2], [2], [1], [1], [0, 0, 0, 1, 1, 1], [0], [0]>} : vector<8x128x128xbf16>, vector<8x64x128xbf16>, vector<8x128x64xf32> -> vector<8x128x64xf32>
    "tpu.trace_stop"() : () -> ()
    %8 = vector.broadcast %0 : f32 to vector<8x128x64xf32>
    %9 = arith.mulf %7, %8 : vector<8x128x64xf32>
    %cst_10 = arith.constant dense<0xFF800000> : vector<8x128xf32>
    %10 = vector.multi_reduction <maximumf>, %9, %cst_10 [2] : vector<8x128x64xf32> to vector<8x128xf32>
    %11 = vector.shape_cast %10 : vector<8x128xf32> to vector<8x128x1xf32>
    %12 = vector.broadcast %11 : vector<8x128x1xf32> to vector<8x128x64xf32>
    %13 = arith.subf %9, %12 : vector<8x128x64xf32>
    %14 = math.exp %13 : vector<8x128x64xf32>
    %cst_11 = arith.constant dense<0.000000e+00> : vector<8x128xf32>
    %15 = vector.multi_reduction <add>, %14, %cst_11 [2] : vector<8x128x64xf32> to vector<8x128xf32>
    %16 = vector.shape_cast %15 : vector<8x128xf32> to vector<8x128x1xf32>
    %17 = tpu.reciprocal %16 : vector<8x128x1xf32> -> vector<8x128x1xf32>
    %18 = vector.broadcast %17 : vector<8x128x1xf32> to vector<8x128x64xf32>
    %19 = arith.mulf %14, %18 : vector<8x128x64xf32>
    %20 = arith.truncf %19 : vector<8x128x64xf32> to vector<8x128x64xbf16>
    "tpu.trace_start"() <{level = 10 : i32, message = "bmn,bnd->bmd"}> : () -> ()
    %cst_12 = arith.constant dense<0.000000e+00> : vector<8x128x128xf32>
    %21 = tpu.matmul %20, %6, %cst_12 {dimension_numbers = #tpu.dot_dimension_numbers<[2], [1], [1], [2], [0, 0, 0, 1, 1, 2], [0], [0]>} : vector<8x128x64xbf16>, vector<8x64x128xbf16>, vector<8x128x128xf32> -> vector<8x128x128xf32>
    "tpu.trace_stop"() : () -> ()
    %c0_13 = arith.constant 0 : index
    %c0_14 = arith.constant 0 : index
    %c0_15 = arith.constant 0 : index
    %22 = vector.load %arg5[%c0_13, %c0_14, %c0_15] : memref<8x128x128xf32, #tpu.memory_space<vmem>>, vector<8x128x128xf32>
    tpu.vector_store %arg5[%c0_13, %c0_14, %c0_15], %21 {strides = array<i32>} : memref<8x128x128xf32, #tpu.memory_space<vmem>>, vector<8x128x128xf32>,
    return
  }
  func.func @transform_0(%arg0: i32) -> (i32, i32) {
    %c0_i32 = arith.constant 0 : i32
    %c0_i32_0 = arith.constant 0 : i32
    %c0_i32_1 = arith.constant 0 : i32
    return %c0_i32, %c0_i32_0 : i32, i32
  }
  func.func @transform_1(%arg0: i32) -> (i32, i32, i32) {
    %c0_i32 = arith.constant 0 : i32
    %c0_i32_0 = arith.constant 0 : i32
    %c0_i32_1 = arith.constant 0 : i32
    return %arg0, %c0_i32, %c0_i32_0 : i32, i32, i32
  }
  func.func @transform_2(%arg0: i32) -> (i32, i32, i32) {
    %c0_i32 = arith.constant 0 : i32
    %c0_i32_0 = arith.constant 0 : i32
    %c0_i32_1 = arith.constant 0 : i32
    return %arg0, %c0_i32, %c0_i32_0 : i32, i32, i32
  }
  func.func @transform_3(%arg0: i32) -> (i32, i32, i32) {
    %c0_i32 = arith.constant 0 : i32
    %c0_i32_0 = arith.constant 0 : i32
    %c0_i32_1 = arith.constant 0 : i32
    return %arg0, %c0_i32, %c0_i32_0 : i32, i32, i32
  }
  func.func @transform_4(%arg0: i32) -> (i32, i32, i32) {
    %c0_i32 = arith.constant 0 : i32
    %c0_i32_0 = arith.constant 0 : i32
    %c0_i32_1 = arith.constant 0 : i32
    return %arg0, %c0_i32, %c0_i32_0 : i32, i32, i32
  }
}

</mosaic_0001>

<bundles_post_ra>
// kernel: tpu_custom_call.1
= control target key start
LH: loop header
LB: loop body
LE: loop exit
PB: predicated region body
PF: predicated region fallthrough
CT: control target
= control target key end

     0   :  { %10 = vsyncpa [#allocation4], 0  ;;  %s12145_s0 = inlined_call_operand.<no memory space> [shape: f32[1,1], index: 0, kind: input, shape index: {}]   ;;  %s12146_s1 = inlined_call_operand.hbm [shape: f32[8,128,128], index: 1, kind: input, shape index: {}]   ;;  %s12147_s2 = inlined_call_operand.hbm [shape: f32[8,64,128], index: 2, kind: input, shape index: {}]   ;;  %s12148_s3 = inlined_call_operand.hbm [shape: f32[8,64,128], index: 3, kind: input, shape index: {}]   ;;  %s12149_s4 = inlined_call_operand.hbm [shape: f32[8,128,128], index: 4, kind: output, shape index: {}]  }
   0x1   :  { %11 = vsyncpa [#allocation7], 0 }
   0x2   :  { %12 = vsyncpa [#allocation5], 0  ;;  %s32_s17 = sshll.u32 %s12147_s2, 4  ;;  %s6806_s18 = smov [#allocation6]   ;;  %s33_s17 = int_to_ptr.hbm [resolvable:$true] %s32_s17 }
   0x3   :  { %s34_s19 = sshll.u32 %s6806_s18, 4  ;;  %s19_s22 = sshll.u32 %s12146_s1, 4  ;;  %s35_s19 = int_to_ptr.vmem [resolvable:$true] %s34_s19  ;;  %s20_s22 = int_to_ptr.hbm [resolvable:$true] %s19_s22 }
   0x4   :  { %s6807_s23 = smov 128   ;;  %s6808_s24 = smov 8  }
   0x5   :  { %40 = dma.hbm_to_vmem [thread:$0]  %s33_s17, 8192, %s35_s19, [#allocation7], %s6807_s23, %s6807_s23, %s6808_s24  }
   0x6   :  { %s6809_s25 = smov [#allocation3]   ;;  %s45_s2 = sshll.u32 %s12148_s3, 4  ;;  %s46_s2 = int_to_ptr.hbm [resolvable:$true] %s45_s2 }
   0x7   :  { %s21_s26 = sshll.u32 %s6809_s25, 4  ;;  %s6810_s1 = smov [#allocation8]   ;;  %s22_s26 = int_to_ptr.vmem [resolvable:$true] %s21_s26 }
   0x8   :  { %27 = dma.hbm_to_vmem [thread:$0]  %s20_s22, 16384, %s22_s26, [#allocation4], %s6807_s23, %s6807_s23, %s6808_s24  }
   0x9   :  { %s47_s29 = sshll.u32 %s6810_s1, 4  ;;  %s48_s29 = int_to_ptr.vmem [resolvable:$true] %s47_s29 }
   0xa   :  { %53 = dma.hbm_to_vmem [thread:$0]  %s46_s2, 8192, %s48_s29, [#allocation7], %s6807_s23, %s6807_s23, %s6808_s24  }
   0xb   :  { %6800 = dma.done.wait [#allocation4], 16384  }
   0xc   :  { %6801 = vsyncadd [#allocation4], 4294950912 }
   0xd   :  { %6802 = dma.done.wait [#allocation7], 16384  }
   0xe   :  { %6803 = vsyncadd [#allocation7], 4294950912  ;;  %v202_v0 = vld [vmem:[#allocation6 + $0x30] sm:$0xff]  ;;  %v203_v1 = vld [vmem:[#allocation6 + $0x38] sm:$0xff]  ;;  %vm1677_vm0 = vcmask 523264   ;;  %s6108_s8 = sshll.u32 %s12149_s4, 4  ;;  %s6109_s8 = int_to_ptr.hbm [resolvable:$true] %s6108_s8 }
   0xf   :  { %v210_v2 = vld [vmem:[#allocation6 + $0x70] sm:$0xff]  ;;  %v458_v3 = vpack.c.bf16 %v202_v0, %v202_v0  ;;  %v459_v4 = vpack.c.bf16 %v203_v1, %v203_v1  ;;  %v211_v5 = vld [vmem:[#allocation6 + $0x78] sm:$0xff]  ;;  %v200_v14 = vld [vmem:[#allocation6 + $0x20] sm:$0xff] }
  0x10   :  { %v466_v6 = vpack.c.bf16 %v210_v2, %v210_v2  ;;  %v218_v7 = vld [vmem:[#allocation6 + $0xb0] sm:$0xff]  ;;  %v219_v8 = vld [vmem:[#allocation6 + $0xb8] sm:$0xff]  ;;  %v467_v9 = vpack.c.bf16 %v211_v5, %v211_v5  ;;  %v201_v19 = vld [vmem:[#allocation6 + $0x28] sm:$0xff]  ;;  %v456_v29 = vpack.c.bf16 %v200_v14, %v200_v14 }
  0x11   :  { %v474_v10 = vpack.c.bf16 %v218_v7, %v218_v7  ;;  %v475_v11 = vpack.c.bf16 %v219_v8, %v219_v8  ;;  %v226_v12 = vld [vmem:[#allocation6 + $0xf0] sm:$0xff]  ;;  %v227_v13 = vld [vmem:[#allocation6 + $0xf8] sm:$0xff]  ;;  %v642_v15 = vunpack.c.l.b16 %v458_v3  ;;  %v643_v16 = vunpack.c.l.b16 %v459_v4  ;;  %v208_v20 = vld [vmem:[#allocation6 + $0x60] sm:$0xff] }
  0x12   :  { %v763_v17 = vunpack.c.l.b16 %v466_v6  ;;  %v482_v18 = vpack.c.bf16 %v226_v12, %v226_v12  ;;  %v764_v21 = vunpack.c.l.b16 %v467_v9  ;;  %v483_v24 = vpack.c.bf16 %v227_v13, %v227_v13  ;;  %v209_v25 = vld [vmem:[#allocation6 + $0x68] sm:$0xff]  ;;  %v216_v26 = vld [vmem:[#allocation6 + $0xa0] sm:$0xff]  ;;  %v198_v42 = vld [vmem:[#allocation6 + $0x10] sm:$0xff] }
  0x13   :  { %v884_v22 = vunpack.c.l.b16 %v474_v10  ;;  %v885_v23 = vunpack.c.l.b16 %v475_v11  ;;  %v647_v27 = vpack.c.b16 %v643_v16, %v642_v15  ;;  %v457_v30 = vpack.c.bf16 %v201_v19, %v201_v19  ;;  %v217_v31 = vld [vmem:[#allocation6 + $0xa8] sm:$0xff]  ;;  %v224_v32 = vld [vmem:[#allocation6 + $0xe0] sm:$0xff]  ;;  %v199_v47 = vld [vmem:[#allocation6 + $0x18] sm:$0xff] }
  0x14   :  { %v1005_v28 = vunpack.c.l.b16 %v482_v18  ;;  %v768_v33 = vpack.c.b16 %v764_v21, %v763_v17  ;;  %v1006_v35 = vunpack.c.l.b16 %v483_v24  ;;  %v464_v36 = vpack.c.bf16 %v208_v20, %v208_v20  ;;  %v225_v37 = vld [vmem:[#allocation6 + $0xe8] sm:$0xff]  ;;  %v206_v48 = vld [vmem:[#allocation6 + $0x50] sm:$0xff]  ;;  %v207_v49 = vld [vmem:[#allocation6 + $0x58] sm:$0xff] }
  0x15   :  { %v889_v34 = vpack.c.b16 %v885_v23, %v884_v22  ;;  %656 = vmatpush.bf16.xpose.msra.mxu0 %v647_v27  ;;  %v640_v38 = vunpack.c.l.b16 %v456_v29  ;;  %v641_v39 = vunpack.c.l.b16 %v457_v30  ;;  %v465_v40 = vpack.c.bf16 %v209_v25, %v209_v25  ;;  %v214_v53 = vld [vmem:[#allocation6 + $0x90] sm:$0xff]  ;;  %v215_v58 = vld [vmem:[#allocation6 + $0x98] sm:$0xff]  ;;  %v196_v8 = vld [vmem:[#allocation6] sm:$0xff] }
  0x16   :  { %v472_v41 = vpack.c.bf16 %v216_v26, %v216_v26  ;;  %777 = vmatpush.bf16.xpose.msra.mxu1 %v768_v33  ;;  %v1010_v43 = vpack.c.b16 %v1006_v35, %v1005_v28  ;;  %v761_v44 = vunpack.c.l.b16 %v464_v36  ;;  %v473_v45 = vpack.c.bf16 %v217_v31, %v217_v31  ;;  %v222_v63 = vld [vmem:[#allocation6 + $0xd0] sm:$0xff]  ;;  %v223_v0 = vld [vmem:[#allocation6 + $0xd8] sm:$0xff]  ;;  %v197_v9 = vld [vmem:[#allocation6 + $0x8] sm:$0xff] }
  0x17   :  { %898 = vmatpush.bf16.xpose.msra.mxu2 %v889_v34  ;;  %v480_v46 = vpack.c.bf16 %v224_v32, %v224_v32  ;;  %v762_v50 = vunpack.c.l.b16 %v465_v40  ;;  %v481_v52 = vpack.c.bf16 %v225_v37, %v225_v37  ;;  %v646_v54 = vpack.c.b16 %v641_v39, %v640_v38  ;;  %v204_v16 = vld [vmem:[#allocation6 + $0x40] sm:$0xff]  ;;  %v205_v19 = vld [vmem:[#allocation6 + $0x48] sm:$0xff] }
  0x18   :  { %v882_v51 = vunpack.c.l.b16 %v472_v41  ;;  %1019 = vmatpush.bf16.xpose.msra.mxu3 %v1010_v43  ;;  %v883_v55 = vunpack.c.l.b16 %v473_v45  ;;  %v454_v57 = vpack.c.bf16 %v198_v42, %v198_v42  ;;  %v455_v60 = vpack.c.bf16 %v199_v47, %v199_v47  ;;  %v212_v20 = vld [vmem:[#allocation6 + $0x80] sm:$0xff]  ;;  %v213_v21 = vld [vmem:[#allocation6 + $0x88] sm:$0xff] }
  0x19   :  { %v1003_v56 = vunpack.c.l.b16 %v480_v46  ;;  %v1004_v59 = vunpack.c.l.b16 %v481_v52  ;;  %v462_v61 = vpack.c.bf16 %v206_v48, %v206_v48  ;;  %v463_v62 = vpack.c.bf16 %v207_v49, %v207_v49  ;;  %v220_v27 = vld [vmem:[#allocation6 + $0xc0] sm:$0xff]  ;;  %v221_v28 = vld [vmem:[#allocation6 + $0xc8] sm:$0xff] }
  0x1a   :  { %v767_v1 = vpack.c.b16 %v762_v50, %v761_v44  ;;  %v888_v2 = vpack.c.b16 %v883_v55, %v882_v51  ;;  %v470_v3 = vpack.c.bf16 %v214_v53, %v214_v53  ;;  %v471_v4 = vpack.c.bf16 %v215_v58, %v215_v58  ;;  %v68_v38 = vld [vmem:[#allocation3] sm:$0xff]  ;;  %v69_v39 = vld [vmem:[#allocation3 + $0x8] sm:$0xff] }
  0x1b   :  { %v1009_v5 = vpack.c.b16 %v1004_v59, %v1003_v56  ;;  %v478_v6 = vpack.c.bf16 %v222_v63, %v222_v63  ;;  %v479_v7 = vpack.c.bf16 %v223_v0, %v223_v0  ;;  %v638_v10 = vunpack.c.l.b16 %v454_v57  ;;  %v84_v40 = vld [vmem:[#allocation3 + $0x80] sm:$0xff]  ;;  %v85_v45 = vld [vmem:[#allocation3 + $0x88] sm:$0xff] }
  0x1c   :  { %v639_v11 = vunpack.c.l.b16 %v455_v60  ;;  %v759_v12 = vunpack.c.l.b16 %v462_v61  ;;  %v760_v13 = vunpack.c.l.b16 %v463_v62  ;;  %v880_v14 = vunpack.c.l.b16 %v470_v3  ;;  %v100_v46 = vld [vmem:[#allocation3 + $0x100] sm:$0xff]  ;;  %v101_v47 = vld [vmem:[#allocation3 + $0x108] sm:$0xff] }
  0x1d   :  { %657 = vmatpush.bf16.xpose.msra.mxu0 %v646_v54  ;;  %v881_v15 = vunpack.c.l.b16 %v471_v4  ;;  %v452_v17 = vpack.c.bf16 %v196_v8, %v196_v8  ;;  %v453_v18 = vpack.c.bf16 %v197_v9, %v197_v9  ;;  %v1001_v22 = vunpack.c.l.b16 %v478_v6  ;;  %v116_v53 = vld [vmem:[#allocation3 + $0x180] sm:$0xff]  ;;  %v117_v54 = vld [vmem:[#allocation3 + $0x188] sm:$0xff] }
  0x1e   :  { %778 = vmatpush.bf16.xpose.msra.mxu1 %v767_v1  ;;  %v1002_v23 = vunpack.c.l.b16 %v479_v7  ;;  %v645_v24 = vpack.c.b16 %v639_v11, %v638_v10  ;;  %v766_v25 = vpack.c.b16 %v760_v13, %v759_v12  ;;  %v460_v26 = vpack.c.bf16 %v204_v16, %v204_v16  ;;  %v70_v11 = vld [vmem:[#allocation3 + $0x10] sm:$0xff]  ;;  %v71_v12 = vld [vmem:[#allocation3 + $0x18] sm:$0xff] }
  0x1f   :  { %899 = vmatpush.bf16.xpose.msra.mxu2 %v888_v2  ;;  %v887_v29 = vpack.c.b16 %v881_v15, %v880_v14  ;;  %v461_v30 = vpack.c.bf16 %v205_v19, %v205_v19  ;;  %v468_v31 = vpack.c.bf16 %v212_v20, %v212_v20  ;;  %v469_v32 = vpack.c.bf16 %v213_v21, %v213_v21  ;;  %v102_v14 = vld [vmem:[#allocation3 + $0x110] sm:$0xff]  ;;  %v103_v15 = vld [vmem:[#allocation3 + $0x118] sm:$0xff] }
  0x20   :  { %1020 = vmatpush.bf16.xpose.msra.mxu3 %v1009_v5  ;;  %v636_v33 = vunpack.c.l.b16 %v452_v17  ;;  %v637_v34 = vunpack.c.l.b16 %v453_v18  ;;  %v1008_v35 = vpack.c.b16 %v1002_v23, %v1001_v22  ;;  %v476_v36 = vpack.c.bf16 %v220_v27, %v220_v27  ;;  %v118_v18 = vld [vmem:[#allocation3 + $0x190] sm:$0xff]  ;;  %v87_v22 = vld [vmem:[#allocation3 + $0x98] sm:$0xff] }
  0x21   :  { %v477_v37 = vpack.c.bf16 %v221_v28, %v221_v28  ;;  %v757_v41 = vunpack.c.l.b16 %v460_v26  ;;  %v758_v42 = vunpack.c.l.b16 %v461_v30  ;;  %v878_v43 = vunpack.c.l.b16 %v468_v31  ;;  %v86_v19 = vld [vmem:[#allocation3 + $0x90] sm:$0xff]  ;;  %v119_v23 = vld [vmem:[#allocation3 + $0x198] sm:$0xff] }
  0x22   :  { %v879_v44 = vunpack.c.l.b16 %v469_v32  ;;  %v644_v48 = vpack.c.b16 %v637_v34, %v636_v33  ;;  %v999_v49 = vunpack.c.l.b16 %v476_v36  ;;  %v324_v51 = vpack.c.bf16 %v68_v38, %v68_v38  ;;  %v242_v30 = vld [vmem:[#allocation6 + $0x170] sm:$0xff]  ;;  %v243_v31 = vld [vmem:[#allocation6 + $0x178] sm:$0xff] }
  0x23   :  { %v1000_v50 = vunpack.c.l.b16 %v477_v37  ;;  %v325_v52 = vpack.c.bf16 %v69_v39, %v69_v39  ;;  %v340_v55 = vpack.c.bf16 %v84_v40, %v84_v40  ;;  %v341_v56 = vpack.c.bf16 %v85_v45, %v85_v45  ;;  %v250_v36 = vld [vmem:[#allocation6 + $0x1b0] sm:$0xff]  ;;  %v251_v37 = vld [vmem:[#allocation6 + $0x1b8] sm:$0xff] }
  0x24   :  { %v356_v57 = vpack.c.bf16 %v100_v46, %v100_v46  ;;  %v357_v58 = vpack.c.bf16 %v101_v47, %v101_v47  ;;  %v765_v59 = vpack.c.b16 %v758_v42, %v757_v41  ;;  %v886_v60 = vpack.c.b16 %v879_v44, %v878_v43  ;;  %v258_v38 = vld [vmem:[#allocation6 + $0x1f0] sm:$0xff]  ;;  %v259_v43 = vld [vmem:[#allocation6 + $0x1f8] sm:$0xff] }
  0x25   :  { %658 = vmatpush.bf16.xpose.msra.mxu0 %v645_v24  ;;  %v372_v61 = vpack.c.bf16 %v116_v53, %v116_v53  ;;  %v373_v62 = vpack.c.bf16 %v117_v54, %v117_v54  ;;  %v1007_v63 = vpack.c.b16 %v1000_v50, %v999_v49  ;;  %v596_v0 = vunpack.c.l.b16 %v324_v51  ;;  %v234_v24 = vld [vmem:[#allocation6 + $0x130] sm:$0xff] }
  0x26   :  { %779 = vmatpush.bf16.xpose.msra.mxu1 %v766_v25  ;;  %v597_v1 = vunpack.c.l.b16 %v325_v52  ;;  %v717_v2 = vunpack.c.l.b16 %v340_v55  ;;  %v718_v3 = vunpack.c.l.b16 %v341_v56  ;;  %v838_v4 = vunpack.c.l.b16 %v356_v57 }
  0x27   :  { %900 = vmatpush.bf16.xpose.msra.mxu2 %v887_v29  ;;  %v839_v5 = vunpack.c.l.b16 %v357_v58  ;;  %v959_v6 = vunpack.c.l.b16 %v372_v61  ;;  %v960_v7 = vunpack.c.l.b16 %v373_v62  ;;  %v326_v16 = vpack.c.bf16 %v70_v11, %v70_v11  ;;  %v235_v29 = vld [vmem:[#allocation6 + $0x138] sm:$0xff]  ;;  %v233_v11 = vld [vmem:[#allocation6 + $0x128] sm:$0xff] }
  0x28   :  { %1021 = vmatpush.bf16.xpose.msra.mxu3 %v1008_v35  ;;  %v612_v8 = vpack.c.b16 %v597_v1, %v596_v0  ;;  %v733_v9 = vpack.c.b16 %v718_v3, %v717_v2  ;;  %v327_v17 = vpack.c.bf16 %v71_v12, %v71_v12  ;;  %v358_v20 = vpack.c.bf16 %v102_v14, %v102_v14 }
  0x29   :  { %v854_v10 = vpack.c.b16 %v839_v5, %v838_v4  ;;  %v975_v13 = vpack.c.b16 %v960_v7, %v959_v6  ;;  %v359_v21 = vpack.c.bf16 %v103_v15, %v103_v15  ;;  %v598_v25 = vunpack.c.l.b16 %v326_v16  ;;  %v72_v4 = vld [vmem:[#allocation3 + $0x20] sm:$0xff]  ;;  %v73_v5 = vld [vmem:[#allocation3 + $0x28] sm:$0xff] }
  0x2a   :  { %v599_v26 = vunpack.c.l.b16 %v327_v17  ;;  %v374_v27 = vpack.c.bf16 %v118_v18, %v118_v18  ;;  %v342_v28 = vpack.c.bf16 %v86_v19, %v86_v19  ;;  %v343_v32 = vpack.c.bf16 %v87_v22, %v87_v22  ;;  %v104_v6 = vld [vmem:[#allocation3 + $0x120] sm:$0xff]  ;;  %v105_v7 = vld [vmem:[#allocation3 + $0x128] sm:$0xff] }
  0x2b   :  { %v490_v33 = vpack.c.bf16 %v234_v24, %v234_v24  ;;  %v491_v34 = vpack.c.bf16 %v235_v29, %v235_v29  ;;  %v498_v35 = vpack.c.bf16 %v242_v30, %v242_v30  ;;  %v840_v39 = vunpack.c.l.b16 %v358_v20  ;;  %v120_v15 = vld [vmem:[#allocation3 + $0x1a0] sm:$0xff]  ;;  %v121_v16 = vld [vmem:[#allocation3 + $0x1a8] sm:$0xff] }
  0x2c   :  { %v841_v40 = vunpack.c.l.b16 %v359_v21  ;;  %v375_v41 = vpack.c.bf16 %v119_v23, %v119_v23  ;;  %v499_v42 = vpack.c.bf16 %v243_v31, %v243_v31  ;;  %v506_v47 = vpack.c.bf16 %v250_v36, %v250_v36 }
  0x2d   :  { %659 = vmatpush.bf16.xpose.msra.mxu0 %v644_v48  ;;  %v1126_v44 = vunpack.c.l.b16 %v490_v33  ;;  %v1127_v45 = vunpack.c.l.b16 %v491_v34  ;;  %v1247_v46 = vunpack.c.l.b16 %v498_v35  ;;  %v719_v48 = vunpack.c.l.b16 %v342_v28 }
  0x2e   :  { %780 = vmatpush.bf16.xpose.msra.mxu1 %v765_v59  ;;  %v1248_v49 = vunpack.c.l.b16 %v499_v42  ;;  %v507_v50 = vpack.c.bf16 %v251_v37, %v251_v37  ;;  %v514_v51 = vpack.c.bf16 %v258_v38, %v258_v38  ;;  %v720_v52 = vunpack.c.l.b16 %v343_v32  ;;  %v91_v42 = vld [vmem:[#allocation3 + $0xb8] sm:$0xff] }
  0x2f   :  { %901 = vmatpush.bf16.xpose.msra.mxu2 %v886_v60  ;;  %v1131_v53 = vpack.c.b16 %v1127_v45, %v1126_v44  ;;  %v1368_v54 = vunpack.c.l.b16 %v506_v47  ;;  %v515_v55 = vpack.c.bf16 %v259_v43, %v259_v43  ;;  %v961_v59 = vunpack.c.l.b16 %v374_v27  ;;  %v106_v43 = vld [vmem:[#allocation3 + $0x130] sm:$0xff]  ;;  %v240_v47 = vld [vmem:[#allocation6 + $0x160] sm:$0xff] }
  0x30   :  { %1022 = vmatpush.bf16.xpose.msra.mxu3 %v1007_v63  ;;  %v1252_v56 = vpack.c.b16 %v1248_v49, %v1247_v46  ;;  %v1369_v57 = vunpack.c.l.b16 %v507_v50  ;;  %v1489_v58 = vunpack.c.l.b16 %v514_v51  ;;  %v962_v60 = vunpack.c.l.b16 %v375_v41  ;;  %v90_v41 = vld [vmem:[#allocation3 + $0xb0] sm:$0xff]  ;;  %v107_v46 = vld [vmem:[#allocation3 + $0x138] sm:$0xff] }
  0x31   :  { %v1490_v61 = vunpack.c.l.b16 %v515_v55  ;;  %v613_v62 = vpack.c.b16 %v599_v26, %v598_v25  ;;  %v855_v0 = vpack.c.b16 %v841_v40, %v840_v39  ;;  %v734_v1 = vpack.c.b16 %v720_v52, %v719_v48  ;;  %v74_v39 = vld [vmem:[#allocation3 + $0x30] sm:$0xff]  ;;  %v75_v40 = vld [vmem:[#allocation3 + $0x38] sm:$0xff]  ;;  %v241_v48 = vld [vmem:[#allocation6 + $0x168] sm:$0xff] }
  0x32   :  { %v1373_v63 = vpack.c.b16 %v1369_v57, %v1368_v54  ;;  %v976_v3 = vpack.c.b16 %v962_v60, %v961_v59  ;;  %v328_v12 = vpack.c.bf16 %v72_v4, %v72_v4  ;;  %v360_v14 = vpack.c.bf16 %v104_v6, %v104_v6  ;;  %v122_v49 = vld [vmem:[#allocation3 + $0x1b0] sm:$0xff]  ;;  %v248_v52 = vld [vmem:[#allocation6 + $0x1a0] sm:$0xff]  ;;  %v123_v55 = vld [vmem:[#allocation3 + $0x1b8] sm:$0xff] }
  0x33   :  { %v1494_v2 = vpack.c.b16 %v1490_v61, %v1489_v58  ;;  %v361_v18 = vpack.c.bf16 %v105_v7, %v105_v7  ;;  %v489_v21 = vpack.c.bf16 %v233_v11, %v233_v11  ;;  %v376_v23 = vpack.c.bf16 %v120_v15, %v120_v15  ;;  %v256_v57 = vld [vmem:[#allocation6 + $0x1e0] sm:$0xff] }
  0x34   :  { %660 = vmatmul.bf16.vlgmr.msra.gmra.mxu0 %v612_v8  ;;  %v88_v8 = vld [vmem:[#allocation3 + $0xa0] sm:$0xff]  ;;  %v377_v24 = vpack.c.bf16 %v121_v16, %v121_v16  ;;  %v600_v26 = vunpack.c.l.b16 %v328_v12  ;;  %v842_v28 = vunpack.c.l.b16 %v360_v14  ;;  %v330_v44 = vpack.c.bf16 %v74_v39, %v74_v39 }
  0x35   :  { %781 = vmatmul.bf16.vlgmr.msra.gmra.mxu1 %v733_v9  ;;  %1140 = vmatpush.bf16.xpose.msrb.mxu0 %v1131_v53  ;;  %v89_v9 = vld [vmem:[#allocation3 + $0xa8] sm:$0xff]  ;;  %v344_v19 = vpack.c.bf16 %v88_v8, %v88_v8  ;;  %v1125_v25 = vunpack.c.l.b16 %v489_v21  ;;  %v843_v29 = vunpack.c.l.b16 %v361_v18  ;;  %v963_v33 = vunpack.c.l.b16 %v376_v23  ;;  %v108_v23 = vld [vmem:[#allocation3 + $0x140] sm:$0xff] }
  0x36   :  { %902 = vmatmul.bf16.vlgmr.msra.gmra.mxu2 %v854_v10  ;;  %1261 = vmatpush.bf16.xpose.msrb.mxu1 %v1252_v56  ;;  %v232_v10 = vld [vmem:[#allocation6 + $0x120] sm:$0xff]  ;;  %v345_v20 = vpack.c.bf16 %v89_v9, %v89_v9  ;;  %v964_v34 = vunpack.c.l.b16 %v377_v24  ;;  %v331_v45 = vpack.c.bf16 %v75_v40, %v75_v40  ;;  %v496_v50 = vpack.c.bf16 %v240_v47, %v240_v47  ;;  %v249_v56 = vld [vmem:[#allocation6 + $0x1a8] sm:$0xff] }
  0x37   :  { %1023 = vmatmul.bf16.vlgmr.msra.gmra.mxu3 %v975_v13  ;;  %1382 = vmatpush.bf16.xpose.msrb.mxu2 %v1373_v63  ;;  %v329_v13 = vpack.c.bf16 %v73_v5, %v73_v5  ;;  %v488_v17 = vpack.c.bf16 %v232_v10, %v232_v10  ;;  %v721_v30 = vunpack.c.l.b16 %v344_v19  ;;  %v856_v36 = vpack.c.b16 %v843_v29, %v842_v28  ;;  %v109_v24 = vld [vmem:[#allocation3 + $0x148] sm:$0xff] }
  0x38   :  { %1503 = vmatpush.bf16.xpose.msrb.mxu3 %v1494_v2  ;;  %v722_v31 = vunpack.c.l.b16 %v345_v20  ;;  %v977_v38 = vpack.c.b16 %v964_v34, %v963_v33  ;;  %v497_v51 = vpack.c.bf16 %v241_v48, %v241_v48  ;;  %v346_v53 = vpack.c.bf16 %v90_v41, %v90_v41  ;;  %v124_v34 = vld [vmem:[#allocation3 + $0x1c0] sm:$0xff]  ;;  %v231_v41 = vld [vmem:[#allocation6 + $0x118] sm:$0xff]  ;;  %v246_v48 = vld [vmem:[#allocation6 + $0x190] sm:$0xff] }
  0x39   :  { %v1124_v22 = vunpack.c.l.b16 %v488_v17  ;;  %v601_v27 = vunpack.c.l.b16 %v329_v13  ;;  %v347_v54 = vpack.c.bf16 %v91_v42, %v91_v42  ;;  %v362_v58 = vpack.c.bf16 %v106_v43, %v106_v43  ;;  %v238_v42 = vld [vmem:[#allocation6 + $0x150] sm:$0xff]  ;;  %v239_v43 = vld [vmem:[#allocation6 + $0x158] sm:$0xff] }
  0x3a   :  { %v735_v37 = vpack.c.b16 %v722_v31, %v721_v30  ;;  %v363_v59 = vpack.c.bf16 %v107_v46, %v107_v46  ;;  %v1245_v60 = vunpack.c.l.b16 %v496_v50  ;;  %v1246_v61 = vunpack.c.l.b16 %v497_v51  ;;  %v92_v31 = vld [vmem:[#allocation3 + $0xc0] sm:$0xff]  ;;  %v254_v50 = vld [vmem:[#allocation6 + $0x1d0] sm:$0xff] }
  0x3b   :  { %v1130_v32 = vpack.c.b16 %v1125_v25, %v1124_v22  ;;  %v614_v35 = vpack.c.b16 %v601_v27, %v600_v26  ;;  %v602_v63 = vunpack.c.l.b16 %v330_v44  ;;  %v505_v2 = vpack.c.bf16 %v249_v56, %v249_v56  ;;  %v76_v25 = vld [vmem:[#allocation3 + $0x40] sm:$0xff]  ;;  %v77_v27 = vld [vmem:[#allocation3 + $0x48] sm:$0xff] }
  0x3c   :  { %v379_v4 = vpack.c.bf16 %v123_v55, %v123_v55  ;;  %v1251_v5 = vpack.c.b16 %v1246_v61, %v1245_v60  ;;  %v512_v6 = vpack.c.bf16 %v256_v57, %v256_v57  ;;  %v723_v7 = vunpack.c.l.b16 %v346_v53  ;;  %v255_v55 = vld [vmem:[#allocation6 + $0x1d8] sm:$0xff] }
  0x3d   :  { %1141 = vmatpush.bf16.xpose.msrb.mxu0 %v1130_v32  ;;  %v1367_v9 = vunpack.c.l.b16 %v505_v2  ;;  %v724_v11 = vunpack.c.l.b16 %v347_v54  ;;  %v844_v12 = vunpack.c.l.b16 %v362_v58  ;;  %v845_v13 = vunpack.c.l.b16 %v363_v59  ;;  %v93_v32 = vld [vmem:[#allocation3 + $0xc8] sm:$0xff] }
  0x3e   :  { %1262 = vmatpush.bf16.xpose.msrb.mxu1 %v1251_v5  ;;  %v1487_v14 = vunpack.c.l.b16 %v512_v6  ;;  %v966_v18 = vunpack.c.l.b16 %v379_v4  ;;  %v364_v28 = vpack.c.bf16 %v108_v23, %v108_v23  ;;  %v365_v29 = vpack.c.bf16 %v109_v24, %v109_v24  ;;  %v126_v24 = vld [vmem:[#allocation3 + $0x1d0] sm:$0xff] }
  0x3f   :  { %v736_v21 = vpack.c.b16 %v724_v11, %v723_v7  ;;  %v857_v22 = vpack.c.b16 %v845_v13, %v844_v12  ;;  %v332_v30 = vpack.c.bf16 %v76_v25, %v76_v25  ;;  %v333_v33 = vpack.c.bf16 %v77_v27, %v77_v27  ;;  %v127_v25 = vld [vmem:[#allocation3 + $0x1d8] sm:$0xff] }
  0x40   :  { %v348_v39 = vpack.c.bf16 %v92_v31, %v92_v31  ;;  %v349_v40 = vpack.c.bf16 %v93_v32, %v93_v32  ;;  %v487_v46 = vpack.c.bf16 %v231_v41, %v231_v41  ;;  %v494_v47 = vpack.c.bf16 %v238_v42, %v238_v42 }
  0x41   :  { %v604_v44 = vunpack.c.l.b16 %v332_v30  ;;  %v605_v51 = vunpack.c.l.b16 %v333_v33  ;;  %v495_v54 = vpack.c.bf16 %v239_v43, %v239_v43  ;;  %v502_v59 = vpack.c.bf16 %v246_v48, %v246_v48 }
  0x42   :  { %v1123_v57 = vunpack.c.l.b16 %v487_v46  ;;  %v1243_v58 = vunpack.c.l.b16 %v494_v47  ;;  %v725_v60 = vunpack.c.l.b16 %v348_v39  ;;  %v382_v30 = vpack.c.bf16 %v126_v24, %v126_v24  ;;  %v96_v46 = vld [vmem:[#allocation3 + $0xe0] sm:$0xff] }
  0x43   :  { %v1244_v61 = vunpack.c.l.b16 %v495_v54  ;;  %v1364_v2 = vunpack.c.l.b16 %v502_v59  ;;  %v383_v31 = vpack.c.bf16 %v127_v25, %v127_v25  ;;  %v128_v54 = vld [vmem:[#allocation3 + $0x1e0] sm:$0xff] }
  0x44   :  { %665 = vmatmul.bf16.gmra.mxu0 %v613_v62  ;;  %v257_v62 = vld [vmem:[#allocation6 + $0x1e8] sm:$0xff] }
  0x45   :  { %786 = vmatmul.bf16.gmra.mxu1 %v734_v1  ;;  %v504_v1 = vpack.c.bf16 %v248_v52, %v248_v52  ;;  %v513_v10 = vpack.c.bf16 %v257_v62, %v257_v62  ;;  %v380_v52 = vpack.c.bf16 %v124_v34, %v124_v34  ;;  %v1250_v4 = vpack.c.b16 %v1244_v61, %v1243_v58  ;;  %v129_v58 = vld [vmem:[#allocation3 + $0x1e8] sm:$0xff] }
  0x46   :  { %907 = vmatmul.bf16.gmra.mxu2 %v855_v0  ;;  %v603_v0 = vunpack.c.l.b16 %v331_v45  ;;  %v970_v39 = vunpack.c.l.b16 %v383_v31  ;;  %v131_v31 = vld [vmem:[#allocation3 + $0x1f8] sm:$0xff] }
  0x47   :  { %1028 = vmatmul.bf16.gmra.mxu3 %v976_v3  ;;  %v378_v3 = vpack.c.bf16 %v122_v49, %v122_v49  ;;  %v1366_v8 = vunpack.c.l.b16 %v504_v1  ;;  %v1488_v16 = vunpack.c.l.b16 %v513_v10  ;;  %v247_v49 = vld [vmem:[#allocation6 + $0x198] sm:$0xff]  ;;  %v967_v7 = vunpack.c.l.b16 %v380_v52  ;;  %1263 = vmatpush.bf16.xpose.msrb.mxu1 %v1250_v4  ;;  %v112_v52 = vld [vmem:[#allocation3 + $0x160] sm:$0xff] }
  0x48   :  { %v615_v19 = vpack.c.b16 %v603_v0, %v602_v63  ;;  %v503_v62 = vpack.c.bf16 %v247_v49, %v247_v49  ;;  %v510_v63 = vpack.c.bf16 %v254_v50, %v254_v50  ;;  %v726_v0 = vunpack.c.l.b16 %v349_v40  ;;  %v97_v49 = vld [vmem:[#allocation3 + $0xe8] sm:$0xff] }
  0x49   :  { %v1372_v15 = vpack.c.b16 %v1367_v9, %v1366_v8  ;;  %v965_v17 = vunpack.c.l.b16 %v378_v3  ;;  %v1493_v20 = vpack.c.b16 %v1488_v16, %v1487_v14  ;;  %v511_v3 = vpack.c.bf16 %v255_v55, %v255_v55  ;;  %v78_v16 = vld [vmem:[#allocation3 + $0x50] sm:$0xff] }
  0x4a   :  { %v1365_v5 = vunpack.c.l.b16 %v503_v62  ;;  %v1485_v6 = vunpack.c.l.b16 %v510_v63  ;;  %v616_v10 = vpack.c.b16 %v605_v51, %v604_v44  ;;  %v737_v13 = vpack.c.b16 %v726_v0, %v725_v60  ;;  %v80_v44 = vld [vmem:[#allocation3 + $0x60] sm:$0xff] }
  0x4b   :  { %1383 = vmatpush.bf16.xpose.msrb.mxu2 %v1372_v15  ;;  %1504 = vmatpush.bf16.xpose.msrb.mxu3 %v1493_v20  ;;  %v978_v26 = vpack.c.b16 %v966_v18, %v965_v17  ;;  %v1486_v9 = vunpack.c.l.b16 %v511_v3  ;;  %v79_v17 = vld [vmem:[#allocation3 + $0x58] sm:$0xff]  ;;  %v110_v18 = vld [vmem:[#allocation3 + $0x150] sm:$0xff]  ;;  %v336_v47 = vpack.c.bf16 %v80_v44, %v80_v44  ;;  %v352_v50 = vpack.c.bf16 %v96_v46, %v96_v46 }
  0x4c   :  { %v1371_v11 = vpack.c.b16 %v1365_v5, %v1364_v2  ;;  %v94_v20 = vld [vmem:[#allocation3 + $0xd0] sm:$0xff]  ;;  %v335_v23 = vpack.c.bf16 %v79_v17, %v79_v17  ;;  %v353_v51 = vpack.c.bf16 %v97_v49, %v97_v49  ;;  %v368_v60 = vpack.c.bf16 %v112_v52, %v112_v52  ;;  %v244_v49 = vld [vmem:[#allocation6 + $0x180] sm:$0xff] }
  0x4d   :  { %v1492_v14 = vpack.c.b16 %v1486_v9, %v1485_v6  ;;  %v608_v55 = vunpack.c.l.b16 %v336_v47  ;;  %v384_v62 = vpack.c.bf16 %v128_v54, %v128_v54  ;;  %v385_v0 = vpack.c.bf16 %v129_v58, %v129_v58  ;;  %v115_v9 = vld [vmem:[#allocation3 + $0x178] sm:$0xff] }
  0x4e   :  { %v607_v33 = vunpack.c.l.b16 %v335_v23  ;;  %v730_v59 = vunpack.c.l.b16 %v353_v51  ;;  %v850_v2 = vunpack.c.l.b16 %v368_v60  ;;  %v98_v23 = vld [vmem:[#allocation3 + $0xf0] sm:$0xff]  ;;  %v252_v51 = vld [vmem:[#allocation6 + $0x1c0] sm:$0xff]  ;;  %v6858_v52 = vstv %s12145_s0  ;;  %s6811_s0 = smov [#allocation9]  }
  0x4f   :  { %v971_v4 = vunpack.c.l.b16 %v384_v62  ;;  %v972_v5 = vunpack.c.l.b16 %v385_v0  ;;  %s6106_s5 = sshll.u32 %s6811_s0, 4  ;;  %s6107_s5 = int_to_ptr.vmem [resolvable:$true] %s6106_s5 }
  0x53   :  { %1384 = vmatpush.bf16.xpose.msrb.mxu2 %v1371_v11  ;;  %1505 = vmatpush.bf16.xpose.msrb.mxu3 %v1492_v14  ;;  %v371_v11 = vpack.c.bf16 %v115_v9, %v115_v9 }
  0x54   :  { %670 = vmatmul.bf16.gmra.mxu0 %v614_v35  ;;  %v125_v35 = vld [vmem:[#allocation3 + $0x1c8] sm:$0xff] }
  0x55   :  { %791 = vmatmul.bf16.gmra.mxu1 %v735_v37  ;;  %v846_v37 = vunpack.c.l.b16 %v364_v28  ;;  %v381_v53 = vpack.c.bf16 %v125_v35, %v125_v35  ;;  %v350_v28 = vpack.c.bf16 %v94_v20, %v94_v20 }
  0x56   :  { %912 = vmatmul.bf16.gmra.mxu2 %v856_v36  ;;  %v230_v36 = vld [vmem:[#allocation6 + $0x110] sm:$0xff] }
  0x57   :  { %1033 = vmatmul.bf16.gmra.mxu3 %v977_v38  ;;  %v847_v38 = vunpack.c.l.b16 %v365_v29  ;;  %v486_v45 = vpack.c.bf16 %v230_v36, %v230_v36  ;;  %v968_v8 = vunpack.c.l.b16 %v381_v53  ;;  %v727_v36 = vunpack.c.l.b16 %v350_v28  ;;  %v113_v53 = vld [vmem:[#allocation3 + $0x168] sm:$0xff] }
  0x58   :  { %v369_v61 = vpack.c.bf16 %v113_v53, %v113_v53  ;;  %v500_v53 = vpack.c.bf16 %v244_v49, %v244_v49 }
  0x59   :  { %v1122_v56 = vunpack.c.l.b16 %v486_v45  ;;  %v858_v12 = vpack.c.b16 %v847_v38, %v846_v37  ;;  %v979_v15 = vpack.c.b16 %v968_v8, %v967_v7  ;;  %v969_v38 = vunpack.c.l.b16 %v382_v30  ;;  %v81_v45 = vld [vmem:[#allocation3 + $0x68] sm:$0xff]  ;;  %v114_v8 = vld [vmem:[#allocation3 + $0x170] sm:$0xff] }
  0x5a   :  { %v337_v48 = vpack.c.bf16 %v81_v45, %v81_v45  ;;  %v851_v3 = vunpack.c.l.b16 %v369_v61  ;;  %v981_v7 = vpack.c.b16 %v972_v5, %v971_v4  ;;  %v130_v30 = vld [vmem:[#allocation3 + $0x1f0] sm:$0xff]  ;;  %v1362_v60 = vunpack.c.l.b16 %v500_v53 }
  0x5b   :  { %v1129_v1 = vpack.c.b16 %v1123_v57, %v1122_v56  ;;  %v980_v43 = vpack.c.b16 %v970_v39, %v969_v38  ;;  %v729_v57 = vunpack.c.l.b16 %v352_v50  ;;  %v236_v39 = vld [vmem:[#allocation6 + $0x140] sm:$0xff]  ;;  %v245_v50 = vld [vmem:[#allocation6 + $0x188] sm:$0xff] }
  0x5c   :  { %v609_v56 = vunpack.c.l.b16 %v337_v48  ;;  %v860_v6 = vpack.c.b16 %v851_v3, %v850_v2  ;;  %v501_v54 = vpack.c.bf16 %v245_v50, %v245_v50 }
  0x5d   :  { %1142 = vmatpush.bf16.xpose.msrb.mxu0 %v1129_v1  ;;  %v739_v1 = vpack.c.b16 %v730_v59, %v729_v57 }
  0x5e   :  { %v618_v63 = vpack.c.b16 %v609_v56, %v608_v55  ;;  %v253_v55 = vld [vmem:[#allocation6 + $0x1c8] sm:$0xff]  ;;  %v508_v56 = vpack.c.bf16 %v252_v51, %v252_v51  ;;  %v1363_v61 = vunpack.c.l.b16 %v501_v54 }
  0x5f   :  { %v509_v58 = vpack.c.bf16 %v253_v55, %v253_v55 }
  0x60   :  { %v1483_v62 = vunpack.c.l.b16 %v508_v56  ;;  %v1370_v3 = vpack.c.b16 %v1363_v61, %v1362_v60 }
  0x62   :  { %1385 = vmatpush.bf16.xpose.msrb.mxu2 %v1370_v3 }
  0x64   :  { %675 = vmatmul.bf16.gmra.mxu0 %v615_v19  ;;  %v111_v19 = vld [vmem:[#allocation3 + $0x158] sm:$0xff] }
  0x65   :  { %796 = vmatmul.bf16.gmra.mxu1 %v736_v21  ;;  %v95_v21 = vld [vmem:[#allocation3 + $0xd8] sm:$0xff]  ;;  %v367_v27 = vpack.c.bf16 %v111_v19, %v111_v19 }
  0x66   :  { %917 = vmatmul.bf16.gmra.mxu2 %v857_v22  ;;  %v334_v22 = vpack.c.bf16 %v78_v16, %v78_v16  ;;  %v351_v29 = vpack.c.bf16 %v95_v21, %v95_v21  ;;  %v82_v21 = vld [vmem:[#allocation3 + $0x70] sm:$0xff] }
  0x67   :  { %1038 = vmatmul.bf16.gmra.mxu3 %v978_v26  ;;  %v366_v26 = vpack.c.bf16 %v110_v18, %v110_v18  ;;  %v849_v35 = vunpack.c.l.b16 %v367_v27  ;;  %v338_v24 = vpack.c.bf16 %v82_v21, %v82_v21  ;;  %v354_v27 = vpack.c.bf16 %v98_v23, %v98_v23  ;;  %v149_v23 = vld [vmem:[#allocation3 + $0x288] sm:$0xff] }
  0x68   :  { %v606_v32 = vunpack.c.l.b16 %v334_v22  ;;  %v728_v37 = vunpack.c.l.b16 %v351_v29  ;;  %v83_v22 = vld [vmem:[#allocation3 + $0x78] sm:$0xff] }
  0x69   :  { %v848_v34 = vunpack.c.l.b16 %v366_v26  ;;  %v339_v25 = vpack.c.bf16 %v83_v22, %v83_v22  ;;  %v99_v26 = vld [vmem:[#allocation3 + $0xf8] sm:$0xff]  ;;  %v148_v22 = vld [vmem:[#allocation3 + $0x280] sm:$0xff] }
  0x6a   :  { %v617_v40 = vpack.c.b16 %v607_v33, %v606_v32  ;;  %v738_v42 = vpack.c.b16 %v728_v37, %v727_v36  ;;  %v355_v29 = vpack.c.bf16 %v99_v26, %v99_v26  ;;  %v610_v32 = vunpack.c.l.b16 %v338_v24 }
  0x6b   :  { %v859_v41 = vpack.c.b16 %v849_v35, %v848_v34  ;;  %v611_v33 = vunpack.c.l.b16 %v339_v25  ;;  %v731_v34 = vunpack.c.l.b16 %v354_v27  ;;  %v386_v35 = vpack.c.bf16 %v130_v30, %v130_v30  ;;  %v180_v30 = vld [vmem:[#allocation3 + $0x380] sm:$0xff] }
  0x6c   :  { %v732_v36 = vunpack.c.l.b16 %v355_v29  ;;  %v387_v37 = vpack.c.bf16 %v131_v31, %v131_v31  ;;  %v404_v25 = vpack.c.bf16 %v148_v22, %v148_v22  ;;  %v405_v26 = vpack.c.bf16 %v149_v23, %v149_v23  ;;  %v165_v29 = vld [vmem:[#allocation3 + $0x308] sm:$0xff] }
  0x6d   :  { %v619_v38 = vpack.c.b16 %v611_v33, %v610_v32 }
  0x6e   :  { %v974_v45 = vunpack.c.l.b16 %v387_v37  ;;  %v1201_v32 = vunpack.c.l.b16 %v404_v25  ;;  %v1202_v33 = vunpack.c.l.b16 %v405_v26 }
  0x74   :  { %680 = vmatmul.bf16.gmra.mxu0 %v616_v10  ;;  %v370_v10 = vpack.c.bf16 %v114_v8, %v114_v8  ;;  %v133_v8 = vld [vmem:[#allocation3 + $0x208] sm:$0xff] }
  0x75   :  { %801 = vmatmul.bf16.gmra.mxu1 %v737_v13  ;;  %v229_v13 = vld [vmem:[#allocation6 + $0x108] sm:$0xff] }
  0x76   :  { %922 = vmatmul.bf16.gmra.mxu2 %v858_v12  ;;  %v228_v12 = vld [vmem:[#allocation6 + $0x100] sm:$0xff]  ;;  %v852_v14 = vunpack.c.l.b16 %v370_v10  ;;  %v485_v17 = vpack.c.bf16 %v229_v13, %v229_v13  ;;  %v389_v10 = vpack.c.bf16 %v133_v8, %v133_v8 }
  0x77   :  { %1043 = vmatmul.bf16.gmra.mxu3 %v979_v15  ;;  %v853_v15 = vunpack.c.l.b16 %v371_v11  ;;  %v484_v16 = vpack.c.bf16 %v228_v12, %v228_v12 }
  0x78   :  { %v1121_v20 = vunpack.c.l.b16 %v485_v17 }
  0x79   :  { %v861_v18 = vpack.c.b16 %v853_v15, %v852_v14  ;;  %v1120_v19 = vunpack.c.l.b16 %v484_v16  ;;  %v1081_v15 = vunpack.c.l.b16 %v389_v10 }
  0x7b   :  { %v1128_v28 = vpack.c.b16 %v1121_v20, %v1120_v19 }
  0x7d   :  { %1143 = vmatpush.bf16.xpose.msrb.mxu0 %v1128_v28  ;;  %v164_v28 = vld [vmem:[#allocation3 + $0x300] sm:$0xff] }
  0x84   :  { %685 = vmatmul.bf16.gmra.mxu0 %v617_v40  ;;  %v237_v40 = vld [vmem:[#allocation6 + $0x148] sm:$0xff] }
  0x85   :  { %806 = vmatmul.bf16.gmra.mxu1 %v738_v42  ;;  %v740_v42 = vpack.c.b16 %v732_v36, %v731_v34  ;;  %v493_v44 = vpack.c.bf16 %v237_v40, %v237_v40  ;;  %v420_v34 = vpack.c.bf16 %v164_v28, %v164_v28 }
  0x86   :  { %927 = vmatmul.bf16.gmra.mxu2 %v859_v41  ;;  %v973_v41 = vunpack.c.l.b16 %v386_v35  ;;  %v181_v35 = vld [vmem:[#allocation3 + $0x388] sm:$0xff] }
  0x87   :  { %1048 = vmatmul.bf16.gmra.mxu3 %v980_v43  ;;  %v492_v43 = vpack.c.bf16 %v236_v39, %v236_v39  ;;  %v1242_v47 = vunpack.c.l.b16 %v493_v44  ;;  %v436_v39 = vpack.c.bf16 %v180_v30, %v180_v30  ;;  %v437_v40 = vpack.c.bf16 %v181_v35, %v181_v35  ;;  %v134_v30 = vld [vmem:[#allocation3 + $0x210] sm:$0xff] }
  0x88   :  { %v982_v48 = vpack.c.b16 %v974_v45, %v973_v41  ;;  %v1322_v44 = vunpack.c.l.b16 %v420_v34 }
  0x89   :  { %v1241_v46 = vunpack.c.l.b16 %v492_v43  ;;  %v1217_v43 = vpack.c.b16 %v1202_v33, %v1201_v32  ;;  %v1444_v49 = vunpack.c.l.b16 %v437_v40  ;;  %v135_v32 = vld [vmem:[#allocation3 + $0x218] sm:$0xff]  ;;  %v150_v33 = vld [vmem:[#allocation3 + $0x290] sm:$0xff] }
  0x8b   :  { %v1249_v57 = vpack.c.b16 %v1242_v47, %v1241_v46  ;;  %v1443_v46 = vunpack.c.l.b16 %v436_v39  ;;  %v406_v39 = vpack.c.bf16 %v150_v33, %v150_v33 }
  0x8d   :  { %1264 = vmatpush.bf16.xpose.msrb.mxu1 %v1249_v57  ;;  %v1459_v53 = vpack.c.b16 %v1444_v49, %v1443_v46 }
  0x94   :  { %690 = vmatmul.bf16.gmra.mxu0 %v618_v63 }
  0x95   :  { %811 = vmatmul.bf16.gmra.mxu1 %v739_v1  ;;  %v1484_v1 = vunpack.c.l.b16 %v509_v58 }
  0x96   :  { %932 = vmatmul.bf16.gmra.mxu2 %v860_v6 }
  0x97   :  { %1053 = vmatmul.bf16.gmra.mxu3 %v981_v7  ;;  %v1491_v5 = vpack.c.b16 %v1484_v1, %v1483_v62  ;;  %v132_v7 = vld [vmem:[#allocation3 + $0x200] sm:$0xff] }
  0x98   :  { %v388_v9 = vpack.c.bf16 %v132_v7, %v132_v7 }
  0x99   :  { %1506 = vmatpush.bf16.xpose.msrb.mxu3 %v1491_v5 }
  0x9a   :  { %v1080_v14 = vunpack.c.l.b16 %v388_v9 }
  0x9c   :  { %v1096_v19 = vpack.c.b16 %v1081_v15, %v1080_v14 }
  0xa4   :  { %695 = vmatmul.bf16.gmra.mxu0 %v619_v38  ;;  %v421_v38 = vpack.c.bf16 %v165_v29, %v165_v29 }
  0xa5   :  { %816 = vmatmul.bf16.gmra.mxu1 %v740_v42 }
  0xa6   :  { %937 = vmatmul.bf16.gmra.mxu2 %v861_v18  ;;  %v1323_v45 = vunpack.c.l.b16 %v421_v38  ;;  %v151_v38 = vld [vmem:[#allocation3 + $0x298] sm:$0xff] }
  0xa7   :  { %1058 = vmatmul.bf16.gmra.mxu3 %v982_v48  ;;  %v407_v40 = vpack.c.bf16 %v151_v38, %v151_v38 }
  0xa8   :  { %v1338_v50 = vpack.c.b16 %v1323_v45, %v1322_v44 }
  0xa9   :  { %v1204_v49 = vunpack.c.l.b16 %v407_v40 }
  0xb1   :  { %v661_v59 = vpop.f32.mrf.mxu0 }
  0xb2   :  { %v6861_v63 = vmul.f32 %v6858_v52, %v661_v59  ;;  %v782_v0 = vpop.f32.mrf.mxu1 }
  0xb3   :  { %v6864_v2 = vmul.f32 %v6858_v52, %v782_v0 }
  0xb4   :  { %v1678_v4 = vsel %vm1677_vm0, %v6861_v63, -inf  ;;  %1144 = vmatmul.bf16.vlgmr.msrb.gmra.mxu0 %v1096_v19 }
  0xb5   :  { %v1726_v6 = vsel %vm1677_vm0, %v6864_v2, -inf  ;;  %1679 = vmax.xlane.f32.xlu0 %v1678_v4  ;;  %1265 = vmatmul.bf16.vlgmr.msrb.gmra.mxu1 %v1217_v43  ;;  %v167_v43 = vld [vmem:[#allocation3 + $0x318] sm:$0xff] }
  0xb6   :  { %1727 = vmax.xlane.f32.xlu1 %v1726_v6  ;;  %1386 = vmatmul.bf16.vlgmr.msrb.gmra.mxu2 %v1338_v50 }
  0xb7   :  { %1507 = vmatmul.bf16.vlgmr.msrb.gmra.mxu3 %v1459_v53  ;;  %v423_v53 = vpack.c.bf16 %v167_v43, %v167_v43 }
  0xb9   :  { %v903_v11 = vpop.f32.mrf.mxu2  ;;  %v663_v13 = vpop.f32.mrf.mxu0 }
  0xba   :  { %v6871_v12 = vmul.f32 %v6858_v52, %v903_v11  ;;  %v1024_v16 = vpop.f32.mrf.mxu3  ;;  %v784_v20 = vpop.f32.mrf.mxu1  ;;  %v6884_v31 = vmul.f32 %v6858_v52, %v663_v13 }
  0xbb   :  { %v6874_v17 = vmul.f32 %v6858_v52, %v1024_v16  ;;  %v6881_v24 = vmul.f32 %v6858_v52, %v784_v20 }
  0xbc   :  { %v1774_v18 = vsel %vm1677_vm0, %v6871_v12, -inf  ;;  %v1681_v48 = vsel %vm1677_vm0, %v6884_v31, -inf }
  0xbd   :  { %1775 = vmax.xlane.f32.xlu2 %v1774_v18  ;;  %v1822_v21 = vsel %vm1677_vm0, %v6874_v17, -inf  ;;  %v1729_v42 = vsel %vm1677_vm0, %v6881_v24, -inf }
  0xbe   :  { %1823 = vmax.xlane.f32.xlu0 %v1822_v21 }
  0xc1   :  { %v905_v27 = vpop.f32.mrf.mxu2  ;;  %v666_v37 = vpop.f32.mrf.mxu0 }
  0xc2   :  { %v1026_v36 = vpop.f32.mrf.mxu3  ;;  %v6896_v51 = vmul.f32 %v6858_v52, %v666_v37  ;;  %v787_v55 = vpop.f32.mrf.mxu1  ;;  %v6899_v56 = vmul.f32 %v6858_v52, %v905_v27  ;;  %v391_v37 = vpack.c.bf16 %v135_v32, %v135_v32 }
  0xc3   :  { %v6887_v41 = vmul.f32 %v6858_v52, %v1026_v36  ;;  %v6914_v1 = vmul.f32 %v6858_v52, %v787_v55  ;;  %v390_v36 = vpack.c.bf16 %v134_v30, %v134_v30 }
  0xc4   :  { %v1684_v59 = vsel %vm1677_vm0, %v6896_v51, -inf  ;;  %v1777_v62 = vsel %vm1677_vm0, %v6899_v56, -inf  ;;  %v1083_v46 = vunpack.c.l.b16 %v391_v37 }
  0xc5   :  { %1730 = vmax.xlane.f32.xlu2 %v1729_v42  ;;  %v1825_v47 = vsel %vm1677_vm0, %v6887_v41, -inf  ;;  %v1732_v8 = vsel %vm1677_vm0, %v6914_v1, -inf  ;;  %v166_v42 = vld [vmem:[#allocation3 + $0x310] sm:$0xff]  ;;  %v1082_v45 = vunpack.c.l.b16 %v390_v36 }
  0xc6   :  { %1826 = vmax.xlane.f32.xlu1 %v1825_v47  ;;  %1682 = vmax.xlane.f32.xlu0 %v1681_v48  ;;  %v1203_v47 = vunpack.c.l.b16 %v406_v39  ;;  %v422_v50 = vpack.c.bf16 %v166_v42, %v166_v42 }
  0xc7   :  { %v1097_v55 = vpack.c.b16 %v1083_v46, %v1082_v45 }
  0xc9   :  { %v908_v54 = vpop.f32.mrf.mxu2  ;;  %v668_v60 = vpop.f32.mrf.mxu0  ;;  %1149 = vmatmul.bf16.gmra.mxu0 %v1097_v55 }
  0xca   :  { %v1029_v57 = vpop.f32.mrf.mxu3  ;;  %v6911_v0 = vmul.f32 %v6858_v52, %v908_v54  ;;  %v789_v5 = vpop.f32.mrf.mxu1  ;;  %v6929_v13 = vmul.f32 %v6858_v52, %v668_v60  ;;  %v1324_v60 = vunpack.c.l.b16 %v422_v50 }
  0xcb   :  { %v6902_v58 = vmul.f32 %v6858_v52, %v1029_v57  ;;  %v6947_v23 = vmul.f32 %v6858_v52, %v789_v5 }
  0xcc   :  { %v1780_v7 = vsel %vm1677_vm0, %v6911_v0, -inf  ;;  %v1687_v18 = vsel %vm1677_vm0, %v6929_v13, -inf }
  0xcd   :  { %v1828_v61 = vsel %vm1677_vm0, %v6902_v58, -inf  ;;  %v1735_v28 = vsel %vm1677_vm0, %v6947_v23, -inf }
  0xce   :  { %1829 = vmax.xlane.f32.xlu2 %v1828_v61  ;;  %1685 = vmax.xlane.f32.xlu1 %v1684_v59  ;;  %v1218_v59 = vpack.c.b16 %v1204_v49, %v1203_v47  ;;  %v1325_v61 = vunpack.c.l.b16 %v423_v53  ;;  %v168_v53 = vld [vmem:[#allocation3 + $0x320] sm:$0xff] }
  0xcf   :  { %1778 = vmax.xlane.f32.xlu0 %v1777_v62 }
  0xd0   :  { %1270 = vmatmul.bf16.gmra.mxu1 %v1218_v59 }
  0xd1   :  { %v910_v3 = vpop.f32.mrf.mxu2  ;;  %v671_v9 = vpop.f32.mrf.mxu0 }
  0xd2   :  { %v6917_v4 = vmul.f32 %v6858_v52, %v910_v3  ;;  %v1031_v10 = vpop.f32.mrf.mxu3  ;;  %v6926_v11 = vmul.f32 %v6858_v52, %v671_v9  ;;  %v792_v16 = vpop.f32.mrf.mxu1 }
  0xd3   :  { %v6932_v14 = vmul.f32 %v6858_v52, %v1031_v10  ;;  %v6941_v20 = vmul.f32 %v6858_v52, %v792_v16 }
  0xd4   :  { %v1783_v6 = vsel %vm1677_vm0, %v6917_v4, -inf  ;;  %v1690_v15 = vsel %vm1677_vm0, %v6926_v11, -inf }
  0xd5   :  { %v1831_v19 = vsel %vm1677_vm0, %v6932_v14, -inf  ;;  %v1738_v25 = vsel %vm1677_vm0, %v6941_v20, -inf }
  0xd6   :  { %1784 = vmax.xlane.f32.xlu2 %v1783_v6  ;;  %1781 = vmax.xlane.f32.xlu1 %v1780_v7  ;;  %v1339_v6 = vpack.c.b16 %v1325_v61, %v1324_v60 }
  0xd7   :  { %1733 = vmax.xlane.f32.xlu0 %v1732_v8 }
  0xd8   :  { %1391 = vmatmul.bf16.gmra.mxu2 %v1339_v6 }
  0xd9   :  { %v913_v21 = vpop.f32.mrf.mxu2  ;;  %v673_v29 = vpop.f32.mrf.mxu0 }
  0xda   :  { %v6944_v22 = vmul.f32 %v6858_v52, %v913_v21  ;;  %v1034_v26 = vpop.f32.mrf.mxu3  ;;  %v794_v35 = vpop.f32.mrf.mxu1  ;;  %v6959_v44 = vmul.f32 %v6858_v52, %v673_v29 }
  0xdb   :  { %v6956_v34 = vmul.f32 %v6858_v52, %v1034_v26  ;;  %v6962_v48 = vmul.f32 %v6858_v52, %v794_v35 }
  0xdc   :  { %v1786_v27 = vsel %vm1677_vm0, %v6944_v22, -inf  ;;  %v1693_v62 = vsel %vm1677_vm0, %v6959_v44, -inf }
  0xdd   :  { %v1834_v54 = vsel %vm1677_vm0, %v6956_v34, -inf  ;;  %v1741_v5 = vsel %vm1677_vm0, %v6962_v48, -inf }
  0xde   :  { %1688 = vmax.xlane.f32.xlu1 %v1687_v18  ;;  %1691 = vmax.xlane.f32.xlu2 %v1690_v15 }
  0xdf   :  { %1832 = vmax.xlane.f32.xlu0 %v1831_v19 }
  0xe1   :  { %v915_v57 = vpop.f32.mrf.mxu2  ;;  %v676_v7 = vpop.f32.mrf.mxu0 }
  0xe2   :  { %v1036_v3 = vpop.f32.mrf.mxu3  ;;  %v6971_v8 = vmul.f32 %v6858_v52, %v676_v7  ;;  %v6974_v9 = vmul.f32 %v6858_v52, %v915_v57  ;;  %v797_v15 = vpop.f32.mrf.mxu1  ;;  %v424_v57 = vpack.c.bf16 %v168_v53, %v168_v53 }
  0xe3   :  { %v6977_v10 = vmul.f32 %v6858_v52, %v1036_v3 }
  0xe4   :  { %12360 = vst [vmem:[#allocation13_spill] sm:$0xff] %v6971_v8  ;;  %v1696_v16 = vsel %vm1677_vm0, %v6971_v8, -inf  ;;  %v1789_v19 = vsel %vm1677_vm0, %v6974_v9, -inf  ;;  %v1326_v61 = vunpack.c.l.b16 %v424_v57 }
  0xe5   :  { %12361 = vst [vmem:[#allocation14_spill] sm:$0xff] %v6977_v10  ;;  %v1837_v21 = vsel %vm1677_vm0, %v6977_v10, -inf }
  0xe6   :  { %1736 = vmax.xlane.f32.xlu1 %v1735_v28  ;;  %1739 = vmax.xlane.f32.xlu2 %v1738_v25  ;;  %v6986_v25 = vmul.f32 %v6858_v52, %v797_v15 }
  0xe7   :  { %1787 = vmax.xlane.f32.xlu0 %v1786_v27 }
  0xe8   :  { %12362 = vst [vmem:[#allocation15_spill] sm:$0xff] %v6986_v25  ;;  %v1744_v29 = vsel %vm1677_vm0, %v6986_v25, -inf }
  0xe9   :  { %v918_v18 = vpop.f32.mrf.mxu2  ;;  %v678_v32 = vpop.f32.mrf.mxu0 }
  0xea   :  { %v6989_v26 = vmul.f32 %v6858_v52, %v918_v18  ;;  %v1039_v27 = vpop.f32.mrf.mxu3  ;;  %v799_v35 = vpop.f32.mrf.mxu1  ;;  %v7001_v37 = vmul.f32 %v6858_v52, %v678_v32  ;;  %v136_v18 = vld [vmem:[#allocation3 + $0x220] sm:$0xff] }
  0xeb   :  { %v6992_v28 = vmul.f32 %v6858_v52, %v1039_v27  ;;  %v7004_v38 = vmul.f32 %v6858_v52, %v799_v35 }
  0xec   :  { %12363 = vst [vmem:[#allocation16_spill] sm:$0xff] %v6989_v26  ;;  %v1792_v30 = vsel %vm1677_vm0, %v6989_v26, -inf  ;;  %v1699_v45 = vsel %vm1677_vm0, %v7001_v37, -inf }
  0xed   :  { %12364 = vst [vmem:[#allocation17_spill] sm:$0xff] %v6992_v28  ;;  %v1840_v33 = vsel %vm1677_vm0, %v6992_v28, -inf  ;;  %v1747_v43 = vsel %vm1677_vm0, %v7004_v38, -inf }
  0xee   :  { %1835 = vmax.xlane.f32.xlu1 %v1834_v54  ;;  %1694 = vmax.xlane.f32.xlu2 %v1693_v62  ;;  %12365 = vst [vmem:[#allocation18_spill] sm:$0xff] %v7001_v37  ;;  %v169_v54 = vld [vmem:[#allocation3 + $0x328] sm:$0xff] }
  0xef   :  { %1742 = vmax.xlane.f32.xlu0 %v1741_v5  ;;  %12366 = vst [vmem:[#allocation19_spill] sm:$0xff] %v7004_v38  ;;  %v425_v59 = vpack.c.bf16 %v169_v54, %v169_v54 }
  0xf1   :  { %v920_v36 = vpop.f32.mrf.mxu2  ;;  %v681_v42 = vpop.f32.mrf.mxu0  ;;  %v1327_v6 = vunpack.c.l.b16 %v425_v59 }
  0xf2   :  { %v7007_v39 = vmul.f32 %v6858_v52, %v920_v36  ;;  %v1041_v40 = vpop.f32.mrf.mxu3  ;;  %v7016_v47 = vmul.f32 %v6858_v52, %v681_v42  ;;  %v802_v49 = vpop.f32.mrf.mxu1 }
  0xf3   :  { %v7019_v50 = vmul.f32 %v6858_v52, %v802_v49  ;;  %v7022_v55 = vmul.f32 %v6858_v52, %v1041_v40 }
  0xf4   :  { %12367 = vst [vmem:[#allocation20_spill] sm:$0xff] %v7007_v39  ;;  %v1795_v46 = vsel %vm1677_vm0, %v7007_v39, -inf  ;;  %v1702_v60 = vsel %vm1677_vm0, %v7016_v47, -inf  ;;  %v173_v39 = vld [vmem:[#allocation3 + $0x348] sm:$0xff] }
  0xf5   :  { %12368 = vst [vmem:[#allocation21_spill] sm:$0xff] %v7016_v47  ;;  %v1750_v3 = vsel %vm1677_vm0, %v7019_v50, -inf  ;;  %v1843_v7 = vsel %vm1677_vm0, %v7022_v55, -inf  ;;  %v157_v47 = vld [vmem:[#allocation3 + $0x2c8] sm:$0xff]  ;;  %v429_v8 = vpack.c.bf16 %v173_v39, %v173_v39 }
  0xf6   :  { %1790 = vmax.xlane.f32.xlu1 %v1789_v19  ;;  %1838 = vmax.xlane.f32.xlu2 %v1837_v21  ;;  %12369 = vst [vmem:[#allocation22_spill] sm:$0xff] %v7019_v50  ;;  %v137_v19 = vld [vmem:[#allocation3 + $0x228] sm:$0xff]  ;;  %v152_v21 = vld [vmem:[#allocation3 + $0x2a0] sm:$0xff] }
  0xf7   :  { %1697 = vmax.xlane.f32.xlu0 %v1696_v16  ;;  %12370 = vst [vmem:[#allocation23_spill] sm:$0xff] %v7022_v55  ;;  %v1340_v16 = vpack.c.b16 %v1327_v6, %v1326_v61  ;;  %v393_v32 = vpack.c.bf16 %v137_v19, %v137_v19  ;;  %v408_v35 = vpack.c.bf16 %v152_v21, %v152_v21  ;;  %v156_v50 = vld [vmem:[#allocation3 + $0x2c0] sm:$0xff] }
  0xf8   :  { %v172_v55 = vld [vmem:[#allocation3 + $0x340] sm:$0xff] }
  0xf9   :  { %v923_v62 = vpop.f32.mrf.mxu2  ;;  %v683_v27 = vpop.f32.mrf.mxu0  ;;  %1396 = vmatmul.bf16.gmra.mxu2 %v1340_v16  ;;  %v1085_v42 = vunpack.c.l.b16 %v393_v32  ;;  %v428_v26 = vpack.c.bf16 %v172_v55, %v172_v55 }
  0xfa   :  { %v1044_v5 = vpop.f32.mrf.mxu3  ;;  %v7031_v15 = vmul.f32 %v6858_v52, %v923_v62  ;;  %v804_v57 = vpop.f32.mrf.mxu1 }
  0xfc   :  { %12371 = vst [vmem:[#allocation24_spill] sm:$0xff] %v7031_v15  ;;  %v1798_v49 = vsel %vm1677_vm0, %v7031_v15, -inf  ;;  %v141_v15 = vld [vmem:[#allocation3 + $0x248] sm:$0xff] }
  0xfe   :  { %1745 = vmax.xlane.f32.xlu1 %v1744_v29  ;;  %1793 = vmax.xlane.f32.xlu2 %v1792_v30  ;;  %v7034_v29 = vmul.f32 %v6858_v52, %v1044_v5  ;;  %v392_v30 = vpack.c.bf16 %v136_v18, %v136_v18 }
  0xff   :  { %1841 = vmax.xlane.f32.xlu0 %v1840_v33  ;;  %v153_v33 = vld [vmem:[#allocation3 + $0x2a8] sm:$0xff] }
 0x100   :  { %12372 = vst [vmem:[#allocation25_spill] sm:$0xff] %v7034_v29  ;;  %v409_v36 = vpack.c.bf16 %v153_v33, %v153_v33  ;;  %v1084_v40 = vunpack.c.l.b16 %v392_v30  ;;  %v1846_v53 = vsel %vm1677_vm0, %v7034_v29, -inf }
 0x102   :  { %v1098_v54 = vpack.c.b16 %v1085_v42, %v1084_v40  ;;  %v1046_v62 = vpop.f32.mrf.mxu3  ;;  %v807_v16 = vpop.f32.mrf.mxu1 }
 0x103   :  { %v7052_v6 = vmul.f32 %v6858_v52, %v1046_v62  ;;  %v7064_v30 = vmul.f32 %v6858_v52, %v807_v16 }
 0x104   :  { %1154 = vmatmul.bf16.gmra.mxu0 %v1098_v54 }
 0x105   :  { %12376 = vst [vmem:[#allocation29_spill] sm:$0xff] %v7052_v6  ;;  %v1849_v21 = vsel %vm1677_vm0, %v7052_v6, -inf }
 0x106   :  { %1748 = vmax.xlane.f32.xlu2 %v1747_v43  ;;  %1700 = vmax.xlane.f32.xlu1 %v1699_v45  ;;  %v1205_v43 = vunpack.c.l.b16 %v408_v35  ;;  %v7037_v45 = vmul.f32 %v6858_v52, %v683_v27  ;;  %12378 = vst [vmem:[#allocation31_spill] sm:$0xff] %v7064_v30  ;;  %v1756_v35 = vsel %vm1677_vm0, %v7064_v30, -inf }
 0x107   :  { %1796 = vmax.xlane.f32.xlu0 %v1795_v46  ;;  %v1206_v46 = vunpack.c.l.b16 %v409_v36 }
 0x108   :  { %12373 = vst [vmem:[#allocation26_spill] sm:$0xff] %v7037_v45  ;;  %v1705_v61 = vsel %vm1677_vm0, %v7037_v45, -inf }
 0x109   :  { %v1219_v59 = vpack.c.b16 %v1206_v46, %v1205_v43 }
 0x10a   :  { %v1049_v40 = vpop.f32.mrf.mxu3 }
 0x10b   :  { %1275 = vmatmul.bf16.gmra.mxu1 %v1219_v59  ;;  %v7076_v46 = vmul.f32 %v6858_v52, %v1049_v40 }
 0x10d   :  { %12380 = vst [vmem:[#allocation33_spill] sm:$0xff] %v7076_v46  ;;  %v1852_v59 = vsel %vm1677_vm0, %v7076_v46, -inf }
 0x10e   :  { %1844 = vmax.xlane.f32.xlu1 %v1843_v7  ;;  %1703 = vmax.xlane.f32.xlu2 %v1702_v60  ;;  %v925_v60 = vpop.f32.mrf.mxu2  ;;  %v686_v7 = vpop.f32.mrf.mxu0 }
 0x10f   :  { %1751 = vmax.xlane.f32.xlu0 %v1750_v3  ;;  %v7046_v3 = vmul.f32 %v6858_v52, %v804_v57  ;;  %v7049_v5 = vmul.f32 %v6858_v52, %v925_v60  ;;  %v7061_v27 = vmul.f32 %v6858_v52, %v686_v7 }
 0x111   :  { %12374 = vst [vmem:[#allocation27_spill] sm:$0xff] %v7046_v3  ;;  %v1753_v18 = vsel %vm1677_vm0, %v7046_v3, -inf  ;;  %v1801_v19 = vsel %vm1677_vm0, %v7049_v5, -inf  ;;  %v1708_v36 = vsel %vm1677_vm0, %v7061_v27, -inf }
 0x112   :  { %12375 = vst [vmem:[#allocation28_spill] sm:$0xff] %v7049_v5  ;;  %v1051_v62 = vpop.f32.mrf.mxu3 }
 0x113   :  { %12377 = vst [vmem:[#allocation30_spill] sm:$0xff] %v7061_v27 }
 0x116   :  { %1799 = vmax.xlane.f32.xlu1 %v1798_v49  ;;  %1847 = vmax.xlane.f32.xlu2 %v1846_v53  ;;  %v928_v32 = vpop.f32.mrf.mxu2  ;;  %v688_v43 = vpop.f32.mrf.mxu0 }
 0x117   :  { %1706 = vmax.xlane.f32.xlu0 %v1705_v61  ;;  %v7067_v33 = vmul.f32 %v6858_v52, %v928_v32  ;;  %v809_v49 = vpop.f32.mrf.mxu1  ;;  %v7081_v54 = vmul.f32 %v6858_v52, %v688_v43 }
 0x118   :  { %v7084_v57 = vmul.f32 %v6858_v52, %v809_v49 }
 0x119   :  { %12379 = vst [vmem:[#allocation32_spill] sm:$0xff] %v7067_v33  ;;  %v1804_v42 = vsel %vm1677_vm0, %v7067_v33, -inf  ;;  %v1711_v61 = vsel %vm1677_vm0, %v7081_v54, -inf }
 0x11a   :  { %12381 = vst [vmem:[#allocation34_spill] sm:$0xff] %v7081_v54  ;;  %v1759_v7 = vsel %vm1677_vm0, %v7084_v57, -inf }
 0x11b   :  { %12382 = vst [vmem:[#allocation35_spill] sm:$0xff] %v7084_v57 }
 0x11e   :  { %1754 = vmax.xlane.f32.xlu1 %v1753_v18  ;;  %1802 = vmax.xlane.f32.xlu2 %v1801_v19  ;;  %v930_v60 = vpop.f32.mrf.mxu2  ;;  %v691_v18 = vpop.f32.mrf.mxu0  ;;  %v138_v19 = vld [vmem:[#allocation3 + $0x230] sm:$0xff] }
 0x11f   :  { %1850 = vmax.xlane.f32.xlu0 %v1849_v21  ;;  %v139_v21 = vld [vmem:[#allocation3 + $0x238] sm:$0xff]  ;;  %v7095_v32 = vmul.f32 %v6858_v52, %v691_v18  ;;  %v7098_v40 = vmul.f32 %v6858_v52, %v930_v60  ;;  %v812_v18 = vpop.f32.mrf.mxu1 }
 0x121   :  { %12383 = vst [vmem:[#allocation36_spill] sm:$0xff] %v7095_v32  ;;  %v1807_v60 = vsel %vm1677_vm0, %v7098_v40, -inf }
 0x122   :  { %12384 = vst [vmem:[#allocation37_spill] sm:$0xff] %v7098_v40  ;;  %v155_v40 = vld [vmem:[#allocation3 + $0x2b8] sm:$0xff] }
 0x126   :  { %1757 = vmax.xlane.f32.xlu2 %v1756_v35  ;;  %1709 = vmax.xlane.f32.xlu1 %v1708_v36  ;;  %v394_v35 = vpack.c.bf16 %v138_v19, %v138_v19  ;;  %v395_v36 = vpack.c.bf16 %v139_v21, %v139_v21  ;;  %v1714_v19 = vsel %vm1677_vm0, %v7095_v32, -inf  ;;  %v933_v21 = vpop.f32.mrf.mxu2  ;;  %v154_v32 = vld [vmem:[#allocation3 + $0x2b0] sm:$0xff] }
 0x127   :  { %1805 = vmax.xlane.f32.xlu0 %v1804_v42  ;;  %v7101_v42 = vmul.f32 %v6858_v52, %v1051_v62 }
 0x128   :  { %v7078_v53 = vpop.xlane.xlu0 %1679  ;;  %v1087_v57 = vunpack.c.l.b16 %v395_v36 }
 0x129   :  { %12385 = vst [vmem:[#allocation38_spill] sm:$0xff] %v7101_v42  ;;  %v7103_v43 = vpop.xlane.xlu1 %1727  ;;  %v1855_v62 = vsel %vm1677_vm0, %v7101_v42, -inf }
 0x12e   :  { %1853 = vmax.xlane.f32.xlu1 %v1852_v59  ;;  %1712 = vmax.xlane.f32.xlu2 %v1711_v61  ;;  %v170_v59 = vld [vmem:[#allocation3 + $0x330] sm:$0xff]  ;;  %v171_v61 = vld [vmem:[#allocation3 + $0x338] sm:$0xff] }
 0x12f   :  { %1760 = vmax.xlane.f32.xlu0 %v1759_v7  ;;  %v1086_v7 = vunpack.c.l.b16 %v394_v35  ;;  %v426_v54 = vpack.c.bf16 %v170_v59, %v170_v59  ;;  %v427_v46 = vpack.c.bf16 %v171_v61, %v171_v61  ;;  %v7114_v35 = vmul.f32 %v6858_v52, %v812_v18  ;;  %v1054_v61 = vpop.f32.mrf.mxu3 }
 0x130   :  { %v7092_v16 = vpop.xlane.xlu2 %1775  ;;  %v7119_v59 = vmul.f32 %v6858_v52, %v933_v21  ;;  %v7122_v42 = vmul.f32 %v6858_v52, %v1054_v61 }
 0x131   :  { %v7105_v49 = vpop.xlane.xlu0 %1823  ;;  %v1099_v33 = vpack.c.b16 %v1087_v57, %v1086_v7  ;;  %v1328_v27 = vunpack.c.l.b16 %v426_v54  ;;  %v1329_v30 = vunpack.c.l.b16 %v427_v46  ;;  %12386 = vst [vmem:[#allocation39_spill] sm:$0xff] %v7114_v35  ;;  %v410_v57 = vpack.c.bf16 %v154_v32, %v154_v32  ;;  %v935_v32 = vpop.f32.mrf.mxu2 }
 0x132   :  { %12387 = vst [vmem:[#allocation40_spill] sm:$0xff] %v7119_v59  ;;  %v411_v7 = vpack.c.bf16 %v155_v40, %v155_v40  ;;  %v1762_v21 = vsel %vm1677_vm0, %v7114_v35, -inf  ;;  %v1858_v61 = vsel %vm1677_vm0, %v7122_v42, -inf }
 0x133   :  { %1159 = vmatmul.bf16.gmra.mxu0 %v1099_v33  ;;  %12388 = vst [vmem:[#allocation41_spill] sm:$0xff] %v7122_v42  ;;  %v1341_v54 = vpack.c.b16 %v1329_v30, %v1328_v27  ;;  %v1810_v33 = vsel %vm1677_vm0, %v7119_v59, -inf  ;;  %v814_v30 = vpop.f32.mrf.mxu1  ;;  %v7145_v59 = vmul.f32 %v6858_v52, %v935_v32 }
 0x135   :  { %1401 = vmatmul.bf16.gmra.mxu2 %v1341_v54  ;;  %v7138_v54 = vmul.f32 %v6858_v52, %v814_v30  ;;  %12391 = vst [vmem:[#allocation44_spill] sm:$0xff] %v7145_v59 }
 0x136   :  { %1808 = vmax.xlane.f32.xlu1 %v1807_v60  ;;  %1856 = vmax.xlane.f32.xlu2 %v1855_v62  ;;  %v1208_v60 = vunpack.c.l.b16 %v411_v7  ;;  %v693_v62 = vpop.f32.mrf.mxu0 }
 0x137   :  { %1715 = vmax.xlane.f32.xlu0 %v1714_v19  ;;  %v1207_v19 = vunpack.c.l.b16 %v410_v57  ;;  %v7135_v40 = vmul.f32 %v6858_v52, %v693_v62  ;;  %12390 = vst [vmem:[#allocation43_spill] sm:$0xff] %v7138_v54 }
 0x138   :  { %v7116_v36 = vpop.xlane.xlu2 %1730 }
 0x139   :  { %v7124_v46 = vpop.xlane.xlu1 %1826  ;;  %v7126_v18 = vpop.xlane.xlu0 %1682  ;;  %v1220_v27 = vpack.c.b16 %v1208_v60, %v1207_v19  ;;  %12389 = vst [vmem:[#allocation42_spill] sm:$0xff] %v7135_v40  ;;  %v1765_v60 = vsel %vm1677_vm0, %v7138_v54, -inf  ;;  %v1717_v62 = vsel %vm1677_vm0, %v7135_v40, -inf }
 0x13b   :  { %1280 = vmatmul.bf16.gmra.mxu1 %v1220_v27  ;;  %v817_v30 = vpop.f32.mrf.mxu1 }
 0x13c   :  { %v7159_v32 = vmul.f32 %v6858_v52, %v817_v30 }
 0x13e   :  { %1763 = vmax.xlane.f32.xlu1 %v1762_v21  ;;  %1811 = vmax.xlane.f32.xlu2 %v1810_v33  ;;  %v1056_v21 = vpop.f32.mrf.mxu3  ;;  %v696_v33 = vpop.f32.mrf.mxu0  ;;  %12393 = vst [vmem:[#allocation46_spill] sm:$0xff] %v7159_v32 }
 0x13f   :  { %1859 = vmax.xlane.f32.xlu0 %v1858_v61  ;;  %v1813_v61 = vsel %vm1677_vm0, %v7145_v59, -inf  ;;  %v7156_v27 = vmul.f32 %v6858_v52, %v696_v33  ;;  %v7162_v42 = vmul.f32 %v6858_v52, %v1056_v21  ;;  %v1768_v33 = vsel %vm1677_vm0, %v7159_v32, -inf }
 0x141   :  { %v7140_v57 = vpop.xlane.xlu2 %1829  ;;  %v7142_v7 = vpop.xlane.xlu1 %1685  ;;  %12392 = vst [vmem:[#allocation45_spill] sm:$0xff] %v7156_v27  ;;  %v1861_v30 = vsel %vm1677_vm0, %v7162_v42, -inf }
 0x142   :  { %v7147_v19 = vpop.xlane.xlu0 %1778  ;;  %12394 = vst [vmem:[#allocation47_spill] sm:$0xff] %v7162_v42 }
 0x146   :  { %1766 = vmax.xlane.f32.xlu2 %v1765_v60  ;;  %1718 = vmax.xlane.f32.xlu1 %v1717_v62  ;;  %v1720_v62 = vsel %vm1677_vm0, %v7156_v27, -inf  ;;  %v1059_v59 = vpop.f32.mrf.mxu3  ;;  %v698_v40 = vpop.f32.mrf.mxu0 }
 0x147   :  { %1814 = vmax.xlane.f32.xlu0 %v1813_v61  ;;  %v938_v61 = vpop.f32.mrf.mxu2  ;;  %v7180_v6 = vmul.f32 %v6858_v52, %v1059_v59  ;;  %v7187_v32 = vmul.f32 %v6858_v52, %v698_v40  ;;  %v819_v59 = vpop.f32.mrf.mxu1 }
 0x148   :  { %v7177_v21 = vmul.f32 %v6858_v52, %v938_v61  ;;  %v7200_v29 = vmul.f32 %v6858_v52, %v819_v59  ;;  %v413_v59 = vpack.c.bf16 %v157_v47, %v157_v47 }
 0x149   :  { %v7164_v54 = vpop.xlane.xlu2 %1784  ;;  %v7166_v35 = vpop.xlane.xlu1 %1781  ;;  %12396 = vst [vmem:[#allocation49_spill] sm:$0xff] %v7180_v6  ;;  %v1864_v61 = vsel %vm1677_vm0, %v7180_v6, -inf  ;;  %v1723_v42 = vsel %vm1677_vm0, %v7187_v32, -inf }
 0x14a   :  { %v7168_v60 = vpop.xlane.xlu0 %1733  ;;  %12395 = vst [vmem:[#allocation48_spill] sm:$0xff] %v7177_v21 }
 0x14b   :  { %12397 = vst [vmem:[#allocation50_spill] sm:$0xff] %v7187_v32  ;;  %v412_v32 = vpack.c.bf16 %v156_v50, %v156_v50  ;;  %v1210_v50 = vunpack.c.l.b16 %v413_v59 }
 0x14d   :  { %v1209_v28 = vunpack.c.l.b16 %v412_v32  ;;  %v1331_v32 = vunpack.c.l.b16 %v429_v8  ;;  %v2094_v8 = vsub.f32 %v6871_v12, %v7092_v16  ;;  %v2079_v16 = vsub.f32 %v6881_v24, %v7116_v36 }
 0x14e   :  { %1862 = vmax.xlane.f32.xlu1 %v1861_v30  ;;  %1721 = vmax.xlane.f32.xlu2 %v1720_v62  ;;  %v1816_v62 = vsel %vm1677_vm0, %v7177_v21, -inf  ;;  %v1061_v40 = vpop.f32.mrf.mxu3  ;;  %v140_v21 = vld [vmem:[#allocation3 + $0x240] sm:$0xff]  ;;  %v1145_v10 = vpop.f32.mrf.mxu0 }
 0x14f   :  { %1769 = vmax.xlane.f32.xlu0 %v1768_v33  ;;  %v2078_v33 = vsub.f32 %v6864_v2, %v7103_v43  ;;  %v940_v30 = vpop.f32.mrf.mxu2 }
 0x150   :  { %v7203_v6 = vmul.f32 %v6858_v52, %v940_v30  ;;  %v2062_v30 = vsub.f32 %v6861_v63, %v7078_v53  ;;  %v1330_v53 = vunpack.c.l.b16 %v428_v26 }
 0x151   :  { %v7182_v5 = vpop.xlane.xlu1 %1688  ;;  %v7184_v27 = vpop.xlane.xlu2 %1691  ;;  %v2222_v45 = vmul.f32 1.442695, %v2078_v33 }
 0x152   :  { %v7189_v3 = vpop.xlane.xlu0 %1832  ;;  %12398 = vst [vmem:[#allocation51_spill] sm:$0xff] %v7203_v6  ;;  %v1819_v47 = vsel %vm1677_vm0, %v7203_v6, -inf }
 0x153   :  { %6192 = vpow2.f32 %v2222_v45  ;;  %v1221_v45 = vpack.c.b16 %v1210_v50, %v1209_v28 }
 0x155   :  { %1285 = vmatmul.bf16.gmra.mxu1 %v1221_v45 }
 0x156   :  { %1817 = vmax.xlane.f32.xlu1 %v1816_v62  ;;  %1865 = vmax.xlane.f32.xlu2 %v1864_v61  ;;  %v396_v62 = vpack.c.bf16 %v140_v21, %v140_v21  ;;  %v397_v61 = vpack.c.bf16 %v141_v15, %v141_v15  ;;  %v2110_v15 = vsub.f32 %v6874_v17, %v7105_v49  ;;  %v1266_v21 = vpop.f32.mrf.mxu1  ;;  %v2190_v17 = vmul.f32 1.442695, %v2062_v30 }
 0x157   :  { %1724 = vmax.xlane.f32.xlu0 %v1723_v42  ;;  %v7210_v42 = vmul.f32 %v6858_v52, %v1061_v40  ;;  %v1771_v40 = vsel %vm1677_vm0, %v7200_v29, -inf  ;;  %v7225_v49 = vmul.f32 %v6858_v52, %v1145_v10  ;;  %v7228_v55 = vmul.f32 %v6858_v52, %v1266_v21  ;;  %v1387_v59 = vpop.f32.mrf.mxu2 }
 0x158   :  { %v1088_v37 = vunpack.c.l.b16 %v396_v62  ;;  %v1089_v38 = vunpack.c.l.b16 %v397_v61  ;;  %v1342_v62 = vpack.c.b16 %v1331_v32, %v1330_v53  ;;  %6194 = vpow2.f32 %v2190_v17  ;;  %v1147_v32 = vpop.f32.mrf.mxu0 }
 0x159   :  { %v7205_v2 = vpop.xlane.xlu1 %1736  ;;  %v7207_v43 = vpop.xlane.xlu2 %1739  ;;  %12399 = vst [vmem:[#allocation52_spill] sm:$0xff] %v7210_v42  ;;  %v1867_v63 = vsel %vm1677_vm0, %v7210_v42, -inf  ;;  %v1918_v10 = vsel %vm1677_vm0, %v7228_v55, -inf  ;;  %v1870_v28 = vsel %vm1677_vm0, %v7225_v49, -inf  ;;  %v7247_v30 = vmul.f32 %v6858_v52, %v1387_v59 }
 0x15a   :  { %v7212_v33 = vpop.xlane.xlu0 %1787  ;;  %v1100_v25 = vpack.c.b16 %v1089_v38, %v1088_v37  ;;  %12400 = vst [vmem:[#allocation53_spill] sm:$0xff] %v7225_v49  ;;  %v2286_v37 = vmul.f32 1.442695, %v2110_v15  ;;  %v7234_v61 = vpop.eup %6192  ;;  %1406 = vmatmul.bf16.gmra.mxu2 %v1342_v62  ;;  %v2254_v21 = vmul.f32 1.442695, %v2094_v8  ;;  %v7273_v36 = vmul.f32 %v6858_v52, %v1147_v32 }
 0x15b   :  { %12401 = vst [vmem:[#allocation54_spill] sm:$0xff] %v7228_v55  ;;  %v1966_v45 = vsel %vm1677_vm0, %v7247_v30, -inf  ;;  %v2224_v62 = vmul.f32 1.442695, %v2079_v16  ;;  %v2111_v59 = vsub.f32 %v6887_v41, %v7124_v46  ;;  %v2064_v55 = vsub.f32 %v6896_v51, %v7142_v7 }
 0x15c   :  { %1164 = vmatmul.bf16.gmra.mxu0 %v1100_v25  ;;  %12402 = vst [vmem:[#allocation55_spill] sm:$0xff] %v7234_v61  ;;  %6196 = vpow2.f32 %v2286_v37  ;;  %v2494_v25 = vsel %vm1677_vm0, %v7234_v61, 0.0  ;;  %v1508_v37 = vpop.f32.mrf.mxu3 }
 0x15d   :  { %12403 = vst [vmem:[#allocation56_spill] sm:$0xff] %v7247_v30  ;;  %6198 = vpow2.f32 %v2254_v21  ;;  %v7270_v24 = vmul.f32 %v6858_v52, %v1508_v37  ;;  %v1873_v21 = vsel %vm1677_vm0, %v7273_v36, -inf }
 0x15e   :  { %1772 = vmax.xlane.f32.xlu1 %v1771_v40  ;;  %1820 = vmax.xlane.f32.xlu2 %v1819_v47  ;;  %v7249_v15 = vpop.eup %6194  ;;  %12407 = vst [vmem:[#allocation60_spill] sm:$0xff] %v7273_v36  ;;  %6200 = vpow2.f32 %v2224_v62  ;;  %v174_v62 = vld [vmem:[#allocation3 + $0x350] sm:$0xff] }
 0x15f   :  { %1868 = vmax.xlane.f32.xlu0 %v1867_v63  ;;  %12404 = vst [vmem:[#allocation57_spill] sm:$0xff] %v7249_v15  ;;  %v2063_v63 = vsub.f32 %v6884_v31, %v7126_v18  ;;  %v2446_v17 = vsel %vm1677_vm0, %v7249_v15, 0.0  ;;  %v1389_v36 = vpop.f32.mrf.mxu2 }
 0x160   :  { %12406 = vst [vmem:[#allocation59_spill] sm:$0xff] %v7270_v24  ;;  %v1150_v51 = vpop.f32.mrf.mxu0 }
 0x161   :  { %v7230_v38 = vpop.xlane.xlu1 %1835  ;;  %v7232_v39 = vpop.xlane.xlu2 %1694  ;;  %v2192_v31 = vmul.f32 1.442695, %v2063_v63  ;;  %v7337_v7 = vmul.f32 %v6858_v52, %v1150_v51 }
 0x162   :  { %v7236_v26 = vpop.xlane.xlu0 %1742  ;;  %v7255_v47 = vpop.eup %6196 }
 0x163   :  { %12405 = vst [vmem:[#allocation58_spill] sm:$0xff] %v7255_v47  ;;  %v2590_v53 = vsel %vm1677_vm0, %v7255_v47, 0.0  ;;  %v7281_v8 = vpop.eup %6198  ;;  %6202 = vpow2.f32 %v2192_v31  ;;  %v1268_v63 = vpop.f32.mrf.mxu1  ;;  %v175_v31 = vld [vmem:[#allocation3 + $0x358] sm:$0xff] }
 0x164   :  { %12408 = vst [vmem:[#allocation61_spill] sm:$0xff] %v7281_v8  ;;  %v2542_v16 = vsel %vm1677_vm0, %v7281_v8, 0.0  ;;  %v7300_v41 = vmul.f32 %v6858_v52, %v1268_v63  ;;  %v1510_v30 = vpop.f32.mrf.mxu3 }
 0x165   :  { %12413 = vst [vmem:[#allocation66_spill] sm:$0xff] %v7337_v7 }
 0x166   :  { %1919 = vmax.xlane.f32.xlu2 %v1918_v10  ;;  %1871 = vmax.xlane.f32.xlu1 %v1870_v28  ;;  %12411 = vst [vmem:[#allocation64_spill] sm:$0xff] %v7300_v41 }
 0x167   :  { %2495 = vadd.xlane.f32.xlu0 %v2494_v25  ;;  %v2014_v25 = vsel %vm1677_vm0, %v7270_v24, -inf }
 0x169   :  { %v7251_v50 = vpop.xlane.xlu1 %1790  ;;  %v7253_v40 = vpop.xlane.xlu2 %1838 }
 0x16a   :  { %v7257_v12 = vpop.xlane.xlu0 %1697 }
 0x16e   :  { %2591 = vadd.xlane.f32.xlu2 %v2590_v53  ;;  %2447 = vadd.xlane.f32.xlu1 %v2446_v17  ;;  %v7291_v53 = vpop.eup %6200 }
 0x16f   :  { %1967 = vmax.xlane.f32.xlu0 %v1966_v45  ;;  %v2288_v45 = vmul.f32 1.442695, %v2111_v59  ;;  %12409 = vst [vmem:[#allocation62_spill] sm:$0xff] %v7291_v53  ;;  %v7297_v37 = vpop.eup %6202  ;;  %v431_v59 = vpack.c.bf16 %v175_v31, %v175_v31  ;;  %v2497_v8 = vsel %vm1677_vm0, %v7291_v53, 0.0  ;;  %v143_v31 = vld [vmem:[#allocation3 + $0x258] sm:$0xff]  ;;  %v158_v53 = vld [vmem:[#allocation3 + $0x2d0] sm:$0xff] }
 0x170   :  { %12410 = vst [vmem:[#allocation63_spill] sm:$0xff] %v7297_v37  ;;  %v2449_v63 = vsel %vm1677_vm0, %v7297_v37, 0.0  ;;  %v7318_v37 = vmul.f32 %v6858_v52, %v1510_v30 }
 0x171   :  { %v7275_v18 = vpop.xlane.xlu1 %1745  ;;  %v7277_v10 = vpop.xlane.xlu2 %1793  ;;  %6204 = vpow2.f32 %v2288_v45  ;;  %v1333_v47 = vunpack.c.l.b16 %v431_v59 }
 0x172   :  { %v7279_v28 = vpop.xlane.xlu0 %1841  ;;  %12412 = vst [vmem:[#allocation65_spill] sm:$0xff] %v7318_v37 }
 0x176   :  { %2015 = vmax.xlane.f32.xlu1 %v2014_v25  ;;  %1874 = vmax.xlane.f32.xlu2 %v1873_v21  ;;  %v2095_v25 = vsub.f32 %v6899_v56, %v7147_v19  ;;  %v430_v21 = vpack.c.bf16 %v174_v62, %v174_v62  ;;  %v1921_v56 = vsel %vm1677_vm0, %v7300_v41, -inf }
 0x177   :  { %2543 = vadd.xlane.f32.xlu0 %v2542_v16  ;;  %v2080_v16 = vsub.f32 %v6914_v1, %v7168_v60  ;;  %v7315_v1 = vmul.f32 %v6858_v52, %v1389_v36  ;;  %v142_v60 = vld [vmem:[#allocation3 + $0x250] sm:$0xff] }
 0x178   :  { %v1332_v24 = vunpack.c.l.b16 %v430_v21  ;;  %v2256_v19 = vmul.f32 1.442695, %v2095_v25  ;;  %v398_v59 = vpack.c.bf16 %v142_v60, %v142_v60  ;;  %v159_v25 = vld [vmem:[#allocation3 + $0x2d8] sm:$0xff] }
 0x179   :  { %v7293_v17 = vpop.xlane.xlu2 %1748  ;;  %v7295_v32 = vpop.xlane.xlu1 %1700  ;;  %v2226_v62 = vmul.f32 1.442695, %v2080_v16  ;;  %v415_v41 = vpack.c.bf16 %v159_v25, %v159_v25  ;;  %v2194_v25 = vmul.f32 1.442695, %v2064_v55  ;;  %v2081_v55 = vsub.f32 %v6947_v23, %v7205_v2  ;;  %v185_v23 = vld [vmem:[#allocation3 + $0x3a8] sm:$0xff] }
 0x17a   :  { %v7302_v46 = vpop.xlane.xlu0 %1796  ;;  %v1343_v45 = vpack.c.b16 %v1333_v47, %v1332_v24  ;;  %v182_v47 = vld [vmem:[#allocation3 + $0x390] sm:$0xff]  ;;  %v183_v24 = vld [vmem:[#allocation3 + $0x398] sm:$0xff]  ;;  %v7324_v16 = vpop.eup %6204  ;;  %6206 = vpow2.f32 %v2256_v19  ;;  %v1090_v30 = vunpack.c.l.b16 %v398_v59 }
 0x17b   :  { %v438_v15 = vpack.c.bf16 %v182_v47, %v182_v47  ;;  %6208 = vpow2.f32 %v2226_v62  ;;  %v439_v60 = vpack.c.bf16 %v183_v24, %v183_v24  ;;  %v2593_v19 = vsel %vm1677_vm0, %v7324_v16, 0.0  ;;  %v1392_v24 = vpop.f32.mrf.mxu2 }
 0x17c   :  { %1411 = vmatmul.bf16.gmra.mxu2 %v1343_v45  ;;  %v1212_v45 = vunpack.c.l.b16 %v415_v41  ;;  %6210 = vpow2.f32 %v2194_v25  ;;  %v2228_v2 = vmul.f32 1.442695, %v2081_v55 }
 0x17d   :  { %v1445_v6 = vunpack.c.l.b16 %v438_v15 }
 0x17e   :  { %2498 = vadd.xlane.f32.xlu1 %v2497_v8  ;;  %2450 = vadd.xlane.f32.xlu2 %v2449_v63  ;;  %v399_v63 = vpack.c.bf16 %v143_v31, %v143_v31  ;;  %v2017_v31 = vsel %vm1677_vm0, %v7318_v37, -inf }
 0x17f   :  { %1922 = vmax.xlane.f32.xlu0 %v1921_v56  ;;  %v414_v56 = vpack.c.bf16 %v158_v53, %v158_v53  ;;  %v1969_v53 = vsel %vm1677_vm0, %v7315_v1, -inf }
 0x180   :  { %v1091_v61 = vunpack.c.l.b16 %v399_v63  ;;  %v1446_v63 = vunpack.c.l.b16 %v439_v60  ;;  %v7339_v62 = vpop.eup %6206 }
 0x181   :  { %v7320_v21 = vpop.xlane.xlu1 %1844  ;;  %v7322_v8 = vpop.xlane.xlu2 %1703  ;;  %v1211_v49 = vunpack.c.l.b16 %v414_v56 }
 0x182   :  { %v7326_v36 = vpop.xlane.xlu0 %1751  ;;  %v1101_v42 = vpack.c.b16 %v1091_v61, %v1090_v30  ;;  %v1460_v41 = vpack.c.b16 %v1446_v63, %v1445_v6  ;;  %v7345_v56 = vpop.eup %6208  ;;  %v1876_v6 = vsel %vm1677_vm0, %v7337_v7, -inf  ;;  %v2545_v30 = vsel %vm1677_vm0, %v7339_v62, 0.0 }
 0x183   :  { %v1222_v59 = vpack.c.b16 %v1212_v45, %v1211_v49  ;;  %12414 = vst [vmem:[#allocation67_spill] sm:$0xff] %v7345_v56  ;;  %v2112_v49 = vsub.f32 %v6902_v58, %v7140_v57  ;;  %v2500_v58 = vsel %vm1677_vm0, %v7345_v56, 0.0  ;;  %v1271_v45 = vpop.f32.mrf.mxu1  ;;  %v441_v63 = vpack.c.bf16 %v185_v23, %v185_v23  ;;  %v1152_v7 = vpop.f32.mrf.mxu0 }
 0x184   :  { %1169 = vmatmul.bf16.gmra.mxu0 %v1101_v42  ;;  %1512 = vmatmul.bf16.gmra.mxu3 %v1460_v41  ;;  %v2096_v42 = vsub.f32 %v6911_v0, %v7166_v35  ;;  %v7362_v0 = vmul.f32 %v6858_v52, %v1271_v45  ;;  %v7365_v35 = vmul.f32 %v6858_v52, %v1392_v24  ;;  %v7373_v41 = vpop.eup %6210  ;;  %v160_v45 = vld [vmem:[#allocation3 + $0x2e0] sm:$0xff] }
 0x185   :  { %1290 = vmatmul.bf16.gmra.mxu1 %v1222_v59  ;;  %v2290_v57 = vmul.f32 1.442695, %v2112_v49  ;;  %12417 = vst [vmem:[#allocation70_spill] sm:$0xff] %v7373_v41  ;;  %v2452_v24 = vsel %vm1677_vm0, %v7373_v41, 0.0 }
 0x186   :  { %1970 = vmax.xlane.f32.xlu1 %v1969_v53  ;;  %2018 = vmax.xlane.f32.xlu2 %v2017_v31  ;;  %12415 = vst [vmem:[#allocation68_spill] sm:$0xff] %v7362_v0  ;;  %v2258_v60 = vmul.f32 1.442695, %v2096_v42  ;;  %v184_v53 = vld [vmem:[#allocation3 + $0x3a0] sm:$0xff]  ;;  %v1924_v25 = vsel %vm1677_vm0, %v7362_v0, -inf  ;;  %v1972_v49 = vsel %vm1677_vm0, %v7365_v35, -inf }
 0x187   :  { %2594 = vadd.xlane.f32.xlu0 %v2593_v19  ;;  %12416 = vst [vmem:[#allocation69_spill] sm:$0xff] %v7365_v35  ;;  %v440_v59 = vpack.c.bf16 %v184_v53, %v184_v53  ;;  %6212 = vpow2.f32 %v2290_v57  ;;  %v145_v57 = vld [vmem:[#allocation3 + $0x268] sm:$0xff] }
 0x188   :  { %6214 = vpow2.f32 %v2258_v60  ;;  %v161_v60 = vld [vmem:[#allocation3 + $0x2e8] sm:$0xff] }
 0x189   :  { %v7341_v61 = vpop.xlane.xlu1 %1799  ;;  %v7343_v15 = vpop.xlane.xlu2 %1847  ;;  %v1447_v42 = vunpack.c.l.b16 %v440_v59  ;;  %6216 = vpow2.f32 %v2228_v2  ;;  %v416_v2 = vpack.c.bf16 %v160_v45, %v160_v45 }
 0x18a   :  { %v7349_v47 = vpop.xlane.xlu0 %1706 }
 0x18b   :  { %v1213_v35 = vunpack.c.l.b16 %v416_v2  ;;  %v1273_v37 = vpop.f32.mrf.mxu1  ;;  %v7406_v2 = vmul.f32 %v6858_v52, %v1152_v7  ;;  %v2082_v7 = vsub.f32 %v6941_v20, %v7207_v43 }
 0x18d   :  { %12421 = vst [vmem:[#allocation74_spill] sm:$0xff] %v7406_v2 }
 0x18e   :  { %2546 = vadd.xlane.f32.xlu1 %v2545_v30  ;;  %2501 = vadd.xlane.f32.xlu2 %v2500_v58  ;;  %v7381_v30 = vpop.eup %6212  ;;  %v144_v58 = vld [vmem:[#allocation3 + $0x260] sm:$0xff] }
 0x18f   :  { %1877 = vmax.xlane.f32.xlu0 %v1876_v6  ;;  %v1448_v6 = vunpack.c.l.b16 %v441_v63  ;;  %12418 = vst [vmem:[#allocation71_spill] sm:$0xff] %v7381_v30  ;;  %v400_v59 = vpack.c.bf16 %v144_v58, %v144_v58  ;;  %v401_v63 = vpack.c.bf16 %v145_v57, %v145_v57  ;;  %v2097_v58 = vsub.f32 %v6917_v4, %v7164_v54  ;;  %v1394_v54 = vpop.f32.mrf.mxu2 }
 0x190   :  { %v2113_v57 = vsub.f32 %v6932_v14, %v7189_v3  ;;  %v2596_v0 = vsel %vm1677_vm0, %v7381_v30, 0.0  ;;  %v2066_v30 = vsub.f32 %v6926_v11, %v7184_v27 }
 0x191   :  { %v7367_v31 = vpop.xlane.xlu1 %1754  ;;  %v7369_v19 = vpop.xlane.xlu2 %1802  ;;  %v1461_v55 = vpack.c.b16 %v1448_v6, %v1447_v42  ;;  %v417_v42 = vpack.c.bf16 %v161_v60, %v161_v60  ;;  %v1092_v41 = vunpack.c.l.b16 %v400_v59  ;;  %v1093_v56 = vunpack.c.l.b16 %v401_v63  ;;  %v186_v59 = vld [vmem:[#allocation3 + $0x3b0] sm:$0xff]  ;;  %v187_v63 = vld [vmem:[#allocation3 + $0x3b8] sm:$0xff] }
 0x192   :  { %v7371_v51 = vpop.xlane.xlu0 %1850  ;;  %v2260_v14 = vmul.f32 1.442695, %v2097_v58  ;;  %v2292_v3 = vmul.f32 1.442695, %v2113_v57 }
 0x193   :  { %v1214_v45 = vunpack.c.l.b16 %v417_v42  ;;  %v1102_v60 = vpack.c.b16 %v1093_v56, %v1092_v41  ;;  %v7409_v56 = vmul.f32 %v6858_v52, %v1273_v37  ;;  %v443_v42 = vpack.c.bf16 %v187_v63, %v187_v63  ;;  %v1276_v27 = vpop.f32.mrf.mxu1 }
 0x194   :  { %1517 = vmatmul.bf16.gmra.mxu3 %v1461_v55 }
 0x195   :  { %1174 = vmatmul.bf16.gmra.mxu0 %v1102_v60  ;;  %12422 = vst [vmem:[#allocation75_spill] sm:$0xff] %v7409_v56  ;;  %v1927_v37 = vsel %vm1677_vm0, %v7409_v56, -inf }
 0x196   :  { %1925 = vmax.xlane.f32.xlu1 %v1924_v25  ;;  %1973 = vmax.xlane.f32.xlu2 %v1972_v49  ;;  %v7387_v25 = vpop.eup %6214 }
 0x197   :  { %2453 = vadd.xlane.f32.xlu0 %v2452_v24  ;;  %12419 = vst [vmem:[#allocation72_spill] sm:$0xff] %v7387_v25  ;;  %v7391_v6 = vpop.eup %6216  ;;  %v2065_v24 = vsub.f32 %v6929_v13, %v7182_v5  ;;  %v2548_v55 = vsel %vm1677_vm0, %v7387_v25, 0.0  ;;  %v1223_v5 = vpack.c.b16 %v1214_v45, %v1213_v35  ;;  %v442_v35 = vpack.c.bf16 %v186_v59, %v186_v59 }
 0x198   :  { %12420 = vst [vmem:[#allocation73_spill] sm:$0xff] %v7391_v6  ;;  %v2503_v13 = vsel %vm1677_vm0, %v7391_v6, 0.0  ;;  %v1450_v45 = vunpack.c.l.b16 %v443_v42 }
 0x199   :  { %v7383_v53 = vpop.xlane.xlu2 %1757  ;;  %v7385_v23 = vpop.xlane.xlu1 %1709  ;;  %v2196_v4 = vmul.f32 1.442695, %v2065_v24  ;;  %1295 = vmatmul.bf16.gmra.mxu1 %v1223_v5  ;;  %v7416_v24 = vmul.f32 %v6858_v52, %v1394_v54  ;;  %v1449_v57 = vunpack.c.l.b16 %v442_v35  ;;  %v2230_v5 = vmul.f32 1.442695, %v2082_v7  ;;  %v147_v54 = vld [vmem:[#allocation3 + $0x278] sm:$0xff] }
 0x19a   :  { %v7389_v49 = vpop.xlane.xlu0 %1805  ;;  %v403_v63 = vpack.c.bf16 %v147_v54, %v147_v54  ;;  %v163_v35 = vld [vmem:[#allocation3 + $0x2f8] sm:$0xff]  ;;  %v2114_v54 = vsub.f32 %v6956_v34, %v7230_v38  ;;  %v2198_v34 = vmul.f32 1.442695, %v2066_v30  ;;  %v7454_v38 = vmul.f32 %v6858_v52, %v1276_v27 }
 0x19b   :  { %12423 = vst [vmem:[#allocation76_spill] sm:$0xff] %v7416_v24  ;;  %6218 = vpow2.f32 %v2196_v4  ;;  %v1975_v60 = vsel %vm1677_vm0, %v7416_v24, -inf  ;;  %v146_v4 = vld [vmem:[#allocation3 + $0x270] sm:$0xff]  ;;  %v1155_v24 = vpop.f32.mrf.mxu0  ;;  %v2067_v30 = vsub.f32 %v6959_v44, %v7232_v39  ;;  %v12430_v39 = vld [vmem:[#allocation14_spill] sm:$0xff] }
 0x19c   :  { %6220 = vpow2.f32 %v2292_v3  ;;  %v162_v3 = vld [vmem:[#allocation3 + $0x2f0] sm:$0xff]  ;;  %v7451_v11 = vmul.f32 %v6858_v52, %v1155_v24  ;;  %12428 = vst [vmem:[#allocation81_spill] sm:$0xff] %v7454_v38  ;;  %v2098_v24 = vsub.f32 %v6944_v22, %v7212_v33  ;;  %v1930_v27 = vsel %vm1677_vm0, %v7454_v38, -inf }
 0x19d   :  { %6222 = vpow2.f32 %v2260_v14  ;;  %v402_v14 = vpack.c.bf16 %v146_v4, %v146_v4  ;;  %v418_v42 = vpack.c.bf16 %v162_v3, %v162_v3  ;;  %v2099_v22 = vsub.f32 %v6974_v9, %v7251_v50  ;;  %v12433_v50 = vld [vmem:[#allocation15_spill] sm:$0xff] }
 0x19e   :  { %2597 = vadd.xlane.f32.xlu1 %v2596_v0  ;;  %2549 = vadd.xlane.f32.xlu2 %v2548_v55  ;;  %v1879_v55 = vsel %vm1677_vm0, %v7406_v2, -inf  ;;  %6224 = vpow2.f32 %v2230_v5  ;;  %12427 = vst [vmem:[#allocation80_spill] sm:$0xff] %v7451_v11  ;;  %v188_v5 = vld [vmem:[#allocation3 + $0x3c0] sm:$0xff]  ;;  %v2262_v44 = vmul.f32 1.442695, %v2098_v24 }
 0x19f   :  { %2504 = vadd.xlane.f32.xlu0 %v2503_v13  ;;  %v1462_v13 = vpack.c.b16 %v1450_v45, %v1449_v57  ;;  %v419_v57 = vpack.c.bf16 %v163_v35, %v163_v35  ;;  %v1094_v7 = vunpack.c.l.b16 %v402_v14  ;;  %v1215_v25 = vunpack.c.l.b16 %v418_v42  ;;  %v189_v42 = vld [vmem:[#allocation3 + $0x3c8] sm:$0xff] }
 0x1a0   :  { %6226 = vpow2.f32 %v2198_v34  ;;  %v2264_v24 = vmul.f32 1.442695, %v2099_v22  ;;  %v12437_v22 = vld [vmem:[#allocation17_spill] sm:$0xff] }
 0x1a1   :  { %v7411_v0 = vpop.xlane.xlu1 %1853  ;;  %v7413_v41 = vpop.xlane.xlu2 %1712  ;;  %v1216_v4 = vunpack.c.l.b16 %v419_v57  ;;  %v2294_v57 = vmul.f32 1.442695, %v2114_v54 }
 0x1a2   :  { %v7418_v58 = vpop.xlane.xlu0 %1760  ;;  %v7428_v59 = vpop.eup %6218 }
 0x1a3   :  { %12424 = vst [vmem:[#allocation77_spill] sm:$0xff] %v7428_v59  ;;  %6228 = vpow2.f32 %v2294_v57 }
 0x1a4   :  { %1522 = vmatmul.bf16.gmra.mxu3 %v1462_v13  ;;  %v2455_v13 = vsel %vm1677_vm0, %v7428_v59, 0.0  ;;  %6230 = vpow2.f32 %v2262_v44  ;;  %v12438_v44 = vld [vmem:[#allocation19_spill] sm:$0xff] }
 0x1a6   :  { %1928 = vmax.xlane.f32.xlu2 %v1927_v37  ;;  %1880 = vmax.xlane.f32.xlu1 %v1879_v55  ;;  %v7434_v37 = vpop.eup %6220 }
 0x1a7   :  { %1976 = vmax.xlane.f32.xlu0 %v1975_v60  ;;  %12425 = vst [vmem:[#allocation78_spill] sm:$0xff] %v7434_v37  ;;  %v7438_v45 = vpop.eup %6222  ;;  %v1095_v60 = vunpack.c.l.b16 %v403_v63  ;;  %v2599_v3 = vsel %vm1677_vm0, %v7434_v37, 0.0  ;;  %v1224_v63 = vpack.c.b16 %v1216_v4, %v1215_v25  ;;  %v445_v25 = vpack.c.bf16 %v189_v42, %v189_v42  ;;  %v1397_v42 = vpop.f32.mrf.mxu2 }
 0x1a8   :  { %12426 = vst [vmem:[#allocation79_spill] sm:$0xff] %v7438_v45  ;;  %v2551_v14 = vsel %vm1677_vm0, %v7438_v45, 0.0  ;;  %v7460_v4 = vpop.eup %6224  ;;  %v7483_v57 = vmul.f32 %v6858_v52, %v1397_v42 }
 0x1a9   :  { %v7430_v20 = vpop.xlane.xlu1 %1808  ;;  %v7432_v43 = vpop.xlane.xlu2 %1856  ;;  %v1103_v35 = vpack.c.b16 %v1095_v60, %v1094_v7  ;;  %1300 = vmatmul.bf16.gmra.mxu1 %v1224_v63  ;;  %12429 = vst [vmem:[#allocation82_spill] sm:$0xff] %v7460_v4  ;;  %v2083_v63 = vsub.f32 %v6962_v48, %v7236_v26  ;;  %v2506_v33 = vsel %vm1677_vm0, %v7460_v4, 0.0  ;;  %v12431_v48 = vld [vmem:[#allocation13_spill] sm:$0xff] }
 0x1aa   :  { %v7436_v55 = vpop.xlane.xlu0 %1715  ;;  %v2068_v26 = vsub.f32 %v12431_v48, %v7257_v12  ;;  %12432 = vst [vmem:[#allocation14_spill] sm:$0xff] %v7483_v57 }
 0x1ab   :  { %1179 = vmatmul.bf16.gmra.mxu0 %v1103_v35  ;;  %v1882_v35 = vsel %vm1677_vm0, %v7451_v11, -inf  ;;  %v2232_v9 = vmul.f32 1.442695, %v2083_v63  ;;  %v12491_v11 = vld [vmem:[#allocation41_spill] sm:$0xff] }
 0x1ac   :  { %v2202_v63 = vmul.f32 1.442695, %v2068_v26  ;;  %v1157_v26 = vpop.f32.mrf.mxu0 }
 0x1ae   :  { %2600 = vadd.xlane.f32.xlu2 %v2599_v3  ;;  %2456 = vadd.xlane.f32.xlu1 %v2455_v13  ;;  %v444_v3 = vpack.c.bf16 %v188_v5, %v188_v5  ;;  %v2115_v5 = vsub.f32 %v12430_v39, %v7253_v40  ;;  %v2116_v39 = vsub.f32 %v12437_v22, %v7279_v28 }
 0x1af   :  { %2552 = vadd.xlane.f32.xlu0 %v2551_v14  ;;  %v1452_v14 = vunpack.c.l.b16 %v445_v25  ;;  %v2084_v25 = vsub.f32 %v12433_v50, %v7275_v18  ;;  %v1978_v18 = vsel %vm1677_vm0, %v7483_v57, -inf }
 0x1b0   :  { %v1451_v54 = vunpack.c.l.b16 %v444_v3  ;;  %v2200_v3 = vmul.f32 1.442695, %v2067_v30  ;;  %v2296_v30 = vmul.f32 1.442695, %v2115_v5  ;;  %v2085_v5 = vsub.f32 %v12438_v44, %v7293_v17 }
 0x1b1   :  { %v7456_v7 = vpop.xlane.xlu1 %1763  ;;  %v7458_v60 = vpop.xlane.xlu2 %1811  ;;  %v2298_v17 = vmul.f32 1.442695, %v2116_v39  ;;  %v7528_v39 = vmul.f32 %v6858_v52, %v1157_v26 }
 0x1b2   :  { %v7464_v13 = vpop.xlane.xlu0 %1859  ;;  %v1463_v34 = vpack.c.b16 %v1452_v14, %v1451_v54  ;;  %6232 = vpow2.f32 %v2200_v3  ;;  %v12439_v3 = vld [vmem:[#allocation18_spill] sm:$0xff] }
 0x1b3   :  { %6234 = vpow2.f32 %v2232_v9  ;;  %v2069_v48 = vsub.f32 %v12439_v3, %v7295_v32  ;;  %v12441_v9 = vld [vmem:[#allocation20_spill] sm:$0xff]  ;;  %12446 = vst [vmem:[#allocation18_spill] sm:$0xff] %v7528_v39  ;;  %v12448_v3 = vld [vmem:[#allocation22_spill] sm:$0xff]  ;;  %v2122_v45 = vsub.f32 %v12491_v11, %v7464_v13 }
 0x1b4   :  { %1527 = vmatmul.bf16.gmra.mxu3 %v1463_v34  ;;  %6236 = vpow2.f32 %v2264_v24  ;;  %v2101_v50 = vsub.f32 %v12441_v9, %v7302_v46  ;;  %v191_v24 = vld [vmem:[#allocation3 + $0x3d8] sm:$0xff]  ;;  %v2086_v9 = vsub.f32 %v12448_v3, %v7326_v36  ;;  %v1399_v3 = vpop.f32.mrf.mxu2  ;;  %v1160_v57 = vpop.f32.mrf.mxu0  ;;  %v12495_v11 = vld [vmem:[#allocation42_spill] sm:$0xff] }
 0x1b5   :  { %6238 = vpow2.f32 %v2296_v30  ;;  %v447_v44 = vpack.c.bf16 %v191_v24, %v191_v24 }
 0x1b6   :  { %2507 = vadd.xlane.f32.xlu1 %v2506_v33  ;;  %1883 = vmax.xlane.f32.xlu2 %v1882_v35  ;;  %v7491_v33 = vpop.eup %6226  ;;  %v12435_v35 = vld [vmem:[#allocation16_spill] sm:$0xff]  ;;  %6240 = vpow2.f32 %v2202_v63 }
 0x1b7   :  { %1931 = vmax.xlane.f32.xlu0 %v1930_v27  ;;  %12434 = vst [vmem:[#allocation13_spill] sm:$0xff] %v7491_v33  ;;  %v2100_v12 = vsub.f32 %v12435_v35, %v7277_v10  ;;  %v7497_v14 = vpop.eup %6228  ;;  %v2234_v27 = vmul.f32 1.442695, %v2084_v25  ;;  %v2458_v10 = vsel %vm1677_vm0, %v7491_v33, 0.0  ;;  %v190_v25 = vld [vmem:[#allocation3 + $0x3d0] sm:$0xff] }
 0x1b8   :  { %12436 = vst [vmem:[#allocation15_spill] sm:$0xff] %v7497_v14  ;;  %v2602_v34 = vsel %vm1677_vm0, %v7497_v14, 0.0  ;;  %v7511_v28 = vpop.eup %6230  ;;  %v2236_v35 = vmul.f32 1.442695, %v2085_v5  ;;  %v446_v22 = vpack.c.bf16 %v190_v25, %v190_v25  ;;  %v1454_v25 = vunpack.c.l.b16 %v447_v44  ;;  %v12450_v14 = vld [vmem:[#allocation24_spill] sm:$0xff]  ;;  %v12453_v44 = vld [vmem:[#allocation25_spill] sm:$0xff] }
 0x1b9   :  { %v7487_v4 = vpop.xlane.xlu2 %1766  ;;  %v7489_v40 = vpop.xlane.xlu1 %1718  ;;  %v2266_v42 = vmul.f32 1.442695, %v2100_v12  ;;  %12440 = vst [vmem:[#allocation16_spill] sm:$0xff] %v7511_v28  ;;  %6242 = vpow2.f32 %v2234_v27  ;;  %v12443_v12 = vld [vmem:[#allocation23_spill] sm:$0xff]  ;;  %v12445_v27 = vld [vmem:[#allocation21_spill] sm:$0xff]  ;;  %v2554_v33 = vsel %vm1677_vm0, %v7511_v28, 0.0 }
 0x1ba   :  { %v7495_v54 = vpop.xlane.xlu0 %1814  ;;  %v7515_v30 = vpop.eup %6232  ;;  %v2117_v63 = vsub.f32 %v12443_v12, %v7320_v21  ;;  %v2070_v46 = vsub.f32 %v12445_v27, %v7322_v8  ;;  %v2204_v21 = vmul.f32 1.442695, %v2069_v48  ;;  %v1453_v12 = vunpack.c.l.b16 %v446_v22 }
 0x1bb   :  { %12442 = vst [vmem:[#allocation17_spill] sm:$0xff] %v7515_v30  ;;  %6244 = vpow2.f32 %v2266_v42  ;;  %v2268_v42 = vmul.f32 1.442695, %v2101_v50  ;;  %v2102_v8 = vsub.f32 %v12450_v14, %v7341_v61  ;;  %v1278_v50 = vpop.f32.mrf.mxu1  ;;  %v1885_v61 = vsel %vm1677_vm0, %v7528_v39, -inf }
 0x1bc   :  { %6246 = vpow2.f32 %v2298_v17  ;;  %v2300_v26 = vmul.f32 1.442695, %v2117_v63  ;;  %v2206_v22 = vmul.f32 1.442695, %v2070_v46  ;;  %v2118_v17 = vsub.f32 %v12453_v44, %v7343_v15  ;;  %v12454_v63 = vld [vmem:[#allocation26_spill] sm:$0xff]  ;;  %v12456_v15 = vld [vmem:[#allocation27_spill] sm:$0xff] }
 0x1bd   :  { %6248 = vpow2.f32 %v2236_v35  ;;  %v1464_v14 = vpack.c.b16 %v1454_v25, %v1453_v12  ;;  %v2238_v35 = vmul.f32 1.442695, %v2086_v9  ;;  %v2071_v28 = vsub.f32 %v12454_v63, %v7349_v47  ;;  %v12464_v63 = vld [vmem:[#allocation30_spill] sm:$0xff] }
 0x1be   :  { %1979 = vmax.xlane.f32.xlu1 %v1978_v18  ;;  %2459 = vadd.xlane.f32.xlu2 %v2458_v10  ;;  %v7523_v10 = vpop.eup %6234  ;;  %6250 = vpow2.f32 %v2204_v21  ;;  %v2270_v46 = vmul.f32 1.442695, %v2102_v8  ;;  %v2087_v44 = vsub.f32 %v12456_v15, %v7367_v31  ;;  %v7561_v39 = vmul.f32 %v6858_v52, %v1278_v50  ;;  %v12461_v31 = vld [vmem:[#allocation29_spill] sm:$0xff]  ;;  %v12463_v50 = vld [vmem:[#allocation31_spill] sm:$0xff] }
 0x1bf   :  { %2603 = vadd.xlane.f32.xlu0 %v2602_v34  ;;  %12444 = vst [vmem:[#allocation19_spill] sm:$0xff] %v7523_v10  ;;  %v7532_v5 = vpop.eup %6236  ;;  %v2509_v48 = vsel %vm1677_vm0, %v7523_v10, 0.0  ;;  %6252 = vpow2.f32 %v2268_v42  ;;  %v7564_v21 = vmul.f32 %v6858_v52, %v1399_v3  ;;  %v2302_v25 = vmul.f32 1.442695, %v2118_v17 }
 0x1c0   :  { %12447 = vst [vmem:[#allocation20_spill] sm:$0xff] %v7532_v5  ;;  %v7536_v24 = vpop.eup %6238  ;;  %6254 = vpow2.f32 %v2300_v26  ;;  %v2119_v42 = vsub.f32 %v12461_v31, %v7371_v51  ;;  %v2208_v26 = vmul.f32 1.442695, %v2071_v28  ;;  %v2088_v3 = vsub.f32 %v12463_v50, %v7383_v53  ;;  %v12466_v51 = vld [vmem:[#allocation32_spill] sm:$0xff]  ;;  %v12470_v31 = vld [vmem:[#allocation34_spill] sm:$0xff] }
 0x1c1   :  { %v7519_v18 = vpop.xlane.xlu1 %1862  ;;  %v7521_v32 = vpop.xlane.xlu2 %1721  ;;  %12449 = vst [vmem:[#allocation23_spill] sm:$0xff] %v7536_v24  ;;  %6256 = vpow2.f32 %v2206_v22  ;;  %v2072_v15 = vsub.f32 %v12464_v63, %v7385_v23  ;;  %v1981_v28 = vsel %vm1677_vm0, %v7564_v21, -inf  ;;  %v2461_v23 = vsel %vm1677_vm0, %v7515_v30, 0.0 }
 0x1c2   :  { %v7530_v34 = vpop.xlane.xlu0 %1769  ;;  %v7540_v27 = vpop.eup %6240  ;;  %12458 = vst [vmem:[#allocation25_spill] sm:$0xff] %v7561_v39  ;;  %6258 = vpow2.f32 %v2238_v35  ;;  %v2304_v53 = vmul.f32 1.442695, %v2119_v42  ;;  %v2073_v50 = vsub.f32 %v12470_v31, %v7413_v41  ;;  %v12472_v42 = vld [vmem:[#allocation35_spill] sm:$0xff]  ;;  %v2075_v13 = vsub.f32 %v12495_v11, %v7489_v40 }
 0x1c3   :  { %12451 = vst [vmem:[#allocation21_spill] sm:$0xff] %v7540_v27  ;;  %v7546_v36 = vpop.eup %6242  ;;  %6260 = vpow2.f32 %v2270_v46  ;;  %v12468_v46 = vld [vmem:[#allocation33_spill] sm:$0xff] }
 0x1c4   :  { %12452 = vst [vmem:[#allocation22_spill] sm:$0xff] %v7546_v36  ;;  %v7554_v10 = vpop.eup %6244  ;;  %1532 = vmatmul.bf16.gmra.mxu3 %v1464_v14  ;;  %v1933_v14 = vsel %vm1677_vm0, %v7561_v39, -inf  ;;  %6262 = vpow2.f32 %v2302_v25  ;;  %v2210_v25 = vmul.f32 1.442695, %v2072_v15 }
 0x1c5   :  { %12455 = vst [vmem:[#allocation24_spill] sm:$0xff] %v7554_v10  ;;  %v7570_v12 = vpop.eup %6246  ;;  %6264 = vpow2.f32 %v2208_v26 }
 0x1c6   :  { %2555 = vadd.xlane.f32.xlu1 %v2554_v33  ;;  %2510 = vadd.xlane.f32.xlu2 %v2509_v48  ;;  %v12457_v33 = vld [vmem:[#allocation28_spill] sm:$0xff]  ;;  %12459 = vst [vmem:[#allocation26_spill] sm:$0xff] %v7564_v21 }
 0x1c7   :  { %1886 = vmax.xlane.f32.xlu0 %v1885_v61  ;;  %v2103_v48 = vsub.f32 %v12457_v33, %v7369_v19  ;;  %12460 = vst [vmem:[#allocation27_spill] sm:$0xff] %v7570_v12  ;;  %v7576_v19 = vpop.eup %6248  ;;  %v2240_v61 = vmul.f32 1.442695, %v2087_v44  ;;  %v2104_v33 = vsub.f32 %v12466_v51, %v7389_v49  ;;  %v2120_v44 = vsub.f32 %v12468_v46, %v7411_v0 }
 0x1c8   :  { %12462 = vst [vmem:[#allocation28_spill] sm:$0xff] %v7576_v19  ;;  %v7582_v22 = vpop.eup %6250  ;;  %v2242_v49 = vmul.f32 1.442695, %v2088_v3  ;;  %v2089_v0 = vsub.f32 %v12472_v42, %v7418_v58  ;;  %v2212_v58 = vmul.f32 1.442695, %v2073_v50  ;;  %v193_v42 = vld [vmem:[#allocation3 + $0x3e8] sm:$0xff] }
 0x1c9   :  { %v7566_v9 = vpop.xlane.xlu1 %1817  ;;  %v7568_v47 = vpop.xlane.xlu2 %1865  ;;  %12465 = vst [vmem:[#allocation29_spill] sm:$0xff] %v7582_v22  ;;  %v2272_v17 = vmul.f32 1.442695, %v2103_v48  ;;  %6266 = vpow2.f32 %v2240_v61  ;;  %v12476_v61 = vld [vmem:[#allocation38_spill] sm:$0xff]  ;;  %v449_v30 = vpack.c.bf16 %v193_v42, %v193_v42  ;;  %v12479_v50 = vld [vmem:[#allocation36_spill] sm:$0xff] }
 0x1ca   :  { %v7574_v8 = vpop.xlane.xlu0 %1724  ;;  %v7590_v35 = vpop.eup %6252  ;;  %v2121_v15 = vsub.f32 %v12476_v61, %v7432_v43  ;;  %v2074_v61 = vsub.f32 %v12479_v50, %v7436_v55 }
 0x1cb   :  { %12467 = vst [vmem:[#allocation31_spill] sm:$0xff] %v7590_v35  ;;  %v7596_v48 = vpop.eup %6254  ;;  %6268 = vpow2.f32 %v2272_v17  ;;  %v2605_v17 = vsel %vm1677_vm0, %v7536_v24, 0.0  ;;  %v2512_v24 = vsel %vm1677_vm0, %v7546_v36, 0.0 }
 0x1cc   :  { %12469 = vst [vmem:[#allocation30_spill] sm:$0xff] %v7596_v48  ;;  %v7600_v63 = vpop.eup %6256  ;;  %6270 = vpow2.f32 %v2304_v53  ;;  %v2244_v53 = vmul.f32 1.442695, %v2089_v0  ;;  %v2308_v39 = vmul.f32 1.442695, %v2121_v15  ;;  %v1456_v0 = vunpack.c.l.b16 %v449_v30 }
 0x1cd   :  { %12471 = vst [vmem:[#allocation32_spill] sm:$0xff] %v7600_v63  ;;  %v7604_v51 = vpop.eup %6258  ;;  %6272 = vpow2.f32 %v2242_v49  ;;  %v2214_v30 = vmul.f32 1.442695, %v2074_v61 }
 0x1ce   :  { %1934 = vmax.xlane.f32.xlu1 %v1933_v14  ;;  %1982 = vmax.xlane.f32.xlu2 %v1981_v28  ;;  %12473 = vst [vmem:[#allocation33_spill] sm:$0xff] %v7604_v51  ;;  %v2274_v14 = vmul.f32 1.442695, %v2104_v33  ;;  %v12474_v28 = vld [vmem:[#allocation37_spill] sm:$0xff]  ;;  %v7612_v41 = vpop.eup %6260  ;;  %6274 = vpow2.f32 %v2210_v25 }
 0x1cf   :  { %2462 = vadd.xlane.f32.xlu0 %v2461_v23  ;;  %v2105_v46 = vsub.f32 %v12474_v28, %v7430_v20  ;;  %12475 = vst [vmem:[#allocation34_spill] sm:$0xff] %v7612_v41  ;;  %v2306_v23 = vmul.f32 1.442695, %v2120_v44  ;;  %v2557_v20 = vsel %vm1677_vm0, %v7532_v5, 0.0  ;;  %v192_v33 = vld [vmem:[#allocation3 + $0x3e0] sm:$0xff]  ;;  %v7622_v28 = vpop.eup %6262  ;;  %v1281_v44 = vpop.f32.mrf.mxu1 }
 0x1d0   :  { %12477 = vst [vmem:[#allocation35_spill] sm:$0xff] %v7622_v28  ;;  %v448_v21 = vpack.c.bf16 %v192_v33, %v192_v33  ;;  %v7624_v43 = vpop.eup %6264  ;;  %6276 = vpow2.f32 %v2274_v14  ;;  %v7635_v14 = vmul.f32 %v6858_v52, %v1160_v57  ;;  %v7638_v55 = vmul.f32 %v6858_v52, %v1281_v44 }
 0x1d1   :  { %v7608_v26 = vpop.xlane.xlu1 %1772  ;;  %v7610_v3 = vpop.xlane.xlu2 %1820  ;;  %12478 = vst [vmem:[#allocation37_spill] sm:$0xff] %v7624_v43  ;;  %v2276_v49 = vmul.f32 1.442695, %v2105_v46  ;;  %6278 = vpow2.f32 %v2306_v23 }
 0x1d2   :  { %v7616_v31 = vpop.xlane.xlu0 %1868  ;;  %v7630_v5 = vpop.eup %6266  ;;  %v1455_v25 = vunpack.c.l.b16 %v448_v21  ;;  %6280 = vpow2.f32 %v2212_v58  ;;  %12482 = vst [vmem:[#allocation83_spill] sm:$0xff] %v7635_v14 }
 0x1d3   :  { %12480 = vst [vmem:[#allocation38_spill] sm:$0xff] %v7630_v5  ;;  %v7632_v33 = vpop.eup %6268  ;;  %v1402_v46 = vpop.f32.mrf.mxu2  ;;  %6282 = vpow2.f32 %v2244_v53  ;;  %v177_v53 = vld [vmem:[#allocation3 + $0x368] sm:$0xff] }
 0x1d4   :  { %12481 = vst [vmem:[#allocation36_spill] sm:$0xff] %v7632_v33  ;;  %v7640_v42 = vpop.eup %6270  ;;  %v7643_v23 = vmul.f32 %v6858_v52, %v1402_v46  ;;  %v1465_v15 = vpack.c.b16 %v1456_v0, %v1455_v25  ;;  %6284 = vpow2.f32 %v2276_v49  ;;  %v12488_v49 = vld [vmem:[#allocation39_spill] sm:$0xff]  ;;  %v433_v0 = vpack.c.bf16 %v177_v53, %v177_v53 }
 0x1d5   :  { %12483 = vst [vmem:[#allocation84_spill] sm:$0xff] %v7638_v55  ;;  %v7645_v21 = vpop.eup %6272  ;;  %6286 = vpow2.f32 %v2308_v39  ;;  %v2090_v50 = vsub.f32 %v12488_v49, %v7456_v7  ;;  %v266_v46 = vld [vmem:[#allocation8 + $0x30] sm:$0xff]  ;;  %v1936_v39 = vsel %vm1677_vm0, %v7638_v55, -inf  ;;  %v1888_v7 = vsel %vm1677_vm0, %v7635_v14, -inf }
 0x1d6   :  { %2606 = vadd.xlane.f32.xlu1 %v2605_v17  ;;  %2558 = vadd.xlane.f32.xlu2 %v2557_v20  ;;  %12484 = vst [vmem:[#allocation85_spill] sm:$0xff] %v7640_v42  ;;  %v7657_v17 = vsel %vm1677_vm0, %v7554_v10, 0.0  ;;  %v176_v20 = vld [vmem:[#allocation3 + $0x360] sm:$0xff]  ;;  %v7659_v44 = vpop.eup %6274  ;;  %v12490_v10 = vld [vmem:[#allocation40_spill] sm:$0xff]  ;;  %v274_v49 = vld [vmem:[#allocation8 + $0x70] sm:$0xff]  ;;  %v1984_v59 = vsel %vm1677_vm0, %v7643_v23, -inf  ;;  %6288 = vpow2.f32 %v2214_v30  ;;  %v522_v55 = vpack.c.bf16 %v266_v46, %v266_v46 }
 0x1d7   :  { %2513 = vadd.xlane.f32.xlu0 %v2512_v24  ;;  %12485 = vst [vmem:[#allocation86_spill] sm:$0xff] %v7643_v23  ;;  %v7653_v24 = vsel %vm1677_vm0, %v7540_v27, 0.0  ;;  %1537 = vmatmul.bf16.gmra.mxu3 %v1465_v15  ;;  %v432_v25 = vpack.c.bf16 %v176_v20, %v176_v20  ;;  %v267_v27 = vld [vmem:[#allocation8 + $0x38] sm:$0xff]  ;;  %v7665_v36 = vpop.eup %6276  ;;  %v2106_v38 = vsub.f32 %v12490_v10, %v7458_v60  ;;  %v12493_v53 = vld [vmem:[#allocation43_spill] sm:$0xff]  ;;  %v1335_v10 = vunpack.c.l.b16 %v433_v0 }
 0x1d8   :  { %12486 = vst [vmem:[#allocation87_spill] sm:$0xff] %v7645_v21  ;;  %v275_v15 = vld [vmem:[#allocation8 + $0x78] sm:$0xff]  ;;  %v7675_v20 = vpop.eup %6278  ;;  %v2091_v37 = vsub.f32 %v12493_v53, %v7487_v4  ;;  %v523_v14 = vpack.c.bf16 %v267_v27, %v267_v27  ;;  %v2246_v6 = vmul.f32 1.442695, %v2090_v50  ;;  %v530_v4 = vpack.c.bf16 %v274_v49, %v274_v49  ;;  %v273_v49 = vld [vmem:[#allocation8 + $0x68] sm:$0xff] }
 0x1d9   :  { %v7647_v58 = vpop.xlane.xlu2 %1919  ;;  %v7649_v57 = vpop.xlane.xlu1 %1871  ;;  %12487 = vst [vmem:[#allocation88_spill] sm:$0xff] %v7659_v44  ;;  %v1334_v60 = vunpack.c.l.b16 %v432_v25  ;;  %v531_v53 = vpack.c.bf16 %v275_v15, %v275_v15  ;;  %v2278_v25 = vmul.f32 1.442695, %v2106_v38  ;;  %v2310_v0 = vmul.f32 1.442695, %v2122_v45  ;;  %v12499_v27 = vld [vmem:[#allocation44_spill] sm:$0xff] }
 0x1da   :  { %v7663_v61 = vpop.xlane.xlu0 %2495  ;;  %12489 = vst [vmem:[#allocation39_spill] sm:$0xff] %v7665_v36  ;;  %v7681_v2 = vpop.eup %6280  ;;  %v264_v36 = vld [vmem:[#allocation8 + $0x20] sm:$0xff]  ;;  %v4932_v30 = vunpack.c.l.b16 %v522_v55  ;;  %v2248_v40 = vmul.f32 1.442695, %v2091_v37  ;;  %v2107_v46 = vsub.f32 %v12499_v27, %v7495_v54  ;;  %v2608_v50 = vsel %vm1677_vm0, %v7570_v12, 0.0  ;;  %v12500_v54 = vld [vmem:[#allocation47_spill] sm:$0xff] }
 0x1db   :  { %12492 = vst [vmem:[#allocation40_spill] sm:$0xff] %v7675_v20  ;;  %v7685_v56 = vpop.eup %6282  ;;  %v1344_v21 = vpack.c.b16 %v1335_v10, %v1334_v60  ;;  %6290 = vrcp.f32 %v7663_v61  ;;  %v5070_v55 = vunpack.c.l.b16 %v531_v53  ;;  %v520_v37 = vpack.c.bf16 %v264_v36, %v264_v36  ;;  %v12501_v10 = vld [vmem:[#allocation45_spill] sm:$0xff] }
 0x1dc   :  { %12494 = vst [vmem:[#allocation41_spill] sm:$0xff] %v7681_v2  ;;  %v7687_v23 = vpop.eup %6284  ;;  %v4933_v2 = vunpack.c.l.b16 %v523_v14  ;;  %v5069_v14 = vunpack.c.l.b16 %v530_v4  ;;  %6292 = vpow2.f32 %v2246_v6  ;;  %v2216_v15 = vmul.f32 1.442695, %v2075_v13  ;;  %v12503_v6 = vld [vmem:[#allocation46_spill] sm:$0xff] }
 0x1dd   :  { %12496 = vst [vmem:[#allocation43_spill] sm:$0xff] %v7685_v56  ;;  %v7689_v20 = vpop.eup %6286  ;;  %1416 = vmatmul.bf16.gmra.mxu2 %v1344_v21  ;;  %v2123_v60 = vsub.f32 %v12500_v54, %v7519_v18  ;;  %v2076_v11 = vsub.f32 %v12501_v10, %v7521_v32  ;;  %v1162_v21 = vpop.f32.mrf.mxu0  ;;  %6294 = vpow2.f32 %v2278_v25  ;;  %v529_v4 = vpack.c.bf16 %v273_v49, %v273_v49  ;;  %v12504_v18 = vld [vmem:[#allocation48_spill] sm:$0xff] }
 0x1de   :  { %1937 = vmax.xlane.f32.xlu2 %v1936_v39  ;;  %1889 = vmax.xlane.f32.xlu1 %v1888_v7  ;;  %12497 = vst [vmem:[#allocation42_spill] sm:$0xff] %v7687_v23  ;;  %v265_v39 = vld [vmem:[#allocation8 + $0x28] sm:$0xff]  ;;  %v272_v7 = vld [vmem:[#allocation8 + $0x60] sm:$0xff]  ;;  %v4937_v45 = vpack.c.b16 %v4933_v2, %v4932_v30  ;;  %v7706_v12 = vpop.eup %6288  ;;  %6296 = vpow2.f32 %v2310_v0  ;;  %v2280_v36 = vmul.f32 1.442695, %v2107_v46  ;;  %v2092_v13 = vsub.f32 %v12503_v6, %v7530_v34 }
 0x1df   :  { %1985 = vmax.xlane.f32.xlu0 %v1984_v59  ;;  %12498 = vst [vmem:[#allocation89_spill] sm:$0xff] %v7689_v20  ;;  %v521_v20 = vpack.c.bf16 %v265_v39, %v265_v39  ;;  %v528_v2 = vpack.c.bf16 %v272_v7, %v272_v7  ;;  %v2108_v53 = vsub.f32 %v12504_v18, %v7566_v9  ;;  %6298 = vpow2.f32 %v2248_v40  ;;  %v12506_v0 = vld [vmem:[#allocation49_spill] sm:$0xff]  ;;  %v12507_v34 = vld [vmem:[#allocation50_spill] sm:$0xff]  ;;  %v1283_v40 = vpop.f32.mrf.mxu1 }
 0x1e0   :  { %12502 = vst [vmem:[#allocation44_spill] sm:$0xff] %v7706_v12  ;;  %4970 = vmatpush.bf16.msra.mxu0 %v4937_v45  ;;  %v7713_v32 = vmul.f32 %v6858_v52, %v1162_v21  ;;  %v5074_v30 = vpack.c.b16 %v5070_v55, %v5069_v14  ;;  %v4930_v54 = vunpack.c.l.b16 %v520_v37  ;;  %6300 = vpow2.f32 %v2216_v15  ;;  %v12511_v21 = vld [vmem:[#allocation51_spill] sm:$0xff] }
 0x1e1   :  { %v7696_v38 = vpop.xlane.xlu2 %2591  ;;  %v7698_v59 = vpop.xlane.xlu1 %2447  ;;  %v2312_v25 = vmul.f32 1.442695, %v2123_v60  ;;  %v2218_v39 = vmul.f32 1.442695, %v2076_v11  ;;  %v2124_v46 = vsub.f32 %v12506_v0, %v7568_v47  ;;  %v2077_v9 = vsub.f32 %v12507_v34, %v7574_v8 }
 0x1e2   :  { %v7704_v27 = vpop.xlane.xlu0 %1967  ;;  %12505 = vst [vmem:[#allocation47_spill] sm:$0xff] %v7713_v32  ;;  %v7715_v10 = vpop.eup %6290  ;;  %5107 = vmatpush.bf16.msra.mxu1 %v5074_v30  ;;  %v4931_v7 = vunpack.c.l.b16 %v521_v20  ;;  %v5067_v49 = vunpack.c.l.b16 %v528_v2  ;;  %v5068_v45 = vunpack.c.l.b16 %v529_v4  ;;  %6302 = vpow2.f32 %v2280_v36 }
 0x1e3   :  { %v7723_v14 = vpop.eup %6292  ;;  %v2250_v55 = vmul.f32 1.442695, %v2092_v13  ;;  %v2282_v37 = vmul.f32 1.442695, %v2108_v53  ;;  %v2093_v47 = vsub.f32 %v7200_v29, %v7608_v26  ;;  %v3055_v8 = vmul.f32 %v7715_v10, %v7663_v61  ;;  %v12515_v13 = vld [vmem:[#allocation52_spill] sm:$0xff]  ;;  %v1404_v53 = vpop.f32.mrf.mxu2 }
 0x1e4   :  { %12508 = vst [vmem:[#allocation45_spill] sm:$0xff] %v7723_v14  ;;  %6304 = vrcp.f32 %v7698_v59  ;;  %v4936_v20 = vpack.c.b16 %v4931_v7, %v4930_v54  ;;  %v5073_v15 = vpack.c.b16 %v5068_v45, %v5067_v49  ;;  %v2314_v11 = vmul.f32 1.442695, %v2124_v46 }
 0x1e5   :  { %6306 = vpow2.f32 %v2312_v25  ;;  %v2109_v29 = vsub.f32 %v12511_v21, %v7610_v3  ;;  %v7741_v26 = vmul.f32 %v6858_v52, %v1283_v40  ;;  %v2220_v36 = vmul.f32 1.442695, %v2077_v9 }
 0x1e6   :  { %2609 = vadd.xlane.f32.xlu2 %v2608_v50  ;;  %2465 = vadd.xlane.f32.xlu1 %v7653_v24  ;;  %v7727_v50 = vpop.eup %6294  ;;  %6308 = vpow2.f32 %v2218_v39  ;;  %v2125_v18 = vsub.f32 %v12515_v13, %v7616_v31  ;;  %v2515_v3 = vsel %vm1677_vm0, %v7576_v19, 0.0  ;;  %v2467_v30 = vsel %vm1677_vm0, %v7582_v22, 0.0  ;;  %v12522_v13 = vld [vmem:[#allocation53_spill] sm:$0xff] }
 0x1e7   :  { %2561 = vadd.xlane.f32.xlu0 %v7657_v17  ;;  %12509 = vst [vmem:[#allocation46_spill] sm:$0xff] %v7727_v50  ;;  %v7736_v60 = vpop.eup %6296  ;;  %4971 = vmatpush.bf16.msra.mxu0 %v4936_v20  ;;  %6310 = vpow2.f32 %v2250_v55  ;;  %v2252_v54 = vmul.f32 1.442695, %v2093_v47  ;;  %v3056_v25 = vsub.f32 1.0, %v3055_v8  ;;  %v1891_v39 = vsel %vm1677_vm0, %v7713_v32, -inf }
 0x1e8   :  { %12510 = vst [vmem:[#allocation48_spill] sm:$0xff] %v7736_v60  ;;  %v7745_v4 = vpop.eup %6298  ;;  %5108 = vmatpush.bf16.msra.mxu1 %v5073_v15  ;;  %6312 = vpow2.f32 %v2282_v37  ;;  %v2284_v46 = vmul.f32 1.442695, %v2109_v29  ;;  %v1939_v31 = vsel %vm1677_vm0, %v7741_v26, -inf  ;;  %v7763_v34 = vsel %vm1677_vm0, %v7590_v35, 0.0  ;;  %v12519_v37 = vld [vmem:[#allocation54_spill] sm:$0xff] }
 0x1e9   :  { %v7732_v24 = vpop.xlane.xlu1 %2015  ;;  %v7734_v17 = vpop.xlane.xlu2 %1874  ;;  %12512 = vst [vmem:[#allocation49_spill] sm:$0xff] %v7741_v26  ;;  %6314 = vpow2.f32 %v2314_v11  ;;  %v7768_v40 = vmul.f32 %v6858_v52, %v1404_v53  ;;  %v2611_v7 = vsel %vm1677_vm0, %v7596_v48, 0.0  ;;  %v7774_v49 = vsel %vm1677_vm0, %v7600_v63, 0.0  ;;  %v270_v63 = vld [vmem:[#allocation8 + $0x50] sm:$0xff]  ;;  %v269_v60 = vld [vmem:[#allocation8 + $0x48] sm:$0xff] }
 0x1ea   :  { %v7743_v2 = vpop.xlane.xlu0 %2543  ;;  %12513 = vst [vmem:[#allocation50_spill] sm:$0xff] %v7745_v4  ;;  %v7747_v6 = vpop.eup %6300  ;;  %6316 = vpow2.f32 %v2220_v36  ;;  %v2316_v55 = vmul.f32 1.442695, %v2125_v18  ;;  %v2142_v47 = vsub.f32 %v12519_v37, %v7647_v58  ;;  %v7783_v8 = vsel %vm1677_vm0, %v7604_v51, 0.0  ;;  %v271_v51 = vld [vmem:[#allocation8 + $0x58] sm:$0xff]  ;;  %v260_v4 = vld [vmem:[#allocation8] sm:$0xff] }
 0x1eb   :  { %12514 = vst [vmem:[#allocation51_spill] sm:$0xff] %v7747_v6  ;;  %v7757_v0 = vpop.eup %6302  ;;  %6318 = vrcp.f32 %v7696_v38  ;;  %v3057_v15 = vmul.f32 %v7715_v10, %v3056_v25  ;;  %v7794_v29 = vsel %vm1677_vm0, %v7622_v28, 0.0  ;;  %v7798_v58 = vsel %vm1677_vm0, %v7612_v41, 0.0  ;;  %v263_v28 = vld [vmem:[#allocation8 + $0x18] sm:$0xff]  ;;  %v261_v6 = vld [vmem:[#allocation8 + $0x8] sm:$0xff] }
 0x1ec   :  { %12516 = vst [vmem:[#allocation52_spill] sm:$0xff] %v7757_v0  ;;  %v7765_v9 = vpop.eup %6304  ;;  %6320 = vpow2.f32 %v2252_v54  ;;  %v2126_v18 = vsub.f32 %v12522_v13, %v7649_v57  ;;  %v3063_v53 = vand.u32 2147483647, %v7663_v61  ;;  %v7820_v57 = vsel %vm1677_vm0, %v7624_v43, 0.0  ;;  %v1165_v43 = vpop.f32.mrf.mxu0 }
 0x1ed   :  { %12517 = vst [vmem:[#allocation90_spill] sm:$0xff] %v7768_v40  ;;  %v7776_v45 = vpop.eup %6306  ;;  %6322 = vpow2.f32 %v2284_v46  ;;  %v7816_v46 = vsel %vm1677_vm0, %v7630_v5, 0.0  ;;  %v2350_v13 = vmul.f32 1.442695, %v2142_v47  ;;  %v3065_v41 = vand.u32 2147483648, %v7663_v61  ;;  %v12537_v47 = vld [vmem:[#allocation55_spill] sm:$0xff] }
 0x1ee   :  { %2516 = vadd.xlane.f32.xlu1 %v2515_v3  ;;  %1892 = vmax.xlane.f32.xlu2 %v1891_v39  ;;  %12518 = vst [vmem:[#allocation91_spill] sm:$0xff] %v7776_v45  ;;  %v7785_v20 = vpop.eup %6308  ;;  %v2831_v3 = vmul.f32 %v7765_v9, %v7698_v59  ;;  %v1987_v39 = vsel %vm1677_vm0, %v7768_v40, -inf  ;;  %v3058_v35 = vadd.f32 %v7715_v10, %v3057_v15  ;;  %vm3059_vm1 = vweird.f32 %v7663_v61  ;;  %v268_v45 = vld [vmem:[#allocation8 + $0x40] sm:$0xff] }
 0x1ef   :  { %1940 = vmax.xlane.f32.xlu0 %v1939_v31  ;;  %12520 = vst [vmem:[#allocation54_spill] sm:$0xff] %v7785_v20  ;;  %v7800_v36 = vpop.eup %6310  ;;  %v262_v31 = vld [vmem:[#allocation8 + $0x10] sm:$0xff]  ;;  %vm3060_vm2 = vweird.f32 %v7715_v10  ;;  %vm7835_vm3 = vcmp.eq.f32.partialorder %v3063_v53, 8.507059e+37  ;;  %v7840_v15 = vmul.f32 %v6858_v52, %v1165_v43  ;;  %v519_v48 = vpack.c.bf16 %v263_v28, %v263_v28 }
 0x1f0   :  { %12521 = vst [vmem:[#allocation92_spill] sm:$0xff] %v7800_v36  ;;  %v7809_v25 = vpop.eup %6312  ;;  %v2832_v20 = vsub.f32 1.0, %v2831_v3  ;;  %v526_v22 = vpack.c.bf16 %v270_v63, %v270_v63  ;;  %v527_v40 = vpack.c.bf16 %v271_v51, %v271_v51  ;;  %vm7850_vm4 = vmor %vm3059_vm1, %vm3060_vm2  ;;  %v3066_v43 = vor.u32 1.1754944e-38, %v3065_v41 }
 0x1f1   :  { %v7788_v11 = vpop.xlane.xlu1 %2498  ;;  %v7790_v21 = vpop.xlane.xlu2 %2450  ;;  %12523 = vst [vmem:[#allocation53_spill] sm:$0xff] %v7809_v25  ;;  %v3062_v63 = vsel %vm7850_vm4, %v7715_v10, %v3058_v35  ;;  %v2839_v28 = vand.u32 2147483647, %v7698_v59  ;;  %v2841_v61 = vand.u32 2147483648, %v7698_v59  ;;  %vm2835_vm5 = vweird.f32 %v7698_v59 }
 0x1f2   :  { %v7807_v54 = vpop.xlane.xlu0 %1922  ;;  %6324 = vrcp.f32 %v7788_v11  ;;  %v7822_v37 = vpop.eup %6314  ;;  %12528 = vst [vmem:[#allocation95_spill] sm:$0xff] %v7840_v15  ;;  %vm2836_vm7 = vweird.f32 %v7765_v9  ;;  %vm3507_vm10 = vweird.f32 %v7696_v38  ;;  %vm3073_vm12 = vweird.f32 %v7788_v11 }
 0x1f3   :  { %12524 = vst [vmem:[#allocation93_spill] sm:$0xff] %v7822_v37  ;;  %6326 = vpow2.f32 %v2316_v55  ;;  %v7825_v36 = vpop.eup %6316  ;;  %v7833_v55 = vmul.f32 1.442695, %v2126_v18  ;;  %v518_v37 = vpack.c.bf16 %v262_v31, %v262_v31  ;;  %v2833_v31 = vmul.f32 %v7765_v9, %v2832_v20  ;;  %vm7912_vm11 = vmor %vm2835_vm5, %vm2836_vm7 }
 0x1f4   :  { %12525 = vst [vmem:[#allocation94_spill] sm:$0xff] %v7825_v36  ;;  %6328 = vrcp.f32 %v7790_v21  ;;  %v7831_v5 = vpop.eup %6318  ;;  %vm7886_vm6 = vcmp.eq.f32.partialorder %v2839_v28, 8.507059e+37  ;;  %vm2849_vm14 = vweird.f32 %v7790_v21  ;;  %v525_v0 = vpack.c.bf16 %v269_v60, %v269_v60 }
 0x1f5   :  { %v7842_v36 = vpop.eup %6320  ;;  %6330 = vpow2.f32 %v2350_v13  ;;  %v3503_v51 = vmul.f32 %v7831_v5, %v7696_v38  ;;  %v1894_v13 = vsel %vm1677_vm0, %v7840_v15, -inf  ;;  %v2842_v15 = vor.u32 1.1754944e-38, %v2841_v61 }
 0x1f6   :  { %1988 = vmax.xlane.f32.xlu1 %v1987_v39  ;;  %2468 = vadd.xlane.f32.xlu2 %v2467_v30  ;;  %12529 = vst [vmem:[#allocation96_spill] sm:$0xff] %v7842_v36  ;;  %v7844_v26 = vpop.eup %6322  ;;  %v4929_v30 = vunpack.c.l.b16 %v519_v48  ;;  %v5065_v36 = vunpack.c.l.b16 %v526_v22  ;;  %6332 = vrcp.f32 %v7743_v2  ;;  %v2834_v22 = vadd.f32 %v7765_v9, %v2833_v31  ;;  %v194_v31 = vld [vmem:[#allocation3 + $0x3f0] sm:$0xff] }
 0x1f7   :  { %2612 = vadd.xlane.f32.xlu0 %v2611_v7  ;;  %12530 = vst [vmem:[#allocation97_spill] sm:$0xff] %v7844_v26  ;;  %v4928_v7 = vunpack.c.l.b16 %v518_v37  ;;  %v5066_v26 = vunpack.c.l.b16 %v527_v40  ;;  %v3504_v19 = vsub.f32 1.0, %v3503_v51  ;;  %vm3508_vm15 = vweird.f32 %v7831_v5 }
 0x1f8   :  { %v7856_v53 = vpop.eup %6324  ;;  %v2838_v59 = vsel %vm7912_vm11, %v7765_v9, %v2834_v22  ;;  %v450_v22 = vpack.c.bf16 %v194_v31, %v194_v31  ;;  %vm7999_vm5 = vmor %vm3507_vm10, %vm3508_vm15  ;;  %vm3283_vm10 = vweird.f32 %v7743_v2 }
 0x1f9   :  { %v7865_v3 = vpop.xlane.xlu1 %1970  ;;  %v7867_v41 = vpop.xlane.xlu2 %2018  ;;  %v3069_v35 = vmul.f32 %v7856_v53, %v7788_v11  ;;  %vm3074_vm8 = vweird.f32 %v7856_v53  ;;  %v5072_v51 = vpack.c.b16 %v5066_v26, %v5065_v36  ;;  %v3079_v36 = vand.u32 2147483648, %v7788_v11 }
 0x1fa   :  { %v7869_v39 = vpop.eup %6326  ;;  %v7875_v10 = vpop.xlane.xlu0 %2594  ;;  %vm7930_vm13 = vmor %vm3073_vm12, %vm3074_vm8  ;;  %v1457_v32 = vunpack.c.l.b16 %v450_v22 }
 0x1fb   :  { %12533 = vst [vmem:[#allocation98_spill] sm:$0xff] %v7869_v39  ;;  %v7879_v18 = vpop.eup %6328  ;;  %v3067_v39 = vsel %vm7835_vm3, %v3066_v43, %v3062_v63  ;;  %v3070_v20 = vsub.f32 1.0, %v3069_v35  ;;  %6334 = vrcp.f32 %v7875_v10  ;;  %v4935_v63 = vpack.c.b16 %v4929_v30, %v4928_v7  ;;  %5109 = vmatpush.bf16.msra.mxu1 %v5072_v51 }
 0x1fc   :  { %v2845_v25 = vmul.f32 %v7879_v18, %v7790_v21  ;;  %v7891_v48 = vpop.eup %6330  ;;  %v7899_v43 = vmul.f32 %v12537_v47, %v3067_v39  ;;  %vm2850_vm9 = vweird.f32 %v7879_v18  ;;  %v2853_v30 = vand.u32 2147483647, %v7790_v21 }
 0x1fd   :  { %12536 = vst [vmem:[#allocation99_spill] sm:$0xff] %v7891_v48  ;;  %v3071_v40 = vmul.f32 %v7856_v53, %v3070_v20  ;;  %4972 = vmatpush.bf16.msra.mxu0 %v4935_v63  ;;  %vm7944_vm1 = vmor %vm2849_vm14, %vm2850_vm9  ;;  %v3080_v31 = vor.u32 1.1754944e-38, %v3079_v36  ;;  %vm3521_vm7 = vweird.f32 %v7875_v10 }
 0x1fe   :  { %v2846_v37 = vsub.f32 1.0, %v2845_v25  ;;  %2564 = vadd.xlane.f32.xlu1 %v7763_v34  ;;  %2519 = vadd.xlane.f32.xlu2 %v7783_v8  ;;  %v2855_v25 = vand.u32 2147483648, %v7790_v21  ;;  %v195_v34 = vld [vmem:[#allocation3 + $0x3f8] sm:$0xff]  ;;  %v3505_v8 = vmul.f32 %v7831_v5, %v3504_v19  ;;  %v7923_v19 = vpop.eup %6332  ;;  %vm2854_vm2 = vcmp.eq.f32.partialorder %v2853_v30, 8.507059e+37 }
 0x1ff   :  { %1895 = vmax.xlane.f32.xlu0 %v1894_v13  ;;  %v3072_v28 = vadd.f32 %v7856_v53, %v3071_v40  ;;  %v3077_v13 = vand.u32 2147483647, %v7788_v11  ;;  %v451_v11 = vpack.c.bf16 %v195_v34, %v195_v34  ;;  %v3279_v26 = vmul.f32 %v7923_v19, %v7743_v2  ;;  %v290_v34 = vld [vmem:[#allocation8 + $0xf0] sm:$0xff]  ;;  %v12545_v30 = vld [vmem:[#allocation56_spill] sm:$0xff] }
 0x200   :  { %v2847_v61 = vmul.f32 %v7879_v18, %v2846_v37  ;;  %v2856_v63 = vor.u32 1.1754944e-38, %v2855_v25  ;;  %v1407_v25 = vpop.f32.mrf.mxu2  ;;  %vm3284_vm8 = vweird.f32 %v7923_v19 }
 0x201   :  { %v7919_v7 = vpop.xlane.xlu1 %2546  ;;  %v7921_v39 = vpop.xlane.xlu2 %2501  ;;  %v3076_v21 = vsel %vm7930_vm13, %v7856_v53, %v3072_v28  ;;  %v4766_v53 = vpack.c.bf16 %v7899_v43, %v7899_v43  ;;  %v7964_v28 = vadd.f32 %v7831_v5, %v3505_v8  ;;  %vm3078_vm3 = vcmp.eq.f32.partialorder %v3077_v13, 8.507059e+37  ;;  %v291_v8 = vld [vmem:[#allocation8 + $0xf8] sm:$0xff]  ;;  %vm8083_vm15 = vmor %vm3283_vm10, %vm3284_vm8 }
 0x202   :  { %v2848_v20 = vadd.f32 %v7879_v18, %v2847_v61  ;;  %v7937_v40 = vpop.xlane.xlu0 %1877  ;;  %v7939_v37 = vpop.eup %6334  ;;  %6336 = vrcp.f32 %v7919_v7  ;;  %v2843_v61 = vsel %vm7886_vm6, %v2842_v15, %v2838_v59  ;;  %v3081_v35 = vsel %vm3078_vm3, %v3080_v31, %v3076_v21  ;;  %v12544_v59 = vld [vmem:[#allocation57_spill] sm:$0xff] }
 0x203   :  { %v3517_v51 = vmul.f32 %v7939_v37, %v7875_v10  ;;  %v1458_v15 = vunpack.c.l.b16 %v451_v11  ;;  %v7968_v36 = vmul.f32 %v12544_v59, %v2843_v61  ;;  %v546_v13 = vpack.c.bf16 %v290_v34, %v290_v34 }
 0x204   :  { %v2852_v47 = vsel %vm7944_vm1, %v7879_v18, %v2848_v20  ;;  %v1286_v20 = vpop.f32.mrf.mxu1  ;;  %v12547_v21 = vand.u32 2147483647, %v7696_v38  ;;  %v7987_v31 = vmul.f32 %v6858_v52, %v1407_v25  ;;  %v7993_v59 = vunpack.c.l.b16 %v4766_v53  ;;  %v12555_v25 = vld [vmem:[#allocation62_spill] sm:$0xff] }
 0x205   :  { %v2857_v18 = vsel %vm2854_vm2, %v2856_v63, %v2852_v47  ;;  %v3518_v9 = vsub.f32 1.0, %v3517_v51  ;;  %v7973_v43 = vmul.f32 %v6858_v52, %v1286_v20  ;;  %v3280_v63 = vsub.f32 1.0, %v3279_v26  ;;  %v12551_v51 = vld [vmem:[#allocation63_spill] sm:$0xff] }
 0x206   :  { %vm7979_vm4 = vcmp.eq.f32.partialorder %v12547_v21, 8.507059e+37  ;;  %v4623_v61 = vmul.f32 %v12551_v51, %v2857_v18  ;;  %12552 = vst [vmem:[#allocation57_spill] sm:$0xff] %v7987_v31  ;;  %v3510_v53 = vsel %vm7999_vm5, %v7831_v5, %v7964_v28  ;;  %v547_v14 = vpack.c.bf16 %v291_v8, %v291_v8 }
 0x207   :  { %2471 = vadd.xlane.f32.xlu0 %v7774_v49  ;;  %12546 = vst [vmem:[#allocation55_spill] sm:$0xff] %v7973_v43  ;;  %v12550_v49 = vand.u32 2147483648, %v7696_v38  ;;  %v3519_v48 = vmul.f32 %v7939_v37, %v3518_v9  ;;  %v1466_v38 = vpack.c.b16 %v1458_v15, %v1457_v32  ;;  %v4750_v26 = vpack.c.bf16 %v7968_v36, %v7968_v36 }
 0x208   :  { %v7975_v47 = vpop.eup %6336  ;;  %v3281_v5 = vmul.f32 %v7923_v19, %v3280_v63  ;;  %v4751_v28 = vpack.c.bf16 %v4623_v61, %v4623_v61  ;;  %v5344_v9 = vunpack.c.l.b16 %v547_v14  ;;  %v1990_v32 = vsel %vm1677_vm0, %v7987_v31, -inf  ;;  %v178_v31 = vld [vmem:[#allocation3 + $0x370] sm:$0xff] }
 0x209   :  { %v3514_v11 = vor.u32 1.1754944e-38, %v12550_v49  ;;  %v7989_v20 = vpop.xlane.xlu1 %1925  ;;  %v7991_v34 = vpop.xlane.xlu2 %1973  ;;  %v4639_v49 = vmul.f32 %v12555_v25, %v3081_v35  ;;  %v3293_v18 = vmul.f32 %v7975_v47, %v7919_v7  ;;  %v5343_v35 = vunpack.c.l.b16 %v546_v13  ;;  %1542 = vmatmul.bf16.gmra.mxu3 %v1466_v38  ;;  %1991 = vmax.xlane.f32.xlu2 %v1990_v32 }
 0x20a   :  { %v8006_v51 = vpop.xlane.xlu0 %2453  ;;  %v1942_v25 = vsel %vm1677_vm0, %v7973_v43, -inf  ;;  %vm3522_vm6 = vweird.f32 %v7939_v37  ;;  %v516_v36 = vpack.c.bf16 %v260_v4, %v260_v4  ;;  %v517_v8 = vpack.c.bf16 %v261_v6, %v261_v6  ;;  %v288_v4 = vld [vmem:[#allocation8 + $0xe0] sm:$0xff]  ;;  %v289_v6 = vld [vmem:[#allocation8 + $0xe8] sm:$0xff] }
 0x20b   :  { %1943 = vmax.xlane.f32.xlu1 %v1942_v25  ;;  %v4767_v15 = vpack.c.bf16 %v4639_v49, %v4639_v49  ;;  %v3520_v13 = vadd.f32 %v7939_v37, %v3519_v48  ;;  %v5348_v21 = vpack.c.b16 %v5344_v9, %v5343_v35  ;;  %v524_v43 = vpack.c.bf16 %v268_v45, %v268_v45  ;;  %vm8038_vm9 = vmor %vm3521_vm7, %vm3522_vm6 }
 0x20c   :  { %v3294_v14 = vsub.f32 1.0, %v3293_v18  ;;  %v4926_v63 = vunpack.c.l.b16 %v516_v36  ;;  %v4927_v61 = vunpack.c.l.b16 %v517_v8  ;;  %v4895_v38 = vunpack.c.l.b16 %v4751_v28  ;;  %v179_v18 = vld [vmem:[#allocation3 + $0x378] sm:$0xff] }
 0x20d   :  { %v3527_v49 = vand.u32 2147483648, %v7875_v10  ;;  %5381 = vmatpush.bf16.msra.mxu3 %v5348_v21  ;;  %v5063_v25 = vunpack.c.l.b16 %v524_v43  ;;  %v5064_v32 = vunpack.c.l.b16 %v525_v0  ;;  %v3515_v60 = vsel %vm7979_vm4, %v3514_v11, %v3510_v53 }
 0x20e   :  { %v3525_v0 = vand.u32 2147483647, %v7875_v10  ;;  %v4934_v43 = vpack.c.b16 %v4927_v61, %v4926_v63  ;;  %v4894_v28 = vunpack.c.l.b16 %v4750_v26  ;;  %v5032_v22 = vunpack.c.l.b16 %v4767_v15 }
 0x20f   :  { %2522 = vadd.xlane.f32.xlu0 %v7816_v46  ;;  %v3524_v11 = vsel %vm8038_vm9, %v7939_v37, %v3520_v13  ;;  %v5071_v53 = vpack.c.b16 %v5064_v32, %v5063_v25  ;;  %v3295_v9 = vmul.f32 %v7975_v47, %v3294_v14  ;;  %v544_v36 = vpack.c.bf16 %v288_v4, %v288_v4  ;;  %v282_v13 = vld [vmem:[#allocation8 + $0xb0] sm:$0xff]  ;;  %v283_v25 = vld [vmem:[#allocation8 + $0xb8] sm:$0xff] }
 0x210   :  { %4973 = vmatpush.bf16.msra.mxu0 %v4934_v43  ;;  %v545_v8 = vpack.c.bf16 %v289_v6, %v289_v6  ;;  %v434_v21 = vpack.c.bf16 %v178_v31, %v178_v31  ;;  %v8051_v10 = vadd.f32 %v7923_v19, %v3281_v5  ;;  %v3528_v63 = vor.u32 1.1754944e-38, %v3527_v49  ;;  %v286_v14 = vld [vmem:[#allocation8 + $0xd0] sm:$0xff]  ;;  %v280_v49 = vld [vmem:[#allocation8 + $0xa0] sm:$0xff] }
 0x211   :  { %v8027_v48 = vpop.xlane.xlu1 %2597  ;;  %v8029_v45 = vpop.xlane.xlu2 %2549  ;;  %5110 = vmatpush.bf16.msra.mxu1 %v5071_v53  ;;  %v435_v26 = vpack.c.bf16 %v179_v18, %v179_v18  ;;  %v4910_v61 = vpack.c.b16 %v4895_v38, %v4894_v28  ;;  %vm3526_vm11 = vcmp.eq.f32.partialorder %v3525_v0, 8.507059e+37  ;;  %v5341_v15 = vunpack.c.l.b16 %v544_v36  ;;  %2567 = vadd.xlane.f32.xlu2 %v7798_v58  ;;  %v287_v38 = vld [vmem:[#allocation8 + $0xd8] sm:$0xff]  ;;  %v281_v0 = vld [vmem:[#allocation8 + $0xa8] sm:$0xff] }
 0x212   :  { %v8043_v35 = vpop.xlane.xlu0 %2504  ;;  %v5342_v46 = vunpack.c.l.b16 %v545_v8  ;;  %v1336_v37 = vunpack.c.l.b16 %v434_v21  ;;  %v3529_v32 = vsel %vm3526_vm11, %v3528_v63, %v3524_v11  ;;  %vm3297_vm12 = vweird.f32 %v7919_v7  ;;  %v279_v21 = vld [vmem:[#allocation8 + $0x98] sm:$0xff] }
 0x213   :  { %2615 = vadd.xlane.f32.xlu1 %v7794_v29  ;;  %v1337_v31 = vunpack.c.l.b16 %v435_v26  ;;  %6122 = vmatmul.msk.bf16.vlgmr.msra.gmra.mxu0 %vm1677_vm0, %v4910_v61  ;;  %v5047_v5 = vpack.c.b16 %v5032_v22, %v7993_v59  ;;  %v3296_v29 = vadd.f32 %v7975_v47, %v3295_v9  ;;  %vm3298_vm13 = vweird.f32 %v7975_v47 }
 0x214   :  { %v3303_v4 = vand.u32 2147483648, %v7919_v7  ;;  %v5347_v6 = vpack.c.b16 %v5342_v46, %v5341_v15  ;;  %v538_v58 = vpack.c.bf16 %v282_v13, %v282_v13  ;;  %v539_v18 = vpack.c.bf16 %v283_v25, %v283_v25  ;;  %vm8074_vm14 = vmor %vm3297_vm12, %vm3298_vm13  ;;  %v12560_v15 = vld [vmem:[#allocation58_spill] sm:$0xff] }
 0x215   :  { %v1345_v43 = vpack.c.b16 %v1337_v31, %v1336_v37  ;;  %6130 = vmatmul.msk.bf16.vlgmr.msra.gmra.mxu1 %vm1677_vm0, %v5047_v5  ;;  %v542_v28 = vpack.c.bf16 %v286_v14, %v286_v14  ;;  %v4671_v59 = vmul.f32 %v7324_v16, %v3529_v32  ;;  %v3301_v22 = vand.u32 2147483647, %v7919_v7  ;;  %v284_v5 = vld [vmem:[#allocation8 + $0xc0] sm:$0xff] }
 0x216   :  { %5382 = vmatpush.bf16.msra.mxu3 %v5347_v6  ;;  %v543_v9 = vpack.c.bf16 %v287_v38, %v287_v38  ;;  %v536_v36 = vpack.c.bf16 %v280_v49, %v280_v49  ;;  %v5206_v63 = vunpack.c.l.b16 %v538_v58  ;;  %v5207_v26 = vunpack.c.l.b16 %v539_v18  ;;  %v1167_v58 = vpop.f32.mrf.mxu0  ;;  %v1288_v18 = vpop.f32.mrf.mxu1 }
 0x217   :  { %1421 = vmatmul.bf16.gmra.mxu2 %v1345_v43  ;;  %v5339_v61 = vunpack.c.l.b16 %v542_v28  ;;  %v537_v16 = vpack.c.bf16 %v281_v0, %v281_v0  ;;  %v4670_v46 = vmul.f32 %v12560_v15, %v3515_v60  ;;  %v3300_v7 = vsel %vm8074_vm14, %v7975_v47, %v3296_v29  ;;  %v285_v43 = vld [vmem:[#allocation8 + $0xc8] sm:$0xff] }
 0x218   :  { %v5340_v13 = vunpack.c.l.b16 %v543_v9  ;;  %v5204_v25 = vunpack.c.l.b16 %v536_v36  ;;  %v3286_v14 = vsel %vm8083_vm15, %v7923_v19, %v8051_v10  ;;  %v3304_v60 = vor.u32 1.1754944e-38, %v3303_v4  ;;  %v278_v36 = vld [vmem:[#allocation8 + $0x90] sm:$0xff] }
 0x219   :  { %v8062_v11 = vpop.xlane.xlu2 %1928  ;;  %v8064_v53 = vpop.xlane.xlu1 %1880  ;;  %v5211_v32 = vpack.c.b16 %v5207_v26, %v5206_v63  ;;  %v5205_v31 = vunpack.c.l.b16 %v537_v16  ;;  %v12563_v38 = vand.u32 2147483648, %v7743_v2  ;;  %v4799_v6 = vpack.c.bf16 %v4671_v59, %v4671_v59 }
 0x21a   :  { %v8068_v8 = vpop.xlane.xlu0 %1976  ;;  %vm3302_vm1 = vcmp.eq.f32.partialorder %v3301_v22, 8.507059e+37  ;;  %v5346_v0 = vpack.c.b16 %v5340_v13, %v5339_v61  ;;  %v12564_v47 = vand.u32 2147483647, %v7743_v2  ;;  %6338 = vrcp.f32 %v7921_v39  ;;  %v8100_v59 = vpop.f32.mrf.mxu3  ;;  %v12565_v22 = vld [vmem:[#allocation59_spill] sm:$0xff]  ;;  %v12567_v13 = vld [vmem:[#allocation61_spill] sm:$0xff] }
 0x21b   :  { %v3290_v49 = vor.u32 1.1754944e-38, %v12563_v38  ;;  %v3305_v29 = vsel %vm3302_vm1, %v3304_v60, %v3300_v7  ;;  %5244 = vmatpush.bf16.msra.mxu2 %v5211_v32  ;;  %v5210_v19 = vpack.c.b16 %v5205_v31, %v5204_v25  ;;  %6340 = vpow2.f32 %v7833_v55 }
 0x21c   :  { %vm3288_vm2 = vcmp.eq.f32.partialorder %v12564_v47, 8.507059e+37  ;;  %v4798_v10 = vpack.c.bf16 %v4670_v46, %v4670_v46  ;;  %5383 = vmatpush.bf16.msra.mxu3 %v5346_v0  ;;  %v540_v28 = vpack.c.bf16 %v284_v5, %v284_v5  ;;  %v2174_v9 = vsub.f32 %v12565_v22, %v7732_v24  ;;  %v1409_v46 = vpop.f32.mrf.mxu2 }
 0x21d   :  { %v3291_v4 = vsel %vm3288_vm2, %v3290_v49, %v3286_v14  ;;  %v541_v2 = vpack.c.bf16 %v285_v43, %v285_v43  ;;  %6342 = vrcp.f32 %v8043_v35  ;;  %v8107_v63 = vsel %vm1677_vm0, %v7632_v33, 0.0 }
 0x21e   :  { %v12566_v61 = vsub.f32 %v12545_v30, %v7704_v27  ;;  %v5306_v15 = vunpack.c.l.b16 %v4799_v6  ;;  %v4655_v24 = vmul.f32 %v7339_v62, %v3305_v29  ;;  %v5337_v37 = vunpack.c.l.b16 %v540_v28  ;;  %v12570_v27 = vld [vmem:[#allocation60_spill] sm:$0xff]  ;;  %v276_v29 = vld [vmem:[#allocation8 + $0x80] sm:$0xff] }
 0x21f   :  { %v4654_v25 = vmul.f32 %v12567_v13, %v3291_v4  ;;  %v8121_v14 = vmul.f32 %v6858_v52, %v1167_v58  ;;  %v8124_v60 = vmul.f32 %v6858_v52, %v1288_v18  ;;  %5245 = vmatpush.bf16.msra.mxu2 %v5210_v19  ;;  %v5338_v32 = vunpack.c.l.b16 %v541_v2  ;;  %v12571_v6 = vld [vmem:[#allocation64_spill] sm:$0xff] }
 0x220   :  { %v2382_v16 = vmul.f32 1.442695, %v12566_v61  ;;  %v5305_v31 = vunpack.c.l.b16 %v4798_v10  ;;  %v2127_v30 = vsub.f32 %v12570_v27, %v7734_v17  ;;  %v534_v5 = vpack.c.bf16 %v278_v36, %v278_v36  ;;  %v8128_v38 = vpop.eup %6338  ;;  %v277_v17 = vld [vmem:[#allocation8 + $0x88] sm:$0xff] }
 0x221   :  { %v8109_v55 = vpop.xlane.xlu2 %2600  ;;  %v8111_v26 = vpop.xlane.xlu1 %2456  ;;  %12568 = vst [vmem:[#allocation56_spill] sm:$0xff] %v8121_v14  ;;  %v535_v62 = vpack.c.bf16 %v279_v21, %v279_v21  ;;  %v2414_v49 = vmul.f32 1.442695, %v2174_v9  ;;  %v2143_v0 = vsub.f32 %v12571_v6, %v7807_v54  ;;  %v8133_v43 = vmul.f32 %v6858_v52, %v1409_v46 }
 0x222   :  { %v8117_v7 = vpop.xlane.xlu0 %2552  ;;  %12569 = vst [vmem:[#allocation63_spill] sm:$0xff] %v8124_v60  ;;  %v5345_v47 = vpack.c.b16 %v5338_v32, %v5337_v37  ;;  %v8135_v58 = vpop.eup %6340  ;;  %v4783_v19 = vpack.c.bf16 %v4655_v24, %v4655_v24  ;;  %v5202_v10 = vunpack.c.l.b16 %v534_v5  ;;  %v5321_v18 = vpack.c.b16 %v5306_v15, %v5305_v31 }
 0x223   :  { %12572 = vst [vmem:[#allocation62_spill] sm:$0xff] %v8133_v43  ;;  %v5203_v4 = vunpack.c.l.b16 %v535_v62  ;;  %v8137_v28 = vpop.eup %6342  ;;  %v4782_v22 = vpack.c.bf16 %v4654_v25, %v4654_v25  ;;  %v2159_v9 = vsub.f32 %v7315_v1, %v7865_v3  ;;  %v1945_v54 = vsel %vm1677_vm0, %v8124_v60, -inf  ;;  %v8160_v27 = vpop.f32.mrf.mxu3 }
 0x224   :  { %12573 = vst [vmem:[#allocation58_spill] sm:$0xff] %v8135_v58  ;;  %5384 = vmatpush.bf16.msra.mxu3 %v5345_v47  ;;  %v1897_v2 = vsel %vm1677_vm0, %v8121_v14, -inf  ;;  %v2320_v36 = vmul.f32 1.442695, %v2127_v30  ;;  %v3083_v21 = vmul.f32 %v8128_v38, %v7921_v39  ;;  %1946 = vmax.xlane.f32.xlu2 %v1945_v54  ;;  %v532_v15 = vpack.c.bf16 %v276_v29, %v276_v29  ;;  %v12574_v30 = vld [vmem:[#allocation65_spill] sm:$0xff] }
 0x225   :  { %v5209_v61 = vpack.c.b16 %v5203_v4, %v5202_v10  ;;  %1898 = vmax.xlane.f32.xlu1 %v1897_v2  ;;  %6344 = vpow2.f32 %v2382_v16  ;;  %v2352_v24 = vmul.f32 1.442695, %v2143_v0  ;;  %v533_v46 = vpack.c.bf16 %v277_v17, %v277_v17  ;;  %v12575_v10 = vld [vmem:[#allocation40_spill] sm:$0xff] }
 0x226   :  { %v2617_v1 = vsel %vm1677_vm0, %v7640_v42, 0.0  ;;  %v5169_v13 = vunpack.c.l.b16 %v4783_v19  ;;  %v3097_v25 = vmul.f32 %v8137_v28, %v8043_v35  ;;  %v5200_v32 = vunpack.c.l.b16 %v532_v15  ;;  %v12580_v15 = vld [vmem:[#allocation87_spill] sm:$0xff] }
 0x227   :  { %5246 = vmatpush.bf16.msra.mxu2 %v5209_v61  ;;  %6146 = vmatmul.msk.bf16.vlgmr.msra.gmra.mxu3 %vm1677_vm0, %v5321_v18  ;;  %v1993_v16 = vsel %vm1677_vm0, %v8133_v43, -inf  ;;  %6346 = vpow2.f32 %v2414_v49  ;;  %v2175_v5 = vsub.f32 %v12574_v30, %v7867_v41  ;;  %v5201_v62 = vunpack.c.l.b16 %v533_v46  ;;  %v12576_v49 = vld [vmem:[#allocation39_spill] sm:$0xff]  ;;  %v12577_v41 = vld [vmem:[#allocation66_spill] sm:$0xff] }
 0x228   :  { %1994 = vmax.xlane.f32.xlu0 %v1993_v16  ;;  %v8166_v6 = vsel %vm1677_vm0, %v7659_v44, 0.0  ;;  %6348 = vpow2.f32 %v2320_v36  ;;  %v5168_v0 = vunpack.c.l.b16 %v4782_v22  ;;  %v2384_v47 = vmul.f32 1.442695, %v2159_v9  ;;  %v1170_v22 = vpop.f32.mrf.mxu0  ;;  %v12582_v16 = vld [vmem:[#allocation68_spill] sm:$0xff] }
 0x229   :  { %v8149_v3 = vpop.xlane.xlu1 %2507  ;;  %v8151_v37 = vpop.xlane.xlu2 %1883  ;;  %v3084_v29 = vsub.f32 1.0, %v3083_v21  ;;  %6350 = vpow2.f32 %v2352_v24  ;;  %v5208_v19 = vpack.c.b16 %v5201_v62, %v5200_v32  ;;  %v8170_v4 = vsel %vm1677_vm0, %v12575_v10, 0.0  ;;  %v12579_v21 = vld [vmem:[#allocation41_spill] sm:$0xff] }
 0x22a   :  { %v8158_v31 = vpop.xlane.xlu0 %1931  ;;  %v8174_v18 = vsel %vm1677_vm0, %v12576_v49, 0.0  ;;  %v2128_v17 = vsub.f32 %v12577_v41, %v7937_v40  ;;  %6352 = vrcp.f32 %v8006_v51  ;;  %v3098_v54 = vsub.f32 1.0, %v3097_v25 }
 0x22b   :  { %v5184_v2 = vpack.c.b16 %v5169_v13, %v5168_v0  ;;  %v8179_v9 = vpop.eup %6344  ;;  %v2416_v36 = vmul.f32 1.442695, %v2175_v5  ;;  %6354 = vrcp.f32 %v8027_v48  ;;  %5247 = vmatpush.bf16.msra.mxu2 %v5208_v19  ;;  %v8184_v61 = vsel %vm1677_vm0, %v12579_v21, 0.0  ;;  %v1412_v21 = vpop.f32.mrf.mxu2 }
 0x22c   :  { %12578 = vst [vmem:[#allocation59_spill] sm:$0xff] %v8179_v9  ;;  %v8188_v24 = vsel %vm1677_vm0, %v12580_v15, 0.0  ;;  %6356 = vpow2.f32 %v2384_v47  ;;  %v3085_v40 = vmul.f32 %v8128_v38, %v3084_v29  ;;  %2618 = vadd.xlane.f32.xlu2 %v2617_v1  ;;  %v8194_v46 = vsel %vm1677_vm0, %v7687_v23, 0.0  ;;  %v8242_v15 = vpop.f32.mrf.mxu3 }
 0x22d   :  { %2474 = vadd.xlane.f32.xlu1 %v7820_v57  ;;  %v8198_v13 = vsel %vm1677_vm0, %v7685_v56, 0.0  ;;  %v8200_v25 = vpop.eup %6346  ;;  %v3093_v32 = vand.u32 2147483648, %v7921_v39  ;;  %v2144_v30 = vsub.f32 %v12582_v16, %v7989_v20  ;;  %6358 = vrcp.f32 %v8111_v26  ;;  %v12585_v20 = vld [vmem:[#allocation89_spill] sm:$0xff]  ;;  %v1291_v16 = vpop.f32.mrf.mxu1 }
 0x22e   :  { %12581 = vst [vmem:[#allocation61_spill] sm:$0xff] %v8200_v25  ;;  %v8207_v1 = vmul.f32 %v6858_v52, %v1170_v22  ;;  %v8213_v62 = vpop.eup %6348  ;;  %v2322_v0 = vmul.f32 1.442695, %v2128_v17  ;;  %6360 = vrcp.f32 %v8029_v45  ;;  %v3099_v47 = vmul.f32 %v8137_v28, %v3098_v54  ;;  %6138 = vmatmul.msk.bf16.vlgmr.msra.gmra.mxu2 %vm1677_vm0, %v5184_v2  ;;  %v12587_v22 = vld [vmem:[#allocation69_spill] sm:$0xff] }
 0x22f   :  { %12584 = vst [vmem:[#allocation64_spill] sm:$0xff] %v8213_v62  ;;  %v8222_v19 = vsel %vm1677_vm0, %v12585_v20, 0.0  ;;  %v8224_v41 = vpop.eup %6350  ;;  %6362 = vpow2.f32 %v2416_v36  ;;  %vm3087_vm3 = vweird.f32 %v7921_v39  ;;  %v2160_v17 = vsub.f32 %v12587_v22, %v7991_v34 }
 0x230   :  { %12583 = vst [vmem:[#allocation60_spill] sm:$0xff] %v8207_v1  ;;  %2570 = vadd.xlane.f32.xlu0 %v8107_v63  ;;  %v8232_v54 = vsel %vm1677_vm0, %v7706_v12, 0.0  ;;  %v8234_v2 = vpop.eup %6352  ;;  %v3086_v56 = vadd.f32 %v8128_v38, %v3085_v40  ;;  %vm3088_vm4 = vweird.f32 %v8128_v38  ;;  %6364 = vrcp.f32 %v8109_v55 }
 0x231   :  { %v8209_v57 = vpop.xlane.xlu1 %1979  ;;  %v8211_v5 = vpop.xlane.xlu2 %2459  ;;  %12586 = vst [vmem:[#allocation65_spill] sm:$0xff] %v8224_v41  ;;  %v8240_v36 = vmul.f32 %v6858_v52, %v1291_v16  ;;  %v3091_v63 = vand.u32 2147483647, %v7921_v39  ;;  %v3094_v22 = vor.u32 1.1754944e-38, %v3093_v32  ;;  %v2354_v12 = vmul.f32 1.442695, %v2144_v30  ;;  %vm8260_vm6 = vmor %vm3087_vm3, %vm3088_vm4 }
 0x232   :  { %v8218_v29 = vpop.xlane.xlu0 %2603  ;;  %12588 = vst [vmem:[#allocation66_spill] sm:$0xff] %v8232_v54  ;;  %v8244_v34 = vpop.eup %6354  ;;  %v1900_v20 = vsel %vm1677_vm0, %v8207_v1, -inf  ;;  %6366 = vpow2.f32 %v2322_v0  ;;  %v3100_v40 = vadd.f32 %v8137_v28, %v3099_v47  ;;  %vm3102_vm5 = vweird.f32 %v8137_v28 }
 0x233   :  { %12589 = vst [vmem:[#allocation68_spill] sm:$0xff] %v8240_v36  ;;  %v8249_v10 = vpop.eup %6356  ;;  %v3107_v16 = vand.u32 2147483648, %v8043_v35  ;;  %v2386_v30 = vmul.f32 1.442695, %v2160_v17  ;;  %v2859_v0 = vmul.f32 %v8234_v2, %v8006_v51  ;;  %vm3101_vm7 = vweird.f32 %v8043_v35 }
 0x234   :  { %12590 = vst [vmem:[#allocation69_spill] sm:$0xff] %v8249_v10  ;;  %v8254_v23 = vpop.eup %6358  ;;  %v3105_v47 = vand.u32 2147483647, %v8043_v35  ;;  %v3531_v1 = vmul.f32 %v8244_v34, %v8027_v48  ;;  %6368 = vrcp.f32 %v8117_v7  ;;  %1901 = vmax.xlane.f32.xlu2 %v1900_v20  ;;  %v1948_v39 = vsel %vm1677_vm0, %v8240_v36, -inf  ;;  %vm8283_vm9 = vmor %vm3101_vm7, %vm3102_vm5 }
 0x235   :  { %v8268_v49 = vpop.eup %6360  ;;  %2477 = vadd.xlane.f32.xlu1 %v8166_v6  ;;  %v3090_v17 = vsel %vm8260_vm6, %v8128_v38, %v3086_v56  ;;  %vm3092_vm8 = vcmp.eq.f32.partialorder %v3091_v63, 8.507059e+37  ;;  %6370 = vpow2.f32 %v2354_v12  ;;  %v8288_v6 = vmul.f32 %v6858_v52, %v1412_v21 }
 0x236   :  { %v8279_v44 = vpop.eup %6362  ;;  %v8296_v56 = vsel %vm1677_vm0, %v7727_v50, 0.0  ;;  %v3108_v12 = vor.u32 1.1754944e-38, %v3107_v16  ;;  %v2873_v63 = vmul.f32 %v8254_v23, %v8111_v26  ;;  %v3095_v32 = vsel %vm3092_vm8, %v3094_v22, %v3090_v17  ;;  %v12598_v22 = vld [vmem:[#allocation67_spill] sm:$0xff] }
 0x237   :  { %12593 = vst [vmem:[#allocation100_spill] sm:$0xff] %v8279_v44  ;;  %v8298_v38 = vpop.eup %6364  ;;  %v3104_v21 = vsel %vm8283_vm9, %v8137_v28, %v3100_v40  ;;  %6372 = vpow2.f32 %v2386_v30  ;;  %v2869_v33 = vand.u32 2147483648, %v8006_v51  ;;  %v3307_v50 = vmul.f32 %v8268_v49, %v8029_v45  ;;  %v12599_v40 = vld [vmem:[#allocation73_spill] sm:$0xff] }
 0x238   :  { %12596 = vst [vmem:[#allocation101_spill] sm:$0xff] %v8288_v6  ;;  %vm3106_vm10 = vcmp.eq.f32.partialorder %v3105_v47, 8.507059e+37  ;;  %1949 = vmax.xlane.f32.xlu0 %v1948_v39  ;;  %v8310_v42 = vpop.eup %6366  ;;  %v2860_v16 = vsub.f32 1.0, %v2859_v0  ;;  %v3532_v43 = vsub.f32 1.0, %v3531_v1  ;;  %v4640_v17 = vmul.f32 %v12598_v22, %v3095_v32 }
 0x239   :  { %v8290_v20 = vpop.xlane.xlu1 %2555  ;;  %v8292_v36 = vpop.xlane.xlu2 %2510  ;;  %12597 = vst [vmem:[#allocation102_spill] sm:$0xff] %v8310_v42  ;;  %v3109_v58 = vsel %vm3106_vm10, %v3108_v12, %v3104_v21  ;;  %v2867_v35 = vand.u32 2147483647, %v8006_v51  ;;  %v3545_v28 = vmul.f32 %v8298_v38, %v8109_v55  ;;  %v1996_v62 = vsel %vm1677_vm0, %v8288_v6, -inf }
 0x23a   :  { %v8305_v41 = vpop.xlane.xlu0 %1886  ;;  %v4641_v30 = vmul.f32 %v12599_v40, %v3109_v58  ;;  %v8319_v14 = vpop.eup %6368  ;;  %vm2863_vm11 = vweird.f32 %v8006_v51  ;;  %v3541_v0 = vand.u32 2147483648, %v8027_v48  ;;  %v3317_v1 = vand.u32 2147483648, %v8029_v45 }
 0x23b   :  { %v2874_v47 = vsub.f32 1.0, %v2873_v63  ;;  %v4768_v39 = vpack.c.bf16 %v4640_v17, %v4640_v17  ;;  %v8324_v12 = vpop.f32.mrf.mxu3  ;;  %v8326_v32 = vpop.eup %6370  ;;  %v8328_v21 = vor.u32 1.1754944e-38, %v2869_v33  ;;  %v3539_v58 = vand.u32 2147483647, %v8027_v48 }
 0x23c   :  { %12600 = vst [vmem:[#allocation67_spill] sm:$0xff] %v8326_v32  ;;  %v3308_v22 = vsub.f32 1.0, %v3307_v50  ;;  %v4769_v40 = vpack.c.bf16 %v4641_v30, %v4641_v30  ;;  %v2861_v6 = vmul.f32 %v8234_v2, %v2860_v16  ;;  %vm2864_vm12 = vweird.f32 %v8234_v2  ;;  %v1172_v63 = vpop.f32.mrf.mxu0  ;;  %v1293_v17 = vpop.f32.mrf.mxu1  ;;  %2621 = vadd.xlane.f32.xlu2 %v8170_v4 }
 0x23d   :  { %v3533_v42 = vmul.f32 %v8244_v34, %v3532_v43  ;;  %vm3535_vm13 = vweird.f32 %v8027_v48  ;;  %1997 = vmax.xlane.f32.xlu1 %v1996_v62  ;;  %v8336_v32 = vpop.eup %6372  ;;  %vm8338_vm14 = vcmp.eq.f32.partialorder %v2867_v35, 8.507059e+37  ;;  %v3546_v50 = vsub.f32 1.0, %v3545_v28  ;;  %vm8385_vm5 = vmor %vm2863_vm11, %vm2864_vm12  ;;  %v1414_v51 = vpop.f32.mrf.mxu2  ;;  %v12624_v28 = vld [vmem:[#allocation76_spill] sm:$0xff]  ;;  %v12631_v48 = vld [vmem:[#allocation79_spill] sm:$0xff] }
 0x23e   :  { %12601 = vst [vmem:[#allocation73_spill] sm:$0xff] %v8336_v32  ;;  %v3321_v16 = vmul.f32 %v8319_v14, %v8117_v7  ;;  %v5033_v30 = vunpack.c.l.b16 %v4768_v39  ;;  %v5034_v60 = vunpack.c.l.b16 %v4769_v40  ;;  %v3542_v10 = vor.u32 1.1754944e-38, %v3541_v0 }
 0x23f   :  { %v3315_v62 = vand.u32 2147483647, %v8029_v45  ;;  %v8349_v4 = vor.u32 1.1754944e-38, %v3317_v1  ;;  %v2875_v35 = vmul.f32 %v8254_v23, %v2874_v47  ;;  %vm3536_vm15 = vweird.f32 %v8244_v34 }
 0x240   :  { %vm8353_vm1 = vcmp.eq.f32.partialorder %v3539_v58, 8.507059e+37  ;;  %v3309_v39 = vmul.f32 %v8268_v49, %v3308_v22  ;;  %v8359_v40 = vmul.f32 %v6858_v52, %v1293_v17  ;;  %v5048_v32 = vpack.c.b16 %v5034_v60, %v5033_v30  ;;  %2573 = vadd.xlane.f32.xlu0 %v8174_v18  ;;  %v12607_v22 = vld [vmem:[#allocation75_spill] sm:$0xff]  ;;  %v12608_v18 = vld [vmem:[#allocation74_spill] sm:$0xff]  ;;  %vm8400_vm6 = vmor %vm3535_vm13, %vm3536_vm15 }
 0x241   :  { %v8344_v43 = vpop.xlane.xlu1 %1934  ;;  %v8346_v44 = vpop.xlane.xlu2 %1982  ;;  %v2862_v0 = vadd.f32 %v8234_v2, %v2861_v6  ;;  %vm3312_vm2 = vweird.f32 %v8268_v49  ;;  %v2881_v1 = vand.u32 2147483647, %v8111_v26  ;;  %v2883_v47 = vand.u32 2147483648, %v8111_v26 }
 0x242   :  { %12606 = vst [vmem:[#allocation103_spill] sm:$0xff] %v8359_v40  ;;  %v8366_v58 = vpop.xlane.xlu0 %2462  ;;  %v3534_v25 = vadd.f32 %v8244_v34, %v3533_v42  ;;  %v3547_v17 = vmul.f32 %v8298_v38, %v3546_v50  ;;  %v3322_v60 = vsub.f32 1.0, %v3321_v16  ;;  %6131 = vmatmul.msk.bf16.gmra.mxu1 %vm1677_vm0, %v5048_v32  ;;  %vm3311_vm3 = vweird.f32 %v8029_v45 }
 0x243   :  { %v2876_v30 = vadd.f32 %v8254_v23, %v2875_v35  ;;  %vm2878_vm4 = vweird.f32 %v8254_v23  ;;  %v8379_v54 = vmul.f32 %v6858_v52, %v1172_v63  ;;  %v8390_v32 = vadd.f32 %v8268_v49, %v3309_v39  ;;  %v8413_v9 = vpop.f32.mrf.mxu3 }
 0x244   :  { %v3553_v50 = vand.u32 2147483647, %v8109_v55  ;;  %v3555_v16 = vand.u32 2147483648, %v8109_v55  ;;  %v1951_v35 = vsel %vm1677_vm0, %v8359_v40, -inf  ;;  %vm3549_vm7 = vweird.f32 %v8109_v55  ;;  %2480 = vadd.xlane.f32.xlu2 %v8184_v61  ;;  %v8411_v6 = vpop.f32.mrf.mxu0 }
 0x245   :  { %12609 = vst [vmem:[#allocation75_spill] sm:$0xff] %v8379_v54  ;;  %vm2877_vm8 = vweird.f32 %v8111_v26  ;;  %vm8406_vm9 = vcmp.eq.f32.partialorder %v2881_v1, 8.507059e+37  ;;  %v2884_v39 = vor.u32 1.1754944e-38, %v2883_v47  ;;  %1952 = vmax.xlane.f32.xlu1 %v1951_v35  ;;  %vm8415_vm10 = vcmp.eq.f32.partialorder %v3315_v62, 8.507059e+37  ;;  %v8429_v62 = vpop.f32.mrf.mxu1 }
 0x246   :  { %v3548_v40 = vadd.f32 %v8298_v38, %v3547_v17  ;;  %vm3550_vm11 = vweird.f32 %v8298_v38  ;;  %vm2879_vm12 = vmor %vm2877_vm8, %vm2878_vm4  ;;  %v3323_v26 = vmul.f32 %v8319_v14, %v3322_v60  ;;  %v2866_v61 = vsel %vm8385_vm5, %v8234_v2, %v2862_v0 }
 0x247   :  { %v1903_v1 = vsel %vm1677_vm0, %v8379_v54, -inf  ;;  %v2871_v47 = vsel %vm8338_vm14, %v8328_v21, %v2866_v61  ;;  %v2880_v17 = vsel %vm2879_vm12, %v8254_v23, %v2876_v30  ;;  %v3538_v35 = vsel %vm8400_vm6, %v8244_v34, %v3534_v25  ;;  %vm3551_vm14 = vmor %vm3549_vm7, %vm3550_vm11  ;;  %v12620_v23 = vld [vmem:[#allocation70_spill] sm:$0xff]  ;;  %v12621_v34 = vld [vmem:[#allocation77_spill] sm:$0xff] }
 0x248   :  { %vm8438_vm13 = vcmp.eq.f32.partialorder %v3553_v50, 8.507059e+37  ;;  %v3556_v2 = vor.u32 1.1754944e-38, %v3555_v16  ;;  %6374 = vrcp.f32 %v8149_v3  ;;  %1904 = vmax.xlane.f32.xlu0 %v1903_v1  ;;  %v2885_v0 = vsel %vm8406_vm9, %v2884_v39, %v2880_v17  ;;  %v12626_v17 = vld [vmem:[#allocation78_spill] sm:$0xff] }
 0x249   :  { %v8445_v42 = vpop.xlane.xlu1 %2606  ;;  %v8447_v21 = vpop.xlane.xlu2 %2558  ;;  %6376 = vrcp.f32 %v8292_v36  ;;  %v4624_v25 = vmul.f32 %v12620_v23, %v2871_v47  ;;  %v4625_v33 = vmul.f32 %v12621_v34, %v2885_v0  ;;  %v3543_v30 = vsel %vm8353_vm1, %v3542_v10, %v3538_v35  ;;  %vm8471_vm1 = vmor %vm3311_vm3, %vm3312_vm2 }
 0x24a   :  { %vm3326_vm15 = vweird.f32 %v8319_v14  ;;  %v3329_v50 = vand.u32 2147483647, %v8117_v7  ;;  %v3331_v16 = vand.u32 2147483648, %v8117_v7  ;;  %v3552_v63 = vsel %vm3551_vm14, %v8298_v38, %v3548_v40  ;;  %v8465_v47 = vpop.xlane.xlu0 %2513  ;;  %v12625_v40 = vld [vmem:[#allocation71_spill] sm:$0xff] }
 0x24b   :  { %v3324_v55 = vadd.f32 %v8319_v14, %v3323_v26  ;;  %v4752_v39 = vpack.c.bf16 %v4624_v25, %v4624_v25  ;;  %v4753_v61 = vpack.c.bf16 %v4625_v33, %v4625_v33  ;;  %v3557_v1 = vsel %vm8438_vm13, %v3556_v2, %v3552_v63 }
 0x24c   :  { %v2161_v38 = vsub.f32 %v12624_v28, %v8068_v8  ;;  %vm3325_vm4 = vweird.f32 %v8117_v7  ;;  %v4672_v26 = vmul.f32 %v12625_v40, %v3543_v30  ;;  %v4673_v35 = vmul.f32 %v12626_v17, %v3557_v1 }
 0x24d   :  { %v8481_v60 = vmul.f32 %v6858_v52, %v1414_v51  ;;  %v4896_v2 = vunpack.c.l.b16 %v4752_v39  ;;  %v4897_v0 = vunpack.c.l.b16 %v4753_v61  ;;  %v3314_v45 = vsel %vm8471_vm1, %v8268_v49, %v8390_v32  ;;  %2576 = vadd.xlane.f32.xlu1 %v8194_v46  ;;  %vm3327_vm2 = vmor %vm3325_vm4, %vm3326_vm15  ;;  %v8501_v32 = vpop.f32.mrf.mxu0  ;;  %v1298_v10 = vpop.f32.mrf.mxu1 }
 0x24e   :  { %v8488_v23 = vpop.eup %6374  ;;  %v12628_v8 = vsub.f32 %v12607_v22, %v8062_v11  ;;  %v3332_v25 = vor.u32 1.1754944e-38, %v3331_v16  ;;  %v4800_v34 = vpack.c.bf16 %v4672_v26, %v4672_v26  ;;  %v4801_v33 = vpack.c.bf16 %v4673_v35, %v4673_v35  ;;  %v8503_v11 = vpop.f32.mrf.mxu3 }
 0x24f   :  { %12627 = vst [vmem:[#allocation74_spill] sm:$0xff] %v8481_v60  ;;  %v8495_v30 = vpop.eup %6376  ;;  %vm3330_vm3 = vcmp.eq.f32.partialorder %v3329_v50, 8.507059e+37  ;;  %v4911_v51 = vpack.c.b16 %v4897_v0, %v4896_v2  ;;  %v3319_v49 = vsel %vm8415_vm10, %v8349_v4, %v3314_v45  ;;  %v3328_v46 = vsel %vm3327_vm2, %v8319_v14, %v3324_v55  ;;  %v12630_v4 = vld [vmem:[#allocation72_spill] sm:$0xff]  ;;  %v12635_v45 = vld [vmem:[#allocation81_spill] sm:$0xff] }
 0x250   :  { %v2356_v7 = vmul.f32 1.442695, %v12628_v8  ;;  %v12629_v22 = vsub.f32 %v12608_v18, %v8064_v53  ;;  %v5307_v63 = vunpack.c.l.b16 %v4800_v34  ;;  %v5308_v39 = vunpack.c.l.b16 %v4801_v33  ;;  %2624 = vadd.xlane.f32.xlu0 %v8222_v19  ;;  %v12632_v53 = vld [vmem:[#allocation80_spill] sm:$0xff] }
 0x251   :  { %v3333_v61 = vsel %vm3330_vm3, %v3332_v25, %v3328_v46  ;;  %v3111_v50 = vmul.f32 %v8488_v23, %v8149_v3  ;;  %6123 = vmatmul.msk.bf16.gmra.mxu0 %vm1677_vm0, %v4911_v51  ;;  %v4656_v14 = vmul.f32 %v12630_v4, %v3319_v49  ;;  %v1999_v1 = vsel %vm1677_vm0, %v8481_v60, -inf  ;;  %v8524_v26 = vpop.xlane.xlu2 %1937  ;;  %v8526_v17 = vpop.xlane.xlu1 %1889 }
 0x252   :  { %v2324_v16 = vmul.f32 1.442695, %v12629_v22  ;;  %v4657_v55 = vmul.f32 %v12631_v48, %v3333_v61  ;;  %v2130_v18 = vsub.f32 %v12632_v53, %v8151_v37  ;;  %v3125_v28 = vmul.f32 %v8495_v30, %v8292_v36  ;;  %2000 = vmax.xlane.f32.xlu2 %v1999_v1  ;;  %v8540_v51 = vpop.xlane.xlu0 %1985 }
 0x253   :  { %v8522_v19 = vmul.f32 %v6858_v52, %v8411_v6  ;;  %v5322_v40 = vpack.c.b16 %v5308_v39, %v5307_v63  ;;  %6378 = vrcp.f32 %v8211_v5  ;;  %v8531_v35 = vmul.f32 %v6858_v52, %v8429_v62  ;;  %v12637_v39 = vld [vmem:[#allocation14_spill] sm:$0xff] }
 0x254   :  { %v4784_v37 = vpack.c.bf16 %v4656_v14, %v4656_v14  ;;  %v4785_v2 = vpack.c.bf16 %v4657_v55, %v4657_v55  ;;  %v2388_v0 = vmul.f32 1.442695, %v2161_v38  ;;  %v2146_v8 = vsub.f32 %v12635_v45, %v8158_v31  ;;  %v12638_v55 = vld [vmem:[#allocation52_spill] sm:$0xff] }
 0x255   :  { %12633 = vst [vmem:[#allocation70_spill] sm:$0xff] %v8522_v19  ;;  %6147 = vmatmul.msk.bf16.gmra.mxu3 %vm1677_vm0, %v5322_v40  ;;  %v8537_v6 = vmul.f32 %v6858_v52, %v1298_v10  ;;  %6380 = vrcp.f32 %v8366_v58  ;;  %v3112_v25 = vsub.f32 1.0, %v3111_v50  ;;  %v2326_v62 = vmul.f32 1.442695, %v2130_v18  ;;  %v1180_v14 = vpop.f32.mrf.mxu0 }
 0x256   :  { %12634 = vst [vmem:[#allocation77_spill] sm:$0xff] %v8531_v35  ;;  %6382 = vpow2.f32 %v2356_v7  ;;  %v5170_v34 = vunpack.c.l.b16 %v4784_v37  ;;  %v5171_v33 = vunpack.c.l.b16 %v4785_v2  ;;  %v3126_v49 = vsub.f32 1.0, %v3125_v28  ;;  %v8557_v48 = vpop.f32.mrf.mxu3 }
 0x257   :  { %12636 = vst [vmem:[#allocation76_spill] sm:$0xff] %v8537_v6  ;;  %6384 = vpow2.f32 %v2324_v16  ;;  %v1906_v38 = vsel %vm1677_vm0, %v8522_v19, -inf  ;;  %v3119_v31 = vand.u32 2147483647, %v8149_v3  ;;  %v3121_v46 = vand.u32 2147483648, %v8149_v3 }
 0x258   :  { %v5185_v22 = vpack.c.b16 %v5171_v33, %v5170_v34  ;;  %v1954_v63 = vsel %vm1677_vm0, %v8531_v35, -inf  ;;  %1907 = vmax.xlane.f32.xlu1 %v1906_v38  ;;  %v2358_v7 = vmul.f32 1.442695, %v2146_v8  ;;  %v2162_v61 = vsub.f32 %v12637_v39, %v8209_v57  ;;  %v12639_v57 = vld [vmem:[#allocation48_spill] sm:$0xff] }
 0x259   :  { %6386 = vrcp.f32 %v8290_v20  ;;  %v1957_v16 = vsel %vm1677_vm0, %v8537_v6, -inf  ;;  %v8553_v50 = vpop.eup %6378  ;;  %v3113_v4 = vmul.f32 %v8488_v23, %v3112_v25  ;;  %v8561_v1 = vsel %vm1677_vm0, %v12638_v55, 0.0  ;;  %v8590_v25 = vpop.xlane.xlu2 %2609 }
 0x25a   :  { %6388 = vpow2.f32 %v2388_v0  ;;  %6139 = vmatmul.msk.bf16.gmra.mxu2 %vm1677_vm0, %v5185_v22  ;;  %1958 = vmax.xlane.f32.xlu0 %v1957_v16  ;;  %v8565_v10 = vsel %vm1677_vm0, %v12639_v57, 0.0  ;;  %v8571_v18 = vmul.f32 %v6858_v52, %v8100_v59  ;;  %v3127_v28 = vmul.f32 %v8495_v30, %v3126_v49  ;;  %v8592_v34 = vpop.xlane.xlu1 %2465  ;;  %v8619_v16 = vpop.xlane.xlu0 %2561 }
 0x25b   :  { %v8567_v53 = vpop.eup %6380  ;;  %6390 = vpow2.f32 %v2326_v62  ;;  %1955 = vmax.xlane.f32.xlu2 %v1954_v63  ;;  %v8575_v40 = vmul.f32 %v6858_v52, %v1180_v14  ;;  %vm3115_vm5 = vweird.f32 %v8149_v3  ;;  %vm8580_vm6 = vcmp.eq.f32.partialorder %v3119_v31, 8.507059e+37  ;;  %v12658_v14 = vld [vmem:[#allocation19_spill] sm:$0xff] }
 0x25c   :  { %v8577_v37 = vpop.eup %6382  ;;  %v3122_v0 = vor.u32 1.1754944e-38, %v3121_v46  ;;  %6392 = vrcp.f32 %v8218_v29  ;;  %vm3116_vm7 = vweird.f32 %v8488_v23  ;;  %v2390_v45 = vmul.f32 1.442695, %v2162_v61 }
 0x25d   :  { %12640 = vst [vmem:[#allocation71_spill] sm:$0xff] %v8575_v40  ;;  %v8585_v59 = vpop.eup %6384  ;;  %6394 = vpow2.f32 %v2358_v7  ;;  %v2887_v8 = vmul.f32 %v8553_v50, %v8211_v5  ;;  %v3114_v33 = vadd.f32 %v8488_v23, %v3113_v4  ;;  %v3135_v62 = vand.u32 2147483648, %v8292_v36  ;;  %vm8627_vm9 = vmor %vm3115_vm5, %vm3116_vm7 }
 0x25e   :  { %12641 = vst [vmem:[#allocation78_spill] sm:$0xff] %v8577_v37  ;;  %v8598_v49 = vmul.f32 %v6858_v52, %v8501_v32  ;;  %v2901_v38 = vmul.f32 %v8567_v53, %v8366_v58  ;;  %v3128_v46 = vadd.f32 %v8495_v30, %v3127_v28  ;;  %vm3130_vm8 = vweird.f32 %v8495_v30 }
 0x25f   :  { %12644 = vst [vmem:[#allocation72_spill] sm:$0xff] %v8585_v59  ;;  %v8602_v31 = vpop.eup %6386  ;;  %6396 = vrcp.f32 %v8447_v21  ;;  %v1912_v22 = vsel %vm1677_vm0, %v8575_v40, -inf  ;;  %v8613_v32 = vmul.f32 %v6858_v52, %v8160_v27  ;;  %v2895_v7 = vand.u32 2147483647, %v8211_v5  ;;  %v1301_v40 = vpop.f32.mrf.mxu1 }
 0x260   :  { %12645 = vst [vmem:[#allocation79_spill] sm:$0xff] %v8598_v49  ;;  %v8609_v63 = vpop.eup %6388  ;;  %v2897_v39 = vand.u32 2147483648, %v8211_v5  ;;  %v3133_v61 = vand.u32 2147483647, %v8292_v36  ;;  %2528 = vadd.xlane.f32.xlu1 %v8198_v13  ;;  %6398 = vpow2.f32 %v2390_v45  ;;  %v2888_v27 = vsub.f32 1.0, %v2887_v8 }
 0x261   :  { %12646 = vst [vmem:[#allocation80_spill] sm:$0xff] %v8609_v63  ;;  %v8621_v4 = vpop.eup %6390  ;;  %v3569_v28 = vand.u32 2147483648, %v8218_v29  ;;  %vm3129_vm10 = vweird.f32 %v8292_v36  ;;  %v3335_v6 = vmul.f32 %v8602_v31, %v8290_v20  ;;  %v3136_v19 = vor.u32 1.1754944e-38, %v3135_v62 }
 0x262   :  { %12647 = vst [vmem:[#allocation81_spill] sm:$0xff] %v8621_v4  ;;  %v8633_v13 = vpop.eup %6392  ;;  %vm8639_vm11 = vmor %vm3129_vm10, %vm3130_vm8  ;;  %v2902_v35 = vsub.f32 1.0, %v2901_v38  ;;  %v1909_v45 = vsel %vm1677_vm0, %v8598_v49, -inf  ;;  %1913 = vmax.xlane.f32.xlu0 %v1912_v22  ;;  %vm2891_vm12 = vweird.f32 %v8211_v5  ;;  %6400 = vrcp.f32 %v8445_v42  ;;  %v12663_v5 = vld [vmem:[#allocation18_spill] sm:$0xff] }
 0x263   :  { %v8645_v8 = vpop.eup %6394  ;;  %v8650_v36 = vmul.f32 %v6858_v52, %v1301_v40  ;;  %1910 = vmax.xlane.f32.xlu2 %v1909_v45  ;;  %v3118_v57 = vsel %vm8627_vm9, %v8488_v23, %v3114_v33  ;;  %v3132_v62 = vsel %vm8639_vm11, %v8495_v30, %v3128_v46  ;;  %v2898_v38 = vor.u32 1.1754944e-38, %v2897_v39  ;;  %v12657_v39 = vld [vmem:[#allocation82_spill] sm:$0xff] }
 0x264   :  { %12652 = vst [vmem:[#allocation14_spill] sm:$0xff] %v8645_v8  ;;  %v8661_v49 = vmul.f32 %v6858_v52, %v8242_v15  ;;  %vm3134_vm13 = vcmp.eq.f32.partialorder %v3133_v61, 8.507059e+37  ;;  %v8663_v8 = vpop.f32.mrf.mxu3  ;;  %v2889_v45 = vmul.f32 %v8553_v50, %v2888_v27  ;;  %vm8668_vm14 = vcmp.eq.f32.partialorder %v2895_v7, 8.507059e+37 }
 0x265   :  { %12653 = vst [vmem:[#allocation104_spill] sm:$0xff] %v8650_v36  ;;  %v8665_v40 = vpop.eup %6396  ;;  %v3559_v30 = vmul.f32 %v8633_v13, %v8218_v29  ;;  %v3123_v33 = vsel %vm8580_vm6, %v3122_v0, %v3118_v57  ;;  %v3137_v46 = vsel %vm3134_vm13, %v3136_v19, %v3132_v62  ;;  %vm2892_vm15 = vweird.f32 %v8553_v50  ;;  %v8687_v57 = vpop.xlane.xlu1 %2516 }
 0x266   :  { %12654 = vst [vmem:[#allocation105_spill] sm:$0xff] %v8661_v49  ;;  %v2903_v15 = vmul.f32 %v8567_v53, %v2902_v35  ;;  %v4642_v61 = vmul.f32 %v12657_v39, %v3123_v33  ;;  %v4643_v3 = vmul.f32 %v12658_v14, %v3137_v46  ;;  %v8680_v27 = vpop.eup %6398  ;;  %v8682_v7 = vor.u32 1.1754944e-38, %v3569_v28  ;;  %v8689_v19 = vpop.xlane.xlu2 %1892  ;;  %vm8713_vm3 = vmor %vm2891_vm12, %vm2892_vm15 }
 0x267   :  { %12659 = vst [vmem:[#allocation82_spill] sm:$0xff] %v8680_v27  ;;  %v3336_v22 = vsub.f32 1.0, %v3335_v6  ;;  %v3343_v55 = vand.u32 2147483647, %v8290_v20  ;;  %v1960_v2 = vsel %vm1677_vm0, %v8650_v36, -inf  ;;  %v3349_v35 = vmul.f32 %v8665_v40, %v8447_v21  ;;  %v1182_v36 = vpop.f32.mrf.mxu0 }
 0x268   :  { %v4770_v0 = vpack.c.bf16 %v4642_v61, %v4642_v61  ;;  %v4771_v62 = vpack.c.bf16 %v4643_v3, %v4643_v3  ;;  %1961 = vmax.xlane.f32.xlu1 %v1960_v2  ;;  %v2020_v28 = vsel %vm1677_vm0, %v8571_v18, -inf  ;;  %v8695_v33 = vpop.eup %6400  ;;  %v2890_v6 = vadd.f32 %v8553_v50, %v2889_v45  ;;  %v8703_v2 = vpop.xlane.xlu0 %1940 }
 0x269   :  { %v3560_v46 = vsub.f32 1.0, %v3559_v30  ;;  %v2909_v39 = vand.u32 2147483647, %v8366_v58  ;;  %v2911_v14 = vand.u32 2147483648, %v8366_v58  ;;  %v2904_v4 = vadd.f32 %v8567_v53, %v2903_v15  ;;  %v1303_v30 = vpop.f32.mrf.mxu1 }
 0x26a   :  { %vm2906_vm1 = vweird.f32 %v8567_v53  ;;  %v5035_v61 = vunpack.c.l.b16 %v4770_v0  ;;  %v5036_v3 = vunpack.c.l.b16 %v4771_v62  ;;  %2525 = vadd.xlane.f32.xlu0 %v8188_v24  ;;  %v3337_v60 = vmul.f32 %v8602_v31, %v3336_v22 }
 0x26b   :  { %vm3340_vm4 = vweird.f32 %v8602_v31  ;;  %v3345_v45 = vand.u32 2147483648, %v8290_v20  ;;  %vm2905_vm2 = vweird.f32 %v8366_v58  ;;  %2021 = vmax.xlane.f32.xlu2 %v2020_v28  ;;  %vm3339_vm5 = vweird.f32 %v8290_v20 }
 0x26c   :  { %v3573_v24 = vmul.f32 %v8695_v33, %v8445_v42  ;;  %v3350_v22 = vsub.f32 1.0, %v3349_v35  ;;  %v8721_v0 = vmul.f32 %v6858_v52, %v1182_v36  ;;  %v5049_v58 = vpack.c.b16 %v5036_v3, %v5035_v61  ;;  %vm2907_vm7 = vmor %vm2905_vm2, %vm2906_vm1  ;;  %v12668_v3 = vld [vmem:[#allocation13_spill] sm:$0xff]  ;;  %v12681_v61 = vld [vmem:[#allocation84_spill] sm:$0xff] }
 0x26d   :  { %v3561_v62 = vmul.f32 %v8633_v13, %v3560_v46  ;;  %vm3564_vm6 = vweird.f32 %v8633_v13  ;;  %v2131_v28 = vsub.f32 %v12663_v5, %v8305_v41  ;;  %v2912_v59 = vor.u32 1.1754944e-38, %v2911_v14  ;;  %v8739_v41 = vpop.f32.mrf.mxu3  ;;  %vm8783_vm13 = vmor %vm3339_vm5, %vm3340_vm4 }
 0x26e   :  { %12662 = vst [vmem:[#allocation19_spill] sm:$0xff] %v8721_v0  ;;  %v2894_v54 = vsel %vm8713_vm3, %v8553_v50, %v2890_v6  ;;  %vm2910_vm8 = vcmp.eq.f32.partialorder %v2909_v39, 8.507059e+37  ;;  %v8733_v36 = vmul.f32 %v6858_v52, %v1303_v30  ;;  %6132 = vmatmul.msk.bf16.gmra.mxu1 %vm1677_vm0, %v5049_v58  ;;  %v2908_v46 = vsel %vm2907_vm7, %v8567_v53, %v2904_v4  ;;  %v12667_v50 = vld [vmem:[#allocation25_spill] sm:$0xff] }
 0x26f   :  { %v2899_v35 = vsel %vm8668_vm14, %v2898_v38, %v2894_v54  ;;  %vm3563_vm9 = vweird.f32 %v8218_v29  ;;  %v3338_v14 = vadd.f32 %v8602_v31, %v3337_v60  ;;  %vm8743_vm10 = vcmp.eq.f32.partialorder %v3343_v55, 8.507059e+37  ;;  %v12669_v53 = vld [vmem:[#allocation17_spill] sm:$0xff] }
 0x270   :  { %12664 = vst [vmem:[#allocation18_spill] sm:$0xff] %v8733_v36  ;;  %v2147_v6 = vsub.f32 %v12667_v50, %v8344_v43  ;;  %v2913_v39 = vsel %vm2910_vm8, %v2912_v59, %v2908_v46  ;;  %v4626_v30 = vmul.f32 %v12668_v3, %v2899_v35  ;;  %v3574_v23 = vsub.f32 1.0, %v3573_v24  ;;  %v8757_v43 = vpop.xlane.xlu1 %1988  ;;  %v8759_v59 = vpop.xlane.xlu2 %2468  ;;  %v12670_v24 = vld [vmem:[#allocation26_spill] sm:$0xff]  ;;  %vm8812_vm1 = vmor %vm3563_vm9, %vm3564_vm6  ;;  %v12691_v35 = vld [vmem:[#allocation23_spill] sm:$0xff] }
 0x271   :  { %v3351_v54 = vmul.f32 %v8665_v40, %v3350_v22  ;;  %v4627_v4 = vmul.f32 %v12669_v53, %v2913_v39  ;;  %v1915_v38 = vsel %vm1677_vm0, %v8721_v0, -inf  ;;  %v2328_v15 = vmul.f32 1.442695, %v2131_v28 }
 0x272   :  { %6402 = vrcp.f32 %v8465_v47  ;;  %v4754_v60 = vpack.c.bf16 %v4626_v30, %v4626_v30  ;;  %1916 = vmax.xlane.f32.xlu1 %v1915_v38  ;;  %v2023_v55 = vsel %vm1677_vm0, %v8613_v32, -inf  ;;  %v2163_v22 = vsub.f32 %v12670_v24, %v8346_v44 }
 0x273   :  { %v4755_v58 = vpack.c.bf16 %v4627_v4, %v4627_v4  ;;  %v1963_v5 = vsel %vm1677_vm0, %v8733_v36, -inf  ;;  %2024 = vmax.xlane.f32.xlu0 %v2023_v55  ;;  %6404 = vrcp.f32 %v8687_v57  ;;  %v12671_v28 = vand.u32 2147483647, %v8218_v29  ;;  %v8776_v4 = vpop.xlane.xlu0 %2612 }
 0x274   :  { %v3346_v46 = vor.u32 1.1754944e-38, %v3345_v45  ;;  %v2360_v50 = vmul.f32 1.442695, %v2147_v6  ;;  %vm3354_vm12 = vweird.f32 %v8665_v40  ;;  %v3359_v39 = vand.u32 2147483648, %v8447_v21  ;;  %1964 = vmax.xlane.f32.xlu2 %v1963_v5 }
 0x275   :  { %vm8768_vm11 = vcmp.eq.f32.partialorder %v12671_v28, 8.507059e+37  ;;  %v3575_v44 = vmul.f32 %v8695_v33, %v3574_v23  ;;  %v3352_v3 = vadd.f32 %v8665_v40, %v3351_v54  ;;  %v4898_v30 = vunpack.c.l.b16 %v4754_v60  ;;  %v8824_v5 = vpop.f32.mrf.mxu3 }
 0x276   :  { %v4899_v53 = vunpack.c.l.b16 %v4755_v58  ;;  %v3562_v38 = vadd.f32 %v8633_v13, %v3561_v62  ;;  %6406 = vpow2.f32 %v2328_v15  ;;  %v8789_v6 = vmul.f32 %v6858_v52, %v8324_v12 }
 0x277   :  { %v3357_v23 = vand.u32 2147483647, %v8447_v21  ;;  %v2392_v54 = vmul.f32 1.442695, %v2163_v22  ;;  %vm3353_vm14 = vweird.f32 %v8447_v21  ;;  %v3342_v62 = vsel %vm8783_vm13, %v8602_v31, %v3338_v14 }
 0x278   :  { %v4912_v60 = vpack.c.b16 %v4899_v53, %v4898_v30  ;;  %v8796_v20 = vpop.eup %6402  ;;  %6408 = vpow2.f32 %v2360_v50  ;;  %v3581_v55 = vand.u32 2147483647, %v8445_v42  ;;  %v3583_v15 = vand.u32 2147483648, %v8445_v42  ;;  %vm8802_vm15 = vmor %vm3353_vm14, %vm3354_vm12 }
 0x279   :  { %v3360_v24 = vor.u32 1.1754944e-38, %v3359_v39  ;;  %v8806_v21 = vpop.eup %6404  ;;  %v3576_v14 = vadd.f32 %v8695_v33, %v3575_v44  ;;  %vm3578_vm4 = vweird.f32 %v8695_v33  ;;  %v3347_v22 = vsel %vm8743_vm10, %v3346_v46, %v3342_v62  ;;  %v8856_v44 = vpop.xlane.xlu2 %2519 }
 0x27a   :  { %6124 = vmatmul.msk.bf16.gmra.mxu0 %vm1677_vm0, %v4912_v60  ;;  %v3356_v58 = vsel %vm8802_vm15, %v8665_v40, %v3352_v3  ;;  %v8828_v29 = vmul.f32 %v6858_v52, %v8413_v9  ;;  %vm3358_vm2 = vcmp.eq.f32.partialorder %v3357_v23, 8.507059e+37  ;;  %6410 = vrcp.f32 %v8590_v25  ;;  %2579 = vadd.xlane.f32.xlu1 %v8296_v56  ;;  %v12686_v3 = vld [vmem:[#allocation20_spill] sm:$0xff]  ;;  %v12688_v23 = vld [vmem:[#allocation83_spill] sm:$0xff] }
 0x27b   :  { %v3566_v28 = vsel %vm8812_vm1, %v8633_v13, %v3562_v38  ;;  %vm3577_vm3 = vweird.f32 %v8445_v42  ;;  %v2148_v40 = vsub.f32 %v12681_v61, %v8524_v26  ;;  %6412 = vrcp.f32 %v8592_v34  ;;  %2627 = vadd.xlane.f32.xlu0 %v8565_v10  ;;  %v12685_v26 = vld [vmem:[#allocation16_spill] sm:$0xff]  ;;  %v8854_v10 = vpop.xlane.xlu1 %2564 }
 0x27c   :  { %12680 = vst [vmem:[#allocation25_spill] sm:$0xff] %v8828_v29  ;;  %v3361_v46 = vsel %vm3358_vm2, %v3360_v24, %v3356_v58  ;;  %v8840_v9 = vpop.eup %6406  ;;  %vm8844_vm5 = vmor %vm3577_vm3, %vm3578_vm4  ;;  %v3584_v13 = vor.u32 1.1754944e-38, %v3583_v15  ;;  %v3139_v56 = vmul.f32 %v8796_v20, %v8465_v47  ;;  %v3153_v42 = vmul.f32 %v8806_v21, %v8687_v57  ;;  %2582 = vadd.xlane.f32.xlu2 %v8561_v1  ;;  %v12689_v15 = vld [vmem:[#allocation15_spill] sm:$0xff]  ;;  %v12690_v24 = vld [vmem:[#allocation86_spill] sm:$0xff]  ;;  %v8873_v58 = vpop.xlane.xlu0 %1895 }
 0x27d   :  { %12682 = vst [vmem:[#allocation13_spill] sm:$0xff] %v8840_v9  ;;  %v4658_v39 = vmul.f32 %v12685_v26, %v3347_v22  ;;  %vm3582_vm6 = vcmp.eq.f32.partialorder %v3581_v55, 8.507059e+37  ;;  %v4659_v30 = vmul.f32 %v12686_v3, %v3361_v46  ;;  %v3571_v53 = vsel %vm8768_vm11, %v8682_v7, %v3566_v28 }
 0x27e   :  { %v3580_v38 = vsel %vm8844_vm5, %v8695_v33, %v3576_v14  ;;  %v8865_v45 = vpop.eup %6408  ;;  %v2132_v1 = vsub.f32 %v12688_v23, %v8526_v17  ;;  %v4674_v12 = vmul.f32 %v12689_v15, %v3571_v53  ;;  %v2362_v55 = vmul.f32 1.442695, %v2148_v40  ;;  %v8883_v53 = vpop.f32.mrf.mxu3  ;;  %v12692_v23 = vld [vmem:[#allocation66_spill] sm:$0xff] }
 0x27f   :  { %12687 = vst [vmem:[#allocation17_spill] sm:$0xff] %v8865_v45  ;;  %v4786_v60 = vpack.c.bf16 %v4658_v39, %v4658_v39  ;;  %v3585_v62 = vsel %vm3582_vm6, %v3584_v13, %v3580_v38  ;;  %v2164_v31 = vsub.f32 %v12690_v24, %v8540_v51  ;;  %v4787_v22 = vpack.c.bf16 %v4659_v30, %v4659_v30  ;;  %v12694_v24 = vld [vmem:[#allocation91_spill] sm:$0xff] }
 0x280   :  { %v4675_v7 = vmul.f32 %v12691_v35, %v3585_v62  ;;  %v8875_v28 = vpop.eup %6410  ;;  %v3140_v33 = vsub.f32 1.0, %v3139_v56  ;;  %6414 = vrcp.f32 %v8619_v16  ;;  %v3154_v14 = vsub.f32 1.0, %v3153_v42 }
 0x281   :  { %v4802_v17 = vpack.c.bf16 %v4674_v12, %v4674_v12  ;;  %v8878_v61 = vpop.eup %6412  ;;  %v5172_v46 = vunpack.c.l.b16 %v4786_v60  ;;  %v5173_v50 = vunpack.c.l.b16 %v4787_v22  ;;  %6416 = vrcp.f32 %v8759_v59  ;;  %v8908_v35 = vpop.xlane.xlu2 %1991 }
 0x282   :  { %v4803_v40 = vpack.c.bf16 %v4675_v7, %v4675_v7  ;;  %6418 = vpow2.f32 %v2392_v54  ;;  %v3147_v51 = vand.u32 2147483647, %v8465_v47  ;;  %v3149_v13 = vand.u32 2147483648, %v8465_v47 }
 0x283   :  { %v2330_v26 = vmul.f32 1.442695, %v2132_v1  ;;  %v2394_v39 = vmul.f32 1.442695, %v2164_v31  ;;  %v5186_v3 = vpack.c.b16 %v5173_v50, %v5172_v46  ;;  %v5309_v56 = vunpack.c.l.b16 %v4802_v17  ;;  %v8906_v22 = vpop.xlane.xlu1 %1943 }
 0x284   :  { %v5310_v30 = vunpack.c.l.b16 %v4803_v40  ;;  %v3141_v42 = vmul.f32 %v8796_v20, %v3140_v33  ;;  %6420 = vpow2.f32 %v2362_v55  ;;  %v3587_v38 = vmul.f32 %v8875_v28, %v8590_v25  ;;  %2483 = vadd.xlane.f32.xlu2 %v12692_v23 }
 0x285   :  { %v2915_v54 = vmul.f32 %v8878_v61, %v8592_v34  ;;  %vm3143_vm7 = vweird.f32 %v8465_v47  ;;  %v3597_v1 = vand.u32 2147483648, %v8590_v25  ;;  %v3155_v60 = vmul.f32 %v8806_v21, %v3154_v14  ;;  %6140 = vmatmul.msk.bf16.gmra.mxu2 %vm1677_vm0, %v5186_v3 }
 0x286   :  { %v5323_v62 = vpack.c.b16 %v5310_v30, %v5309_v56  ;;  %6422 = vrcp.f32 %v8776_v4  ;;  %v8896_v15 = vpop.eup %6414  ;;  %v8898_v12 = vor.u32 1.1754944e-38, %v3149_v13  ;;  %v8902_v55 = vmul.f32 %v6858_v52, %v8503_v11  ;;  %v12695_v11 = vld [vmem:[#allocation51_spill] sm:$0xff]  ;;  %v8935_v56 = vpop.xlane.xlu0 %2471 }
 0x287   :  { %6424 = vpow2.f32 %v2330_v26  ;;  %v2629_v31 = vsel %vm1677_vm0, %v12694_v24, 0.0  ;;  %v8910_v7 = vpop.eup %6416  ;;  %vm3144_vm8 = vweird.f32 %v8796_v20  ;;  %v8915_v33 = vmul.f32 %v6858_v52, %v8557_v48  ;;  %v12707_v24 = vld [vmem:[#allocation45_spill] sm:$0xff] }
 0x288   :  { %12693 = vst [vmem:[#allocation26_spill] sm:$0xff] %v8902_v55  ;;  %6426 = vpow2.f32 %v2394_v39  ;;  %6148 = vmatmul.msk.bf16.gmra.mxu3 %vm1677_vm0, %v5323_v62  ;;  %2630 = vadd.xlane.f32.xlu1 %v2629_v31  ;;  %v2485_v14 = vsel %vm1677_vm0, %v12695_v11, 0.0  ;;  %v8920_v17 = vpop.eup %6418  ;;  %v3588_v46 = vsub.f32 1.0, %v3587_v38  ;;  %v3595_v50 = vand.u32 2147483647, %v8590_v25  ;;  %v8951_v31 = vpop.f32.mrf.mxu2  ;;  %vm8980_vm1 = vmor %vm3143_vm7, %vm3144_vm8 }
 0x289   :  { %12696 = vst [vmem:[#allocation84_spill] sm:$0xff] %v8920_v17  ;;  %v2916_v40 = vsub.f32 1.0, %v2915_v54  ;;  %v2929_v13 = vmul.f32 %v8910_v7, %v8759_v59  ;;  %2486 = vadd.xlane.f32.xlu0 %v2485_v14  ;;  %v3142_v26 = vadd.f32 %v8796_v20, %v3141_v42  ;;  %vm8926_vm9 = vcmp.eq.f32.partialorder %v3147_v51, 8.507059e+37 }
 0x28a   :  { %vm3591_vm10 = vweird.f32 %v8590_v25  ;;  %v8931_v39 = vor.u32 1.1754944e-38, %v3597_v1  ;;  %v3156_v3 = vadd.f32 %v8806_v21, %v3155_v60  ;;  %vm3158_vm11 = vweird.f32 %v8806_v21  ;;  %v8937_v30 = vpop.eup %6420  ;;  %v12700_v60 = vld [vmem:[#allocation50_spill] sm:$0xff] }
 0x28b   :  { %12699 = vst [vmem:[#allocation16_spill] sm:$0xff] %v8937_v30  ;;  %vm2919_vm12 = vweird.f32 %v8592_v34  ;;  %v2923_v42 = vand.u32 2147483647, %v8592_v34  ;;  %v3363_v51 = vmul.f32 %v8896_v15, %v8619_v16  ;;  %v3163_v38 = vand.u32 2147483648, %v8687_v57 }
 0x28c   :  { %6428 = vrcp.f32 %v8854_v10  ;;  %v8945_v54 = vpop.eup %6422  ;;  %vm3157_vm13 = vweird.f32 %v8687_v57  ;;  %v3161_v23 = vand.u32 2147483647, %v8687_v57  ;;  %v2930_v1 = vsub.f32 1.0, %v2929_v13 }
 0x28d   :  { %v2533_v62 = vsel %vm1677_vm0, %v12700_v60, 0.0  ;;  %v8953_v14 = vpop.eup %6424  ;;  %v3589_v0 = vmul.f32 %v8875_v28, %v3588_v46  ;;  %v2917_v36 = vmul.f32 %v8878_v61, %v2916_v40  ;;  %v2925_v30 = vand.u32 2147483648, %v8592_v34  ;;  %vm8960_vm14 = vmor %vm3157_vm13, %vm3158_vm11  ;;  %v8974_v60 = vpop.f32.mrf.mxu3 }
 0x28e   :  { %12701 = vst [vmem:[#allocation20_spill] sm:$0xff] %v8953_v14  ;;  %v3601_v57 = vmul.f32 %v8945_v54, %v8776_v4  ;;  %2534 = vadd.xlane.f32.xlu2 %v2533_v62  ;;  %v8966_v13 = vpop.eup %6426  ;;  %vm3592_vm15 = vweird.f32 %v8875_v28  ;;  %v3371_v46 = vand.u32 2147483647, %v8619_v16  ;;  %v3373_v40 = vand.u32 2147483648, %v8619_v16 }
 0x28f   :  { %12704 = vst [vmem:[#allocation83_spill] sm:$0xff] %v8966_v13  ;;  %v3160_v14 = vsel %vm8960_vm14, %v8806_v21, %v3156_v3  ;;  %v3364_v13 = vsub.f32 1.0, %v3363_v51  ;;  %v3164_v11 = vor.u32 1.1754944e-38, %v3163_v38  ;;  %v2530_v17 = vsel %vm1677_vm0, %v12707_v24, 0.0  ;;  %vm9015_vm5 = vmor %vm3591_vm10, %vm3592_vm15  ;;  %v12723_v24 = vld [vmem:[#allocation53_spill] sm:$0xff] }
 0x290   :  { %v3602_v45 = vsub.f32 1.0, %v3601_v57  ;;  %vm3162_vm4 = vcmp.eq.f32.partialorder %v3161_v23, 8.507059e+37  ;;  %v2931_v9 = vmul.f32 %v8910_v7, %v2930_v1  ;;  %2531 = vadd.xlane.f32.xlu1 %v2530_v17  ;;  %v2026_v21 = vsel %vm1677_vm0, %v8661_v49, -inf  ;;  %v8999_v1 = vpop.xlane.xlu1 %2615  ;;  %v9001_v17 = vpop.xlane.xlu2 %2567 }
 0x291   :  { %v3146_v47 = vsel %vm8980_vm1, %v8796_v20, %v3142_v26  ;;  %v8995_v51 = vadd.f32 %v8875_v28, %v3589_v0  ;;  %v2918_v38 = vadd.f32 %v8878_v61, %v2917_v36  ;;  %vm2920_vm2 = vweird.f32 %v8878_v61  ;;  %2027 = vmax.xlane.f32.xlu0 %v2026_v21  ;;  %v12710_v0 = vld [vmem:[#allocation47_spill] sm:$0xff] }
 0x292   :  { %v8992_v3 = vpop.eup %6428  ;;  %v3165_v23 = vsel %vm3162_vm4, %v3164_v11, %v3160_v14  ;;  %vm9003_vm3 = vcmp.eq.f32.partialorder %v2923_v42, 8.507059e+37  ;;  %v2926_v20 = vor.u32 1.1754944e-38, %v2925_v30  ;;  %v9007_v26 = vor.u32 1.1754944e-38, %v3373_v40  ;;  %vm9033_vm8 = vmor %vm2919_vm12, %vm2920_vm2  ;;  %v12731_v11 = vld [vmem:[#allocation21_spill] sm:$0xff] }
 0x293   :  { %v2133_v62 = vsub.f32 %v12710_v0, %v8689_v19  ;;  %vm9019_vm6 = vcmp.eq.f32.partialorder %v3595_v50, 8.507059e+37  ;;  %v3365_v42 = vmul.f32 %v8896_v15, %v3364_v13  ;;  %vm2934_vm7 = vweird.f32 %v8910_v7  ;;  %v12717_v13 = vld [vmem:[#allocation22_spill] sm:$0xff]  ;;  %v9042_v0 = vpop.xlane.xlu0 %2522 }
 0x294   :  { %v3603_v30 = vmul.f32 %v8945_v54, %v3602_v45  ;;  %v3151_v19 = vsel %vm8926_vm9, %v8898_v12, %v3146_v47  ;;  %v2932_v50 = vadd.f32 %v8910_v7, %v2931_v9  ;;  %v3377_v14 = vmul.f32 %v8992_v3, %v8854_v10  ;;  %v12718_v45 = vld [vmem:[#allocation28_spill] sm:$0xff]  ;;  %v4975_v12 = vpop.f32.mrf.mxu0 }
 0x295   :  { %v4644_v40 = vmul.f32 %v12717_v13, %v3151_v19  ;;  %v4645_v21 = vmul.f32 %v12718_v45, %v3165_v23  ;;  %v3594_v34 = vsel %vm9015_vm5, %v8875_v28, %v8995_v51  ;;  %v2922_v48 = vsel %vm9033_vm8, %v8878_v61, %v2918_v38  ;;  %5974 = vst [vmem:[#allocation9] sm:$0xff] %v4975_v12  ;;  %v9056_v13 = vpop.f32.mrf.mxu2  ;;  %v5112_v28 = vpop.f32.mrf.mxu1 }
 0x296   :  { %vm3367_vm9 = vweird.f32 %v8619_v16  ;;  %vm2933_vm10 = vweird.f32 %v8759_v59  ;;  %v2939_v9 = vand.u32 2147483648, %v8759_v59  ;;  %v2937_v47 = vand.u32 2147483647, %v8759_v59  ;;  %5990 = vst [vmem:[#allocation9 + $0x80] sm:$0xff] %v5112_v28  ;;  %v9071_v45 = vpop.f32.mrf.mxu3 }
 0x297   :  { %vm3605_vm11 = vweird.f32 %v8776_v4  ;;  %v4772_v23 = vpack.c.bf16 %v4644_v40, %v4644_v40  ;;  %v4773_v19 = vpack.c.bf16 %v4645_v21, %v4645_v21  ;;  %vm9060_vm12 = vmor %vm2933_vm10, %vm2934_vm7  ;;  %v3604_v51 = vadd.f32 %v8945_v54, %v3603_v30 }
 0x298   :  { %vm3606_vm13 = vweird.f32 %v8945_v54  ;;  %v3611_v38 = vand.u32 2147483648, %v8776_v4  ;;  %6430 = vrcp.f32 %v8856_v44  ;;  %v2936_v59 = vsel %vm9060_vm12, %v8910_v7, %v2932_v50  ;;  %v12726_v50 = vld [vmem:[#allocation97_spill] sm:$0xff]  ;;  %v9101_v61 = vpop.xlane.xlu1 %1898 }
 0x299   :  { %v3378_v36 = vsub.f32 1.0, %v3377_v14  ;;  %v5037_v25 = vunpack.c.l.b16 %v4772_v23  ;;  %v5038_v40 = vunpack.c.l.b16 %v4773_v19  ;;  %vm9073_vm14 = vcmp.eq.f32.partialorder %v3371_v46, 8.507059e+37  ;;  %vm9087_vm4 = vmor %vm3605_vm11, %vm3606_vm13  ;;  %v9099_v19 = vpop.xlane.xlu2 %1946 }
 0x29a   :  { %v2940_v30 = vor.u32 1.1754944e-38, %v2939_v9  ;;  %v3609_v12 = vand.u32 2147483647, %v8776_v4  ;;  %v2584_v49 = vsel %vm1677_vm0, %v12723_v24, 0.0  ;;  %v2029_v28 = vsel %vm1677_vm0, %v8789_v6, -inf  ;;  %v12772_v24 = vld [vmem:[#allocation33_spill] sm:$0xff] }
 0x29b   :  { %vm3368_vm15 = vweird.f32 %v8896_v15  ;;  %vm2938_vm1 = vcmp.eq.f32.partialorder %v2937_v47, 8.507059e+37  ;;  %v5050_v46 = vpack.c.b16 %v5038_v40, %v5037_v25  ;;  %2585 = vadd.xlane.f32.xlu2 %v2584_v49  ;;  %2030 = vmax.xlane.f32.xlu1 %v2029_v28  ;;  %v2587_v14 = vsel %vm1677_vm0, %v12726_v50, 0.0 }
 0x29c   :  { %v2927_v9 = vsel %vm9003_vm3, %v2926_v20, %v2922_v48  ;;  %v3366_v23 = vadd.f32 %v8896_v15, %v3365_v42  ;;  %v2941_v47 = vsel %vm2938_vm1, %v2940_v30, %v2936_v59  ;;  %v3608_v4 = vsel %vm9087_vm4, %v8945_v54, %v3604_v51  ;;  %2588 = vadd.xlane.f32.xlu0 %v2587_v14  ;;  %v4977_v20 = vpop.f32.mrf.mxu0  ;;  %v12727_v54 = vld [vmem:[#allocation49_spill] sm:$0xff]  ;;  %v12728_v51 = vld [vmem:[#allocation90_spill] sm:$0xff]  ;;  %vm9119_vm3 = vmor %vm3367_vm9, %vm3368_vm15 }
 0x29d   :  { %v3599_v49 = vsel %vm9019_vm6, %v8931_v39, %v3594_v34  ;;  %v2332_v25 = vmul.f32 1.442695, %v2133_v62  ;;  %v3612_v40 = vor.u32 1.1754944e-38, %v3611_v38  ;;  %v3379_v57 = vmul.f32 %v8992_v3, %v3378_v36  ;;  %6133 = vmatmul.msk.bf16.gmra.mxu1 %vm1677_vm0, %v5050_v46  ;;  %5975 = vst [vmem:[#allocation9 + $0x8] sm:$0xff] %v4977_v20  ;;  %v12732_v38 = vld [vmem:[#allocation29_spill] sm:$0xff]  ;;  %v5114_v28 = vpop.f32.mrf.mxu1 }
 0x29e   :  { %v9108_v42 = vpop.eup %6430  ;;  %v2149_v48 = vsub.f32 %v12727_v54, %v8703_v2  ;;  %v2165_v59 = vsub.f32 %v12728_v51, %v8757_v43  ;;  %vm3610_vm2 = vcmp.eq.f32.partialorder %v3609_v12, 8.507059e+37  ;;  %6432 = vrcp.f32 %v8935_v56  ;;  %v9126_v43 = vpop.xlane.xlu0 %1994  ;;  %5991 = vst [vmem:[#allocation9 + $0x88] sm:$0xff] %v5114_v28 }
 0x29f   :  { %v3613_v62 = vsel %vm3610_vm2, %v3612_v40, %v3608_v4  ;;  %v4628_v34 = vmul.f32 %v12731_v11, %v2927_v9  ;;  %v4629_v2 = vmul.f32 %v12732_v38, %v2941_v47  ;;  %6434 = vrcp.f32 %v9042_v0  ;;  %v9139_v9 = vpop.f32.mrf.mxu2  ;;  %v12734_v47 = vld [vmem:[#allocation30_spill] sm:$0xff]  ;;  %v9149_v54 = vpop.f32.mrf.mxu3 }
 0x2a0   :  { %v3370_v36 = vsel %vm9119_vm3, %v8896_v15, %v3366_v23  ;;  %v9133_v16 = vmul.f32 %v6858_v52, %v8663_v8  ;;  %v3385_v30 = vand.u32 2147483647, %v8854_v10  ;;  %v3387_v12 = vand.u32 2147483648, %v8854_v10  ;;  %v12733_v8 = vld [vmem:[#allocation27_spill] sm:$0xff]  ;;  %v9167_v39 = vpop.xlane.xlu1 %2474 }
 0x2a1   :  { %v3380_v7 = vadd.f32 %v8992_v3, %v3379_v57  ;;  %vm3382_vm5 = vweird.f32 %v8992_v3  ;;  %v4756_v46 = vpack.c.bf16 %v4628_v34, %v4628_v34  ;;  %v4757_v14 = vpack.c.bf16 %v4629_v2, %v4629_v2 }
 0x2a2   :  { %6436 = vpow2.f32 %v2332_v25  ;;  %v3167_v15 = vmul.f32 %v9108_v42, %v8856_v44  ;;  %v4676_v23 = vmul.f32 %v12733_v8, %v3599_v49  ;;  %v4677_v4 = vmul.f32 %v12734_v47, %v3613_v62 }
 0x2a3   :  { %v3375_v40 = vsel %vm9073_vm14, %v9007_v26, %v3370_v36  ;;  %v2364_v57 = vmul.f32 1.442695, %v2149_v48  ;;  %v2396_v20 = vmul.f32 1.442695, %v2165_v59  ;;  %vm3381_vm6 = vweird.f32 %v8854_v10  ;;  %v12739_v26 = vld [vmem:[#allocation95_spill] sm:$0xff]  ;;  %v9165_v10 = vpop.xlane.xlu2 %2618 }
 0x2a4   :  { %v9151_v51 = vpop.eup %6432  ;;  %vm9155_vm7 = vmor %vm3381_vm6, %vm3382_vm5  ;;  %vm9159_vm8 = vcmp.eq.f32.partialorder %v3385_v30, 8.507059e+37  ;;  %v2134_v21 = vsub.f32 %v12739_v26, %v8873_v58  ;;  %v4900_v48 = vunpack.c.l.b16 %v4756_v46  ;;  %v4901_v59 = vunpack.c.l.b16 %v4757_v14  ;;  %v12740_v30 = vld [vmem:[#allocation55_spill] sm:$0xff] }
 0x2a5   :  { %v9169_v62 = vpop.eup %6434  ;;  %v3384_v11 = vsel %vm9155_vm7, %v8992_v3, %v3380_v7  ;;  %v3388_v34 = vor.u32 1.1754944e-38, %v3387_v12  ;;  %v4804_v38 = vpack.c.bf16 %v4676_v23, %v4676_v23  ;;  %v4805_v2 = vpack.c.bf16 %v4677_v4, %v4677_v4  ;;  %v12743_v23 = vld [vmem:[#allocation93_spill] sm:$0xff] }
 0x2a6   :  { %v3168_v36 = vsub.f32 1.0, %v3167_v15  ;;  %v2150_v28 = vsub.f32 %v12740_v30, %v8906_v22  ;;  %v4913_v58 = vpack.c.b16 %v4901_v59, %v4900_v48  ;;  %v3181_v46 = vmul.f32 %v9169_v62, %v9042_v0  ;;  %v9181_v25 = vpop.xlane.xlu0 %2570  ;;  %v12742_v22 = vld [vmem:[#allocation98_spill] sm:$0xff] }
 0x2a7   :  { %v2943_v14 = vmul.f32 %v9151_v51, %v8935_v56  ;;  %6438 = vrcp.f32 %v8999_v1  ;;  %v5311_v8 = vunpack.c.l.b16 %v4804_v38  ;;  %v5312_v47 = vunpack.c.l.b16 %v4805_v2  ;;  %v12744_v59 = vld [vmem:[#allocation54_spill] sm:$0xff] }
 0x2a8   :  { %v9183_v3 = vpop.eup %6436  ;;  %v3389_v12 = vsel %vm9159_vm8, %v3388_v34, %v3384_v11  ;;  %v2334_v7 = vmul.f32 1.442695, %v2134_v21  ;;  %6125 = vmatmul.msk.bf16.gmra.mxu0 %vm1677_vm0, %v4913_v58  ;;  %v2635_v15 = vsel %vm1677_vm0, %v12742_v22, 0.0  ;;  %v2632_v4 = vsel %vm1677_vm0, %v12743_v23, 0.0  ;;  %v12745_v11 = vld [vmem:[#allocation57_spill] sm:$0xff] }
 0x2a9   :  { %12741 = vst [vmem:[#allocation15_spill] sm:$0xff] %v9183_v3  ;;  %6440 = vpow2.f32 %v2364_v57  ;;  %v3182_v26 = vsub.f32 1.0, %v3181_v46  ;;  %v5324_v48 = vpack.c.b16 %v5312_v47, %v5311_v8  ;;  %2636 = vadd.xlane.f32.xlu2 %v2635_v15  ;;  %2633 = vadd.xlane.f32.xlu1 %v2632_v4  ;;  %v2488_v38 = vsel %vm1677_vm0, %v12744_v59, 0.0  ;;  %v12746_v57 = vld [vmem:[#allocation24_spill] sm:$0xff]  ;;  %v12747_v46 = vld [vmem:[#allocation31_spill] sm:$0xff]  ;;  %v9201_v47 = vpop.f32.mrf.mxu2 }
 0x2aa   :  { %6442 = vpow2.f32 %v2396_v20  ;;  %v3175_v49 = vand.u32 2147483647, %v8856_v44  ;;  %v2366_v21 = vmul.f32 1.442695, %v2150_v28  ;;  %v2166_v34 = vsub.f32 %v12745_v11, %v8908_v35  ;;  %2489 = vadd.xlane.f32.xlu0 %v2488_v38  ;;  %v9212_v35 = vpop.xlane.xlu1 %2477  ;;  %v5386_v4 = vpop.f32.mrf.mxu3  ;;  %v12768_v38 = vld [vmem:[#allocation59_spill] sm:$0xff] }
 0x2ab   :  { %v3169_v2 = vmul.f32 %v9108_v42, %v3168_v36  ;;  %v2944_v30 = vsub.f32 1.0, %v2943_v14  ;;  %6149 = vmatmul.msk.bf16.gmra.mxu3 %vm1677_vm0, %v5324_v48  ;;  %v4660_v58 = vmul.f32 %v12746_v57, %v3375_v40  ;;  %v4661_v8 = vmul.f32 %v12747_v46, %v3389_v12  ;;  %v9214_v36 = vpop.xlane.xlu2 %1901  ;;  %6022 = vst [vmem:[#allocation9 + $0x180] sm:$0xff] %v5386_v4 }
 0x2ac   :  { %v9205_v20 = vmul.f32 %v6858_v52, %v8739_v41  ;;  %v9209_v28 = vmul.f32 %v6858_v52, %v8824_v5  ;;  %vm3171_vm9 = vweird.f32 %v8856_v44  ;;  %6444 = vpow2.f32 %v2334_v7 }
 0x2ad   :  { %v9216_v40 = vpop.eup %6438  ;;  %6446 = vrcp.f32 %v9001_v17  ;;  %v3183_v14 = vmul.f32 %v9169_v62, %v3182_v26  ;;  %v4788_v12 = vpack.c.bf16 %v4660_v58, %v4660_v58  ;;  %v4789_v41 = vpack.c.bf16 %v4661_v8, %v4661_v8 }
 0x2ae   :  { %12748 = vst [vmem:[#allocation86_spill] sm:$0xff] %v9205_v20  ;;  %vm3172_vm10 = vweird.f32 %v9108_v42  ;;  %v3177_v5 = vand.u32 2147483648, %v8856_v44  ;;  %6448 = vpow2.f32 %v2366_v21  ;;  %v2398_v15 = vmul.f32 1.442695, %v2166_v34  ;;  %v9230_v58 = vpop.xlane.xlu0 %1949  ;;  %v12754_v34 = vld [vmem:[#allocation92_spill] sm:$0xff] }
 0x2af   :  { %12749 = vst [vmem:[#allocation23_spill] sm:$0xff] %v9209_v28  ;;  %v9222_v7 = vpop.eup %6440  ;;  %v3170_v48 = vadd.f32 %v9108_v42, %v3169_v2  ;;  %vm9225_vm11 = vcmp.eq.f32.partialorder %v3175_v49, 8.507059e+37  ;;  %v2945_v11 = vmul.f32 %v9151_v51, %v2944_v30  ;;  %v5174_v26 = vunpack.c.l.b16 %v4788_v12  ;;  %v12755_v2 = vld [vmem:[#allocation94_spill] sm:$0xff]  ;;  %vm9259_vm13 = vmor %vm3171_vm9, %vm3172_vm10 }
 0x2b0   :  { %12750 = vst [vmem:[#allocation66_spill] sm:$0xff] %v9222_v7  ;;  %v5175_v57 = vunpack.c.l.b16 %v4789_v41  ;;  %v9232_v46 = vpop.eup %6442  ;;  %v3615_v21 = vmul.f32 %v9216_v40, %v8999_v1  ;;  %vm3186_vm12 = vweird.f32 %v9169_v62  ;;  %v2536_v49 = vsel %vm1677_vm0, %v12754_v34, 0.0  ;;  %v12756_v41 = vld [vmem:[#allocation96_spill] sm:$0xff] }
 0x2b1   :  { %12753 = vst [vmem:[#allocation47_spill] sm:$0xff] %v9232_v46  ;;  %v2491_v8 = vsel %vm1677_vm0, %v12755_v2, 0.0  ;;  %v3184_v30 = vadd.f32 %v9169_v62, %v3183_v14  ;;  %2537 = vadd.xlane.f32.xlu2 %v2536_v49  ;;  %v2539_v4 = vsel %vm1677_vm0, %v12756_v41, 0.0  ;;  %6450 = vrcp.f32 %v9165_v10 }
 0x2b2   :  { %v5187_v12 = vpack.c.b16 %v5175_v57, %v5174_v26  ;;  %2492 = vadd.xlane.f32.xlu1 %v2491_v8  ;;  %v9245_v3 = vpop.eup %6444  ;;  %v3178_v7 = vor.u32 1.1754944e-38, %v3177_v5  ;;  %v9249_v59 = vmul.f32 %v6858_v52, %v8883_v53  ;;  %v3191_v34 = vand.u32 2147483648, %v9042_v0  ;;  %2540 = vadd.xlane.f32.xlu0 %v2539_v4  ;;  %v5388_v2 = vpop.f32.mrf.mxu3 }
 0x2b3   :  { %12757 = vst [vmem:[#allocation22_spill] sm:$0xff] %v9245_v3  ;;  %6452 = vrcp.f32 %v9167_v39  ;;  %v9253_v14 = vpop.eup %6446  ;;  %v2951_v5 = vand.u32 2147483647, %v8935_v56  ;;  %vm3185_vm14 = vweird.f32 %v9042_v0  ;;  %v3189_v53 = vand.u32 2147483647, %v9042_v0  ;;  %v9281_v0 = vpop.xlane.xlu1 %1997 }
 0x2b4   :  { %12758 = vst [vmem:[#allocation28_spill] sm:$0xff] %v9249_v59  ;;  %6141 = vmatmul.msk.bf16.gmra.mxu2 %vm1677_vm0, %v5187_v12  ;;  %6454 = vrcp.f32 %v9181_v25  ;;  %v9268_v57 = vpop.eup %6448  ;;  %v3174_v44 = vsel %vm9259_vm13, %v9108_v42, %v3170_v48  ;;  %v2953_v49 = vand.u32 2147483648, %v8935_v56  ;;  %v3625_v8 = vand.u32 2147483648, %v8999_v1  ;;  %vm9277_vm15 = vmor %vm3185_vm14, %vm3186_vm12 }
 0x2b5   :  { %12761 = vst [vmem:[#allocation49_spill] sm:$0xff] %v9268_v57  ;;  %6456 = vpow2.f32 %v2398_v15  ;;  %v2946_v12 = vadd.f32 %v9151_v51, %v2945_v11  ;;  %vm2948_vm1 = vweird.f32 %v9151_v51  ;;  %v3616_v57 = vsub.f32 1.0, %v3615_v21  ;;  %v9288_v15 = vpop.xlane.xlu2 %2621  ;;  %v5249_v11 = vpop.f32.mrf.mxu2 }
 0x2b6   :  { %v3188_v42 = vsel %vm9277_vm15, %v9169_v62, %v3184_v30  ;;  %v3391_v48 = vmul.f32 %v9253_v14, %v9001_v17  ;;  %v3192_v26 = vor.u32 1.1754944e-38, %v3191_v34  ;;  %v2035_v3 = vsel %vm1677_vm0, %v8902_v55, -inf  ;;  %6006 = vst [vmem:[#allocation9 + $0x100] sm:$0xff] %v5249_v11  ;;  %v9304_v34 = vpop.xlane.xlu0 %2573 }
 0x2b7   :  { %v2032_v41 = vsel %vm1677_vm0, %v8828_v29, -inf  ;;  %v9296_v22 = vpop.eup %6450  ;;  %vm2947_vm4 = vweird.f32 %v8935_v56  ;;  %vm9299_vm2 = vcmp.eq.f32.partialorder %v2951_v5, 8.507059e+37  ;;  %v3623_v21 = vand.u32 2147483647, %v8999_v1  ;;  %6023 = vst [vmem:[#allocation9 + $0x188] sm:$0xff] %v5388_v2 }
 0x2b8   :  { %vm3190_vm3 = vcmp.eq.f32.partialorder %v3189_v53, 8.507059e+37  ;;  %v3179_v4 = vsel %vm9225_vm11, %v3178_v7, %v3174_v44  ;;  %v3401_v23 = vand.u32 2147483648, %v9001_v17  ;;  %v3629_v56 = vmul.f32 %v9296_v22, %v9165_v10  ;;  %vm9317_vm5 = vmor %vm2947_vm4, %vm2948_vm1 }
 0x2b9   :  { %v9306_v30 = vpop.eup %6452  ;;  %v3193_v46 = vsel %vm3190_vm3, %v3192_v26, %v3188_v42  ;;  %v2954_v11 = vor.u32 1.1754944e-38, %v2953_v49  ;;  %v3617_v50 = vmul.f32 %v9216_v40, %v3616_v57  ;;  %2036 = vmax.xlane.f32.xlu2 %v2035_v3  ;;  %v2734_v44 = vsel %vm1677_vm0, %v12768_v38, 0.0  ;;  %v12773_v38 = vld [vmem:[#allocation38_spill] sm:$0xff] }
 0x2ba   :  { %v9313_v5 = vpop.eup %6454  ;;  %v2957_v7 = vmul.f32 %v9306_v30, %v9167_v39  ;;  %2033 = vmax.xlane.f32.xlu1 %v2032_v41  ;;  %v2950_v42 = vsel %vm9317_vm5, %v9151_v51, %v2946_v12  ;;  %vm3619_vm6 = vweird.f32 %v8999_v1  ;;  %v3626_v26 = vor.u32 1.1754944e-38, %v3625_v8  ;;  %2735 = vadd.xlane.f32.xlu0 %v2734_v44 }
 0x2bb   :  { %v9326_v2 = vpop.eup %6456  ;;  %v3392_v49 = vsub.f32 1.0, %v3391_v48  ;;  %vm9332_vm7 = vcmp.eq.f32.partialorder %v3623_v21, 8.507059e+37  ;;  %v3630_v3 = vsub.f32 1.0, %v3629_v56  ;;  %v4646_v55 = vmul.f32 %v12772_v24, %v3179_v4  ;;  %v9345_v48 = vpop.xlane.xlu1 %1952 }
 0x2bc   :  { %12769 = vst [vmem:[#allocation90_spill] sm:$0xff] %v9326_v2  ;;  %v2958_v41 = vsub.f32 1.0, %v2957_v7  ;;  %v4647_v29 = vmul.f32 %v12773_v38, %v3193_v46  ;;  %vm3620_vm8 = vweird.f32 %v9216_v40  ;;  %vm3395_vm9 = vweird.f32 %v9001_v17 }
 0x2bd   :  { %v3399_v51 = vand.u32 2147483647, %v9001_v17  ;;  %v9341_v12 = vor.u32 1.1754944e-38, %v3401_v23  ;;  %v3405_v8 = vmul.f32 %v9313_v5, %v9181_v25  ;;  %v3618_v21 = vadd.f32 %v9216_v40, %v3617_v50  ;;  %v5251_v23 = vpop.f32.mrf.mxu2  ;;  %vm9366_vm12 = vmor %vm3619_vm6, %vm3620_vm8 }
 0x2be   :  { %v2959_v56 = vmul.f32 %v9306_v30, %v2958_v41  ;;  %v4774_v24 = vpack.c.bf16 %v4646_v55, %v4646_v55  ;;  %v4775_v4 = vpack.c.bf16 %v4647_v29, %v4647_v29  ;;  %v9351_v46 = vsel %vm9299_vm2, %v2954_v11, %v2950_v42  ;;  %6007 = vst [vmem:[#allocation9 + $0x108] sm:$0xff] %v5251_v23  ;;  %v9358_v55 = vpop.xlane.xlu2 %2480  ;;  %v9360_v29 = vpop.xlane.xlu0 %1904  ;;  %v12776_v42 = vld [vmem:[#allocation61_spill] sm:$0xff]  ;;  %v12778_v23 = vld [vmem:[#allocation100_spill] sm:$0xff] }
 0x2bf   :  { %v3393_v53 = vmul.f32 %v9253_v14, %v3392_v49  ;;  %vm3396_vm10 = vweird.f32 %v9253_v14  ;;  %6458 = vrcp.f32 %v9212_v35  ;;  %v3631_v7 = vmul.f32 %v9296_v22, %v3630_v3  ;;  %v12777_v3 = vld [vmem:[#allocation69_spill] sm:$0xff] }
 0x2c0   :  { %vm2962_vm11 = vweird.f32 %v9306_v30  ;;  %v5039_v50 = vunpack.c.l.b16 %v4774_v24  ;;  %v5040_v38 = vunpack.c.l.b16 %v4775_v4  ;;  %v2960_v11 = vadd.f32 %v9306_v30, %v2959_v56  ;;  %vm9417_vm4 = vmor %vm3395_vm9, %vm3396_vm10 }
 0x2c1   :  { %v3406_v44 = vsub.f32 1.0, %v3405_v8  ;;  %v2782_v49 = vsel %vm1677_vm0, %v12776_v42, 0.0  ;;  %v2737_v41 = vsel %vm1677_vm0, %v12777_v3, 0.0  ;;  %v3622_v24 = vsel %vm9366_vm12, %v9216_v40, %v3618_v21  ;;  %v12781_v21 = vld [vmem:[#allocation63_spill] sm:$0xff] }
 0x2c2   :  { %v2967_v4 = vand.u32 2147483648, %v9167_v39  ;;  %v5051_v1 = vpack.c.b16 %v5040_v38, %v5039_v50  ;;  %2783 = vadd.xlane.f32.xlu2 %v2782_v49  ;;  %2738 = vadd.xlane.f32.xlu1 %v2737_v41  ;;  %v2785_v2 = vsel %vm1677_vm0, %v12778_v23, 0.0  ;;  %v3394_v8 = vadd.f32 %v9253_v14, %v3393_v53  ;;  %v12782_v38 = vld [vmem:[#allocation56_spill] sm:$0xff] }
 0x2c3   :  { %vm9382_vm13 = vcmp.eq.f32.partialorder %v3399_v51, 8.507059e+37  ;;  %v3639_v3 = vand.u32 2147483648, %v9165_v10  ;;  %vm2961_vm14 = vweird.f32 %v9167_v39  ;;  %v2965_v40 = vand.u32 2147483647, %v9167_v39  ;;  %2786 = vadd.xlane.f32.xlu0 %v2785_v2  ;;  %v5117_v39 = vpop.f32.mrf.mxu1  ;;  %v9411_v62 = vpop.xlane.xlu1 %2576  ;;  %v12789_v51 = vld [vmem:[#allocation64_spill] sm:$0xff] }
 0x2c4   :  { %v3632_v49 = vadd.f32 %v9296_v22, %v3631_v7  ;;  %vm3634_vm15 = vweird.f32 %v9296_v22  ;;  %vm9397_vm1 = vmor %vm2961_vm14, %vm2962_vm11  ;;  %6134 = vmatmul.msk.bf16.gmra.mxu1 %vm1677_vm0, %v5051_v1  ;;  %v3627_v53 = vsel %vm9332_vm7, %v3626_v26, %v3622_v24  ;;  %v3407_v41 = vmul.f32 %v9313_v5, %v3406_v44  ;;  %5992 = vst [vmem:[#allocation9 + $0x90] sm:$0xff] %v5117_v39  ;;  %v12792_v1 = vld [vmem:[#allocation32_spill] sm:$0xff] }
 0x2c5   :  { %v9402_v2 = vpop.eup %6458  ;;  %v2964_v7 = vsel %vm9397_vm1, %v9306_v30, %v2960_v11  ;;  %6460 = vrcp.f32 %v9304_v34  ;;  %vm3633_vm2 = vweird.f32 %v9165_v10  ;;  %v3637_v26 = vand.u32 2147483647, %v9165_v10 }
 0x2c6   :  { %v2968_v30 = vor.u32 1.1754944e-38, %v2967_v4  ;;  %6462 = vrcp.f32 %v9288_v15  ;;  %v3398_v57 = vsel %vm9417_vm4, %v9253_v14, %v3394_v8  ;;  %vm9429_vm3 = vmor %vm3633_vm2, %vm3634_vm15  ;;  %v3640_v17 = vor.u32 1.1754944e-38, %v3639_v3  ;;  %v9439_v14 = vpop.xlane.xlu0 %2624  ;;  %v12790_v3 = vld [vmem:[#allocation58_spill] sm:$0xff] }
 0x2c7   :  { %vm2966_vm5 = vcmp.eq.f32.partialorder %v2965_v40, 8.507059e+37  ;;  %v3413_v44 = vand.u32 2147483647, %v9181_v25  ;;  %v3636_v10 = vsel %vm9429_vm3, %v9296_v22, %v3632_v49  ;;  %vm3410_vm6 = vweird.f32 %v9313_v5  ;;  %v12791_v49 = vld [vmem:[#allocation99_spill] sm:$0xff] }
 0x2c8   :  { %v2969_v24 = vsel %vm2966_vm5, %v2968_v30, %v2964_v7  ;;  %v3415_v4 = vand.u32 2147483648, %v9181_v25  ;;  %v3408_v8 = vadd.f32 %v9313_v5, %v3407_v41  ;;  %v2641_v39 = vsel %vm1677_vm0, %v12789_v51, 0.0  ;;  %v9453_v30 = vpop.xlane.xlu2 %2000  ;;  %v12794_v51 = vld [vmem:[#allocation35_spill] sm:$0xff] }
 0x2c9   :  { %v2638_v40 = vsel %vm1677_vm0, %v12790_v3, 0.0  ;;  %6464 = vrcp.f32 %v9358_v55  ;;  %vm3638_vm7 = vcmp.eq.f32.partialorder %v3637_v26, 8.507059e+37  ;;  %v2971_v22 = vmul.f32 %v9402_v2, %v9212_v35  ;;  %v12793_v26 = vld [vmem:[#allocation37_spill] sm:$0xff] }
 0x2ca   :  { %2642 = vadd.xlane.f32.xlu2 %v2641_v39  ;;  %2639 = vadd.xlane.f32.xlu1 %v2638_v40  ;;  %v2686_v7 = vsel %vm1677_vm0, %v12791_v49, 0.0  ;;  %v4630_v41 = vmul.f32 %v12792_v1, %v9351_v46  ;;  %v3641_v50 = vsel %vm3638_vm7, %v3640_v17, %v3636_v10  ;;  %vm3409_vm8 = vweird.f32 %v9181_v25  ;;  %v12795_v46 = vld [vmem:[#allocation62_spill] sm:$0xff] }
 0x2cb   :  { %v9455_v11 = vpop.eup %6460  ;;  %2687 = vadd.xlane.f32.xlu0 %v2686_v7  ;;  %v4631_v3 = vmul.f32 %v12793_v26, %v2969_v24  ;;  %v4678_v23 = vmul.f32 %v12794_v51, %v3627_v53  ;;  %v3403_v40 = vsel %vm9382_vm13, %v9341_v12, %v3398_v57  ;;  %vm9469_vm9 = vmor %vm3409_vm8, %vm3410_vm6  ;;  %vm9473_vm10 = vcmp.eq.f32.partialorder %v3413_v44, 8.507059e+37  ;;  %v5119_v10 = vpop.f32.mrf.mxu1  ;;  %v12800_v26 = vld [vmem:[#allocation85_spill] sm:$0xff] }
 0x2cc   :  { %v9460_v39 = vpop.eup %6462  ;;  %v3416_v53 = vor.u32 1.1754944e-38, %v3415_v4  ;;  %v3412_v56 = vsel %vm9469_vm9, %v9313_v5, %v3408_v8  ;;  %v3419_v12 = vmul.f32 %v9455_v11, %v9304_v34  ;;  %v4758_v57 = vpack.c.bf16 %v4630_v41, %v4630_v41  ;;  %5993 = vst [vmem:[#allocation9 + $0x98] sm:$0xff] %v5119_v10  ;;  %v12801_v5 = vld [vmem:[#allocation34_spill] sm:$0xff]  ;;  %v9489_v59 = vpop.xlane.xlu1 %1907 }
 0x2cd   :  { %v4759_v24 = vpack.c.bf16 %v4631_v3, %v4631_v3  ;;  %v2972_v51 = vsub.f32 1.0, %v2971_v22  ;;  %v2979_v7 = vand.u32 2147483647, %v9212_v35  ;;  %v4679_v44 = vmul.f32 %v12800_v26, %v3641_v50  ;;  %12802 = vst [vmem:[#allocation21_spill] sm:$0xff] %v9489_v59 }
 0x2ce   :  { %v4806_v1 = vpack.c.bf16 %v4678_v23, %v4678_v23  ;;  %v3643_v4 = vmul.f32 %v9460_v39, %v9288_v15  ;;  %v4902_v42 = vunpack.c.l.b16 %v4758_v57  ;;  %v4662_v8 = vmul.f32 %v12801_v5, %v3403_v40 }
 0x2cf   :  { %v9484_v49 = vpop.eup %6464  ;;  %v4903_v17 = vunpack.c.l.b16 %v4759_v24  ;;  %v3417_v3 = vsel %vm9473_vm10, %v3416_v53, %v3412_v56  ;;  %v2981_v22 = vand.u32 2147483648, %v9212_v35  ;;  %v4807_v23 = vpack.c.bf16 %v4679_v44, %v4679_v44  ;;  %v9502_v24 = vpop.xlane.xlu0 %1958  ;;  %v12804_v44 = vld [vmem:[#allocation36_spill] sm:$0xff] }
 0x2d0   :  { %v2985_v50 = vmul.f32 %v9484_v49, %v9358_v55  ;;  %v12803_v41 = vsub.f32 %v12781_v21, %v9099_v19  ;;  %vm2975_vm11 = vweird.f32 %v9212_v35  ;;  %v3420_v57 = vsub.f32 1.0, %v3419_v12  ;;  %v9505_v5 = vpop.xlane.xlu2 %1955  ;;  %v4980_v12 = vpop.f32.mrf.mxu0 }
 0x2d1   :  { %v4914_v40 = vpack.c.b16 %v4903_v17, %v4902_v42  ;;  %v2973_v25 = vmul.f32 %v9402_v2, %v2972_v51  ;;  %v5313_v56 = vunpack.c.l.b16 %v4806_v1  ;;  %v5314_v26 = vunpack.c.l.b16 %v4807_v23  ;;  %5976 = vst [vmem:[#allocation9 + $0x10] sm:$0xff] %v4980_v12 }
 0x2d2   :  { %v9499_v10 = vmul.f32 1.442695, %v12803_v41  ;;  %v2986_v53 = vsub.f32 1.0, %v2985_v50  ;;  %v3644_v59 = vsub.f32 1.0, %v3643_v4  ;;  %v4663_v19 = vmul.f32 %v12804_v44, %v3417_v3  ;;  %v12807_v50 = vld [vmem:[#allocation65_spill] sm:$0xff] }
 0x2d3   :  { %6126 = vmatmul.msk.bf16.gmra.mxu0 %vm1677_vm0, %v4914_v40  ;;  %v4790_v21 = vpack.c.bf16 %v4662_v8, %v4662_v8  ;;  %v2038_v41 = vsel %vm1677_vm0, %v8915_v33, -inf  ;;  %vm9511_vm12 = vcmp.eq.f32.partialorder %v2979_v7, 8.507059e+37  ;;  %v2982_v51 = vor.u32 1.1754944e-38, %v2981_v22 }
 0x2d4   :  { %v2987_v1 = vmul.f32 %v9484_v49, %v2986_v53  ;;  %v5325_v17 = vpack.c.b16 %v5314_v26, %v5313_v56  ;;  %2039 = vmax.xlane.f32.xlu2 %v2038_v41  ;;  %v2689_v4 = vsel %vm1677_vm0, %v12807_v50, 0.0  ;;  %vm2976_vm13 = vweird.f32 %v9402_v2  ;;  %v9529_v56 = vpop.xlane.xlu1 %2528 }
 0x2d5   :  { %v3421_v8 = vmul.f32 %v9455_v11, %v3420_v57  ;;  %v4791_v3 = vpack.c.bf16 %v4663_v19, %v4663_v19  ;;  %2690 = vadd.xlane.f32.xlu1 %v2689_v4  ;;  %v2041_v7 = vsel %vm1677_vm0, %v9133_v16, -inf  ;;  %v2974_v23 = vadd.f32 %v9402_v2, %v2973_v25  ;;  %vm9539_vm1 = vmor %vm2975_vm11, %vm2976_vm13 }
 0x2d6   :  { %vm3647_vm14 = vweird.f32 %v9288_v15  ;;  %v3651_v22 = vand.u32 2147483647, %v9288_v15  ;;  %6150 = vmatmul.msk.bf16.gmra.mxu3 %vm1677_vm0, %v5325_v17  ;;  %2042 = vmax.xlane.f32.xlu0 %v2041_v7  ;;  %6466 = vrcp.f32 %v9411_v62  ;;  %v3645_v40 = vmul.f32 %v9460_v39, %v3644_v59 }
 0x2d7   :  { %v5176_v53 = vunpack.c.l.b16 %v4790_v21  ;;  %v5177_v57 = vunpack.c.l.b16 %v4791_v3  ;;  %6468 = vrcp.f32 %v9439_v14  ;;  %v3653_v26 = vand.u32 2147483648, %v9288_v15  ;;  %v9546_v12 = vpop.xlane.xlu0 %1913 }
 0x2d8   :  { %v3427_v25 = vand.u32 2147483647, %v9304_v34  ;;  %v2988_v44 = vadd.f32 %v9484_v49, %v2987_v1  ;;  %vm2990_vm15 = vweird.f32 %v9484_v49  ;;  %v3422_v19 = vadd.f32 %v9455_v11, %v3421_v8  ;;  %12810 = vst [vmem:[#allocation29_spill] sm:$0xff] %v9546_v12  ;;  %v9554_v4 = vpop.xlane.xlu2 %1910  ;;  %v5391_v59 = vpop.f32.mrf.mxu3 }
 0x2d9   :  { %vm3424_vm4 = vweird.f32 %v9455_v11  ;;  %v2995_v21 = vand.u32 2147483648, %v9358_v55  ;;  %v5188_v41 = vpack.c.b16 %v5177_v57, %v5176_v53  ;;  %v2978_v1 = vsel %vm9539_vm1, %v9402_v2, %v2974_v23  ;;  %v4982_v2 = vpop.f32.mrf.mxu0  ;;  %v12815_v53 = vld [vmem:[#allocation73_spill] sm:$0xff]  ;;  %6024 = vst [vmem:[#allocation9 + $0x190] sm:$0xff] %v5391_v59 }
 0x2da   :  { %v3429_v17 = vand.u32 2147483648, %v9304_v34  ;;  %vm2989_vm2 = vweird.f32 %v9358_v55  ;;  %v2993_v35 = vand.u32 2147483647, %v9358_v55  ;;  %v9557_v8 = vadd.f32 %v9460_v39, %v3645_v40  ;;  %5977 = vst [vmem:[#allocation9 + $0x18] sm:$0xff] %v4982_v2 }
 0x2db   :  { %vm3648_vm3 = vweird.f32 %v9460_v39  ;;  %vm3423_vm5 = vweird.f32 %v9304_v34  ;;  %vm9563_vm6 = vmor %vm2989_vm2, %vm2990_vm15  ;;  %6142 = vmatmul.msk.bf16.gmra.mxu2 %vm1677_vm0, %v5188_v41  ;;  %v2743_v55 = vsel %vm1677_vm0, %v8609_v63, 0.0  ;;  %v9572_v23 = vor.u32 1.1754944e-38, %v3653_v26 }
 0x2dc   :  { %v9570_v7 = vpop.eup %6466  ;;  %vm9576_vm7 = vmor %vm3423_vm5, %vm3424_vm4  ;;  %v2992_v40 = vsel %vm9563_vm6, %v9484_v49, %v2988_v44  ;;  %2744 = vadd.xlane.f32.xlu2 %v2743_v55  ;;  %v2740_v57 = vsel %vm1677_vm0, %v12815_v53, 0.0  ;;  %6470 = vrcp.f32 %v9529_v56  ;;  %v2983_v41 = vsel %vm9511_vm12, %v2982_v51, %v2978_v1  ;;  %v9611_v3 = vpop.xlane.xlu1 %1961 }
 0x2dd   :  { %v6469_v26 = vpop.eup %6468  ;;  %v3426_v12 = vsel %vm9576_vm7, %v9455_v11, %v3422_v19  ;;  %v2996_v63 = vor.u32 1.1754944e-38, %v2995_v21  ;;  %v3433_v49 = vmul.f32 %v9570_v7, %v9411_v62  ;;  %2741 = vadd.xlane.f32.xlu1 %v2740_v57  ;;  %vm9597_vm8 = vmor %vm3647_vm14, %vm3648_vm3  ;;  %vm9601_vm9 = vcmp.eq.f32.partialorder %v3651_v22, 8.507059e+37  ;;  %12820 = vst [vmem:[#allocation27_spill] sm:$0xff] %v9611_v3 }
 0x2de   :  { %vm3428_vm10 = vcmp.eq.f32.partialorder %v3427_v25, 8.507059e+37  ;;  %v3430_v11 = vor.u32 1.1754944e-38, %v3429_v17  ;;  %vm2994_vm11 = vcmp.eq.f32.partialorder %v2993_v35, 8.507059e+37  ;;  %v3657_v51 = vmul.f32 %v6469_v26, %v9439_v14  ;;  %v12821_v25 = vld [vmem:[#allocation88_spill] sm:$0xff] }
 0x2df   :  { %v3650_v19 = vsel %vm9597_vm8, %v9460_v39, %v9557_v8  ;;  %v2997_v21 = vsel %vm2994_vm11, %v2996_v63, %v2992_v40  ;;  %v3434_v15 = vsub.f32 1.0, %v3433_v49  ;;  %v3441_v1 = vand.u32 2147483647, %v9411_v62  ;;  %v5254_v63 = vpop.f32.mrf.mxu2  ;;  %v9619_v8 = vpop.xlane.xlu0 %2525 }
 0x2e0   :  { %v3431_v22 = vsel %vm3428_vm10, %v3430_v11, %v3426_v12  ;;  %v3443_v55 = vand.u32 2147483648, %v9411_v62  ;;  %v3658_v2 = vsub.f32 1.0, %v3657_v51  ;;  %v4632_v17 = vmul.f32 %v12821_v25, %v2983_v41  ;;  %6008 = vst [vmem:[#allocation9 + $0x110] sm:$0xff] %v5254_v63  ;;  %v12822_v12 = vld [vmem:[#allocation41_spill] sm:$0xff]  ;;  %v2022_v41 = vpop.xlane.xlu2 %2021  ;;  %v12823_v11 = vld [vmem:[#allocation102_spill] sm:$0xff] }
 0x2e1   :  { %v3435_v35 = vmul.f32 %v9570_v7, %v3434_v15  ;;  %vm3438_vm12 = vweird.f32 %v9570_v7  ;;  %v3665_v34 = vand.u32 2147483647, %v9439_v14  ;;  %v3667_v39 = vand.u32 2147483648, %v9439_v14 }
 0x2e2   :  { %v9621_v40 = vpop.eup %6470  ;;  %v3659_v57 = vmul.f32 %v6469_v26, %v3658_v2  ;;  %vm3662_vm13 = vweird.f32 %v6469_v26  ;;  %v4633_v59 = vmul.f32 %v12822_v12, %v2997_v21  ;;  %v4760_v49 = vpack.c.bf16 %v4632_v17, %v4632_v17  ;;  %v5393_v21 = vpop.f32.mrf.mxu3 }
 0x2e3   :  { %v3436_v44 = vadd.f32 %v9570_v7, %v3435_v35  ;;  %vm3437_vm14 = vweird.f32 %v9411_v62  ;;  %vm3442_vm15 = vcmp.eq.f32.partialorder %v3441_v1, 8.507059e+37  ;;  %v2644_v51 = vsel %vm1677_vm0, %v12823_v11, 0.0  ;;  %6025 = vst [vmem:[#allocation9 + $0x198] sm:$0xff] %v5393_v21  ;;  %v12826_v11 = vld [vmem:[#allocation42_spill] sm:$0xff] }
 0x2e4   :  { %vm3439_vm1 = vmor %vm3437_vm14, %vm3438_vm12  ;;  %v3444_v15 = vor.u32 1.1754944e-38, %v3443_v55  ;;  %v3660_v25 = vadd.f32 %v6469_v26, %v3659_v57  ;;  %vm3661_vm4 = vweird.f32 %v9439_v14  ;;  %2645 = vadd.xlane.f32.xlu2 %v2644_v51  ;;  %v4761_v2 = vpack.c.bf16 %v4633_v59, %v4633_v59  ;;  %v12824_v57 = vld [vmem:[#allocation60_spill] sm:$0xff] }
 0x2e5   :  { %v3440_v17 = vsel %vm3439_vm1, %v9570_v7, %v3436_v44  ;;  %vm3663_vm2 = vmor %vm3661_vm4, %vm3662_vm13  ;;  %vm3666_vm3 = vcmp.eq.f32.partialorder %v3665_v34, 8.507059e+37  ;;  %v3668_v62 = vor.u32 1.1754944e-38, %v3667_v39  ;;  %v3209_v1 = vmul.f32 %v9621_v40, %v9529_v56  ;;  %v12825_v39 = vld [vmem:[#allocation39_spill] sm:$0xff] }
 0x2e6   :  { %v3445_v35 = vsel %vm3442_vm15, %v3444_v15, %v3440_v17  ;;  %v3664_v63 = vsel %vm3663_vm2, %v6469_v26, %v3660_v25  ;;  %v4904_v12 = vunpack.c.l.b16 %v4760_v49  ;;  %v4905_v55 = vunpack.c.l.b16 %v4761_v2  ;;  %v9644_v26 = vpop.xlane.xlu1 %1916 }
 0x2e7   :  { %v2136_v14 = vsub.f32 %v12824_v57, %v9214_v36  ;;  %v3655_v59 = vsel %vm9601_vm9, %v9572_v23, %v3650_v19  ;;  %v3669_v7 = vsel %vm3666_vm3, %v3668_v62, %v3664_v63  ;;  %v2176_v44 = vsub.f32 %v8571_v18, %v2022_v41  ;;  %v5256_v19 = vpop.f32.mrf.mxu2  ;;  %v2025_v41 = vpop.xlane.xlu0 %2024 }
 0x2e8   :  { %v4915_v34 = vpack.c.b16 %v4905_v55, %v4904_v12  ;;  %v4664_v51 = vmul.f32 %v12825_v39, %v3431_v22  ;;  %v4665_v3 = vmul.f32 %v12826_v11, %v3445_v35  ;;  %6472 = vrcp.f32 %v9619_v8  ;;  %v12830_v11 = vld [vmem:[#allocation68_spill] sm:$0xff]  ;;  %6009 = vst [vmem:[#allocation9 + $0x118] sm:$0xff] %v5256_v19  ;;  %v9659_v21 = vpop.xlane.xlu2 %1964 }
 0x2e9   :  { %v9648_v49 = vmul.f32 %v6858_v52, %v8951_v31  ;;  %v12828_v36 = vsub.f32 %v12782_v38, %v9101_v61  ;;  %v12829_v18 = vsub.f32 %v12795_v46, %v9126_v43  ;;  %v2418_v22 = vmul.f32 1.442695, %v2176_v44  ;;  %v12831_v43 = vld [vmem:[#allocation40_spill] sm:$0xff]  ;;  %v12832_v46 = vld [vmem:[#allocation89_spill] sm:$0xff] }
 0x2ea   :  { %v2152_v15 = vsub.f32 %v12830_v11, %v9230_v58  ;;  %v3210_v25 = vsub.f32 1.0, %v3209_v1  ;;  %6127 = vmatmul.msk.bf16.gmra.mxu0 %vm1677_vm0, %v4915_v34  ;;  %v4792_v31 = vpack.c.bf16 %v4664_v51, %v4664_v51  ;;  %v4793_v2 = vpack.c.bf16 %v4665_v3, %v4665_v3  ;;  %v12834_v51 = vld [vmem:[#allocation103_spill] sm:$0xff] }
 0x2eb   :  { %12827 = vst [vmem:[#allocation30_spill] sm:$0xff] %v9648_v49  ;;  %v2336_v23 = vmul.f32 1.442695, %v12828_v36  ;;  %v2400_v42 = vmul.f32 1.442695, %v12829_v18  ;;  %v2695_v61 = vsel %vm1677_vm0, %v8577_v37, 0.0  ;;  %6474 = vpow2.f32 %v2418_v22  ;;  %v5122_v34 = vpop.f32.mrf.mxu1 }
 0x2ec   :  { %v4680_v38 = vmul.f32 %v12831_v43, %v3655_v59  ;;  %v4681_v17 = vmul.f32 %v12832_v46, %v3669_v7  ;;  %6476 = vpow2.f32 %v9499_v10  ;;  %v2338_v62 = vmul.f32 1.442695, %v2136_v14  ;;  %2696 = vadd.xlane.f32.xlu2 %v2695_v61  ;;  %5994 = vst [vmem:[#allocation9 + $0xa0] sm:$0xff] %v5122_v34  ;;  %v12856_v37 = vld [vmem:[#allocation84_spill] sm:$0xff] }
 0x2ed   :  { %v5178_v58 = vunpack.c.l.b16 %v4792_v31  ;;  %v5179_v1 = vunpack.c.l.b16 %v4793_v2  ;;  %v9668_v35 = vmul.f32 %v6858_v52, %v8974_v60  ;;  %6478 = vpow2.f32 %v2336_v23  ;;  %v12833_v60 = vld [vmem:[#allocation101_spill] sm:$0xff] }
 0x2ee   :  { %v4808_v3 = vpack.c.bf16 %v4680_v38, %v4680_v38  ;;  %v4809_v63 = vpack.c.bf16 %v4681_v17, %v4681_v17  ;;  %v9670_v12 = vpop.eup %6472  ;;  %6480 = vpow2.f32 %v2400_v42  ;;  %v3211_v55 = vmul.f32 %v9621_v40, %v3210_v25 }
 0x2ef   :  { %v5189_v57 = vpack.c.b16 %v5179_v1, %v5178_v58  ;;  %v2177_v59 = vsub.f32 %v8613_v32, %v2025_v41  ;;  %v2370_v10 = vmul.f32 1.442695, %v2152_v15  ;;  %v3195_v14 = vmul.f32 %v9670_v12, %v9619_v8  ;;  %v9682_v32 = vpop.xlane.xlu1 %2579  ;;  %v9704_v43 = vpop.xlane.xlu0 %2627 }
 0x2f0   :  { %v5315_v7 = vunpack.c.l.b16 %v4808_v3  ;;  %v5316_v44 = vunpack.c.l.b16 %v4809_v63  ;;  %6482 = vpow2.f32 %v2338_v62  ;;  %v2168_v39 = vsub.f32 %v12833_v60, %v9281_v0  ;;  %v9694_v15 = vpop.xlane.xlu2 %2582 }
 0x2f1   :  { %v2153_v36 = vsub.f32 %v12834_v51, %v9345_v48  ;;  %v3219_v23 = vand.u32 2147483648, %v9529_v56  ;;  %6143 = vmatmul.msk.bf16.gmra.mxu2 %vm1677_vm0, %v5189_v57  ;;  %v9684_v18 = vpop.eup %6474  ;;  %v3196_v42 = vsub.f32 1.0, %v3195_v14  ;;  %v2420_v22 = vmul.f32 1.442695, %v2177_v59  ;;  %v12841_v14 = vld [vmem:[#allocation75_spill] sm:$0xff] }
 0x2f2   :  { %12835 = vst [vmem:[#allocation95_spill] sm:$0xff] %v9684_v18  ;;  %v5326_v19 = vpack.c.b16 %v5316_v44, %v5315_v7  ;;  %6484 = vrcp.f32 %v9682_v32  ;;  %v9687_v41 = vpop.eup %6476  ;;  %v3212_v0 = vadd.f32 %v9621_v40, %v3211_v55  ;;  %vm3214_vm5 = vweird.f32 %v9621_v40 }
 0x2f3   :  { %12836 = vst [vmem:[#allocation55_spill] sm:$0xff] %v9687_v41  ;;  %v3205_v48 = vand.u32 2147483648, %v9619_v8  ;;  %v2788_v11 = vsel %vm1677_vm0, %v9684_v18, 0.0  ;;  %v9696_v25 = vpop.eup %6478  ;;  %v3197_v31 = vmul.f32 %v9670_v12, %v3196_v42  ;;  %vm3200_vm6 = vweird.f32 %v9670_v12  ;;  %v5124_v59 = vpop.f32.mrf.mxu1 }
 0x2f4   :  { %v3203_v2 = vand.u32 2147483647, %v9619_v8  ;;  %6151 = vmatmul.msk.bf16.gmra.mxu3 %vm1677_vm0, %v5326_v19  ;;  %v2746_v61 = vsel %vm1677_vm0, %v8680_v27, 0.0  ;;  %2789 = vadd.xlane.f32.xlu0 %v2788_v11  ;;  %v9706_v38 = vpop.eup %6480  ;;  %v9710_v46 = vmul.f32 %v6858_v52, %v9056_v13  ;;  %vm3213_vm7 = vweird.f32 %v9529_v56  ;;  %5995 = vst [vmem:[#allocation9 + $0xa8] sm:$0xff] %v5124_v59 }
 0x2f5   :  { %12837 = vst [vmem:[#allocation57_spill] sm:$0xff] %v9706_v38  ;;  %v3217_v17 = vand.u32 2147483647, %v9529_v56  ;;  %2747 = vadd.xlane.f32.xlu2 %v2746_v61  ;;  %6486 = vpow2.f32 %v2420_v22  ;;  %v2402_v62 = vmul.f32 1.442695, %v2168_v39  ;;  %vm9716_vm8 = vmor %vm3213_vm7, %vm3214_vm5  ;;  %v3198_v1 = vadd.f32 %v9670_v12, %v3197_v31  ;;  %v12848_v61 = vld [vmem:[#allocation74_spill] sm:$0xff] }
 0x2f6   :  { %vm3199_vm9 = vweird.f32 %v9619_v8  ;;  %6488 = vrcp.f32 %v9694_v15  ;;  %v9723_v13 = vpop.eup %6482  ;;  %v2372_v3 = vmul.f32 1.442695, %v2153_v36  ;;  %v3216_v56 = vsel %vm9716_vm8, %v9621_v40, %v3212_v0  ;;  %v12844_v36 = vld [vmem:[#allocation72_spill] sm:$0xff] }
 0x2f7   :  { %12840 = vst [vmem:[#allocation24_spill] sm:$0xff] %v9723_v13  ;;  %vm3201_vm10 = vmor %vm3199_vm9, %vm3200_vm6  ;;  %v3206_v63 = vor.u32 1.1754944e-38, %v3205_v48  ;;  %6490 = vrcp.f32 %v9704_v43  ;;  %v3220_v57 = vor.u32 1.1754944e-38, %v3219_v23  ;;  %vm3204_vm11 = vcmp.eq.f32.partialorder %v3203_v2, 8.507059e+37  ;;  %v4985_v60 = vpop.f32.mrf.mxu0 }
 0x2f8   :  { %v9731_v55 = vpop.eup %6484  ;;  %6492 = vpow2.f32 %v2370_v10  ;;  %v3202_v8 = vsel %vm3201_vm10, %v9670_v12, %v3198_v1  ;;  %v2137_v7 = vsub.f32 %v12841_v14, %v9360_v29  ;;  %vm3218_vm12 = vcmp.eq.f32.partialorder %v3217_v17, 8.507059e+37  ;;  %5978 = vst [vmem:[#allocation9 + $0x20] sm:$0xff] %v4985_v60  ;;  %v9754_v23 = vpop.xlane.xlu2 %2483  ;;  %v12853_v17 = vld [vmem:[#allocation67_spill] sm:$0xff] }
 0x2f9   :  { %v3207_v44 = vsel %vm3204_vm11, %v3206_v63, %v3202_v8  ;;  %v3447_v40 = vmul.f32 %v9731_v55, %v9682_v32  ;;  %v9740_v34 = vmul.f32 %v6858_v52, %v9071_v45  ;;  %v9744_v10 = vmul.f32 %v6858_v52, %v9139_v9 }
 0x2fa   :  { %6494 = vpow2.f32 %v2402_v62  ;;  %v3221_v12 = vsel %vm3218_vm12, %v3220_v57, %v3216_v56  ;;  %v9750_v29 = vmul.f32 %v6858_v52, %v9149_v54  ;;  %v2647_v45 = vsel %vm1677_vm0, %v12844_v36, 0.0  ;;  %v12845_v54 = vld [vmem:[#allocation87_spill] sm:$0xff] }
 0x2fb   :  { %v9746_v39 = vpop.eup %6486  ;;  %6496 = vpow2.f32 %v2372_v3  ;;  %v3448_v51 = vsub.f32 1.0, %v3447_v40  ;;  %v9760_v9 = vmul.f32 %v6858_v52, %v9201_v47  ;;  %v4648_v22 = vmul.f32 %v12845_v54, %v3207_v44  ;;  %v12846_v52 = vld [vmem:[#allocation43_spill] sm:$0xff]  ;;  %v9782_v3 = vpop.xlane.xlu1 %2630 }
 0x2fc   :  { %12842 = vst [vmem:[#allocation31_spill] sm:$0xff] %v9746_v39  ;;  %v9756_v42 = vpop.eup %6488  ;;  %2648 = vadd.xlane.f32.xlu0 %v2647_v45  ;;  %v2791_v19 = vsel %vm1677_vm0, %v9746_v39, 0.0  ;;  %6498 = vrcp.f32 %v9754_v23  ;;  %v9768_v48 = vmul.f32 1.442695, %v2137_v7  ;;  %v3455_v31 = vand.u32 2147483647, %v9682_v32  ;;  %v9787_v57 = vpop.xlane.xlu0 %2486 }
 0x2fd   :  { %12843 = vst [vmem:[#allocation33_spill] sm:$0xff] %v9750_v29  ;;  %v9766_v0 = vpop.eup %6490  ;;  %v3461_v11 = vmul.f32 %v9756_v42, %v9694_v15  ;;  %2792 = vadd.xlane.f32.xlu1 %v2791_v19  ;;  %v4649_v47 = vmul.f32 %v12846_v52, %v3221_v12  ;;  %v3471_v62 = vand.u32 2147483648, %v9694_v15  ;;  %v3457_v58 = vand.u32 2147483648, %v9682_v32 }
 0x2fe   :  { %v9774_v2 = vpop.eup %6492  ;;  %v3671_v1 = vmul.f32 %v9766_v0, %v9704_v43  ;;  %v3449_v63 = vmul.f32 %v9731_v55, %v3448_v51  ;;  %vm3451_vm13 = vweird.f32 %v9682_v32  ;;  %6500 = vrcp.f32 %v9782_v3 }
 0x2ff   :  { %12847 = vst [vmem:[#allocation38_spill] sm:$0xff] %v9774_v2  ;;  %v3462_v56 = vsub.f32 1.0, %v3461_v11  ;;  %vm3465_vm14 = vweird.f32 %v9694_v15  ;;  %v3469_v59 = vand.u32 2147483647, %v9694_v15  ;;  %v4776_v7 = vpack.c.bf16 %v4648_v22, %v4648_v22  ;;  %v4987_v11 = vpop.f32.mrf.mxu0  ;;  %v12869_v15 = vld [vmem:[#allocation46_spill] sm:$0xff] }
 0x300   :  { %v9789_v8 = vpop.eup %6494  ;;  %v3672_v14 = vsub.f32 1.0, %v3671_v1  ;;  %vm9795_vm15 = vcmp.eq.f32.partialorder %v3455_v31, 8.507059e+37  ;;  %v3681_v12 = vand.u32 2147483648, %v9704_v43  ;;  %6502 = vrcp.f32 %v9787_v57  ;;  %5979 = vst [vmem:[#allocation9 + $0x28] sm:$0xff] %v4987_v11 }
 0x301   :  { %12849 = vst [vmem:[#allocation63_spill] sm:$0xff] %v9789_v8  ;;  %v9793_v44 = vpop.eup %6496  ;;  %v4777_v60 = vpack.c.bf16 %v4649_v47, %v4649_v47  ;;  %v2044_v51 = vsel %vm1677_vm0, %v9205_v20, -inf  ;;  %v9805_v19 = vor.u32 1.1754944e-38, %v3471_v62  ;;  %v3458_v54 = vor.u32 1.1754944e-38, %v3457_v58  ;;  %v9813_v1 = vpop.xlane.xlu2 %2534  ;;  %v12861_v20 = vld [vmem:[#allocation81_spill] sm:$0xff] }
 0x302   :  { %12850 = vst [vmem:[#allocation56_spill] sm:$0xff] %v9793_v44  ;;  %v9803_v45 = vpop.eup %6498  ;;  %vm3675_vm1 = vweird.f32 %v9704_v43  ;;  %v3679_v22 = vand.u32 2147483647, %v9704_v43  ;;  %v3463_v31 = vmul.f32 %v9756_v42, %v3462_v56  ;;  %v3450_v52 = vadd.f32 %v9731_v55, %v3449_v63 }
 0x303   :  { %vm3452_vm4 = vweird.f32 %v9731_v55  ;;  %v3673_v47 = vmul.f32 %v9766_v0, %v3672_v14  ;;  %v2999_v62 = vmul.f32 %v9803_v45, %v9754_v23  ;;  %v5041_v58 = vunpack.c.l.b16 %v4776_v7 }
 0x304   :  { %2045 = vmax.xlane.f32.xlu0 %v2044_v51  ;;  %v2692_v27 = vsel %vm1677_vm0, %v12853_v17, 0.0  ;;  %6504 = vrcp.f32 %v9813_v1  ;;  %v9820_v56 = vpop.eup %6500  ;;  %vm9822_vm2 = vcmp.eq.f32.partialorder %v3469_v59, 8.507059e+37  ;;  %v3682_v14 = vor.u32 1.1754944e-38, %v3681_v12  ;;  %vm9834_vm5 = vmor %vm3451_vm13, %vm3452_vm4  ;;  %v9845_v12 = vpop.xlane.xlu1 %2531 }
 0x305   :  { %v3009_v11 = vand.u32 2147483648, %v9754_v23  ;;  %v5042_v2 = vunpack.c.l.b16 %v4777_v60  ;;  %2693 = vadd.xlane.f32.xlu1 %v2692_v27  ;;  %v2749_v7 = vsel %vm1677_vm0, %v12856_v37, 0.0  ;;  %vm3466_vm3 = vweird.f32 %v9756_v42  ;;  %v2028_v39 = vpop.xlane.xlu0 %2027 }
 0x306   :  { %vm3676_vm6 = vweird.f32 %v9766_v0  ;;  %vm9839_vm7 = vcmp.eq.f32.partialorder %v3679_v22, 8.507059e+37  ;;  %v3685_v27 = vmul.f32 %v9820_v56, %v9782_v3  ;;  %v2047_v60 = vsel %vm1677_vm0, %v9209_v28, -inf  ;;  %v9849_v37 = vpop.eup %6502  ;;  %vm9866_vm8 = vmor %vm3465_vm14, %vm3466_vm3 }
 0x307   :  { %v3464_v32 = vadd.f32 %v9756_v42, %v3463_v31  ;;  %v3454_v17 = vsel %vm9834_vm5, %v9731_v55, %v3450_v52  ;;  %v3674_v22 = vadd.f32 %v9766_v0, %v3673_v47  ;;  %v5052_v44 = vpack.c.b16 %v5042_v2, %v5041_v58  ;;  %vm9884_vm9 = vmor %vm3675_vm1, %vm3676_vm6 }
 0x308   :  { %v3000_v18 = vsub.f32 1.0, %v2999_v62  ;;  %v3686_v13 = vsub.f32 1.0, %v3685_v27  ;;  %v3013_v36 = vmul.f32 %v9849_v37, %v9787_v57  ;;  %v9860_v28 = vsel %vm1677_vm0, %v12861_v20, 0.0 }
 0x309   :  { %v3007_v55 = vand.u32 2147483647, %v9754_v23  ;;  %v9871_v2 = vor.u32 1.1754944e-38, %v3009_v11  ;;  %v3693_v52 = vand.u32 2147483647, %v9782_v3  ;;  %6135 = vmatmul.msk.bf16.gmra.mxu1 %vm1677_vm0, %v5052_v44  ;;  %6506 = vrcp.f32 %v9845_v12 }
 0x30a   :  { %v9876_v47 = vpop.eup %6504  ;;  %v3459_v62 = vsel %vm9795_vm15, %v3458_v54, %v3454_v17  ;;  %vm3003_vm10 = vweird.f32 %v9754_v23  ;;  %v3687_v58 = vmul.f32 %v9820_v56, %v3686_v13  ;;  %v3695_v44 = vand.u32 2147483648, %v9782_v3  ;;  %v5259_v13 = vpop.f32.mrf.mxu2 }
 0x30b   :  { %v3014_v11 = vsub.f32 1.0, %v3013_v36  ;;  %v3468_v40 = vsel %vm9866_vm8, %v9756_v42, %v3464_v32  ;;  %v3678_v17 = vsel %vm9884_vm9, %v9766_v0, %v3674_v22  ;;  %v3021_v43 = vand.u32 2147483647, %v9787_v57  ;;  %6010 = vst [vmem:[#allocation9 + $0x120] sm:$0xff] %v5259_v13  ;;  %v12868_v0 = vld [vmem:[#allocation105_spill] sm:$0xff] }
 0x30c   :  { %v3023_v54 = vand.u32 2147483648, %v9787_v57  ;;  %v3001_v51 = vmul.f32 %v9803_v45, %v3000_v18  ;;  %v3688_v27 = vadd.f32 %v9820_v56, %v3687_v58  ;;  %vm3690_vm11 = vweird.f32 %v9820_v56  ;;  %2750 = vadd.xlane.f32.xlu0 %v2749_v7  ;;  %v5396_v7 = vpop.f32.mrf.mxu3 }
 0x30d   :  { %v3237_v36 = vmul.f32 %v9876_v47, %v9813_v1  ;;  %vm3689_vm12 = vweird.f32 %v9782_v3  ;;  %vm9905_vm13 = vcmp.eq.f32.partialorder %v3693_v52, 8.507059e+37  ;;  %vm3017_vm14 = vweird.f32 %v9787_v57  ;;  %2048 = vmax.xlane.f32.xlu1 %v2047_v60  ;;  %6026 = vst [vmem:[#allocation9 + $0x1a0] sm:$0xff] %v5396_v7  ;;  %v12882_v57 = vld [vmem:[#allocation91_spill] sm:$0xff] }
 0x30e   :  { %v2178_v18 = vsub.f32 %v12868_v0, %v2028_v39  ;;  %v3473_v32 = vsel %vm9822_vm2, %v9805_v19, %v3468_v40  ;;  %v3696_v22 = vor.u32 1.1754944e-38, %v3695_v44  ;;  %v3015_v31 = vmul.f32 %v9849_v37, %v3014_v11  ;;  %vm9923_vm1 = vmor %vm3689_vm12, %vm3690_vm11  ;;  %v9937_v11 = vpop.xlane.xlu2 %2585  ;;  %v2031_v40 = vpop.xlane.xlu1 %2030 }
 0x30f   :  { %v4666_v3 = vmul.f32 %v12869_v15, %v3459_v62  ;;  %v9916_v52 = vpop.eup %6506  ;;  %v3683_v58 = vsel %vm9839_vm7, %v3682_v14, %v3678_v17  ;;  %vm3004_vm15 = vweird.f32 %v9803_v45  ;;  %v3024_v19 = vor.u32 1.1754944e-38, %v3023_v54 }
 0x310   :  { %v2422_v63 = vmul.f32 1.442695, %v2178_v18  ;;  %v3002_v60 = vadd.f32 %v9803_v45, %v3001_v51  ;;  %v3692_v62 = vsel %vm9923_vm1, %v9820_v56, %v3688_v27  ;;  %vm9931_vm4 = vcmp.eq.f32.partialorder %v3021_v43, 8.507059e+37  ;;  %v9945_v56 = vpop.xlane.xlu0 %2588  ;;  %v12876_v43 = vld [vmem:[#allocation52_spill] sm:$0xff]  ;;  %vm9955_vm6 = vmor %vm3003_vm10, %vm3004_vm15 }
 0x311   :  { %v3238_v14 = vsub.f32 1.0, %v3237_v36  ;;  %v3223_v44 = vmul.f32 %v9916_v52, %v9845_v12  ;;  %vm9939_vm2 = vcmp.eq.f32.partialorder %v3007_v55, 8.507059e+37  ;;  %vm3018_vm3 = vweird.f32 %v9849_v37 }
 0x312   :  { %v3245_v54 = vand.u32 2147483647, %v9813_v1  ;;  %6508 = vpow2.f32 %v2422_v63  ;;  %v4667_v51 = vmul.f32 %v12876_v43, %v3473_v32  ;;  %v3016_v27 = vadd.f32 %v9849_v37, %v3015_v31  ;;  %v5261_v15 = vpop.f32.mrf.mxu2  ;;  %vm9975_vm8 = vmor %vm3017_vm14, %vm3018_vm3  ;;  %v12881_v63 = vld [vmem:[#allocation48_spill] sm:$0xff] }
 0x313   :  { %vm3241_vm5 = vweird.f32 %v9813_v1  ;;  %v3224_v13 = vsub.f32 1.0, %v3223_v44  ;;  %6510 = vrcp.f32 %v9937_v11  ;;  %v4794_v55 = vpack.c.bf16 %v4666_v3, %v4666_v3  ;;  %6011 = vst [vmem:[#allocation9 + $0x128] sm:$0xff] %v5261_v15 }
 0x314   :  { %v3697_v0 = vsel %vm9905_vm13, %v3696_v22, %v3692_v62  ;;  %v3247_v18 = vand.u32 2147483648, %v9813_v1  ;;  %v2179_v32 = vsub.f32 %v8789_v6, %v2031_v40  ;;  %6512 = vrcp.f32 %v9945_v56  ;;  %2651 = vadd.xlane.f32.xlu0 %v9860_v28  ;;  %v5398_v28 = vpop.f32.mrf.mxu3 }
 0x315   :  { %v3006_v31 = vsel %vm9955_vm6, %v9803_v45, %v3002_v60  ;;  %v3239_v7 = vmul.f32 %v9876_v47, %v3238_v14  ;;  %v3225_v23 = vmul.f32 %v9916_v52, %v3224_v13  ;;  %vm3227_vm7 = vweird.f32 %v9845_v12  ;;  %6027 = vst [vmem:[#allocation9 + $0x1a8] sm:$0xff] %v5398_v28 }
 0x316   :  { %vm3242_vm9 = vweird.f32 %v9876_v47  ;;  %v3233_v45 = vand.u32 2147483648, %v9845_v12  ;;  %v2424_v42 = vmul.f32 1.442695, %v2179_v32  ;;  %v4795_v22 = vpack.c.bf16 %v4667_v51, %v4667_v51 }
 0x317   :  { %v3020_v3 = vsel %vm9975_vm8, %v9849_v37, %v3016_v27  ;;  %v5180_v39 = vunpack.c.l.b16 %v4794_v55  ;;  %v4682_v60 = vmul.f32 %v12881_v63, %v3683_v58  ;;  %v4683_v62 = vmul.f32 %v12882_v57, %v3697_v0  ;;  %vm10024_vm12 = vmor %vm3241_vm5, %vm3242_vm9 }
 0x318   :  { %v9986_v14 = vpop.eup %6508  ;;  %v3226_v44 = vadd.f32 %v9916_v52, %v3225_v23  ;;  %vm3228_vm10 = vweird.f32 %v9916_v52  ;;  %6514 = vpow2.f32 %v2424_v42  ;;  %v5181_v40 = vunpack.c.l.b16 %v4795_v22  ;;  %v12894_v23 = vld [vmem:[#allocation45_spill] sm:$0xff] }
 0x319   :  { %12883 = vst [vmem:[#allocation32_spill] sm:$0xff] %v9986_v14  ;;  %v9990_v43 = vpop.eup %6510  ;;  %v3240_v51 = vadd.f32 %v9876_v47, %v3239_v7  ;;  %v2794_v37 = vsel %vm1677_vm0, %v9986_v14, 0.0  ;;  %v4810_v27 = vpack.c.bf16 %v4682_v60, %v4682_v60  ;;  %v4811_v58 = vpack.c.bf16 %v4683_v62, %v4683_v62  ;;  %vm10009_vm11 = vmor %vm3227_vm7, %vm3228_vm10 }
 0x31a   :  { %v9995_v13 = vpop.eup %6512  ;;  %v3025_v55 = vsel %vm9931_vm4, %v3024_v19, %v3020_v3  ;;  %v3231_v36 = vand.u32 2147483647, %v9845_v12  ;;  %v3475_v0 = vmul.f32 %v9990_v43, %v9937_v11  ;;  %v5190_v32 = vpack.c.b16 %v5181_v40, %v5180_v39  ;;  %2795 = vadd.xlane.f32.xlu1 %v2794_v37  ;;  %v5127_v3 = vpop.f32.mrf.mxu1  ;;  %v12890_v39 = vld [vmem:[#allocation51_spill] sm:$0xff]  ;;  %v12893_v37 = vld [vmem:[#allocation13_spill] sm:$0xff] }
 0x31b   :  { %v3011_v7 = vsel %vm9939_vm2, %v9871_v2, %v3006_v31  ;;  %v3489_v19 = vmul.f32 %v9995_v13, %v9945_v56  ;;  %v5317_v59 = vunpack.c.l.b16 %v4810_v27  ;;  %v5318_v15 = vunpack.c.l.b16 %v4811_v58  ;;  %v12889_v31 = vld [vmem:[#allocation17_spill] sm:$0xff]  ;;  %5996 = vst [vmem:[#allocation9 + $0xb0] sm:$0xff] %v5127_v3 }
 0x31c   :  { %v12886_v6 = vsub.f32 %v12848_v61, %v9453_v30  ;;  %v3230_v2 = vsel %vm10009_vm11, %v9916_v52, %v3226_v44  ;;  %v3234_v17 = vor.u32 1.1754944e-38, %v3233_v45  ;;  %6144 = vmatmul.msk.bf16.gmra.mxu2 %vm1677_vm0, %v5190_v32  ;;  %v2701_v30 = vsel %vm1677_vm0, %v12889_v31, 0.0  ;;  %v12892_v45 = vld [vmem:[#allocation44_spill] sm:$0xff]  ;;  %v10043_v40 = vpop.xlane.xlu2 %2636 }
 0x31d   :  { %v3244_v61 = vsel %vm10024_vm12, %v9876_v47, %v3240_v51  ;;  %v3476_v22 = vsub.f32 1.0, %v3475_v0  ;;  %v5327_v28 = vpack.c.b16 %v5318_v15, %v5317_v59  ;;  %v4635_v63 = vmul.f32 %v12890_v39, %v3025_v55  ;;  %2702 = vadd.xlane.f32.xlu0 %v2701_v30  ;;  %v10045_v47 = vpop.xlane.xlu1 %2633  ;;  %v10055_v1 = vpop.xlane.xlu0 %2489  ;;  %v12895_v59 = vld [vmem:[#allocation28_spill] sm:$0xff] }
 0x31e   :  { %v10018_v42 = vmul.f32 1.442695, %v12886_v6  ;;  %v10038_v60 = vpop.eup %6514  ;;  %v3248_v57 = vor.u32 1.1754944e-38, %v3247_v18  ;;  %vm3232_vm13 = vcmp.eq.f32.partialorder %v3231_v36, 8.507059e+37  ;;  %v3490_v52 = vsub.f32 1.0, %v3489_v19  ;;  %v12896_v6 = vld [vmem:[#allocation77_spill] sm:$0xff] }
 0x31f   :  { %12891 = vst [vmem:[#allocation37_spill] sm:$0xff] %v10038_v60  ;;  %v4634_v62 = vmul.f32 %v12892_v45, %v3011_v7  ;;  %vm3246_vm14 = vcmp.eq.f32.partialorder %v3245_v54, 8.507059e+37  ;;  %v3235_v44 = vsel %vm3232_vm13, %v3234_v17, %v3230_v2  ;;  %6152 = vmatmul.msk.bf16.gmra.mxu3 %vm1677_vm0, %v5327_v28  ;;  %v2797_v51 = vsel %vm1677_vm0, %v10038_v60, 0.0  ;;  %v12897_v2 = vld [vmem:[#allocation50_spill] sm:$0xff]  ;;  %v12915_v60 = vld [vmem:[#allocation25_spill] sm:$0xff] }
 0x320   :  { %v2653_v18 = vsel %vm1677_vm0, %v12893_v37, 0.0  ;;  %v3249_v27 = vsel %vm3246_vm14, %v3248_v57, %v3244_v61  ;;  %v3483_v58 = vand.u32 2147483647, %v9937_v11  ;;  %v3485_v55 = vand.u32 2147483648, %v9937_v11  ;;  %2798 = vadd.xlane.f32.xlu2 %v2797_v51 }
 0x321   :  { %6516 = vrcp.f32 %v10043_v40  ;;  %v3477_v54 = vmul.f32 %v9990_v43, %v3476_v22  ;;  %v3497_v36 = vand.u32 2147483647, %v9945_v56  ;;  %v4763_v0 = vpack.c.bf16 %v4635_v63, %v4635_v63 }
 0x322   :  { %6518 = vrcp.f32 %v10045_v47  ;;  %v3491_v32 = vmul.f32 %v9995_v13, %v3490_v52  ;;  %v4762_v7 = vpack.c.bf16 %v4634_v62, %v4634_v62  ;;  %2654 = vadd.xlane.f32.xlu1 %v2653_v18  ;;  %v10062_v19 = vmul.f32 %v12894_v23, %v3235_v44  ;;  %v5129_v63 = vpop.f32.mrf.mxu1 }
 0x323   :  { %v2050_v15 = vsel %vm1677_vm0, %v12895_v59, -inf  ;;  %vm3479_vm15 = vweird.f32 %v9937_v11  ;;  %6520 = vrcp.f32 %v10055_v1  ;;  %v10071_v17 = vmul.f32 %v12897_v2, %v3249_v27  ;;  %5997 = vst [vmem:[#allocation9 + $0xb8] sm:$0xff] %v5129_v63 }
 0x324   :  { %vm10073_vm1 = vcmp.eq.f32.partialorder %v3483_v58, 8.507059e+37  ;;  %v3486_v61 = vor.u32 1.1754944e-38, %v3485_v55  ;;  %vm3493_vm4 = vweird.f32 %v9945_v56  ;;  %v3499_v22 = vand.u32 2147483648, %v9945_v56  ;;  %v10096_v27 = vpop.xlane.xlu2 %2537 }
 0x325   :  { %v3478_v3 = vadd.f32 %v9990_v43, %v3477_v54  ;;  %vm3480_vm2 = vweird.f32 %v9990_v43  ;;  %vm10081_vm3 = vcmp.eq.f32.partialorder %v3497_v36, 8.507059e+37  ;;  %v4907_v39 = vunpack.c.l.b16 %v4763_v0  ;;  %2051 = vmax.xlane.f32.xlu0 %v2050_v15  ;;  %v10098_v58 = vpop.xlane.xlu1 %2492  ;;  %v12902_v54 = vld [vmem:[#allocation14_spill] sm:$0xff]  ;;  %v10116_v15 = vpop.xlane.xlu0 %2540 }
 0x326   :  { %v3492_v52 = vadd.f32 %v9995_v13, %v3491_v32  ;;  %vm3494_vm5 = vweird.f32 %v9995_v13  ;;  %v4906_v45 = vunpack.c.l.b16 %v4762_v7  ;;  %v4778_v62 = vpack.c.bf16 %v10062_v19, %v10062_v19  ;;  %vm10108_vm6 = vmor %vm3479_vm15, %vm3480_vm2  ;;  %v4990_v19 = vpop.f32.mrf.mxu0 }
 0x327   :  { %v10085_v57 = vpop.eup %6516  ;;  %v3721_v18 = vand.u32 2147483647, %v10043_v40  ;;  %v4779_v55 = vpack.c.bf16 %v10071_v17, %v10071_v17  ;;  %v2698_v36 = vsel %vm1677_vm0, %v12902_v54, 0.0  ;;  %v3723_v32 = vand.u32 2147483648, %v10043_v40  ;;  %vm10127_vm7 = vmor %vm3493_vm4, %vm3494_vm5  ;;  %5980 = vst [vmem:[#allocation9 + $0x30] sm:$0xff] %v4990_v19 }
 0x328   :  { %v10091_v44 = vpop.eup %6518  ;;  %v3713_v51 = vmul.f32 %v10085_v57, %v10043_v40  ;;  %v4916_v23 = vpack.c.b16 %v4907_v39, %v4906_v45  ;;  %6522 = vrcp.f32 %v10096_v27  ;;  %2699 = vadd.xlane.f32.xlu2 %v2698_v36  ;;  %v3482_v11 = vsel %vm10108_vm6, %v9990_v43, %v3478_v3 }
 0x329   :  { %v3699_v7 = vmul.f32 %v10091_v44, %v10045_v47  ;;  %v10118_v2 = vpop.eup %6520  ;;  %v3707_v63 = vand.u32 2147483647, %v10045_v47  ;;  %v2002_v45 = vsel %vm1677_vm0, %v9648_v49, -inf  ;;  %v3496_v36 = vsel %vm10127_vm7, %v9995_v13, %v3492_v52 }
 0x32a   :  { %v3714_v39 = vsub.f32 1.0, %v3713_v51  ;;  %v3027_v3 = vmul.f32 %v10118_v2, %v10055_v1  ;;  %6128 = vmatmul.msk.bf16.gmra.mxu0 %vm1677_vm0, %v4916_v23  ;;  %6524 = vrcp.f32 %v10098_v58  ;;  %2003 = vmax.xlane.f32.xlu1 %v2002_v45  ;;  %v3500_v56 = vor.u32 1.1754944e-38, %v3499_v22 }
 0x32b   :  { %v3700_v43 = vsub.f32 1.0, %v3699_v7  ;;  %vm3717_vm8 = vweird.f32 %v10043_v40  ;;  %vm3703_vm9 = vweird.f32 %v10045_v47  ;;  %v10146_v0 = vsel %vm10073_vm1, %v3486_v61, %v3482_v11 }
 0x32c   :  { %v3715_v51 = vmul.f32 %v10085_v57, %v3714_v39  ;;  %v3709_v52 = vand.u32 2147483648, %v10045_v47  ;;  %v3037_v7 = vand.u32 2147483648, %v10055_v1  ;;  %v10153_v23 = vsel %vm10081_vm3, %v3500_v56, %v3496_v36  ;;  %v10173_v36 = vpop.xlane.xlu2 %2036 }
 0x32d   :  { %v3701_v13 = vmul.f32 %v10091_v44, %v3700_v43  ;;  %vm10155_vm10 = vcmp.eq.f32.partialorder %v3721_v18, 8.507059e+37  ;;  %v3724_v19 = vor.u32 1.1754944e-38, %v3723_v32  ;;  %v3028_v17 = vsub.f32 1.0, %v3027_v3  ;;  %v2034_v56 = vpop.xlane.xlu1 %2033  ;;  %v10193_v54 = vpop.xlane.xlu0 %2735 }
 0x32e   :  { %6526 = vrcp.f32 %v10116_v15  ;;  %v10160_v30 = vpop.eup %6522  ;;  %vm3718_vm11 = vweird.f32 %v10085_v57  ;;  %vm3704_vm12 = vweird.f32 %v10091_v44  ;;  %vm10164_vm13 = vcmp.eq.f32.partialorder %v3707_v63, 8.507059e+37 }
 0x32f   :  { %v5043_v28 = vunpack.c.l.b16 %v4778_v62  ;;  %v5044_v11 = vunpack.c.l.b16 %v4779_v55  ;;  %v3716_v18 = vadd.f32 %v10085_v57, %v3715_v51  ;;  %v3702_v39 = vadd.f32 %v10091_v44, %v3701_v13  ;;  %v4992_v55 = vpop.f32.mrf.mxu0  ;;  %vm10185_vm15 = vmor %vm3717_vm8, %vm3718_vm11 }
 0x330   :  { %v3251_v32 = vmul.f32 %v10160_v30, %v10096_v27  ;;  %v3261_v45 = vand.u32 2147483648, %v10096_v27  ;;  %v10175_v43 = vpop.eup %6524  ;;  %v3710_v3 = vor.u32 1.1754944e-38, %v3709_v52  ;;  %vm3031_vm14 = vweird.f32 %v10055_v1  ;;  %5981 = vst [vmem:[#allocation9 + $0x38] sm:$0xff] %v4992_v55  ;;  %vm10199_vm1 = vmor %vm3703_vm9, %vm3704_vm12 }
 0x331   :  { %v3035_v63 = vand.u32 2147483647, %v10055_v1  ;;  %v10179_v62 = vor.u32 1.1754944e-38, %v3037_v7  ;;  %v3029_v13 = vmul.f32 %v10118_v2, %v3028_v17  ;;  %v3041_v52 = vmul.f32 %v10175_v43, %v10098_v58  ;;  %v5401_v7 = vpop.f32.mrf.mxu3  ;;  %v12924_v1 = vld [vmem:[#allocation97_spill] sm:$0xff] }
 0x332   :  { %v3252_v12 = vsub.f32 1.0, %v3251_v32  ;;  %v3051_v31 = vand.u32 2147483648, %v10098_v58  ;;  %vm3032_vm4 = vweird.f32 %v10118_v2  ;;  %vm3255_vm2 = vweird.f32 %v10096_v27  ;;  %6028 = vst [vmem:[#allocation9 + $0x1b0] sm:$0xff] %v5401_v7 }
 0x333   :  { %v3259_v17 = vand.u32 2147483647, %v10096_v27  ;;  %v5053_v32 = vpack.c.b16 %v5044_v11, %v5043_v28  ;;  %v3720_v37 = vsel %vm10185_vm15, %v10085_v57, %v3716_v18  ;;  %v3706_v47 = vsel %vm10199_vm1, %v10091_v44, %v3702_v39  ;;  %vm10253_vm9 = vmor %vm3031_vm14, %vm3032_vm4 }
 0x334   :  { %v10206_v55 = vpop.eup %6526  ;;  %v10214_v20 = vor.u32 1.1754944e-38, %v3261_v45  ;;  %v2180_v14 = vsub.f32 %v12915_v60, %v2034_v56  ;;  %v3253_v49 = vmul.f32 %v10160_v30, %v3252_v12  ;;  %v3042_v59 = vsub.f32 1.0, %v3041_v52 }
 0x335   :  { %v3265_v28 = vmul.f32 %v10206_v55, %v10116_v15  ;;  %6136 = vmatmul.msk.bf16.gmra.mxu1 %vm1677_vm0, %v5053_v32  ;;  %6528 = vrcp.f32 %v10193_v54  ;;  %v3030_v57 = vadd.f32 %v10118_v2, %v3029_v13  ;;  %vm10223_vm3 = vcmp.eq.f32.partialorder %v3035_v63, 8.507059e+37  ;;  %v12920_v63 = vld [vmem:[#allocation26_spill] sm:$0xff] }
 0x336   :  { %vm3045_vm5 = vweird.f32 %v10098_v58  ;;  %v3049_v60 = vand.u32 2147483647, %v10098_v58  ;;  %v10229_v44 = vor.u32 1.1754944e-38, %v3051_v31  ;;  %v3273_v12 = vand.u32 2147483647, %v10116_v15 }
 0x337   :  { %v10234_v18 = vsel %vm10155_vm10, %v3724_v19, %v3720_v37  ;;  %vm3256_vm6 = vweird.f32 %v10160_v30  ;;  %vm10237_vm7 = vcmp.eq.f32.partialorder %v3259_v17, 8.507059e+37  ;;  %v3266_v45 = vsub.f32 1.0, %v3265_v28  ;;  %v12921_v37 = vld [vmem:[#allocation53_spill] sm:$0xff]  ;;  %v5264_v40 = vpop.f32.mrf.mxu2  ;;  %v12925_v17 = vld [vmem:[#allocation47_spill] sm:$0xff] }
 0x338   :  { %vm3269_vm8 = vweird.f32 %v10116_v15  ;;  %v2181_v56 = vsub.f32 %v12920_v63, %v10173_v36  ;;  %v3711_v31 = vsel %vm10164_vm13, %v3710_v3, %v3706_v47  ;;  %v3275_v51 = vand.u32 2147483648, %v10116_v15  ;;  %6012 = vst [vmem:[#allocation9 + $0x130] sm:$0xff] %v5264_v40  ;;  %vm10289_vm14 = vmor %vm3255_vm2, %vm3256_vm6  ;;  %v10305_v40 = vpop.xlane.xlu0 %2786 }
 0x339   :  { %v2426_v22 = vmul.f32 1.442695, %v2180_v14  ;;  %v4668_v19 = vmul.f32 %v12921_v37, %v10146_v0  ;;  %v3254_v52 = vadd.f32 %v10160_v30, %v3253_v49  ;;  %v3043_v36 = vmul.f32 %v10175_v43, %v3042_v59  ;;  %v10261_v14 = vpop.xlane.xlu2 %2783  ;;  %v5403_v32 = vpop.f32.mrf.mxu3 }
 0x33a   :  { %vm3046_vm10 = vweird.f32 %v10175_v43  ;;  %v3267_v61 = vmul.f32 %v10206_v55, %v3266_v45  ;;  %v3034_v0 = vsel %vm10253_vm9, %v10118_v2, %v3030_v57  ;;  %v4669_v3 = vmul.f32 %v12924_v1, %v10153_v23  ;;  %6029 = vst [vmem:[#allocation9 + $0x1b8] sm:$0xff] %v5403_v32 }
 0x33b   :  { %v4796_v7 = vpack.c.bf16 %v4668_v19, %v4668_v19  ;;  %v2755_v49 = vsel %vm1677_vm0, %v12925_v17, 0.0  ;;  %v10270_v59 = vpop.eup %6528  ;;  %vm10272_vm11 = vcmp.eq.f32.partialorder %v3049_v60, 8.507059e+37  ;;  %vm3270_vm12 = vweird.f32 %v10206_v55  ;;  %vm10316_vm15 = vmor %vm3045_vm5, %vm3046_vm10  ;;  %v12940_v60 = vld [vmem:[#allocation20_spill] sm:$0xff] }
 0x33c   :  { %vm10277_vm13 = vcmp.eq.f32.partialorder %v3273_v12, 8.507059e+37  ;;  %v2428_v2 = vmul.f32 1.442695, %v2181_v56  ;;  %2756 = vadd.xlane.f32.xlu0 %v2755_v49  ;;  %v2005_v23 = vsel %vm1677_vm0, %v9710_v46, -inf  ;;  %v2053_v57 = vsel %vm1677_vm0, %v9668_v35, -inf  ;;  %v10296_v56 = vpop.xlane.xlu1 %2738  ;;  %vm10331_vm4 = vmor %vm3269_vm8, %vm3270_vm12 }
 0x33d   :  { %6530 = vpow2.f32 %v2426_v22  ;;  %v4175_v12 = vmul.f32 %v10270_v59, %v10193_v54  ;;  %v4183_v45 = vand.u32 2147483647, %v10193_v54  ;;  %v4797_v63 = vpack.c.bf16 %v4669_v3, %v4669_v3  ;;  %2006 = vmax.xlane.f32.xlu2 %v2005_v23  ;;  %2054 = vmax.xlane.f32.xlu1 %v2053_v57  ;;  %v12939_v23 = vld [vmem:[#allocation98_spill] sm:$0xff] }
 0x33e   :  { %v3258_v27 = vsel %vm10289_vm14, %v10160_v30, %v3254_v52  ;;  %v3044_v37 = vadd.f32 %v10175_v43, %v3043_v36  ;;  %v3268_v19 = vadd.f32 %v10206_v55, %v3267_v61  ;;  %6532 = vrcp.f32 %v10261_v14 }
 0x33f   :  { %v4176_v22 = vsub.f32 1.0, %v4175_v12  ;;  %v4185_v13 = vand.u32 2147483648, %v10193_v54  ;;  %v5182_v1 = vunpack.c.l.b16 %v4796_v7  ;;  %v5183_v3 = vunpack.c.l.b16 %v4797_v63  ;;  %v5266_v32 = vpop.f32.mrf.mxu2 }
 0x340   :  { %v10310_v49 = vsel %vm10223_vm3, %v10179_v62, %v3034_v0  ;;  %v3276_v52 = vor.u32 1.1754944e-38, %v3275_v51  ;;  %vm4179_vm1 = vweird.f32 %v10193_v54  ;;  %6534 = vrcp.f32 %v10296_v56  ;;  %6013 = vst [vmem:[#allocation9 + $0x138] sm:$0xff] %v5266_v32 }
 0x341   :  { %v10325_v36 = vsel %vm10237_vm7, %v10214_v20, %v3258_v27  ;;  %6536 = vpow2.f32 %v2428_v2  ;;  %v4177_v62 = vmul.f32 %v10270_v59, %v4176_v22  ;;  %v5191_v11 = vpack.c.b16 %v5183_v3, %v5182_v1 }
 0x342   :  { %v3048_v51 = vsel %vm10316_vm15, %v10175_v43, %v3044_v37  ;;  %v3272_v20 = vsel %vm10331_vm4, %v10206_v55, %v3268_v19  ;;  %vm10342_vm2 = vcmp.eq.f32.partialorder %v4183_v45, 8.507059e+37  ;;  %6538 = vrcp.f32 %v10305_v40  ;;  %v12938_v43 = vld [vmem:[#allocation93_spill] sm:$0xff]  ;;  %v12941_v45 = vld [vmem:[#allocation83_spill] sm:$0xff]  ;;  %v5132_v19 = vpop.f32.mrf.mxu1 }
 0x343   :  { %v10347_v15 = vpop.eup %6530  ;;  %vm4180_vm3 = vweird.f32 %v10270_v59  ;;  %v4186_v61 = vor.u32 1.1754944e-38, %v4185_v13  ;;  %6145 = vmatmul.msk.bf16.gmra.mxu2 %vm1677_vm0, %v5191_v11  ;;  %v4407_v0 = vand.u32 2147483647, %v10261_v14  ;;  %v4684_v7 = vmul.f32 %v12938_v43, %v3711_v31  ;;  %5998 = vst [vmem:[#allocation9 + $0xc0] sm:$0xff] %v5132_v19  ;;  %v10416_v19 = vpop.xlane.xlu0 %2687 }
 0x344   :  { %v10353_v2 = vpop.eup %6532  ;;  %v4178_v55 = vadd.f32 %v10270_v59, %v4177_v62  ;;  %v4685_v57 = vmul.f32 %v12939_v23, %v10234_v18  ;;  %v2656_v12 = vsel %vm1677_vm0, %v12940_v60, 0.0  ;;  %v2752_v63 = vsel %vm1677_vm0, %v12941_v45, 0.0  ;;  %v10374_v18 = vpop.xlane.xlu2 %2642  ;;  %vm10387_vm6 = vmor %vm4179_vm1, %vm4180_vm3 }
 0x345   :  { %v10365_v27 = vsel %vm10272_vm11, %v10229_v44, %v3048_v51  ;;  %v10369_v31 = vsel %vm10277_vm13, %v3276_v52, %v3272_v20  ;;  %v4399_v37 = vmul.f32 %v10353_v2, %v10261_v14  ;;  %vm4403_vm5 = vweird.f32 %v10261_v14  ;;  %2657 = vadd.xlane.f32.xlu0 %v2656_v12  ;;  %2753 = vadd.xlane.f32.xlu2 %v2752_v63  ;;  %v10408_v32 = vpop.xlane.xlu1 %2639 }
 0x346   :  { %v10376_v22 = vpop.eup %6534  ;;  %v4409_v47 = vand.u32 2147483648, %v10261_v14  ;;  %v4812_v44 = vpack.c.bf16 %v4684_v7, %v4684_v7  ;;  %v4813_v13 = vpack.c.bf16 %v4685_v57, %v4685_v57  ;;  %v2800_v28 = vsel %vm1677_vm0, %v10347_v15, 0.0 }
 0x347   :  { %v10381_v1 = vpop.eup %6536  ;;  %v4400_v30 = vsub.f32 1.0, %v4399_v37  ;;  %vm10391_vm7 = vcmp.eq.f32.partialorder %v4407_v0, 8.507059e+37  ;;  %v4189_v58 = vmul.f32 %v10376_v22, %v10296_v56  ;;  %v4197_v62 = vand.u32 2147483647, %v10296_v56  ;;  %2801 = vadd.xlane.f32.xlu1 %v2800_v28 }
 0x348   :  { %v10398_v11 = vpop.eup %6538  ;;  %v4182_v54 = vsel %vm10387_vm6, %v10270_v59, %v4178_v55  ;;  %v5319_v51 = vunpack.c.l.b16 %v4812_v44  ;;  %v5320_v20 = vunpack.c.l.b16 %v4813_v13  ;;  %6540 = vrcp.f32 %v10374_v18  ;;  %v12956_v44 = vld [vmem:[#allocation54_spill] sm:$0xff] }
 0x349   :  { %v4401_v0 = vmul.f32 %v10353_v2, %v4400_v30  ;;  %vm4404_vm8 = vweird.f32 %v10353_v2  ;;  %v4190_v43 = vsub.f32 1.0, %v4189_v58  ;;  %v4413_v7 = vmul.f32 %v10398_v11, %v10305_v40  ;;  %v12950_v30 = vld [vmem:[#allocation59_spill] sm:$0xff] }
 0x34a   :  { %v4410_v23 = vor.u32 1.1754944e-38, %v4409_v47  ;;  %vm4193_vm9 = vweird.f32 %v10296_v56  ;;  %v4199_v57 = vand.u32 2147483648, %v10296_v56  ;;  %v5328_v59 = vpack.c.b16 %v5320_v20, %v5319_v51  ;;  %vm10420_vm10 = vmor %vm4403_vm5, %vm4404_vm8 }
 0x34b   :  { %v4187_v55 = vsel %vm10342_vm2, %v4186_v61, %v4182_v54  ;;  %v4402_v12 = vadd.f32 %v10353_v2, %v4401_v0  ;;  %v4191_v63 = vmul.f32 %v10376_v22, %v4190_v43  ;;  %v4414_v37 = vsub.f32 1.0, %v4413_v7 }
 0x34c   :  { %vm10424_vm11 = vcmp.eq.f32.partialorder %v4197_v62, 8.507059e+37  ;;  %v4421_v39 = vand.u32 2147483647, %v10305_v40  ;;  %v4423_v61 = vand.u32 2147483648, %v10305_v40  ;;  %6153 = vmatmul.msk.bf16.gmra.mxu3 %vm1677_vm0, %v5328_v59  ;;  %6542 = vrcp.f32 %v10408_v32 }
 0x34d   :  { %v4406_v14 = vsel %vm10420_vm10, %v10353_v2, %v4402_v12  ;;  %v4192_v13 = vadd.f32 %v10376_v22, %v4191_v63  ;;  %vm4194_vm12 = vweird.f32 %v10376_v22  ;;  %v4415_v28 = vmul.f32 %v10398_v11, %v4414_v37  ;;  %v12955_v63 = vld [vmem:[#allocation61_spill] sm:$0xff]  ;;  %v5134_v12 = vpop.f32.mrf.mxu1 }
 0x34e   :  { %v10438_v3 = vpop.eup %6540  ;;  %v10441_v58 = vmul.f32 %v12950_v30, %v4187_v55  ;;  %v4200_v62 = vor.u32 1.1754944e-38, %v4199_v57  ;;  %vm4417_vm13 = vweird.f32 %v10305_v40  ;;  %6544 = vrcp.f32 %v10416_v19  ;;  %vm10453_vm14 = vmor %vm4193_vm9, %vm4194_vm12  ;;  %5999 = vst [vmem:[#allocation9 + $0xc8] sm:$0xff] %v5134_v12  ;;  %v12970_v12 = vld [vmem:[#allocation64_spill] sm:$0xff] }
 0x34f   :  { %v4411_v54 = vsel %vm10391_vm7, %v4410_v23, %v4406_v14  ;;  %v3741_v2 = vmul.f32 %v10438_v3, %v10374_v18  ;;  %v3749_v51 = vand.u32 2147483647, %v10374_v18  ;;  %v3751_v20 = vand.u32 2147483648, %v10374_v18 }
 0x350   :  { %v4416_v43 = vadd.f32 %v10398_v11, %v4415_v28  ;;  %vm4418_vm15 = vweird.f32 %v10398_v11  ;;  %vm10459_vm1 = vcmp.eq.f32.partialorder %v4421_v39, 8.507059e+37  ;;  %v4424_v7 = vor.u32 1.1754944e-38, %v4423_v61 }
 0x351   :  { %v4196_v23 = vsel %vm10453_vm14, %v10376_v22, %v4192_v13  ;;  %v3742_v57 = vsub.f32 1.0, %v3741_v2  ;;  %v3735_v56 = vand.u32 2147483647, %v10408_v32  ;;  %v3737_v59 = vand.u32 2147483648, %v10408_v32  ;;  %vm10478_vm2 = vmor %vm4417_vm13, %vm4418_vm15  ;;  %v313_v2 = vld [vmem:[#allocation8 + $0x1a8] sm:$0xff] }
 0x352   :  { %v6543_v55 = vpop.eup %6542  ;;  %v10471_v37 = vmul.f32 %v12955_v63, %v4411_v54  ;;  %vm3745_vm4 = vweird.f32 %v10374_v18  ;;  %v4636_v39 = vmul.f32 %v12956_v44, %v10310_v49  ;;  %vm10483_vm3 = vcmp.eq.f32.partialorder %v3749_v51, 8.507059e+37 }
 0x353   :  { %v3743_v61 = vmul.f32 %v10438_v3, %v3742_v57  ;;  %v3752_v13 = vor.u32 1.1754944e-38, %v3751_v20  ;;  %vm3731_vm5 = vweird.f32 %v10408_v32  ;;  %v4201_v49 = vsel %vm10424_vm11, %v4200_v62, %v4196_v23  ;;  %v314_v23 = vld [vmem:[#allocation8 + $0x1b0] sm:$0xff]  ;;  %v12964_v57 = vld [vmem:[#allocation69_spill] sm:$0xff] }
 0x354   :  { %v10488_v28 = vpop.eup %6544  ;;  %v4420_v40 = vsel %vm10478_vm2, %v10398_v11, %v4416_v43  ;;  %vm3746_vm6 = vweird.f32 %v10438_v3  ;;  %v3727_v30 = vmul.f32 %v6543_v55, %v10408_v32  ;;  %vm10498_vm7 = vcmp.eq.f32.partialorder %v3735_v56, 8.507059e+37  ;;  %v12963_v11 = vld [vmem:[#allocation94_spill] sm:$0xff] }
 0x355   :  { %v3744_v54 = vadd.f32 %v10438_v3, %v3743_v61  ;;  %v3738_v51 = vor.u32 1.1754944e-38, %v3737_v59  ;;  %v3951_v20 = vmul.f32 %v10488_v28, %v10416_v19  ;;  %v4637_v0 = vmul.f32 %v12963_v11, %v10365_v27  ;;  %vm10515_vm8 = vmor %vm3745_vm4, %vm3746_vm6  ;;  %v315_v27 = vld [vmem:[#allocation8 + $0x1b8] sm:$0xff] }
 0x356   :  { %v3728_v62 = vsub.f32 1.0, %v3727_v30  ;;  %v4764_v43 = vpack.c.bf16 %v4636_v39, %v4636_v39  ;;  %v10509_v63 = vmul.f32 %v12964_v57, %v4201_v49  ;;  %v4425_v56 = vsel %vm10459_vm1, %v4424_v7, %v4420_v40  ;;  %v12967_v57 = vld [vmem:[#allocation92_spill] sm:$0xff] }
 0x357   :  { %v3952_v44 = vsub.f32 1.0, %v3951_v20  ;;  %vm3955_vm9 = vweird.f32 %v10416_v19  ;;  %v3959_v22 = vand.u32 2147483647, %v10416_v19  ;;  %v3748_v39 = vsel %vm10515_vm8, %v10438_v3, %v3744_v54 }
 0x358   :  { %v3729_v61 = vmul.f32 %v6543_v55, %v3728_v62  ;;  %vm3732_vm10 = vweird.f32 %v6543_v55  ;;  %v4765_v52 = vpack.c.bf16 %v4637_v0, %v4637_v0  ;;  %v3961_v18 = vand.u32 2147483648, %v10416_v19  ;;  %v12968_v62 = vld [vmem:[#allocation96_spill] sm:$0xff] }
 0x359   :  { %v3953_v7 = vmul.f32 %v10488_v28, %v3952_v44  ;;  %v4908_v49 = vunpack.c.l.b16 %v4764_v43  ;;  %v570_v40 = vpack.c.bf16 %v314_v23, %v314_v23  ;;  %v571_v11 = vpack.c.bf16 %v315_v27, %v315_v27  ;;  %vm3733_vm11 = vmor %vm3731_vm5, %vm3732_vm10  ;;  %v4995_v43 = vpop.f32.mrf.mxu0 }
 0x35a   :  { %v3730_v30 = vadd.f32 %v6543_v55, %v3729_v61  ;;  %v4909_v20 = vunpack.c.l.b16 %v4765_v52  ;;  %v4652_v47 = vmul.f32 %v12967_v57, %v10325_v36  ;;  %v4847_v59 = vpack.c.bf16 %v10509_v63, %v10509_v63  ;;  %v322_v61 = vld [vmem:[#allocation8 + $0x1f0] sm:$0xff]  ;;  %v323_v52 = vld [vmem:[#allocation8 + $0x1f8] sm:$0xff]  ;;  %5982 = vst [vmem:[#allocation9 + $0x40] sm:$0xff] %v4995_v43 }
 0x35b   :  { %v3753_v3 = vsel %vm10483_vm3, %v3752_v13, %v3748_v39  ;;  %v5754_v54 = vunpack.c.l.b16 %v570_v40  ;;  %v4653_v0 = vmul.f32 %v12968_v62, %v10369_v31  ;;  %v5755_v27 = vunpack.c.l.b16 %v571_v11  ;;  %v312_v39 = vld [vmem:[#allocation8 + $0x1a0] sm:$0xff]  ;;  %v12969_v40 = vld [vmem:[#allocation100_spill] sm:$0xff] }
 0x35c   :  { %v3734_v23 = vsel %vm3733_vm11, %v6543_v55, %v3730_v30  ;;  %v4917_v44 = vpack.c.b16 %v4909_v20, %v4908_v49  ;;  %v4780_v36 = vpack.c.bf16 %v4652_v47, %v4652_v47  ;;  %v3954_v13 = vadd.f32 %v10488_v28, %v3953_v7 }
 0x35d   :  { %v3739_v14 = vsel %vm10498_vm7, %v3738_v51, %v3734_v23  ;;  %vm3956_vm12 = vweird.f32 %v10488_v28  ;;  %v4781_v32 = vpack.c.bf16 %v4653_v0, %v4653_v0  ;;  %v4735_v31 = vmul.f32 %v12969_v40, %v4425_v56  ;;  %v12971_v51 = vld [vmem:[#allocation58_spill] sm:$0xff]  ;;  %v10554_v0 = vpop.xlane.xlu1 %2690  ;;  %v12975_v40 = vld [vmem:[#allocation15_spill] sm:$0xff] }
 0x35e   :  { %v4687_v57 = vmul.f32 %v12970_v12, %v3753_v3  ;;  %v3962_v55 = vor.u32 1.1754944e-38, %v3961_v18  ;;  %6129 = vmatmul.msk.bf16.gmra.mxu0 %vm1677_vm0, %v4917_v44  ;;  %v5759_v47 = vpack.c.b16 %v5755_v27, %v5754_v54  ;;  %v5045_v49 = vunpack.c.l.b16 %v4780_v36  ;;  %vm10546_vm13 = vmor %vm3955_vm9, %vm3956_vm12  ;;  %v12974_v56 = vld [vmem:[#allocation66_spill] sm:$0xff]  ;;  %v10559_v36 = vpop.xlane.xlu2 %2039  ;;  %v320_v12 = vld [vmem:[#allocation8 + $0x1e0] sm:$0xff] }
 0x35f   :  { %v5046_v30 = vunpack.c.l.b16 %v4781_v32  ;;  %v578_v20 = vpack.c.bf16 %v322_v61, %v322_v61  ;;  %v579_v11 = vpack.c.bf16 %v323_v52, %v323_v52  ;;  %v4686_v62 = vmul.f32 %v12971_v51, %v3739_v14  ;;  %v5406_v61 = vpop.f32.mrf.mxu3  ;;  %v5269_v51 = vpop.f32.mrf.mxu2 }
 0x360   :  { %5792 = vmatpush.bf16.msrb.mxu2 %v5759_v47  ;;  %v2707_v18 = vsel %vm1677_vm0, %v12974_v56, 0.0  ;;  %v2803_v3 = vsel %vm1677_vm0, %v10381_v1, 0.0  ;;  %v568_v54 = vpack.c.bf16 %v312_v39, %v312_v39  ;;  %v3958_v43 = vsel %vm10546_vm13, %v10488_v28, %v3954_v13  ;;  %v321_v47 = vld [vmem:[#allocation8 + $0x1e8] sm:$0xff]  ;;  %6030 = vst [vmem:[#allocation9 + $0x1c0] sm:$0xff] %v5406_v61  ;;  %v298_v13 = vld [vmem:[#allocation8 + $0x130] sm:$0xff]  ;;  %v311_v61 = vld [vmem:[#allocation8 + $0x198] sm:$0xff] }
 0x361   :  { %v5054_v23 = vpack.c.b16 %v5046_v30, %v5045_v49  ;;  %v5891_v44 = vunpack.c.l.b16 %v578_v20  ;;  %v5892_v27 = vunpack.c.l.b16 %v579_v11  ;;  %2708 = vadd.xlane.f32.xlu0 %v2707_v18  ;;  %2804 = vadd.xlane.f32.xlu2 %v2803_v3  ;;  %v4863_v52 = vpack.c.bf16 %v4735_v31, %v4735_v31  ;;  %v4997_v31 = vpop.f32.mrf.mxu0  ;;  %6014 = vst [vmem:[#allocation9 + $0x140] sm:$0xff] %v5269_v51  ;;  %v12976_v49 = vld [vmem:[#allocation21_spill] sm:$0xff]  ;;  %v12977_v30 = vld [vmem:[#allocation70_spill] sm:$0xff]  ;;  %v12980_v51 = vld [vmem:[#allocation99_spill] sm:$0xff] }
 0x362   :  { %v569_v14 = vpack.c.bf16 %v313_v2, %v313_v2  ;;  %v5752_v32 = vunpack.c.l.b16 %v568_v54  ;;  %v2659_v39 = vsel %vm1677_vm0, %v12975_v40, 0.0  ;;  %v4815_v7 = vpack.c.bf16 %v4687_v57, %v4687_v57  ;;  %5983 = vst [vmem:[#allocation9 + $0x48] sm:$0xff] %v4997_v31  ;;  %v10591_v31 = vpop.xlane.xlu0 %2042  ;;  %v12981_v20 = vld [vmem:[#allocation16_spill] sm:$0xff] }
 0x363   :  { %vm3960_vm14 = vcmp.eq.f32.partialorder %v3959_v22, 8.507059e+37  ;;  %6137 = vmatmul.msk.bf16.gmra.mxu1 %vm1677_vm0, %v5054_v23  ;;  %v5896_v28 = vpack.c.b16 %v5892_v27, %v5891_v44  ;;  %2660 = vadd.xlane.f32.xlu1 %v2659_v39  ;;  %6546 = vrcp.f32 %v10554_v0  ;;  %v4814_v11 = vpack.c.bf16 %v4686_v62, %v4686_v62  ;;  %v299_v44 = vld [vmem:[#allocation8 + $0x138] sm:$0xff]  ;;  %v310_v27 = vld [vmem:[#allocation8 + $0x190] sm:$0xff] }
 0x364   :  { %v3963_v2 = vsel %vm3960_vm14, %v3962_v55, %v3958_v43  ;;  %v5753_v18 = vunpack.c.l.b16 %v569_v14  ;;  %v12978_v19 = vpack.c.bf16 %v10441_v58, %v10441_v58  ;;  %v12979_v57 = vpack.c.bf16 %v10471_v37, %v10471_v37  ;;  %v318_v14 = vld [vmem:[#allocation8 + $0x1d0] sm:$0xff]  ;;  %v319_v39 = vld [vmem:[#allocation8 + $0x1d8] sm:$0xff] }
 0x365   :  { %5929 = vmatpush.bf16.msrb.mxu3 %v5896_v28  ;;  %v576_v54 = vpack.c.bf16 %v320_v12, %v320_v12  ;;  %v577_v23 = vpack.c.bf16 %v321_v47, %v321_v47  ;;  %v10582_v55 = vunpack.c.l.b16 %v4847_v59  ;;  %v10584_v62 = vunpack.c.l.b16 %v4863_v52  ;;  %v10611_v56 = vpop.xlane.xlu1 %2741 }
 0x366   :  { %v10572_v22 = vunpack.c.l.b16 %v12978_v19  ;;  %v10577_v3 = vunpack.c.l.b16 %v12979_v57  ;;  %v5758_v58 = vpack.c.b16 %v5753_v18, %v5752_v32  ;;  %v554_v43 = vpack.c.bf16 %v298_v13, %v298_v13 }
 0x367   :  { %v10586_v37 = vunpack.c.l.b16 %v4815_v7  ;;  %v10589_v28 = vmul.f32 %v12980_v51, %v3963_v2  ;;  %v5889_v12 = vunpack.c.l.b16 %v576_v54  ;;  %v5890_v47 = vunpack.c.l.b16 %v577_v23 }
 0x368   :  { %v10593_v19 = vunpack.c.l.b16 %v4814_v11  ;;  %5793 = vmatpush.bf16.msrb.mxu2 %v5758_v58  ;;  %v555_v63 = vpack.c.bf16 %v299_v44, %v299_v44  ;;  %v5480_v59 = vunpack.c.l.b16 %v554_v43  ;;  %v566_v52 = vpack.c.bf16 %v310_v27, %v310_v27  ;;  %v296_v58 = vld [vmem:[#allocation8 + $0x120] sm:$0xff] }
 0x369   :  { %v10595_v32 = vpop.eup %6546  ;;  %v5895_v13 = vpack.c.b16 %v5890_v47, %v5889_v12  ;;  %v567_v18 = vpack.c.bf16 %v311_v61, %v311_v61  ;;  %v574_v57 = vpack.c.bf16 %v318_v14, %v318_v14  ;;  %v575_v7 = vpack.c.bf16 %v319_v39, %v319_v39  ;;  %v297_v12 = vld [vmem:[#allocation8 + $0x128] sm:$0xff]  ;;  %v308_v61 = vld [vmem:[#allocation8 + $0x180] sm:$0xff]  ;;  %v10603_v39 = vpop.xlane.xlu2 %2744 }
 0x36a   :  { %v2182_v2 = vsub.f32 %v8915_v33, %v10559_v36  ;;  %v3965_v54 = vmul.f32 %v10595_v32, %v10554_v0  ;;  %v2183_v11 = vsub.f32 %v9133_v16, %v10591_v31  ;;  %v5481_v23 = vunpack.c.l.b16 %v555_v63  ;;  %v309_v14 = vld [vmem:[#allocation8 + $0x188] sm:$0xff] }
 0x36b   :  { %5930 = vmatpush.bf16.msrb.mxu3 %v5895_v13  ;;  %v5750_v44 = vunpack.c.l.b16 %v566_v52  ;;  %v5751_v27 = vunpack.c.l.b16 %v567_v18  ;;  %v5887_v43 = vunpack.c.l.b16 %v574_v57  ;;  %v5888_v51 = vunpack.c.l.b16 %v575_v7  ;;  %v5408_v18 = vpop.f32.mrf.mxu3  ;;  %v5271_v57 = vpop.f32.mrf.mxu2 }
 0x36c   :  { %v3966_v47 = vsub.f32 1.0, %v3965_v54  ;;  %v5485_v33 = vpack.c.b16 %v5481_v23, %v5480_v59  ;;  %v2056_v36 = vsel %vm1677_vm0, %v9740_v34, -inf  ;;  %v2704_v16 = vsel %vm1677_vm0, %v12981_v20, 0.0  ;;  %6031 = vst [vmem:[#allocation9 + $0x1c8] sm:$0xff] %v5408_v18 }
 0x36d   :  { %v3975_v31 = vand.u32 2147483648, %v10554_v0  ;;  %v5757_v63 = vpack.c.b16 %v5751_v27, %v5750_v44  ;;  %v5894_v52 = vpack.c.b16 %v5888_v51, %v5887_v43  ;;  %2057 = vmax.xlane.f32.xlu0 %v2056_v36  ;;  %2705 = vadd.xlane.f32.xlu2 %v2704_v16  ;;  %v552_v13 = vpack.c.bf16 %v296_v58, %v296_v58 }
 0x36e   :  { %v3967_v7 = vmul.f32 %v10595_v32, %v3966_v47  ;;  %5518 = vmatpush.bf16.msrb.mxu0 %v5485_v33  ;;  %v553_v54 = vpack.c.bf16 %v297_v12, %v297_v12  ;;  %v564_v59 = vpack.c.bf16 %v308_v61, %v308_v61  ;;  %v565_v23 = vpack.c.bf16 %v309_v14, %v309_v14  ;;  %v316_v12 = vld [vmem:[#allocation8 + $0x1c0] sm:$0xff]  ;;  %v317_v47 = vld [vmem:[#allocation8 + $0x1c8] sm:$0xff]  ;;  %v294_v33 = vld [vmem:[#allocation8 + $0x110] sm:$0xff] }
 0x36f   :  { %vm3970_vm15 = vweird.f32 %v10595_v32  ;;  %5794 = vmatpush.bf16.msrb.mxu2 %v5757_v63  ;;  %5931 = vmatpush.bf16.msrb.mxu3 %v5894_v52  ;;  %v5478_v20 = vunpack.c.l.b16 %v552_v13  ;;  %v2008_v44 = vsel %vm1677_vm0, %v9744_v10, -inf  ;;  %6548 = vrcp.f32 %v10603_v39  ;;  %6015 = vst [vmem:[#allocation9 + $0x148] sm:$0xff] %v5271_v57  ;;  %v306_v13 = vld [vmem:[#allocation8 + $0x170] sm:$0xff] }
 0x370   :  { %v3968_v58 = vadd.f32 %v10595_v32, %v3967_v7  ;;  %v5479_v27 = vunpack.c.l.b16 %v553_v54  ;;  %v5748_v43 = vunpack.c.l.b16 %v564_v59  ;;  %v5749_v51 = vunpack.c.l.b16 %v565_v23  ;;  %2009 = vmax.xlane.f32.xlu1 %v2008_v44  ;;  %v5000_v7 = vpop.f32.mrf.mxu0  ;;  %v307_v44 = vld [vmem:[#allocation8 + $0x178] sm:$0xff] }
 0x371   :  { %v5732_v61 = vpack.c.b16 %v10582_v55, %v10572_v22  ;;  %vm3969_vm1 = vweird.f32 %v10554_v0  ;;  %v3973_v14 = vand.u32 2147483647, %v10554_v0  ;;  %6550 = vrcp.f32 %v10611_v56  ;;  %v295_v55 = vld [vmem:[#allocation8 + $0x118] sm:$0xff]  ;;  %v10640_v18 = vpop.xlane.xlu2 %2645  ;;  %5984 = vst [vmem:[#allocation9 + $0x50] sm:$0xff] %v5000_v7 }
 0x372   :  { %v5869_v36 = vpack.c.b16 %v10584_v62, %v10577_v3  ;;  %v2430_v16 = vmul.f32 1.442695, %v2182_v2  ;;  %vm10627_vm4 = vmor %vm3969_vm1, %vm3970_vm15  ;;  %v5484_v52 = vpack.c.b16 %v5479_v27, %v5478_v20  ;;  %v5756_v22 = vpack.c.b16 %v5749_v51, %v5748_v43 }
 0x373   :  { %v3972_v2 = vsel %vm10627_vm4, %v10595_v32, %v3968_v58  ;;  %v572_v57 = vpack.c.bf16 %v316_v12, %v316_v12  ;;  %v3976_v54 = vor.u32 1.1754944e-38, %v3975_v31  ;;  %v2432_v59 = vmul.f32 1.442695, %v2183_v11  ;;  %v10644_v58 = vpop.xlane.xlu0 %2789 }
 0x374   :  { %5519 = vmatpush.bf16.msrb.mxu0 %v5484_v52  ;;  %5795 = vmatpush.bf16.msrb.mxu2 %v5756_v22  ;;  %v573_v20 = vpack.c.bf16 %v317_v47, %v317_v47  ;;  %v550_v23 = vpack.c.bf16 %v294_v33, %v294_v33  ;;  %vm3974_vm2 = vcmp.eq.f32.partialorder %v3973_v14, 8.507059e+37  ;;  %v551_v51 = vpack.c.bf16 %v295_v55, %v295_v55  ;;  %v292_v55 = vld [vmem:[#allocation8 + $0x100] sm:$0xff] }
 0x375   :  { %v10638_v27 = vpop.eup %6548  ;;  %v5885_v43 = vunpack.c.l.b16 %v572_v57  ;;  %v562_v0 = vpack.c.bf16 %v306_v13, %v306_v13  ;;  %6552 = vpow2.f32 %v2430_v16  ;;  %v3977_v32 = vsel %vm3974_vm2, %v3976_v54, %v3972_v2  ;;  %v293_v13 = vld [vmem:[#allocation8 + $0x108] sm:$0xff]  ;;  %v304_v54 = vld [vmem:[#allocation8 + $0x160] sm:$0xff] }
 0x376   :  { %v4217_v31 = vmul.f32 %v10638_v27, %v10603_v39  ;;  %v5886_v11 = vunpack.c.l.b16 %v573_v20  ;;  %v5476_v47 = vunpack.c.l.b16 %v550_v23  ;;  %v5477_v14 = vunpack.c.l.b16 %v551_v51  ;;  %v305_v20 = vld [vmem:[#allocation8 + $0x168] sm:$0xff] }
 0x377   :  { %v10646_v12 = vpop.eup %6550  ;;  %6170 = vmatmul.msk.bf16.vlgmr.msrb.gmra.mxu2 %vm1677_vm0, %v5732_v61  ;;  %v563_v33 = vpack.c.bf16 %v307_v44, %v307_v44  ;;  %v5617_v63 = vunpack.c.l.b16 %v562_v0  ;;  %6554 = vpow2.f32 %v2432_v59  ;;  %v4227_v22 = vand.u32 2147483648, %v10603_v39  ;;  %v5274_v0 = vpop.f32.mrf.mxu2 }
 0x378   :  { %v4218_v52 = vsub.f32 1.0, %v4217_v31  ;;  %v4203_v16 = vmul.f32 %v10646_v12, %v10611_v56  ;;  %vm4221_vm3 = vweird.f32 %v10603_v39  ;;  %v5893_v2 = vpack.c.b16 %v5886_v11, %v5885_v43  ;;  %6016 = vst [vmem:[#allocation9 + $0x150] sm:$0xff] %v5274_v0 }
 0x379   :  { %v5483_v57 = vpack.c.b16 %v5477_v14, %v5476_v47  ;;  %v5618_v7 = vunpack.c.l.b16 %v563_v33  ;;  %v2761_v61 = vsel %vm1677_vm0, %v9706_v38, 0.0  ;;  %v10656_v59 = vmul.f32 %v12807_v50, %v3977_v32  ;;  %v5002_v47 = vpop.f32.mrf.mxu0 }
 0x37a   :  { %v4219_v23 = vmul.f32 %v10638_v27, %v4218_v52  ;;  %v4204_v44 = vsub.f32 1.0, %v4203_v16  ;;  %vm4207_vm5 = vweird.f32 %v10611_v56  ;;  %2762 = vadd.xlane.f32.xlu0 %v2761_v61  ;;  %5932 = vmatpush.bf16.msrb.mxu3 %v5893_v2  ;;  %v2011_v51 = vsel %vm1677_vm0, %v9760_v9, -inf  ;;  %v5411_v16 = vpop.f32.mrf.mxu3  ;;  %5985 = vst [vmem:[#allocation9 + $0x58] sm:$0xff] %v5002_v47  ;;  %v10684_v47 = vpop.xlane.xlu1 %2792 }
 0x37b   :  { %5520 = vmatpush.bf16.msrb.mxu0 %v5483_v57  ;;  %v5622_v43 = vpack.c.b16 %v5618_v7, %v5617_v63  ;;  %v548_v31 = vpack.c.bf16 %v292_v55, %v292_v55  ;;  %v549_v11 = vpack.c.bf16 %v293_v13, %v293_v13  ;;  %v10662_v14 = vpop.eup %6552  ;;  %2012 = vmax.xlane.f32.xlu2 %v2011_v51  ;;  %v2059_v52 = vsel %vm1677_vm0, %v9750_v29, -inf  ;;  %v302_v55 = vld [vmem:[#allocation8 + $0x150] sm:$0xff]  ;;  %v303_v13 = vld [vmem:[#allocation8 + $0x158] sm:$0xff]  ;;  %v10677_v0 = vpop.xlane.xlu0 %2648 }
 0x37c   :  { %v4205_v50 = vmul.f32 %v10646_v12, %v4204_v44  ;;  %v560_v32 = vpack.c.bf16 %v304_v54, %v304_v54  ;;  %v561_v33 = vpack.c.bf16 %v305_v20, %v305_v20  ;;  %v4211_v2 = vand.u32 2147483647, %v10611_v56  ;;  %2060 = vmax.xlane.f32.xlu1 %v2059_v52  ;;  %6032 = vst [vmem:[#allocation9 + $0x1d0] sm:$0xff] %v5411_v16 }
 0x37d   :  { %5655 = vmatpush.bf16.msrb.mxu1 %v5622_v43  ;;  %v5474_v63 = vunpack.c.l.b16 %v548_v31  ;;  %v5475_v57 = vunpack.c.l.b16 %v549_v11  ;;  %6556 = vrcp.f32 %v10640_v18  ;;  %v10669_v7 = vpop.eup %6554  ;;  %vm4208_vm6 = vweird.f32 %v10646_v12  ;;  %6178 = vmatmul.msk.bf16.vlgmr.msrb.gmra.mxu3 %vm1677_vm0, %v5869_v36  ;;  %v300_v31 = vld [vmem:[#allocation8 + $0x140] sm:$0xff]  ;;  %v10682_v11 = vpop.xlane.xlu2 %2696 }
 0x37e   :  { %v4206_v61 = vadd.f32 %v10646_v12, %v4205_v50  ;;  %v5615_v54 = vunpack.c.l.b16 %v560_v32  ;;  %v5616_v20 = vunpack.c.l.b16 %v561_v33  ;;  %v4220_v44 = vadd.f32 %v10638_v27, %v4219_v23  ;;  %v301_v32 = vld [vmem:[#allocation8 + $0x148] sm:$0xff]  ;;  %vm10693_vm8 = vmor %vm4207_vm5, %vm4208_vm6 }
 0x37f   :  { %vm4222_vm7 = vweird.f32 %v10638_v27  ;;  %v4213_v43 = vand.u32 2147483648, %v10611_v56  ;;  %v5482_v51 = vpack.c.b16 %v5475_v57, %v5474_v63  ;;  %v4831_v3 = vpack.c.bf16 %v10656_v59, %v10656_v59  ;;  %v12988_v59 = vld [vmem:[#allocation22_spill] sm:$0xff]  ;;  %v5276_v57 = vpop.f32.mrf.mxu2 }
 0x380   :  { %v5621_v62 = vpack.c.b16 %v5616_v20, %v5615_v54  ;;  %v558_v36 = vpack.c.bf16 %v302_v55, %v302_v55  ;;  %v559_v50 = vpack.c.bf16 %v303_v13, %v303_v13  ;;  %v4225_v33 = vand.u32 2147483647, %v10603_v39  ;;  %vm10707_vm10 = vmor %vm4221_vm3, %vm4222_vm7  ;;  %6017 = vst [vmem:[#allocation9 + $0x158] sm:$0xff] %v5276_v57 }
 0x381   :  { %v4228_v23 = vor.u32 1.1754944e-38, %v4227_v22  ;;  %vm10697_vm9 = vcmp.eq.f32.partialorder %v4211_v2, 8.507059e+37  ;;  %5521 = vmatpush.bf16.msrb.mxu0 %v5482_v51  ;;  %v2662_v63 = vsel %vm1677_vm0, %v12988_v59, 0.0  ;;  %v4210_v56 = vsel %vm10693_vm8, %v10646_v12, %v4206_v61  ;;  %v12991_v51 = vld [vmem:[#allocation90_spill] sm:$0xff] }
 0x382   :  { %5656 = vmatpush.bf16.msrb.mxu1 %v5621_v62  ;;  %v5613_v2 = vunpack.c.l.b16 %v558_v36  ;;  %v5614_v55 = vunpack.c.l.b16 %v559_v50  ;;  %2663 = vadd.xlane.f32.xlu0 %v2662_v63  ;;  %v556_v13 = vpack.c.bf16 %v300_v31, %v300_v31  ;;  %v4224_v39 = vsel %vm10707_vm10, %v10638_v27, %v4220_v44  ;;  %v5413_v36 = vpop.f32.mrf.mxu3 }
 0x383   :  { %v10714_v54 = vpop.eup %6556  ;;  %v4214_v20 = vor.u32 1.1754944e-38, %v4213_v43  ;;  %v2758_v59 = vsel %vm1677_vm0, %v12991_v51, 0.0  ;;  %v557_v38 = vpack.c.bf16 %v301_v32, %v301_v32  ;;  %v5580_v29 = vunpack.c.l.b16 %v4831_v3  ;;  %6033 = vst [vmem:[#allocation9 + $0x1d8] sm:$0xff] %v5413_v36  ;;  %v13003_v36 = vld [vmem:[#allocation27_spill] sm:$0xff] }
 0x384   :  { %v12992_v12 = vpack.c.b16 %v10586_v37, %v10593_v19  ;;  %v5620_v61 = vpack.c.b16 %v5614_v55, %v5613_v2  ;;  %2759 = vadd.xlane.f32.xlu2 %v2758_v59  ;;  %v5611_v31 = vunpack.c.l.b16 %v556_v13  ;;  %v2806_v62 = vsel %vm1677_vm0, %v10662_v14, 0.0  ;;  %v12993_v37 = vld [vmem:[#allocation76_spill] sm:$0xff]  ;;  %v10743_v59 = vpop.xlane.xlu1 %2693 }
 0x385   :  { %vm4226_vm11 = vcmp.eq.f32.partialorder %v4225_v33, 8.507059e+37  ;;  %v4215_v27 = vsel %vm10697_vm9, %v4214_v20, %v4210_v56  ;;  %v3755_v44 = vmul.f32 %v10714_v54, %v10640_v18  ;;  %v5612_v43 = vunpack.c.l.b16 %v557_v38  ;;  %2807 = vadd.xlane.f32.xlu1 %v2806_v62  ;;  %v10737_v33 = vpop.xlane.xlu0 %2045  ;;  %v10753_v56 = vpop.xlane.xlu2 %2747  ;;  %v13001_v20 = vld [vmem:[#allocation29_spill] sm:$0xff] }
 0x386   :  { %6154 = vmatmul.msk.bf16.vlgmr.msrb.gmra.mxu0 %vm1677_vm0, %v12992_v12  ;;  %6558 = vpow2.f32 %v9768_v48  ;;  %v2155_v19 = vsub.f32 %v12993_v37, %v9502_v24  ;;  %v12994_v3 = vpack.c.bf16 %v10589_v28, %v10589_v28  ;;  %v4229_v32 = vsel %vm4226_vm11, %v4228_v23, %v4224_v39  ;;  %5657 = vmatpush.bf16.msrb.mxu1 %v5620_v61  ;;  %v12997_v28 = vld [vmem:[#allocation79_spill] sm:$0xff]  ;;  %v5137_v13 = vpop.f32.mrf.mxu1 }
 0x387   :  { %6560 = vpow2.f32 %v10018_v42  ;;  %v12995_v38 = vsub.f32 %v12896_v6, %v9505_v5  ;;  %v5619_v16 = vpack.c.b16 %v5612_v43, %v5611_v31  ;;  %v12996_v24 = vsub.f32 %v12977_v30, %v12976_v49  ;;  %v12998_v5 = vld [vmem:[#allocation80_spill] sm:$0xff]  ;;  %v13002_v12 = vld [vmem:[#allocation71_spill] sm:$0xff]  ;;  %6000 = vst [vmem:[#allocation9 + $0xd0] sm:$0xff] %v5137_v13 }
 0x388   :  { %v5579_v50 = vunpack.c.l.b16 %v12994_v3  ;;  %v2139_v63 = vsub.f32 %v12997_v28, %v9554_v4  ;;  %v4720_v57 = vmul.f32 %v12815_v53, %v4215_v27  ;;  %v3756_v22 = vsub.f32 1.0, %v3755_v44  ;;  %v13004_v27 = vld [vmem:[#allocation104_spill] sm:$0xff] }
 0x389   :  { %v2374_v52 = vmul.f32 1.442695, %v12995_v38  ;;  %v2342_v48 = vmul.f32 1.442695, %v12996_v24  ;;  %v2713_v42 = vsel %vm1677_vm0, %v9687_v41, 0.0  ;;  %v4721_v6 = vmul.f32 %v12998_v5, %v4229_v32  ;;  %v13006_v5 = vld [vmem:[#allocation19_spill] sm:$0xff] }
 0x38a   :  { %v5595_v23 = vpack.c.b16 %v5580_v29, %v5579_v50  ;;  %6562 = vrcp.f32 %v10644_v58  ;;  %v2376_v2 = vmul.f32 1.442695, %v2155_v19  ;;  %5658 = vmatpush.bf16.msrb.mxu1 %v5619_v16  ;;  %2714 = vadd.xlane.f32.xlu0 %v2713_v42  ;;  %v2809_v4 = vsel %vm1677_vm0, %v10669_v7, 0.0 }
 0x38b   :  { %6564 = vrcp.f32 %v10682_v11  ;;  %v4848_v53 = vpack.c.bf16 %v4720_v57, %v4720_v57  ;;  %v4849_v29 = vpack.c.bf16 %v4721_v6, %v4721_v6  ;;  %v2344_v30 = vmul.f32 1.442695, %v2139_v63 }
 0x38c   :  { %6566 = vpow2.f32 %v2374_v52  ;;  %v10760_v49 = vpop.eup %6558  ;;  %2810 = vadd.xlane.f32.xlu2 %v2809_v4  ;;  %v2665_v55 = vsel %vm1677_vm0, %v9696_v25, 0.0  ;;  %v2140_v61 = vsub.f32 %v13002_v12, %v13001_v20  ;;  %v3757_v31 = vmul.f32 %v10714_v54, %v3756_v22  ;;  %v10792_v63 = vpop.xlane.xlu1 %2048  ;;  %v13005_v22 = vld [vmem:[#allocation18_spill] sm:$0xff] }
 0x38d   :  { %12999 = vst [vmem:[#allocation35_spill] sm:$0xff] %v10760_v49  ;;  %6568 = vrcp.f32 %v10753_v56  ;;  %v10765_v39 = vpop.eup %6560  ;;  %6162 = vmatmul.msk.bf16.vlgmr.msrb.gmra.mxu1 %vm1677_vm0, %v5595_v23  ;;  %2666 = vadd.xlane.f32.xlu1 %v2665_v55  ;;  %v5718_v62 = vunpack.c.l.b16 %v4848_v53  ;;  %v2156_v44 = vsub.f32 %v13004_v27, %v13003_v36  ;;  %v5719_v43 = vunpack.c.l.b16 %v4849_v29  ;;  %v10773_v37 = vpop.xlane.xlu0 %2750 }
 0x38e   :  { %13000 = vst [vmem:[#allocation62_spill] sm:$0xff] %v10765_v39  ;;  %6570 = vpow2.f32 %v2342_v48  ;;  %v3763_v3 = vand.u32 2147483647, %v10640_v18  ;;  %v3765_v50 = vand.u32 2147483648, %v10640_v18  ;;  %v4003_v38 = vand.u32 2147483648, %v10682_v11 }
 0x38f   :  { %6572 = vpow2.f32 %v2376_v2  ;;  %v5733_v52 = vpack.c.b16 %v5719_v43, %v5718_v62  ;;  %v10787_v48 = vmul.f32 1.442695, %v2140_v61  ;;  %v3758_v28 = vadd.f32 %v10714_v54, %v3757_v31  ;;  %v5139_v62 = vpop.f32.mrf.mxu1  ;;  %v13012_v43 = vld [vmem:[#allocation86_spill] sm:$0xff] }
 0x390   :  { %v10775_v19 = vpop.eup %6562  ;;  %6574 = vrcp.f32 %v10677_v0  ;;  %vm3760_vm12 = vweird.f32 %v10714_v54  ;;  %v10796_v57 = vmul.f32 1.442695, %v2156_v44  ;;  %vm3759_vm13 = vweird.f32 %v10640_v18  ;;  %6001 = vst [vmem:[#allocation9 + $0xd8] sm:$0xff] %v5139_v62 }
 0x391   :  { %v10780_v32 = vpop.eup %6564  ;;  %6576 = vpow2.f32 %v2344_v30  ;;  %v4427_v16 = vmul.f32 %v10775_v19, %v10644_v58  ;;  %6171 = vmatmul.msk.bf16.gmra.mxu2 %vm1677_vm0, %v5733_v52  ;;  %vm10806_vm14 = vcmp.eq.f32.partialorder %v3763_v3, 8.507059e+37  ;;  %v3766_v53 = vor.u32 1.1754944e-38, %v3765_v50  ;;  %v13009_v30 = vld [vmem:[#allocation49_spill] sm:$0xff]  ;;  %vm10820_vm15 = vmor %vm3759_vm13, %vm3760_vm12 }
 0x392   :  { %v10785_v24 = vpop.eup %6566  ;;  %6578 = vrcp.f32 %v10684_v47  ;;  %v10812_v29 = vmul.f32 %v10780_v32, %v10682_v11  ;;  %v2710_v55 = vsel %vm1677_vm0, %v13009_v30, 0.0  ;;  %v10825_v12 = vor.u32 1.1754944e-38, %v4003_v38 }
 0x393   :  { %v10794_v23 = vpop.eup %6568  ;;  %v2764_v61 = vsel %vm1677_vm0, %v9789_v8, 0.0  ;;  %v4428_v31 = vsub.f32 1.0, %v4427_v16  ;;  %v3762_v27 = vsel %vm10820_vm15, %v10714_v54, %v3758_v28  ;;  %v2184_v3 = vsub.f32 %v13012_v43, %v10737_v33 }
 0x394   :  { %v10804_v2 = vpop.eup %6570  ;;  %2711 = vadd.xlane.f32.xlu2 %v2710_v55  ;;  %v10834_v44 = vmul.f32 %v10794_v23, %v10753_v56  ;;  %6580 = vrcp.f32 %v10743_v59  ;;  %vm4431_vm1 = vweird.f32 %v10644_v58  ;;  %v4435_v52 = vand.u32 2147483647, %v10644_v58 }
 0x395   :  { %v10816_v13 = vpop.eup %6572  ;;  %2765 = vadd.xlane.f32.xlu1 %v2764_v61  ;;  %v10845_v16 = vpop.xlane.xlu0 %2651  ;;  %v3994_v55 = vsub.f32 1.0, %v10812_v29  ;;  %v4437_v33 = vand.u32 2147483648, %v10644_v58  ;;  %v3777_v18 = vand.u32 2147483647, %v10677_v0  ;;  %v2434_v61 = vmul.f32 1.442695, %v2184_v3 }
 0x396   :  { %v6575_v36 = vpop.eup %6574  ;;  %v3767_v62 = vsel %vm10806_vm14, %v3766_v53, %v3762_v27  ;;  %v4429_v43 = vmul.f32 %v10775_v19, %v4428_v31  ;;  %v4232_v38 = vsub.f32 1.0, %v10834_v44  ;;  %v2767_v20 = vsel %vm1677_vm0, %v10765_v39, 0.0  ;;  %v13015_v31 = vld [vmem:[#allocation23_spill] sm:$0xff]  ;;  %v10872_v44 = vpop.xlane.xlu1 %2795  ;;  %v13022_v39 = vld [vmem:[#allocation72_spill] sm:$0xff] }
 0x397   :  { %v10839_v50 = vpop.eup %6576  ;;  %v3769_v54 = vmul.f32 %v6575_v36, %v10677_v0  ;;  %v3779_v29 = vand.u32 2147483648, %v10677_v0  ;;  %6582 = vpow2.f32 %v2434_v61  ;;  %vm3774_vm4 = vweird.f32 %v6575_v36 }
 0x398   :  { %v10847_v28 = vpop.eup %6578  ;;  %6584 = vrcp.f32 %v10773_v37  ;;  %vm4432_vm2 = vweird.f32 %v10775_v19  ;;  %vm3773_vm3 = vweird.f32 %v10677_v0  ;;  %vm10866_vm5 = vcmp.eq.f32.partialorder %v3777_v18, 8.507059e+37 }
 0x399   :  { %v3770_v42 = vsub.f32 1.0, %v3769_v54  ;;  %v4441_v6 = vmul.f32 %v10847_v28, %v10684_v47  ;;  %v2185_v27 = vsub.f32 %v13015_v31, %v10792_v63  ;;  %vm3998_vm6 = vweird.f32 %v10780_v32  ;;  %vm3775_vm7 = vmor %vm3773_vm3, %vm3774_vm4 }
 0x39a   :  { %v10862_v4 = vpop.eup %6580  ;;  %v3780_v18 = vor.u32 1.1754944e-38, %v3779_v29  ;;  %vm4446_vm8 = vweird.f32 %v10847_v28  ;;  %v4451_v63 = vand.u32 2147483648, %v10684_v47  ;;  %vm3997_vm9 = vweird.f32 %v10682_v11  ;;  %vm10894_vm11 = vmor %vm4431_vm1, %vm4432_vm2 }
 0x39b   :  { %v3771_v8 = vmul.f32 %v6575_v36, %v3770_v42  ;;  %v4442_v3 = vsub.f32 1.0, %v4441_v6  ;;  %v4430_v42 = vadd.f32 %v10775_v19, %v4429_v43  ;;  %v3979_v0 = vmul.f32 %v10862_v4, %v10743_v59  ;;  %vm10956_vm3 = vmor %vm3997_vm9, %vm3998_vm6 }
 0x39c   :  { %2768 = vadd.xlane.f32.xlu2 %v2767_v20  ;;  %v2436_v61 = vmul.f32 1.442695, %v2185_v27  ;;  %vm4236_vm10 = vweird.f32 %v10794_v23  ;;  %6586 = vrcp.f32 %v10845_v16  ;;  %vm4445_vm12 = vweird.f32 %v10684_v47 }
 0x39d   :  { %v3772_v6 = vadd.f32 %v6575_v36, %v3771_v8  ;;  %v4443_v54 = vmul.f32 %v10847_v28, %v4442_v3  ;;  %v3980_v20 = vsub.f32 1.0, %v3979_v0  ;;  %v10886_v3 = vpop.xlane.xlu0 %2702  ;;  %v10888_v31 = vpop.eup %6582  ;;  %v4449_v27 = vand.u32 2147483647, %v10684_v47  ;;  %vm10911_vm14 = vmor %vm4445_vm12, %vm4446_vm8  ;;  %v13021_v0 = vld [vmem:[#allocation102_spill] sm:$0xff] }
 0x39e   :  { %13016 = vst [vmem:[#allocation85_spill] sm:$0xff] %v10888_v31  ;;  %6588 = vpow2.f32 %v2436_v61  ;;  %vm4235_vm13 = vweird.f32 %v10753_v56  ;;  %v4434_v58 = vsel %vm10894_vm11, %v10775_v19, %v4430_v42  ;;  %v2812_v47 = vsel %vm1677_vm0, %v10888_v31, 0.0 }
 0x39f   :  { %v3776_v43 = vsel %vm3775_vm7, %v6575_v36, %v3772_v6  ;;  %v4444_v8 = vadd.f32 %v10847_v28, %v4443_v54  ;;  %v10902_v6 = vpop.eup %6584  ;;  %v3995_v54 = vmul.f32 %v10780_v32, %v3994_v55  ;;  %v4233_v61 = vmul.f32 %v10794_v23, %v4232_v38  ;;  %2813 = vadd.xlane.f32.xlu0 %v2812_v47  ;;  %v5279_v42 = vpop.f32.mrf.mxu2  ;;  %vm10982_vm6 = vmor %vm4235_vm13, %vm4236_vm10 }
 0x3a0   :  { %v3781_v36 = vsel %vm10866_vm5, %v3780_v18, %v3776_v43  ;;  %v4688_v18 = vmul.f32 %v13021_v0, %v3767_v62  ;;  %v4438_v55 = vor.u32 1.1754944e-38, %v4437_v33  ;;  %v3981_v19 = vmul.f32 %v10862_v4, %v3980_v20  ;;  %6018 = vst [vmem:[#allocation9 + $0x160] sm:$0xff] %v5279_v42  ;;  %v13023_v62 = vld [vmem:[#allocation24_spill] sm:$0xff]  ;;  %v10948_v47 = vpop.xlane.xlu1 %2654 }
 0x3a1   :  { %v4448_v43 = vsel %vm10911_vm14, %v10847_v28, %v4444_v8  ;;  %vm4436_vm15 = vcmp.eq.f32.partialorder %v4435_v52, 8.507059e+37  ;;  %v4452_v29 = vor.u32 1.1754944e-38, %v4451_v63  ;;  %v4689_v30 = vmul.f32 %v13022_v39, %v3781_v36  ;;  %v10934_v39 = vpop.xlane.xlu2 %2798 }
 0x3a2   :  { %v4816_v41 = vpack.c.bf16 %v4688_v18, %v4688_v18  ;;  %v4439_v31 = vsel %vm4436_vm15, %v4438_v55, %v4434_v58  ;;  %vm4450_vm1 = vcmp.eq.f32.partialorder %v4449_v27, 8.507059e+37  ;;  %v2668_v38 = vsel %vm1677_vm0, %v13023_v62, 0.0  ;;  %v10928_v53 = vpop.eup %6586  ;;  %v5416_v63 = vpop.f32.mrf.mxu3 }
 0x3a3   :  { %v4245_v33 = vmul.f32 %v10902_v6, %v10773_v37  ;;  %v10931_v28 = vadd.f32 %v10780_v32, %v3995_v54  ;;  %v4453_v8 = vsel %vm4450_vm1, %v4452_v29, %v4448_v43  ;;  %v4817_v52 = vpack.c.bf16 %v4689_v30, %v4689_v30  ;;  %6034 = vst [vmem:[#allocation9 + $0x1e0] sm:$0xff] %v5416_v63  ;;  %v13028_v43 = vld [vmem:[#allocation95_spill] sm:$0xff] }
 0x3a4   :  { %2669 = vadd.xlane.f32.xlu2 %v2668_v38  ;;  %6590 = vrcp.f32 %v10872_v44  ;;  %v10936_v20 = vpop.eup %6588  ;;  %v13025_v36 = vand.u32 2147483647, %v10682_v11  ;;  %v4234_v58 = vadd.f32 %v10794_v23, %v4233_v61  ;;  %v3982_v54 = vadd.f32 %v10862_v4, %v3981_v19  ;;  %v13031_v29 = vld [vmem:[#allocation31_spill] sm:$0xff] }
 0x3a5   :  { %13024 = vst [vmem:[#allocation34_spill] sm:$0xff] %v10936_v20  ;;  %vm3984_vm2 = vweird.f32 %v10862_v4  ;;  %v3987_v30 = vand.u32 2147483647, %v10743_v59  ;;  %v3989_v0 = vand.u32 2147483648, %v10743_v59  ;;  %v5444_v18 = vunpack.c.l.b16 %v4816_v41 }
 0x3a6   :  { %vm10940_vm4 = vcmp.eq.f32.partialorder %v13025_v36, 8.507059e+37  ;;  %v5445_v55 = vunpack.c.l.b16 %v4817_v52  ;;  %v4736_v42 = vmul.f32 %v13028_v43, %v4439_v31  ;;  %vm3983_vm5 = vweird.f32 %v10743_v59  ;;  %v10972_v59 = vpop.xlane.xlu0 %2051 }
 0x3a7   :  { %v4246_v19 = vsub.f32 1.0, %v4245_v33  ;;  %v4737_v38 = vmul.f32 %v13031_v29, %v4453_v8  ;;  %v2815_v63 = vsel %vm1677_vm0, %v10936_v20, 0.0  ;;  %vm10964_vm7 = vmor %vm3983_vm5, %vm3984_vm2  ;;  %v3783_v31 = vmul.f32 %v10928_v53, %v10845_v16  ;;  %v5281_v29 = vpop.f32.mrf.mxu2 }
 0x3a8   :  { %v5459_v11 = vpack.c.b16 %v5445_v55, %v5444_v18  ;;  %v4864_v52 = vpack.c.bf16 %v4736_v42, %v4736_v42  ;;  %v2671_v36 = vsel %vm1677_vm0, %v10760_v49, 0.0  ;;  %2816 = vadd.xlane.f32.xlu1 %v2815_v63  ;;  %v4000_v33 = vsel %vm10956_vm3, %v10780_v32, %v10931_v28  ;;  %v5005_v42 = vpop.f32.mrf.mxu0  ;;  %v13036_v63 = vld [vmem:[#allocation56_spill] sm:$0xff]  ;;  %6019 = vst [vmem:[#allocation9 + $0x168] sm:$0xff] %v5281_v29  ;;  %v11018_v27 = vpop.xlane.xlu1 %2003 }
 0x3a9   :  { %v4241_v18 = vand.u32 2147483648, %v10753_v56  ;;  %v3986_v55 = vsel %vm10964_vm7, %v10862_v4, %v3982_v54  ;;  %v4865_v43 = vpack.c.bf16 %v4737_v38, %v4737_v38  ;;  %2672 = vadd.xlane.f32.xlu0 %v2671_v36  ;;  %v4238_v32 = vsel %vm10982_vm6, %v10794_v23, %v4234_v58  ;;  %5986 = vst [vmem:[#allocation9 + $0x60] sm:$0xff] %v5005_v42 }
 0x3aa   :  { %v10990_v61 = vpop.eup %6590  ;;  %vm3988_vm8 = vcmp.eq.f32.partialorder %v3987_v30, 8.507059e+37  ;;  %v3990_v28 = vor.u32 1.1754944e-38, %v3989_v0  ;;  %v2719_v20 = vsel %vm1677_vm0, %v13036_v63, 0.0  ;;  %6155 = vmatmul.msk.bf16.gmra.mxu0 %vm1677_vm0, %v5459_v11  ;;  %v4247_v4 = vmul.f32 %v10902_v6, %v4246_v19  ;;  %v5418_v58 = vpop.f32.mrf.mxu3 }
 0x3ab   :  { %v4253_v54 = vand.u32 2147483647, %v10773_v37  ;;  %v5855_v38 = vunpack.c.l.b16 %v4864_v52  ;;  %v5856_v41 = vunpack.c.l.b16 %v4865_v43  ;;  %v4255_v8 = vand.u32 2147483648, %v10773_v37  ;;  %6035 = vst [vmem:[#allocation9 + $0x1e8] sm:$0xff] %v5418_v58  ;;  %v11012_v52 = vpop.xlane.xlu2 %2699  ;;  %v13038_v43 = vld [vmem:[#allocation67_spill] sm:$0xff] }
 0x3ac   :  { %v3991_v36 = vsel %vm3988_vm8, %v3990_v28, %v3986_v55  ;;  %2720 = vadd.xlane.f32.xlu2 %v2719_v20  ;;  %v3784_v23 = vsub.f32 1.0, %v3783_v31  ;;  %6592 = vrcp.f32 %v10934_v39  ;;  %v4242_v30 = vor.u32 1.1754944e-38, %v4241_v18  ;;  %v13041_v28 = vld [vmem:[#allocation78_spill] sm:$0xff] }
 0x3ad   :  { %v4455_v0 = vmul.f32 %v10990_v61, %v10872_v44  ;;  %v5870_v11 = vpack.c.b16 %v5856_v41, %v5855_v38  ;;  %6594 = vrcp.f32 %v10886_v3  ;;  %v4005_v19 = vsel %vm10940_vm4, %v10825_v12, %v4000_v33 }
 0x3ae   :  { %v13037_v20 = vand.u32 2147483647, %v10753_v56  ;;  %v3793_v31 = vand.u32 2147483648, %v10845_v16  ;;  %6596 = vrcp.f32 %v10948_v47  ;;  %v4248_v55 = vadd.f32 %v10902_v6, %v4247_v4 }
 0x3af   :  { %vm4250_vm10 = vweird.f32 %v10902_v6  ;;  %6179 = vmatmul.msk.bf16.gmra.mxu3 %vm1677_vm0, %v5870_v11  ;;  %v4704_v42 = vmul.f32 %v13038_v43, %v3991_v36  ;;  %vm4249_vm11 = vweird.f32 %v10773_v37  ;;  %vm11021_vm12 = vcmp.eq.f32.partialorder %v4253_v54, 8.507059e+37 }
 0x3b0   :  { %vm4240_vm9 = vcmp.eq.f32.partialorder %v13037_v20, 8.507059e+37  ;;  %v4256_v12 = vor.u32 1.1754944e-38, %v4255_v8  ;;  %v3785_v33 = vmul.f32 %v10928_v53, %v3784_v23  ;;  %vm3787_vm13 = vweird.f32 %v10845_v16  ;;  %v5007_v38 = vpop.f32.mrf.mxu0  ;;  %vm11031_vm14 = vmor %vm4249_vm11, %vm4250_vm10  ;;  %v13044_v23 = vld [vmem:[#allocation38_spill] sm:$0xff] }
 0x3b1   :  { %v4243_v18 = vsel %vm4240_vm9, %v4242_v30, %v4238_v32  ;;  %v3791_v29 = vand.u32 2147483647, %v10845_v16  ;;  %v4456_v32 = vsub.f32 1.0, %v4455_v0  ;;  %v4705_v4 = vmul.f32 %v13041_v28, %v4005_v19  ;;  %5987 = vst [vmem:[#allocation9 + $0x68] sm:$0xff] %v5007_v38 }
 0x3b2   :  { %v11029_v41 = vpop.eup %6592  ;;  %v11035_v37 = vor.u32 1.1754944e-38, %v3793_v31  ;;  %v4465_v54 = vand.u32 2147483648, %v10872_v44  ;;  %v4832_v8 = vpack.c.bf16 %v4704_v42, %v4704_v42  ;;  %v2716_v58 = vsel %vm1677_vm0, %v13044_v23, 0.0  ;;  %v5142_v20 = vpop.f32.mrf.mxu1 }
 0x3b3   :  { %v11040_v30 = vpop.eup %6594  ;;  %v4252_v0 = vsel %vm11031_vm14, %v10902_v6, %v4248_v55  ;;  %vm3788_vm15 = vweird.f32 %v10928_v53  ;;  %vm4459_vm1 = vweird.f32 %v10872_v44  ;;  %v4469_v11 = vmul.f32 %v11029_v41, %v10934_v39  ;;  %2717 = vadd.xlane.f32.xlu1 %v2716_v58  ;;  %v11049_v31 = vpop.xlane.xlu0 %2756  ;;  %v13045_v6 = vld [vmem:[#allocation28_spill] sm:$0xff]  ;;  %6002 = vst [vmem:[#allocation9 + $0xe0] sm:$0xff] %v5142_v20 }
 0x3b4   :  { %v4833_v19 = vpack.c.bf16 %v4705_v4, %v4705_v4  ;;  %v11051_v43 = vpop.eup %6596  ;;  %v11054_v42 = vadd.f32 %v10928_v53, %v3785_v33  ;;  %v5581_v28 = vunpack.c.l.b16 %v4832_v8  ;;  %v2186_v55 = vsub.f32 %v13045_v6, %v10972_v59  ;;  %vm11075_vm2 = vmor %vm3787_vm13, %vm3788_vm15  ;;  %v2007_v20 = vpop.xlane.xlu2 %2006 }
 0x3b5   :  { %6598 = vrcp.f32 %v11012_v52  ;;  %v4457_v38 = vmul.f32 %v10990_v61, %v4456_v32  ;;  %v4470_v36 = vsub.f32 1.0, %v4469_v11  ;;  %v3797_v4 = vmul.f32 %v11051_v43, %v10948_v47 }
 0x3b6   :  { %v5582_v58 = vunpack.c.l.b16 %v4833_v19  ;;  %v4257_v23 = vsel %vm11021_vm12, %v4256_v12, %v4252_v0  ;;  %v4463_v33 = vand.u32 2147483647, %v10872_v44  ;;  %v11065_v63 = vor.u32 1.1754944e-38, %v4465_v54  ;;  %v13048_v0 = vld [vmem:[#allocation82_spill] sm:$0xff] }
 0x3b7   :  { %v2438_v8 = vmul.f32 1.442695, %v2186_v55  ;;  %vm4460_vm4 = vweird.f32 %v10990_v61  ;;  %v4021_v59 = vmul.f32 %v11040_v30, %v10886_v3  ;;  %v4471_v54 = vmul.f32 %v11029_v41, %v4470_v36  ;;  %v2055_v55 = vpop.xlane.xlu1 %2054 }
 0x3b8   :  { %v5596_v11 = vpack.c.b16 %v5582_v58, %v5581_v28  ;;  %v4722_v19 = vmul.f32 %v13048_v0, %v4243_v18  ;;  %v3790_v28 = vsel %vm11075_vm2, %v10928_v53, %v11054_v42  ;;  %v4458_v6 = vadd.f32 %v10990_v61, %v4457_v38  ;;  %v13052_v53 = vld [vmem:[#allocation30_spill] sm:$0xff]  ;;  %vm11111_vm8 = vmor %vm4459_vm1, %vm4460_vm4 }
 0x3b9   :  { %6600 = vpow2.f32 %v2438_v8  ;;  %vm4473_vm3 = vweird.f32 %v10934_v39  ;;  %v3798_v16 = vsub.f32 1.0, %v3797_v4  ;;  %vm11091_vm5 = vcmp.eq.f32.partialorder %v4463_v33, 8.507059e+37  ;;  %v13051_v8 = vld [vmem:[#allocation84_spill] sm:$0xff] }
 0x3ba   :  { %6163 = vmatmul.msk.bf16.gmra.mxu1 %vm1677_vm0, %v5596_v11  ;;  %v4477_v18 = vand.u32 2147483647, %v10934_v39  ;;  %v4723_v0 = vmul.f32 %v13051_v8, %v4257_v23  ;;  %v4850_v56 = vpack.c.bf16 %v4722_v19, %v4722_v19  ;;  %v2170_v42 = vsub.f32 %v13052_v53, %v11018_v27  ;;  %v5144_v12 = vpop.f32.mrf.mxu1 }
 0x3bb   :  { %v11089_v58 = vpop.eup %6598  ;;  %vm11099_vm7 = vcmp.eq.f32.partialorder %v3791_v29, 8.507059e+37  ;;  %v4022_v4 = vsub.f32 1.0, %v4021_v59  ;;  %v4479_v11 = vand.u32 2147483648, %v10934_v39  ;;  %vm3801_vm6 = vweird.f32 %v10948_v47  ;;  %6003 = vst [vmem:[#allocation9 + $0xe8] sm:$0xff] %v5144_v12  ;;  %v11124_v32 = vpop.xlane.xlu0 %2657 }
 0x3bc   :  { %v4007_v33 = vmul.f32 %v11089_v58, %v11012_v52  ;;  %v4472_v27 = vadd.f32 %v11029_v41, %v4471_v54  ;;  %vm4474_vm9 = vweird.f32 %v11029_v41  ;;  %v4851_v29 = vpack.c.bf16 %v4723_v0, %v4723_v0 }
 0x3bd   :  { %v2406_v59 = vmul.f32 1.442695, %v2170_v42  ;;  %v4462_v19 = vsel %vm11111_vm8, %v10990_v61, %v4458_v6  ;;  %vm4025_vm10 = vweird.f32 %v10886_v3  ;;  %v3799_v8 = vmul.f32 %v11051_v43, %v3798_v16  ;;  %vm11133_vm11 = vmor %vm4473_vm3, %vm4474_vm9 }
 0x3be   :  { %v3805_v44 = vand.u32 2147483647, %v10948_v47  ;;  %v3807_v53 = vand.u32 2147483648, %v10948_v47  ;;  %v4008_v49 = vsub.f32 1.0, %v4007_v33  ;;  %v5720_v0 = vunpack.c.l.b16 %v4850_v56 }
 0x3bf   :  { %v11126_v54 = vpop.eup %6600  ;;  %v5721_v42 = vunpack.c.l.b16 %v4851_v29  ;;  %6602 = vpow2.f32 %v2406_v59  ;;  %v4023_v12 = vmul.f32 %v11040_v30, %v4022_v4  ;;  %v2171_v6 = vsub.f32 %v9710_v46, %v2007_v20 }
 0x3c0   :  { %6604 = vrcp.f32 %v11049_v31  ;;  %v2187_v16 = vsub.f32 %v9668_v35, %v2055_v55  ;;  %v4476_v56 = vsel %vm11133_vm11, %v11029_v41, %v4472_v27  ;;  %v2818_v4 = vsel %vm1677_vm0, %v11126_v54, 0.0  ;;  %v11151_v41 = vpop.xlane.xlu2 %2753  ;;  %v11157_v27 = vpop.xlane.xlu1 %2801 }
 0x3c1   :  { %v5734_v33 = vpack.c.b16 %v5721_v42, %v5720_v0  ;;  %6606 = vrcp.f32 %v11124_v32  ;;  %v4480_v39 = vor.u32 1.1754944e-38, %v4479_v11  ;;  %v3800_v23 = vadd.f32 %v11051_v43, %v3799_v8  ;;  %2819 = vadd.xlane.f32.xlu2 %v2818_v4 }
 0x3c2   :  { %vm3802_vm12 = vweird.f32 %v11051_v43  ;;  %v2408_v29 = vmul.f32 1.442695, %v2171_v6  ;;  %vm4026_vm13 = vweird.f32 %v11040_v30  ;;  %vm4478_vm14 = vcmp.eq.f32.partialorder %v4477_v18, 8.507059e+37  ;;  %v13072_v18 = vld [vmem:[#allocation81_spill] sm:$0xff] }
 0x3c3   :  { %v4009_v35 = vmul.f32 %v11089_v58, %v4008_v49  ;;  %6172 = vmatmul.msk.bf16.gmra.mxu2 %vm1677_vm0, %v5734_v33  ;;  %v2440_v46 = vmul.f32 1.442695, %v2187_v16  ;;  %v4467_v20 = vsel %vm11091_vm5, %v11065_v63, %v4462_v19  ;;  %v4024_v55 = vadd.f32 %v11040_v30, %v4023_v12  ;;  %vm11168_vm15 = vmor %vm3801_vm6, %vm3802_vm12 }
 0x3c4   :  { %v4481_v11 = vsel %vm4478_vm14, %v4480_v39, %v4476_v56  ;;  %6608 = vpow2.f32 %v2408_v29  ;;  %v3795_v49 = vsel %vm11099_vm7, %v11035_v37, %v3790_v28  ;;  %vm11172_vm1 = vcmp.eq.f32.partialorder %v3805_v44, 8.507059e+37  ;;  %vm11191_vm2 = vmor %vm4025_vm10, %vm4026_vm13 }
 0x3c5   :  { %v11159_v59 = vpop.eup %6602  ;;  %v3808_v36 = vor.u32 1.1754944e-38, %v3807_v53  ;;  %6610 = vpow2.f32 %v2440_v46  ;;  %v3804_v37 = vsel %vm11168_vm15, %v11051_v43, %v3800_v23  ;;  %vm4012_vm4 = vweird.f32 %v11089_v58  ;;  %v13065_v43 = vld [vmem:[#allocation32_spill] sm:$0xff]  ;;  %v13066_v53 = vld [vmem:[#allocation37_spill] sm:$0xff] }
 0x3c6   :  { %v11176_v19 = vpop.eup %6604  ;;  %v2770_v47 = vsel %vm1677_vm0, %v11159_v59, 0.0  ;;  %6612 = vrcp.f32 %v11151_v41  ;;  %v4010_v8 = vadd.f32 %v11089_v58, %v4009_v35  ;;  %v4738_v44 = vmul.f32 %v13065_v43, %v4467_v20  ;;  %v5284_v42 = vpop.f32.mrf.mxu2 }
 0x3c7   :  { %v11185_v28 = vpop.eup %6606  ;;  %2771 = vadd.xlane.f32.xlu0 %v2770_v47  ;;  %v4739_v0 = vmul.f32 %v13066_v53, %v4481_v11  ;;  %6614 = vrcp.f32 %v11157_v27  ;;  %v4028_v12 = vsel %vm11191_vm2, %v11040_v30, %v4024_v55  ;;  %vm4011_vm3 = vweird.f32 %v11012_v52  ;;  %6020 = vst [vmem:[#allocation9 + $0x170] sm:$0xff] %v5284_v42  ;;  %v13073_v47 = vld [vmem:[#allocation13_spill] sm:$0xff] }
 0x3c8   :  { %v4015_v61 = vand.u32 2147483647, %v11012_v52  ;;  %v4017_v6 = vand.u32 2147483648, %v11012_v52  ;;  %v3809_v16 = vsel %vm11172_vm1, %v3808_v36, %v3804_v37  ;;  %v4273_v56 = vmul.f32 %v11176_v19, %v11049_v31  ;;  %vm11222_vm7 = vmor %vm4011_vm3, %vm4012_vm4 }
 0x3c9   :  { %v4866_v33 = vpack.c.bf16 %v4738_v44, %v4738_v44  ;;  %v4867_v4 = vpack.c.bf16 %v4739_v0, %v4739_v0  ;;  %v13067_v30 = vsub.f32 %v13006_v5, %v9644_v26  ;;  %v13068_v29 = vand.u32 2147483647, %v10886_v3 }
 0x3ca   :  { %v11209_v39 = vpop.eup %6608  ;;  %v13069_v52 = vand.u32 2147483648, %v10886_v3  ;;  %v3811_v20 = vmul.f32 %v11185_v28, %v11124_v32  ;;  %v4014_v26 = vsel %vm11222_vm7, %v11089_v58, %v4010_v8  ;;  %v4690_v3 = vmul.f32 %v13072_v18, %v3795_v49 }
 0x3cb   :  { %v11214_v23 = vmul.f32 1.442695, %v13067_v30  ;;  %vm4030_vm5 = vcmp.eq.f32.partialorder %v13068_v29, 8.507059e+37  ;;  %v11228_v55 = vpop.eup %6610  ;;  %v5857_v5 = vunpack.c.l.b16 %v4866_v33  ;;  %v5858_v11 = vunpack.c.l.b16 %v4867_v4 }
 0x3cc   :  { %v4032_v35 = vor.u32 1.1754944e-38, %v13069_v52  ;;  %v11234_v63 = vpop.eup %6612  ;;  %vm4016_vm6 = vcmp.eq.f32.partialorder %v4015_v61, 8.507059e+37  ;;  %v4018_v37 = vor.u32 1.1754944e-38, %v4017_v6  ;;  %v4691_v38 = vmul.f32 %v13073_v47, %v3809_v16 }
 0x3cd   :  { %v11237_v43 = vpop.eup %6614  ;;  %v4274_v44 = vsub.f32 1.0, %v4273_v56  ;;  %v4259_v53 = vmul.f32 %v11234_v63, %v11151_v41  ;;  %v5871_v0 = vpack.c.b16 %v5858_v11, %v5857_v5  ;;  %v4818_v42 = vpack.c.bf16 %v4690_v3, %v4690_v3  ;;  %v13075_v11 = vld [vmem:[#allocation17_spill] sm:$0xff] }
 0x3ce   :  { %v4033_v36 = vsel %vm4030_vm5, %v4032_v35, %v4028_v12  ;;  %v4019_v58 = vsel %vm4016_vm6, %v4018_v37, %v4014_v26  ;;  %vm4277_vm8 = vweird.f32 %v11049_v31  ;;  %v3812_v8 = vsub.f32 1.0, %v3811_v20  ;;  %v5286_v33 = vpop.f32.mrf.mxu2  ;;  %v13074_v26 = vld [vmem:[#allocation14_spill] sm:$0xff] }
 0x3cf   :  { %v4483_v49 = vmul.f32 %v11237_v43, %v11157_v27  ;;  %v4819_v12 = vpack.c.bf16 %v4691_v38, %v4691_v38  ;;  %v4281_v61 = vand.u32 2147483647, %v11049_v31  ;;  %v4260_v6 = vsub.f32 1.0, %v4259_v53  ;;  %6180 = vmatmul.msk.bf16.gmra.mxu3 %vm1677_vm0, %v5871_v0  ;;  %v5421_v35 = vpop.f32.mrf.mxu3  ;;  %6021 = vst [vmem:[#allocation9 + $0x178] sm:$0xff] %v5286_v33 }
 0x3d0   :  { %v2677_v16 = vsel %vm1677_vm0, %v10839_v50, 0.0  ;;  %v2773_v56 = vsel %vm1677_vm0, %v11209_v39, 0.0  ;;  %v5446_v30 = vunpack.c.l.b16 %v4818_v42  ;;  %v2821_v52 = vsel %vm1677_vm0, %v11228_v55, 0.0  ;;  %6036 = vst [vmem:[#allocation9 + $0x1f0] sm:$0xff] %v5421_v35 }
 0x3d1   :  { %v4484_v4 = vsub.f32 1.0, %v4483_v49  ;;  %v5447_v29 = vunpack.c.l.b16 %v4819_v12  ;;  %2678 = vadd.xlane.f32.xlu2 %v2677_v16  ;;  %2774 = vadd.xlane.f32.xlu1 %v2773_v56  ;;  %v4275_v46 = vmul.f32 %v11176_v19, %v4274_v44  ;;  %v4261_v20 = vmul.f32 %v11234_v63, %v4260_v6 }
 0x3d2   :  { %2822 = vadd.xlane.f32.xlu0 %v2821_v52  ;;  %v4706_v5 = vmul.f32 %v13074_v26, %v4019_v58  ;;  %v4707_v18 = vmul.f32 %v13075_v11, %v4033_v36  ;;  %vm4278_vm9 = vweird.f32 %v11176_v19  ;;  %v4283_v3 = vand.u32 2147483648, %v11049_v31 }
 0x3d3   :  { %v3813_v37 = vmul.f32 %v11185_v28, %v3812_v8  ;;  %v5460_v47 = vpack.c.b16 %v5447_v29, %v5446_v30  ;;  %vm3815_vm10 = vweird.f32 %v11124_v32  ;;  %v4485_v38 = vmul.f32 %v11237_v43, %v4484_v4  ;;  %vm11280_vm14 = vmor %vm4277_vm8, %vm4278_vm9 }
 0x3d4   :  { %v4834_v44 = vpack.c.bf16 %v4706_v5, %v4706_v5  ;;  %v4835_v53 = vpack.c.bf16 %v4707_v18, %v4707_v18  ;;  %v3821_v0 = vand.u32 2147483648, %v11124_v32  ;;  %vm4263_vm11 = vweird.f32 %v11151_v41  ;;  %v11269_v49 = vpop.xlane.xlu0 %2708  ;;  %v11271_v12 = vpop.xlane.xlu2 %2804 }
 0x3d5   :  { %v4267_v36 = vand.u32 2147483647, %v11151_v41  ;;  %v4269_v42 = vand.u32 2147483648, %v11151_v41  ;;  %6156 = vmatmul.msk.bf16.gmra.mxu0 %vm1677_vm0, %v5460_v47  ;;  %v4276_v58 = vadd.f32 %v11176_v19, %v4275_v46  ;;  %v4262_v8 = vadd.f32 %v11234_v63, %v4261_v20 }
 0x3d6   :  { %vm4264_vm12 = vweird.f32 %v11234_v63  ;;  %v5583_v6 = vunpack.c.l.b16 %v4834_v44  ;;  %v3814_v16 = vadd.f32 %v11185_v28, %v3813_v37  ;;  %vm3816_vm13 = vweird.f32 %v11185_v28  ;;  %v11287_v30 = vpop.xlane.xlu1 %2660 }
 0x3d7   :  { %6616 = vrcp.f32 %v11269_v49  ;;  %v5584_v56 = vunpack.c.l.b16 %v4835_v53  ;;  %v4486_v4 = vadd.f32 %v11237_v43, %v4485_v38  ;;  %vm4488_vm15 = vweird.f32 %v11237_v43  ;;  %vm11296_vm1 = vmor %vm4263_vm11, %vm4264_vm12  ;;  %v5423_v5 = vpop.f32.mrf.mxu3 }
 0x3d8   :  { %6618 = vrcp.f32 %v11271_v12  ;;  %v2674_v29 = vsel %vm1677_vm0, %v10804_v2, 0.0  ;;  %v3819_v52 = vand.u32 2147483647, %v11124_v32  ;;  %v4493_v46 = vand.u32 2147483648, %v11157_v27  ;;  %vm11307_vm4 = vmor %vm3815_vm10, %vm3816_vm13  ;;  %6037 = vst [vmem:[#allocation9 + $0x1f8] sm:$0xff] %v5423_v5 }
 0x3d9   :  { %v5597_v20 = vpack.c.b16 %v5584_v56, %v5583_v6  ;;  %2675 = vadd.xlane.f32.xlu1 %v2674_v29  ;;  %v2722_v26 = vsel %vm1677_vm0, %v10785_v24, 0.0  ;;  %v4266_v41 = vsel %vm11296_vm1, %v11234_v63, %v4262_v8  ;;  %vm4487_vm2 = vweird.f32 %v11157_v27 }
 0x3da   :  { %v4491_v18 = vand.u32 2147483647, %v11157_v27  ;;  %6620 = vrcp.f32 %v11287_v30  ;;  %2723 = vadd.xlane.f32.xlu0 %v2722_v26  ;;  %v4280_v32 = vsel %vm11280_vm14, %v11176_v19, %v4276_v58  ;;  %v3818_v37 = vsel %vm11307_vm4, %v11185_v28, %v3814_v16  ;;  %vm11326_vm3 = vmor %vm4487_vm2, %vm4488_vm15 }
 0x3db   :  { %6622 = vpow2.f32 %v11214_v23  ;;  %v4270_v47 = vor.u32 1.1754944e-38, %v4269_v42  ;;  %6164 = vmatmul.msk.bf16.gmra.mxu1 %vm1677_vm0, %v5597_v20  ;;  %v4284_v27 = vor.u32 1.1754944e-38, %v4283_v3  ;;  %v3822_v38 = vor.u32 1.1754944e-38, %v3821_v0  ;;  %v5010_v53 = vpop.f32.mrf.mxu0 }
 0x3dc   :  { %vm4268_vm5 = vcmp.eq.f32.partialorder %v4267_v36, 8.507059e+37  ;;  %v4490_v19 = vsel %vm11326_vm3, %v11237_v43, %v4486_v4  ;;  %vm4282_vm7 = vcmp.eq.f32.partialorder %v4281_v61, 8.507059e+37  ;;  %vm3820_vm6 = vcmp.eq.f32.partialorder %v3819_v52, 8.507059e+37  ;;  %5988 = vst [vmem:[#allocation9 + $0x70] sm:$0xff] %v5010_v53 }
 0x3dd   :  { %v11334_v23 = vpop.eup %6616  ;;  %v4271_v28 = vsel %vm4268_vm5, %v4270_v47, %v4266_v41  ;;  %v4494_v44 = vor.u32 1.1754944e-38, %v4493_v46  ;;  %v4285_v58 = vsel %vm4282_vm7, %v4284_v27, %v4280_v32  ;;  %v11338_v8 = vsel %vm3820_vm6, %v3822_v38, %v3818_v37 }
 0x3de   :  { %v6619_v42 = vpop.eup %6618  ;;  %vm4492_vm8 = vcmp.eq.f32.partialorder %v4491_v18, 8.507059e+37  ;;  %v4049_v3 = vmul.f32 %v11334_v23, %v11269_v49  ;;  %v4057_v43 = vand.u32 2147483647, %v11269_v49  ;;  %v2725_v61 = vsel %vm1677_vm0, %v10816_v13, 0.0 }
 0x3df   :  { %v11342_v0 = vsel %vm4492_vm8, %v4494_v44, %v4490_v19  ;;  %v4497_v31 = vmul.f32 %v6619_v42, %v11271_v12  ;;  %v4059_v16 = vand.u32 2147483648, %v11269_v49  ;;  %vm4501_vm9 = vweird.f32 %v11271_v12 }
 0x3e0   :  { %v6621_v36 = vpop.eup %6620  ;;  %v4050_v6 = vsub.f32 1.0, %v4049_v3  ;;  %v4724_v56 = vmul.f32 %v12941_v45, %v4271_v28  ;;  %v4505_v29 = vand.u32 2147483647, %v11271_v12  ;;  %v4725_v35 = vmul.f32 %v12925_v17, %v4285_v58  ;;  %v2058_v26 = vpop.xlane.xlu0 %2057 }
 0x3e1   :  { %v11351_v33 = vpop.eup %6622  ;;  %v4498_v4 = vsub.f32 1.0, %v4497_v31  ;;  %v3825_v52 = vmul.f32 %v6621_v36, %v11287_v30  ;;  %2726 = vadd.xlane.f32.xlu1 %v2725_v61  ;;  %vm4053_vm10 = vweird.f32 %v11269_v49  ;;  %vm4502_vm11 = vweird.f32 %v6619_v42  ;;  %v11359_v5 = vpop.xlane.xlu2 %2705 }
 0x3e2   :  { %v4507_v46 = vand.u32 2147483648, %v11271_v12  ;;  %v3835_v20 = vand.u32 2147483648, %v11287_v30  ;;  %v4852_v45 = vpack.c.bf16 %v4724_v56, %v4724_v56  ;;  %v2188_v18 = vsub.f32 %v9740_v34, %v2058_v26  ;;  %v5147_v32 = vpop.f32.mrf.mxu1  ;;  %vm4503_vm14 = vmor %vm4501_vm9, %vm4502_vm11 }
 0x3e3   :  { %v4499_v11 = vmul.f32 %v6619_v42, %v4498_v4  ;;  %v3826_v41 = vsub.f32 1.0, %v3825_v52  ;;  %6624 = vrcp.f32 %v11359_v5  ;;  %v4051_v17 = vmul.f32 %v11334_v23, %v4050_v6  ;;  %6004 = vst [vmem:[#allocation9 + $0xf0] sm:$0xff] %v5147_v32  ;;  %v2010_v38 = vpop.xlane.xlu1 %2009  ;;  %v5012_v19 = vpop.f32.mrf.mxu0 }
 0x3e4   :  { %vm3829_vm12 = vweird.f32 %v11287_v30  ;;  %vm3830_vm13 = vweird.f32 %v6621_v36  ;;  %v3833_v37 = vand.u32 2147483647, %v11287_v30  ;;  %v2442_v27 = vmul.f32 1.442695, %v2188_v18  ;;  %5989 = vst [vmem:[#allocation9 + $0x78] sm:$0xff] %v5012_v19 }
 0x3e5   :  { %v4500_v47 = vadd.f32 %v6619_v42, %v4499_v11  ;;  %v3827_v63 = vmul.f32 %v6621_v36, %v3826_v41  ;;  %v4853_v28 = vpack.c.bf16 %v4725_v35, %v4725_v35  ;;  %vm4506_vm15 = vcmp.eq.f32.partialorder %v4505_v29, 8.507059e+37  ;;  %vm3831_vm4 = vmor %vm3829_vm12, %vm3830_vm13 }
 0x3e6   :  { %v4508_v34 = vor.u32 1.1754944e-38, %v4507_v46  ;;  %v3836_v44 = vor.u32 1.1754944e-38, %v3835_v20  ;;  %v2172_v53 = vsub.f32 %v9744_v10, %v2010_v38  ;;  %6626 = vpow2.f32 %v2442_v27 }
 0x3e7   :  { %v4504_v58 = vsel %vm4503_vm14, %v6619_v42, %v4500_v47  ;;  %v3828_v3 = vadd.f32 %v6621_v36, %v3827_v63  ;;  %v5722_v31 = vunpack.c.l.b16 %v4852_v45  ;;  %v4052_v61 = vadd.f32 %v11334_v23, %v4051_v17 }
 0x3e8   :  { %vm4054_vm1 = vweird.f32 %v11334_v23  ;;  %v4509_v6 = vsel %vm4506_vm15, %v4508_v34, %v4504_v58  ;;  %v2410_v12 = vmul.f32 1.442695, %v2172_v53  ;;  %vm11375_vm2 = vcmp.eq.f32.partialorder %v4057_v43, 8.507059e+37 }
 0x3e9   :  { %v6625_v56 = vpop.eup %6624  ;;  %v3832_v10 = vsel %vm3831_vm4, %v6621_v36, %v3828_v3  ;;  %vm3834_vm3 = vcmp.eq.f32.partialorder %v3833_v37, 8.507059e+37  ;;  %v5723_v42 = vunpack.c.l.b16 %v4853_v28  ;;  %v4060_v29 = vor.u32 1.1754944e-38, %v4059_v16  ;;  %vm11382_vm5 = vmor %vm4053_vm10, %vm4054_vm1 }
 0x3ea   :  { %v3837_v52 = vsel %vm3834_vm3, %v3836_v44, %v3832_v10  ;;  %v4035_v35 = vmul.f32 %v6625_v56, %v11359_v5  ;;  %6628 = vpow2.f32 %v2410_v12  ;;  %v5149_v30 = vpop.f32.mrf.mxu1  ;;  %v4740_v43 = vmul.f32 %v10347_v15, %v11342_v0 }
 0x3eb   :  { %v5735_v20 = vpack.c.b16 %v5723_v42, %v5722_v31  ;;  %v4741_v36 = vmul.f32 %v10381_v1, %v4509_v6  ;;  %v4692_v16 = vmul.f32 %v12940_v60, %v11338_v8  ;;  %v4056_v26 = vsel %vm11382_vm5, %v11334_v23, %v4052_v61  ;;  %6005 = vst [vmem:[#allocation9 + $0xf8] sm:$0xff] %v5149_v30  ;;  %v13089_v31 = vld [vmem:[#allocation66_spill] sm:$0xff]  ;;  %v13090_v6 = vld [vmem:[#allocation33_spill] sm:$0xff]  ;;  %v13091_v42 = vld [vmem:[#allocation16_spill] sm:$0xff] }
 0x3ec   :  { %v4036_v45 = vsub.f32 1.0, %v4035_v35  ;;  %v4045_v49 = vand.u32 2147483648, %v11359_v5  ;;  %v4693_v11 = vmul.f32 %v12975_v40, %v3837_v52  ;;  %v11396_v41 = vpop.eup %6626  ;;  %v4043_v18 = vand.u32 2147483647, %v11359_v5 }
 0x3ed   :  { %6173 = vmatmul.msk.bf16.gmra.mxu2 %vm1677_vm0, %v5735_v20  ;;  %v4868_v15 = vpack.c.bf16 %v4740_v43, %v4740_v43  ;;  %v4869_v1 = vpack.c.bf16 %v4741_v36, %v4741_v36  ;;  %v4820_v0 = vpack.c.bf16 %v4692_v16, %v4692_v16  ;;  %vm4040_vm7 = vweird.f32 %v6625_v56  ;;  %v11407_v37 = vpop.xlane.xlu0 %2762 }
 0x3ee   :  { %v4037_v60 = vmul.f32 %v6625_v56, %v4036_v45  ;;  %v2824_v23 = vsel %vm1677_vm0, %v11396_v41, 0.0  ;;  %v4821_v8 = vpack.c.bf16 %v4693_v11, %v4693_v11  ;;  %v13088_v32 = vsub.f32 %v13005_v22, %v9659_v21  ;;  %v2013_v28 = vpop.xlane.xlu2 %2012 }
 0x3ef   :  { %v4061_v40 = vsel %vm11375_vm2, %v4060_v29, %v4056_v26  ;;  %2825 = vadd.xlane.f32.xlu1 %v2824_v23  ;;  %v5859_v47 = vunpack.c.l.b16 %v4868_v15  ;;  %v5860_v63 = vunpack.c.l.b16 %v4869_v1  ;;  %vm4039_vm6 = vweird.f32 %v11359_v5  ;;  %v2061_v3 = vpop.xlane.xlu1 %2060 }
 0x3f0   :  { %v2380_v17 = vmul.f32 1.442695, %v13088_v32  ;;  %v11409_v27 = vpop.eup %6628  ;;  %v4038_v38 = vadd.f32 %v6625_v56, %v4037_v60  ;;  %v4046_v19 = vor.u32 1.1754944e-38, %v4045_v49  ;;  %6630 = vrcp.f32 %v11407_v37  ;;  %vm4041_vm8 = vmor %vm4039_vm6, %vm4040_vm7 }
 0x3f1   :  { %v2776_v21 = vsel %vm1677_vm0, %v11409_v27, 0.0  ;;  %v5872_v22 = vpack.c.b16 %v5860_v63, %v5859_v47  ;;  %v5448_v34 = vunpack.c.l.b16 %v4820_v0  ;;  %v5449_v44 = vunpack.c.l.b16 %v4821_v8 }
 0x3f2   :  { %v4042_v53 = vsel %vm4041_vm8, %v6625_v56, %v4038_v38  ;;  %vm4044_vm9 = vcmp.eq.f32.partialorder %v4043_v18, 8.507059e+37  ;;  %v2173_v58 = vsub.f32 %v9760_v9, %v2013_v28  ;;  %2777 = vadd.xlane.f32.xlu2 %v2776_v21  ;;  %v4709_v61 = vmul.f32 %v13089_v31, %v4061_v40 }
 0x3f3   :  { %6632 = vpow2.f32 %v10787_v48  ;;  %v4047_v5 = vsel %vm4044_vm9, %v4046_v19, %v4042_v53  ;;  %v2189_v12 = vsub.f32 %v13090_v6, %v2061_v3  ;;  %6181 = vmatmul.msk.bf16.gmra.mxu3 %vm1677_vm0, %v5872_v22  ;;  %v5461_v4 = vpack.c.b16 %v5449_v44, %v5448_v34 }
 0x3f4   :  { %6634 = vpow2.f32 %v10796_v57  ;;  %v2412_v10 = vmul.f32 1.442695, %v2173_v58  ;;  %v4708_v56 = vmul.f32 %v13091_v42, %v4047_v5  ;;  %v2683_v48 = vsel %vm1677_vm0, %v11351_v33, 0.0 }
 0x3f5   :  { %6636 = vpow2.f32 %v2380_v17  ;;  %v2444_v29 = vmul.f32 1.442695, %v2189_v12  ;;  %6157 = vmatmul.msk.bf16.gmra.mxu0 %vm1677_vm0, %v5461_v4  ;;  %v4837_v35 = vpack.c.bf16 %v4709_v61, %v4709_v61  ;;  %v11429_v57 = vpop.xlane.xlu0 %2663  ;;  %v4309_v18 = vand.u32 2147483647, %v11407_v37 }
 0x3f6   :  { %v11423_v9 = vpop.eup %6630  ;;  %6638 = vpow2.f32 %v2412_v10  ;;  %v4836_v52 = vpack.c.bf16 %v4708_v56, %v4708_v56  ;;  %v4311_v1 = vand.u32 2147483648, %v11407_v37  ;;  %vm4305_vm10 = vweird.f32 %v11407_v37 }
 0x3f7   :  { %v4301_v46 = vmul.f32 %v11423_v9, %v11407_v37  ;;  %6640 = vpow2.f32 %v2444_v29  ;;  %2684 = vadd.xlane.f32.xlu1 %v2683_v48  ;;  %v11434_v43 = vpop.xlane.xlu2 %2759  ;;  %v5586_v45 = vunpack.c.l.b16 %v4837_v35  ;;  %v3849_v47 = vand.u32 2147483648, %v11429_v57 }
 0x3f8   :  { %6642 = vrcp.f32 %v11429_v57  ;;  %v5585_v36 = vunpack.c.l.b16 %v4836_v52  ;;  %v11439_v26 = vpop.xlane.xlu1 %2807  ;;  %vm4306_vm11 = vweird.f32 %v11423_v9  ;;  %vm11470_vm12 = vcmp.eq.f32.partialorder %v4309_v18, 8.507059e+37 }
 0x3f9   :  { %v11432_v30 = vpop.eup %6632  ;;  %v4302_v20 = vsub.f32 1.0, %v4301_v46  ;;  %6644 = vrcp.f32 %v11434_v43  ;;  %v4312_v44 = vor.u32 1.1754944e-38, %v4311_v1  ;;  %v3847_v53 = vand.u32 2147483647, %v11429_v57  ;;  %vm11495_vm13 = vmor %vm4305_vm10, %vm4306_vm11 }
 0x3fa   :  { %v11436_v16 = vpop.eup %6634  ;;  %6646 = vrcp.f32 %v11439_v26  ;;  %v5797_v0 = vpop.f32.mrf.mxu2  ;;  %v5598_v60 = vpack.c.b16 %v5586_v45, %v5585_v36  ;;  %v2680_v32 = vsel %vm1677_vm0, %v11432_v30, 0.0  ;;  %v4295_v58 = vand.u32 2147483647, %v11434_v43 }
 0x3fb   :  { %v11441_v49 = vpop.eup %6636  ;;  %v4303_v11 = vmul.f32 %v11423_v9, %v4302_v20  ;;  %6070 = vst [vmem:[#allocation9 + $0x300] sm:$0xff] %v5797_v0  ;;  %v2728_v17 = vsel %vm1677_vm0, %v11436_v16, 0.0  ;;  %v4297_v5 = vand.u32 2147483648, %v11434_v43  ;;  %v4521_v6 = vand.u32 2147483648, %v11439_v26 }
 0x3fc   :  { %v11446_v15 = vpop.eup %6638  ;;  %6165 = vmatmul.msk.bf16.gmra.mxu1 %vm1677_vm0, %v5598_v60  ;;  %v11466_v38 = vsel %vm1677_vm0, %v11441_v49, 0.0  ;;  %vm3843_vm14 = vweird.f32 %v11429_v57  ;;  %v11500_v10 = vor.u32 1.1754944e-38, %v3849_v47  ;;  %vm4291_vm15 = vweird.f32 %v11434_v43 }
 0x3fd   :  { %v11449_v23 = vpop.eup %6640  ;;  %v2779_v8 = vsel %vm1677_vm0, %v11446_v15, 0.0  ;;  %v4304_v19 = vadd.f32 %v11423_v9, %v4303_v11  ;;  %v11476_v22 = vpop.xlane.xlu0 %2714  ;;  %v4519_v20 = vand.u32 2147483647, %v11439_v26  ;;  %vm11515_vm1 = vcmp.eq.f32.partialorder %v3847_v53, 8.507059e+37 }
 0x3fe   :  { %v11457_v40 = vpop.eup %6642  ;;  %2780 = vadd.xlane.f32.xlu0 %v2779_v8  ;;  %v2827_v63 = vsel %vm1677_vm0, %v11449_v23, 0.0  ;;  %6648 = vrcp.f32 %v11476_v22  ;;  %v4087_v36 = vand.u32 2147483648, %v11476_v22  ;;  %vm11520_vm4 = vcmp.eq.f32.partialorder %v4295_v58, 8.507059e+37 }
 0x3ff   :  { %v3839_v21 = vmul.f32 %v11457_v40, %v11429_v57  ;;  %2828 = vadd.xlane.f32.xlu2 %v2827_v63  ;;  %v11478_v34 = vpop.eup %6644  ;;  %v11489_v12 = vpop.xlane.xlu2 %2810  ;;  %v4308_v29 = vsel %vm11495_vm13, %v11423_v9, %v4304_v19  ;;  %v4298_v1 = vor.u32 1.1754944e-38, %v4297_v5  ;;  %vm4515_vm2 = vweird.f32 %v11439_v26 }
 0x400   :  { %v11483_v3 = vpop.eup %6646  ;;  %v4287_v61 = vmul.f32 %v11478_v34, %v11434_v43  ;;  %6650 = vrcp.f32 %v11489_v12  ;;  %v11505_v56 = vpop.xlane.xlu1 %2666  ;;  %v11525_v0 = vor.u32 1.1754944e-38, %v4521_v6  ;;  %v11531_v8 = vsel %vm11470_vm12, %v4312_v44, %v4308_v29 }
 0x401   :  { %v3840_v31 = vsub.f32 1.0, %v3839_v21  ;;  %v4511_v42 = vmul.f32 %v11483_v3, %v11439_v26  ;;  %v5934_v35 = vpop.f32.mrf.mxu3  ;;  %6652 = vrcp.f32 %v11505_v56  ;;  %vm3844_vm3 = vweird.f32 %v11457_v40 }
 0x402   :  { %v4288_v48 = vsub.f32 1.0, %v4287_v61  ;;  %v5799_v45 = vpop.f32.mrf.mxu2  ;;  %6086 = vst [vmem:[#allocation9 + $0x380] sm:$0xff] %v5934_v35  ;;  %vm4292_vm5 = vweird.f32 %v11478_v34  ;;  %v4533_v47 = vand.u32 2147483647, %v11489_v12  ;;  %vm4516_vm7 = vweird.f32 %v11483_v3  ;;  %vm11570_vm11 = vmor %vm3843_vm14, %vm3844_vm3 }
 0x403   :  { %v3841_v37 = vmul.f32 %v11457_v40, %v3840_v31  ;;  %v5523_v52 = vpop.f32.mrf.mxu0  ;;  %v4512_v46 = vsub.f32 1.0, %v4511_v42  ;;  %6071 = vst [vmem:[#allocation9 + $0x308] sm:$0xff] %v5799_v45  ;;  %v4085_v44 = vand.u32 2147483647, %v11476_v22  ;;  %v11545_v58 = vor.u32 1.1754944e-38, %v4087_v36  ;;  %vm11550_vm6 = vmor %vm4291_vm15, %vm4292_vm5 }
 0x404   :  { %6038 = vst [vmem:[#allocation9 + $0x200] sm:$0xff] %v5523_v52  ;;  %v4289_v9 = vmul.f32 %v11478_v34, %v4288_v48  ;;  %v11527_v60 = vpop.eup %6648  ;;  %vm11554_vm8 = vcmp.eq.f32.partialorder %v4519_v20, 8.507059e+37  ;;  %vm4529_vm9 = vweird.f32 %v11489_v12  ;;  %vm3857_vm10 = vweird.f32 %v11505_v56  ;;  %vm11606_vm15 = vmor %vm4515_vm2, %vm4516_vm7 }
 0x405   :  { %v3842_v63 = vadd.f32 %v11457_v40, %v3841_v37  ;;  %v4513_v21 = vmul.f32 %v11483_v3, %v4512_v46  ;;  %v4077_v53 = vmul.f32 %v11527_v60, %v11476_v22  ;;  %vm4081_vm12 = vweird.f32 %v11476_v22 }
 0x406   :  { %2681 = vadd.xlane.f32.xlu0 %v2680_v32  ;;  %v4290_v19 = vadd.f32 %v11478_v34, %v4289_v9  ;;  %v11541_v28 = vpop.eup %6650  ;;  %v4535_v32 = vand.u32 2147483648, %v11489_v12  ;;  %vm11578_vm13 = vcmp.eq.f32.partialorder %v4533_v47, 8.507059e+37  ;;  %v3861_v37 = vand.u32 2147483647, %v11505_v56 }
 0x407   :  { %2729 = vadd.xlane.f32.xlu2 %v2728_v17  ;;  %v4078_v17 = vsub.f32 1.0, %v4077_v53  ;;  %v4525_v5 = vmul.f32 %v11541_v28, %v11489_v12  ;;  %v11562_v6 = vpop.xlane.xlu2 %2711  ;;  %v11564_v4 = vpop.eup %6652  ;;  %v3846_v57 = vsel %vm11570_vm11, %v11457_v40, %v3842_v63  ;;  %v4514_v52 = vadd.f32 %v11483_v3, %v4513_v21  ;;  %v13116_v12 = vld [vmem:[#allocation57_spill] sm:$0xff] }
 0x408   :  { %v4294_v42 = vsel %vm11550_vm6, %v11478_v34, %v4290_v19  ;;  %6654 = vrcp.f32 %v11562_v6  ;;  %v11584_v48 = vpop.xlane.xlu1 %2765  ;;  %v3853_v34 = vmul.f32 %v11564_v4, %v11505_v56  ;;  %v4536_v45 = vor.u32 1.1754944e-38, %v4535_v32 }
 0x409   :  { %v4526_v35 = vsub.f32 1.0, %v4525_v5  ;;  %v5936_v20 = vpop.f32.mrf.mxu3  ;;  %v4079_v36 = vmul.f32 %v11527_v60, %v4078_v17  ;;  %v3863_v9 = vand.u32 2147483648, %v11505_v56  ;;  %6656 = vrcp.f32 %v11584_v48 }
 0x40a   :  { %v5660_v47 = vpop.f32.mrf.mxu1  ;;  %v4299_v40 = vsel %vm11520_vm4, %v4298_v1, %v4294_v42  ;;  %vm4530_vm14 = vweird.f32 %v11541_v28  ;;  %v3854_v19 = vsub.f32 1.0, %v3853_v34  ;;  %v3851_v21 = vsel %vm11515_vm1, %v11500_v10, %v3846_v57  ;;  %6087 = vst [vmem:[#allocation9 + $0x388] sm:$0xff] %v5936_v20 }
 0x40b   :  { %v5525_v46 = vpop.f32.mrf.mxu0  ;;  %v4527_v63 = vmul.f32 %v11541_v28, %v4526_v35  ;;  %6054 = vst [vmem:[#allocation9 + $0x280] sm:$0xff] %v5660_v47  ;;  %vm4082_vm4 = vweird.f32 %v11527_v60  ;;  %vm11611_vm3 = vcmp.eq.f32.partialorder %v4085_v44, 8.507059e+37  ;;  %vm11615_vm5 = vcmp.eq.f32.partialorder %v3861_v37, 8.507059e+37  ;;  %vm11632_vm2 = vmor %vm4529_vm9, %vm4530_vm14 }
 0x40c   :  { %6039 = vst [vmem:[#allocation9 + $0x208] sm:$0xff] %v5525_v46  ;;  %v4071_v10 = vand.u32 2147483647, %v11562_v6  ;;  %v4518_v26 = vsel %vm11606_vm15, %v11483_v3, %v4514_v52  ;;  %v3855_v44 = vmul.f32 %v11564_v4, %v3854_v19  ;;  %vm3858_vm1 = vweird.f32 %v11564_v4  ;;  %vm11664_vm11 = vmor %vm4081_vm12, %vm4082_vm4  ;;  %v13121_v19 = vld [vmem:[#allocation22_spill] sm:$0xff] }
 0x40d   :  { %v4528_v11 = vadd.f32 %v11541_v28, %v4527_v63  ;;  %v4080_v31 = vadd.f32 %v11527_v60, %v4079_v36  ;;  %vm4067_vm7 = vweird.f32 %v11562_v6  ;;  %v4726_v3 = vmul.f32 %v12991_v51, %v4299_v40  ;;  %vm3859_vm6 = vmor %vm3857_vm10, %vm3858_vm1 }
 0x40e   :  { %2732 = vadd.xlane.f32.xlu0 %v11466_v38  ;;  %v6655_v32 = vpop.eup %6654  ;;  %v3864_v38 = vor.u32 1.1754944e-38, %v3863_v9  ;;  %v3856_v43 = vadd.f32 %v11564_v4, %v3855_v44  ;;  %v4727_v57 = vmul.f32 %v13116_v12, %v11531_v8  ;;  %v4523_v35 = vsel %vm11554_vm8, %v11525_v0, %v4518_v26 }
 0x40f   :  { %v4532_v5 = vsel %vm11632_vm2, %v11541_v28, %v4528_v11  ;;  %v4063_v42 = vmul.f32 %v6655_v32, %v11562_v6  ;;  %v11643_v37 = vpop.xlane.xlu2 %2768  ;;  %v11647_v52 = vpop.eup %6656  ;;  %vm11654_vm9 = vcmp.eq.f32.partialorder %v4071_v10, 8.507059e+37  ;;  %v4073_v28 = vand.u32 2147483648, %v11562_v6 }
 0x410   :  { %6658 = vrcp.f32 %v11643_v37  ;;  %v4537_v56 = vsel %vm11578_vm13, %v4536_v45, %v4532_v5  ;;  %v3860_v0 = vsel %vm3859_vm6, %v11564_v4, %v3856_v43  ;;  %v4315_v34 = vmul.f32 %v11647_v52, %v11584_v48 }
 0x411   :  { %v4064_v61 = vsub.f32 1.0, %v4063_v42  ;;  %vm4319_vm8 = vweird.f32 %v11584_v48  ;;  %v4084_v46 = vsel %vm11664_vm11, %v11527_v60, %v4080_v31  ;;  %v3865_v22 = vsel %vm11615_vm5, %v3864_v38, %v3860_v0 }
 0x412   :  { %vm4068_vm10 = vweird.f32 %v6655_v32  ;;  %v5662_v20 = vpop.f32.mrf.mxu1  ;;  %v4854_v36 = vpack.c.bf16 %v4726_v3, %v4726_v3  ;;  %v4316_v45 = vsub.f32 1.0, %v4315_v34  ;;  %v4855_v4 = vpack.c.bf16 %v4727_v57, %v4727_v57  ;;  %v11687_v44 = vpop.xlane.xlu0 %2813 }
 0x413   :  { %v4065_v29 = vmul.f32 %v6655_v32, %v4064_v61  ;;  %6055 = vst [vmem:[#allocation9 + $0x288] sm:$0xff] %v5662_v20  ;;  %v4742_v9 = vmul.f32 %v10662_v14, %v4523_v35  ;;  %v4074_v47 = vor.u32 1.1754944e-38, %v4073_v28  ;;  %v4743_v63 = vmul.f32 %v10669_v7, %v4537_v56  ;;  %vm11692_vm12 = vmor %vm4067_vm7, %vm4068_vm10 }
 0x414   :  { %v5724_v40 = vunpack.c.l.b16 %v4854_v36  ;;  %v4694_v53 = vmul.f32 %v13121_v19, %v3851_v21  ;;  %v4089_v60 = vsel %vm11611_vm3, %v11545_v58, %v4084_v46  ;;  %v4317_v10 = vmul.f32 %v11647_v52, %v4316_v45  ;;  %v5802_v11 = vpop.f32.mrf.mxu2  ;;  %v13127_v36 = vld [vmem:[#allocation49_spill] sm:$0xff] }
 0x415   :  { %v4066_v1 = vadd.f32 %v6655_v32, %v4065_v29  ;;  %v4325_v26 = vand.u32 2147483648, %v11584_v48  ;;  %v5725_v7 = vunpack.c.l.b16 %v4855_v4  ;;  %6072 = vst [vmem:[#allocation9 + $0x310] sm:$0xff] %v5802_v11  ;;  %v4870_v21 = vpack.c.bf16 %v4742_v9, %v4742_v9 }
 0x416   :  { %v6659_v31 = vpop.eup %6658  ;;  %v4871_v58 = vpack.c.bf16 %v4743_v63, %v4743_v63  ;;  %v4695_v18 = vmul.f32 %v9696_v25, %v3865_v22  ;;  %v4318_v38 = vadd.f32 %v11647_v52, %v4317_v10  ;;  %vm4320_vm13 = vweird.f32 %v11647_v52 }
 0x417   :  { %v4070_v17 = vsel %vm11692_vm12, %v6655_v32, %v4066_v1  ;;  %v4329_v3 = vmul.f32 %v6659_v31, %v11643_v37  ;;  %v11702_v6 = vpop.xlane.xlu2 %2669  ;;  %v4323_v5 = vand.u32 2147483647, %v11584_v48  ;;  %v5736_v43 = vpack.c.b16 %v5725_v7, %v5724_v40  ;;  %v13124_v32 = vld [vmem:[#allocation55_spill] sm:$0xff]  ;;  %vm11711_vm14 = vmor %vm4319_vm8, %vm4320_vm13 }
 0x418   :  { %6660 = vrcp.f32 %v11702_v6  ;;  %v4822_v42 = vpack.c.bf16 %v4694_v53, %v4694_v53  ;;  %v4075_v25 = vsel %vm11654_vm9, %v4074_v47, %v4070_v17  ;;  %v4326_v12 = vor.u32 1.1754944e-38, %v4325_v26 }
 0x419   :  { %v4330_v57 = vsub.f32 1.0, %v4329_v3  ;;  %v4711_v35 = vmul.f32 %v13124_v32, %v4089_v60  ;;  %v4339_v8 = vand.u32 2147483648, %v11643_v37  ;;  %6174 = vmatmul.msk.bf16.gmra.mxu2 %vm1677_vm0, %v5736_v43  ;;  %v5861_v56 = vunpack.c.l.b16 %v4870_v21 }
 0x41a   :  { %v5862_v0 = vunpack.c.l.b16 %v4871_v58  ;;  %v4823_v61 = vpack.c.bf16 %v4695_v18, %v4695_v18  ;;  %v4322_v51 = vsel %vm11711_vm14, %v11647_v52, %v4318_v38  ;;  %vm4334_vm15 = vweird.f32 %v6659_v31  ;;  %v13128_v58 = vld [vmem:[#allocation63_spill] sm:$0xff]  ;;  %v13129_v18 = vld [vmem:[#allocation62_spill] sm:$0xff] }
 0x41b   :  { %v4331_v34 = vmul.f32 %v6659_v31, %v4330_v57  ;;  %v4337_v46 = vand.u32 2147483647, %v11643_v37  ;;  %v5450_v22 = vunpack.c.l.b16 %v4822_v42  ;;  %v4710_v29 = vmul.f32 %v13127_v36, %v4075_v25  ;;  %v11724_v47 = vpop.xlane.xlu1 %2816 }
 0x41c   :  { %v5873_v48 = vpack.c.b16 %v5862_v0, %v5861_v56  ;;  %v5451_v20 = vunpack.c.l.b16 %v4823_v61  ;;  %vm4333_vm4 = vweird.f32 %v11643_v37  ;;  %v5804_v4 = vpop.f32.mrf.mxu2  ;;  %v4839_v9 = vpack.c.bf16 %v4711_v35, %v4711_v35  ;;  %v11733_v10 = vpop.xlane.xlu0 %2672 }
 0x41d   :  { %v4332_v45 = vadd.f32 %v6659_v31, %v4331_v34  ;;  %6662 = vrcp.f32 %v11687_v44  ;;  %vm4324_vm3 = vcmp.eq.f32.partialorder %v4323_v5, 8.507059e+37  ;;  %vm4335_vm5 = vmor %vm4333_vm4, %vm4334_vm15  ;;  %v4340_v52 = vor.u32 1.1754944e-38, %v4339_v8  ;;  %6073 = vst [vmem:[#allocation9 + $0x318] sm:$0xff] %v5804_v4 }
 0x41e   :  { %v11726_v40 = vpop.eup %6660  ;;  %6182 = vmatmul.msk.bf16.gmra.mxu3 %vm1677_vm0, %v5873_v48  ;;  %v5462_v63 = vpack.c.b16 %v5451_v20, %v5450_v22  ;;  %v4838_v19 = vpack.c.bf16 %v4710_v29, %v4710_v29  ;;  %v4327_v53 = vsel %vm4324_vm3, %v4326_v12, %v4322_v51  ;;  %vm4338_vm1 = vcmp.eq.f32.partialorder %v4337_v46, 8.507059e+37  ;;  %v13143_v29 = vld [vmem:[#allocation35_spill] sm:$0xff] }
 0x41f   :  { %v4336_v60 = vsel %vm4335_vm5, %v6659_v31, %v4332_v45  ;;  %v3867_v37 = vmul.f32 %v11726_v40, %v11702_v6  ;;  %v11731_v1 = vpop.xlane.xlu2 %2720  ;;  %v3875_v14 = vand.u32 2147483647, %v11702_v6  ;;  %v5588_v21 = vunpack.c.l.b16 %v4839_v9 }
 0x420   :  { %v4341_v26 = vsel %vm4338_vm1, %v4340_v52, %v4336_v60  ;;  %6158 = vmatmul.msk.bf16.gmra.mxu0 %vm1677_vm0, %v5462_v63  ;;  %6664 = vrcp.f32 %v11731_v1  ;;  %v5587_v7 = vunpack.c.l.b16 %v4838_v19  ;;  %v4728_v31 = vmul.f32 %v13128_v58, %v4327_v53 }
 0x421   :  { %v3868_v11 = vsub.f32 1.0, %v3867_v37  ;;  %v4729_v17 = vmul.f32 %v13129_v18, %v4341_v26  ;;  %6666 = vrcp.f32 %v11733_v10  ;;  %vm3871_vm2 = vweird.f32 %v11702_v6 }
 0x422   :  { %v3877_v5 = vand.u32 2147483648, %v11702_v6  ;;  %v5599_v43 = vpack.c.b16 %v5588_v21, %v5587_v7  ;;  %v4547_v25 = vand.u32 2147483647, %v11687_v44  ;;  %v4856_v12 = vpack.c.bf16 %v4728_v31, %v4728_v31 }
 0x423   :  { %v6663_v38 = vpop.eup %6662  ;;  %v3869_v3 = vmul.f32 %v11726_v40, %v3868_v11  ;;  %v4857_v57 = vpack.c.bf16 %v4729_v17, %v4729_v17  ;;  %vm3872_vm7 = vweird.f32 %v11726_v40  ;;  %vm11747_vm6 = vcmp.eq.f32.partialorder %v3875_v14, 8.507059e+37 }
 0x424   :  { %v4539_v42 = vmul.f32 %v6663_v38, %v11687_v44  ;;  %6166 = vmatmul.msk.bf16.gmra.mxu1 %vm1677_vm0, %v5599_v43  ;;  %v4549_v35 = vand.u32 2147483648, %v11687_v44  ;;  %6668 = vrcp.f32 %v11724_v47  ;;  %v5726_v0 = vunpack.c.l.b16 %v4856_v12  ;;  %vm11771_vm10 = vmor %vm3871_vm2, %vm3872_vm7 }
 0x425   :  { %v3870_v8 = vadd.f32 %v11726_v40, %v3869_v3  ;;  %v5727_v61 = vunpack.c.l.b16 %v4857_v57  ;;  %v3878_v51 = vor.u32 1.1754944e-38, %v3877_v5  ;;  %v4113_v46 = vand.u32 2147483647, %v11731_v1 }
 0x426   :  { %v11754_v28 = vpop.eup %6664  ;;  %v4540_v56 = vsub.f32 1.0, %v4539_v42  ;;  %vm4543_vm9 = vweird.f32 %v11687_v44  ;;  %v11761_v22 = vpop.xlane.xlu1 %2717  ;;  %vm4544_vm11 = vweird.f32 %v6663_v38  ;;  %vm11763_vm8 = vcmp.eq.f32.partialorder %v4547_v25, 8.507059e+37 }
 0x427   :  { %v4105_v34 = vmul.f32 %v11754_v28, %v11731_v1  ;;  %v5528_v48 = vpop.f32.mrf.mxu0  ;;  %v6667_v20 = vpop.eup %6666  ;;  %v5737_v45 = vpack.c.b16 %v5727_v61, %v5726_v0  ;;  %vm4109_vm12 = vweird.f32 %v11731_v1  ;;  %v4115_v52 = vand.u32 2147483648, %v11731_v1  ;;  %vm11791_vm14 = vmor %vm4543_vm9, %vm4544_vm11 }
 0x428   :  { %v4541_v36 = vmul.f32 %v6663_v38, %v4540_v56  ;;  %6040 = vst [vmem:[#allocation9 + $0x210] sm:$0xff] %v5528_v48  ;;  %v3881_v63 = vmul.f32 %v6667_v20, %v11733_v10  ;;  %v3874_v19 = vsel %vm11771_vm10, %v11726_v40, %v3870_v8  ;;  %v4550_v60 = vor.u32 1.1754944e-38, %v4549_v35 }
 0x429   :  { %v4106_v9 = vsub.f32 1.0, %v4105_v34  ;;  %6175 = vmatmul.msk.bf16.gmra.mxu2 %vm1677_vm0, %v5737_v45  ;;  %6670 = vrcp.f32 %v11761_v22  ;;  %vm11784_vm13 = vcmp.eq.f32.partialorder %v4113_v46, 8.507059e+37  ;;  %v3889_v14 = vand.u32 2147483647, %v11733_v10  ;;  %v13142_v34 = vld [vmem:[#allocation85_spill] sm:$0xff] }
 0x42a   :  { %v4542_v53 = vadd.f32 %v6663_v38, %v4541_v36  ;;  %v6669_v6 = vpop.eup %6668  ;;  %v3882_v40 = vsub.f32 1.0, %v3881_v63  ;;  %vm4110_vm15 = vweird.f32 %v11754_v28  ;;  %v3891_v21 = vand.u32 2147483648, %v11733_v10 }
 0x42b   :  { %v4107_v37 = vmul.f32 %v11754_v28, %v4106_v9  ;;  %v4553_v58 = vmul.f32 %v6669_v6, %v11724_v47  ;;  %v3879_v31 = vsel %vm11747_vm6, %v3878_v51, %v3874_v19  ;;  %vm3886_vm4 = vweird.f32 %v6667_v20  ;;  %vm11808_vm5 = vmor %vm4109_vm12, %vm4110_vm15 }
 0x42c   :  { %v4546_v7 = vsel %vm11791_vm14, %v6663_v38, %v4542_v53  ;;  %v3883_v18 = vmul.f32 %v6667_v20, %v3882_v40  ;;  %v4116_v17 = vor.u32 1.1754944e-38, %v4115_v52  ;;  %vm3885_vm3 = vweird.f32 %v11733_v10 }
 0x42d   :  { %v4108_v44 = vadd.f32 %v11754_v28, %v4107_v37  ;;  %v4554_v3 = vsub.f32 1.0, %v4553_v58  ;;  %v4561_v5 = vand.u32 2147483647, %v11724_v47  ;;  %v4551_v43 = vsel %vm11763_vm8, %v4550_v60, %v4546_v7  ;;  %vm3887_vm2 = vmor %vm3885_vm3, %vm3886_vm4  ;;  %v13144_v60 = vld [vmem:[#allocation34_spill] sm:$0xff] }
 0x42e   :  { %v3884_v42 = vadd.f32 %v6667_v20, %v3883_v18  ;;  %vm4557_vm1 = vweird.f32 %v11724_v47  ;;  %v4563_v25 = vand.u32 2147483648, %v11724_v47  ;;  %v3892_v10 = vor.u32 1.1754944e-38, %v3891_v21 }
 0x42f   :  { %v5530_v12 = vpop.f32.mrf.mxu0  ;;  %v6671_v57 = vpop.eup %6670  ;;  %v4555_v32 = vmul.f32 %v6669_v6, %v4554_v3  ;;  %vm4558_vm7 = vweird.f32 %v6669_v6  ;;  %v4696_v1 = vmul.f32 %v13023_v62, %v3879_v31  ;;  %v4112_v35 = vsel %vm11808_vm5, %v11754_v28, %v4108_v44 }
 0x430   :  { %6041 = vst [vmem:[#allocation9 + $0x218] sm:$0xff] %v5530_v12  ;;  %v3888_v8 = vsel %vm3887_vm2, %v6667_v20, %v3884_v42  ;;  %vm3890_vm6 = vcmp.eq.f32.partialorder %v3889_v14, 8.507059e+37  ;;  %v4091_v56 = vmul.f32 %v6671_v57, %v11761_v22  ;;  %vm4562_vm9 = vcmp.eq.f32.partialorder %v4561_v5, 8.507059e+37  ;;  %vm4559_vm11 = vmor %vm4557_vm1, %vm4558_vm7 }
 0x431   :  { %v3893_v0 = vsel %vm3890_vm6, %v3892_v10, %v3888_v8  ;;  %v4556_v61 = vadd.f32 %v6669_v6, %v4555_v32  ;;  %v4744_v46 = vmul.f32 %v13142_v34, %v4551_v43  ;;  %v4564_v48 = vor.u32 1.1754944e-38, %v4563_v25  ;;  %v13146_v43 = vld [vmem:[#allocation38_spill] sm:$0xff] }
 0x432   :  { %v5939_v51 = vpop.f32.mrf.mxu3  ;;  %v4092_v36 = vsub.f32 1.0, %v4091_v56  ;;  %v4099_v62 = vand.u32 2147483647, %v11761_v22  ;;  %v4697_v28 = vmul.f32 %v13143_v29, %v3893_v0  ;;  %v4117_v20 = vsel %vm11784_vm13, %v4116_v17, %v4112_v35 }
 0x433   :  { %6088 = vst [vmem:[#allocation9 + $0x390] sm:$0xff] %v5939_v51  ;;  %v4560_v45 = vsel %vm4559_vm11, %v6669_v6, %v4556_v61  ;;  %v4101_v4 = vand.u32 2147483648, %v11761_v22  ;;  %v4824_v52 = vpack.c.bf16 %v4696_v1, %v4696_v1  ;;  %vm4096_vm8 = vweird.f32 %v6671_v57  ;;  %v13145_v6 = vld [vmem:[#allocation56_spill] sm:$0xff] }
 0x434   :  { %v11829_v9 = vpop.xlane.xlu2 %2819  ;;  %v4565_v63 = vsel %vm4562_vm9, %v4564_v48, %v4560_v45  ;;  %v4093_v19 = vmul.f32 %v6671_v57, %v4092_v36  ;;  %v4825_v53 = vpack.c.bf16 %v4697_v28, %v4697_v28  ;;  %v4872_v11 = vpack.c.bf16 %v4744_v46, %v4744_v46 }
 0x435   :  { %6672 = vrcp.f32 %v11829_v9  ;;  %v4745_v37 = vmul.f32 %v13144_v60, %v4565_v63  ;;  %vm4095_vm10 = vweird.f32 %v11761_v22  ;;  %v4713_v26 = vmul.f32 %v13145_v6, %v4117_v20 }
 0x436   :  { %v4094_v40 = vadd.f32 %v6671_v57, %v4093_v19  ;;  %vm4097_vm12 = vmor %vm4095_vm10, %vm4096_vm8  ;;  %v4102_v14 = vor.u32 1.1754944e-38, %v4101_v4  ;;  %v5453_v7 = vunpack.c.l.b16 %v4825_v53  ;;  %vm4100_vm13 = vcmp.eq.f32.partialorder %v4099_v62, 8.507059e+37 }
 0x437   :  { %v5665_v47 = vpop.f32.mrf.mxu1  ;;  %v4873_v21 = vpack.c.bf16 %v4745_v37, %v4745_v37  ;;  %v5452_v44 = vunpack.c.l.b16 %v4824_v52  ;;  %v5863_v3 = vunpack.c.l.b16 %v4872_v11  ;;  %v4841_v25 = vpack.c.bf16 %v4713_v26, %v4713_v26 }
 0x438   :  { %6056 = vst [vmem:[#allocation9 + $0x290] sm:$0xff] %v5665_v47  ;;  %v4098_v58 = vsel %vm4097_vm12, %v6671_v57, %v4094_v40  ;;  %v4575_v29 = vand.u32 2147483647, %v11829_v9  ;;  %v4577_v28 = vand.u32 2147483648, %v11829_v9  ;;  %vm4571_vm15 = vweird.f32 %v11829_v9 }
 0x439   :  { %v4103_v18 = vsel %vm4100_vm13, %v4102_v14, %v4098_v58  ;;  %v5463_v22 = vpack.c.b16 %v5453_v7, %v5452_v44  ;;  %v5864_v38 = vunpack.c.l.b16 %v4873_v21  ;;  %v5590_v35 = vunpack.c.l.b16 %v4841_v25 }
 0x43a   :  { %v11835_v31 = vpop.xlane.xlu0 %2771  ;;  %v5941_v17 = vpop.f32.mrf.mxu3  ;;  %v4712_v42 = vmul.f32 %v13146_v43, %v4103_v18  ;;  %vm11872_vm4 = vcmp.eq.f32.partialorder %v4575_v29, 8.507059e+37  ;;  %v4578_v6 = vor.u32 1.1754944e-38, %v4577_v28 }
 0x43b   :  { %6674 = vrcp.f32 %v11835_v31  ;;  %v11838_v5 = vpop.eup %6672  ;;  %6089 = vst [vmem:[#allocation9 + $0x398] sm:$0xff] %v5941_v17  ;;  %6159 = vmatmul.msk.bf16.gmra.mxu0 %vm1677_vm0, %v5463_v22  ;;  %v5874_v57 = vpack.c.b16 %v5864_v38, %v5863_v3  ;;  %v4351_v63 = vand.u32 2147483647, %v11835_v31  ;;  %v4353_v19 = vand.u32 2147483648, %v11835_v31 }
 0x43c   :  { %v4567_v12 = vmul.f32 %v11838_v5, %v11829_v9  ;;  %v4840_v10 = vpack.c.bf16 %v4712_v42, %v4712_v42  ;;  %vm4572_vm14 = vweird.f32 %v11838_v5  ;;  %vm4347_vm1 = vweird.f32 %v11835_v31 }
 0x43d   :  { %6183 = vmatmul.msk.bf16.gmra.mxu3 %vm1677_vm0, %v5874_v57  ;;  %vm11882_vm3 = vmor %vm4571_vm15, %vm4572_vm14  ;;  %vm11894_vm2 = vcmp.eq.f32.partialorder %v4351_v63, 8.507059e+37  ;;  %v4354_v18 = vor.u32 1.1754944e-38, %v4353_v19 }
 0x43e   :  { %v5589_v1 = vunpack.c.l.b16 %v4840_v10  ;;  %v4568_v56 = vsub.f32 1.0, %v4567_v12 }
 0x43f   :  { %v5667_v32 = vpop.f32.mrf.mxu1 }
 0x440   :  { %6057 = vst [vmem:[#allocation9 + $0x298] sm:$0xff] %v5667_v32  ;;  %v5600_v61 = vpack.c.b16 %v5590_v35, %v5589_v1  ;;  %v4569_v36 = vmul.f32 %v11838_v5, %v4568_v56 }
 0x441   :  { %v11845_v8 = vpop.eup %6674 }
 0x442   :  { %v4343_v0 = vmul.f32 %v11845_v8, %v11835_v31  ;;  %6167 = vmatmul.msk.bf16.gmra.mxu1 %vm1677_vm0, %v5600_v61  ;;  %v4570_v4 = vadd.f32 %v11838_v5, %v4569_v36  ;;  %vm4348_vm5 = vweird.f32 %v11845_v8 }
 0x443   :  { %vm11900_vm7 = vmor %vm4347_vm1, %vm4348_vm5 }
 0x444   :  { %v11849_v51 = vpop.xlane.xlu2 %2678  ;;  %v11851_v34 = vpop.xlane.xlu1 %2774  ;;  %v4344_v48 = vsub.f32 1.0, %v4343_v0  ;;  %v4574_v14 = vsel %vm11882_vm3, %v11838_v5, %v4570_v4 }
 0x445   :  { %6676 = vrcp.f32 %v11849_v51  ;;  %v11854_v46 = vpop.xlane.xlu0 %2822  ;;  %v4365_v17 = vand.u32 2147483647, %v11851_v34  ;;  %v4367_v3 = vand.u32 2147483648, %v11851_v34  ;;  %v4579_v43 = vsel %vm11872_vm4, %v4578_v6, %v4574_v14 }
 0x446   :  { %6678 = vrcp.f32 %v11851_v34  ;;  %v5807_v62 = vpop.f32.mrf.mxu2  ;;  %v4345_v20 = vmul.f32 %v11845_v8, %v4344_v48  ;;  %vm3913_vm9 = vweird.f32 %v11849_v51  ;;  %vm4361_vm11 = vweird.f32 %v11851_v34 }
 0x447   :  { %6074 = vst [vmem:[#allocation9 + $0x320] sm:$0xff] %v5807_v62  ;;  %6680 = vrcp.f32 %v11854_v46  ;;  %v4591_v25 = vand.u32 2147483648, %v11854_v46  ;;  %v4589_v1 = vand.u32 2147483647, %v11854_v46  ;;  %vm4366_vm12 = vcmp.eq.f32.partialorder %v4365_v17, 8.507059e+37 }
 0x448   :  { %v4346_v26 = vadd.f32 %v11845_v8, %v4345_v20  ;;  %vm4585_vm13 = vweird.f32 %v11854_v46  ;;  %v3917_v17 = vand.u32 2147483647, %v11849_v51 }
 0x449   :  { %v4592_v28 = vor.u32 1.1754944e-38, %v4591_v25  ;;  %vm4590_vm15 = vcmp.eq.f32.partialorder %v4589_v1, 8.507059e+37 }
 0x44a   :  { %v4350_v42 = vsel %vm11900_vm7, %v11845_v8, %v4346_v26  ;;  %v4368_v8 = vor.u32 1.1754944e-38, %v4367_v3  ;;  %vm3918_vm7 = vcmp.eq.f32.partialorder %v3917_v17, 8.507059e+37 }
 0x44b   :  { %v11863_v45 = vpop.eup %6676 }
 0x44c   :  { %v6679_v52 = vpop.eup %6678  ;;  %v11870_v47 = vpop.xlane.xlu1 %2675  ;;  %v3909_v60 = vmul.f32 %v11863_v45, %v11849_v51  ;;  %vm3914_vm4 = vweird.f32 %v11863_v45 }
 0x44d   :  { %v4357_v37 = vmul.f32 %v6679_v52, %v11851_v34  ;;  %6682 = vrcp.f32 %v11870_v47  ;;  %v11880_v11 = vpop.xlane.xlu0 %2723  ;;  %v6681_v9 = vpop.eup %6680  ;;  %vm4362_vm6 = vweird.f32 %v6679_v52  ;;  %v4355_v34 = vsel %vm11894_vm2, %v4354_v18, %v4350_v42  ;;  %vm11945_vm1 = vmor %vm3913_vm9, %vm3914_vm4 }
 0x44e   :  { %6684 = vrcp.f32 %v11880_v11  ;;  %v4581_v21 = vmul.f32 %v6681_v9, %v11854_v46  ;;  %v5809_v58 = vpop.f32.mrf.mxu2  ;;  %v3910_v5 = vsub.f32 1.0, %v3909_v60  ;;  %vm4586_vm8 = vweird.f32 %v6681_v9  ;;  %vm4363_vm10 = vmor %vm4361_vm11, %vm4362_vm6 }
 0x44f   :  { %v4358_v7 = vsub.f32 1.0, %v4357_v37  ;;  %6075 = vst [vmem:[#allocation9 + $0x328] sm:$0xff] %v5809_v58  ;;  %vm4587_vm14 = vmor %vm4585_vm13, %vm4586_vm8  ;;  %v3919_v46 = vand.u32 2147483648, %v11849_v51  ;;  %v4730_v60 = vmul.f32 %v11159_v59, %v4355_v34  ;;  %vm3899_vm5 = vweird.f32 %v11870_v47 }
 0x450   :  { %v4582_v38 = vsub.f32 1.0, %v4581_v21  ;;  %v3911_v48 = vmul.f32 %v11863_v45, %v3910_v5  ;;  %v3903_v3 = vand.u32 2147483647, %v11870_v47  ;;  %vm4123_vm8 = vweird.f32 %v11880_v11 }
 0x451   :  { %v4359_v31 = vmul.f32 %v6679_v52, %v4358_v7  ;;  %v4858_v14 = vpack.c.bf16 %v4730_v60, %v4730_v60 }
 0x452   :  { %v5533_v12 = vpop.f32.mrf.mxu0  ;;  %v4583_v32 = vmul.f32 %v6681_v9, %v4582_v38  ;;  %v5944_v35 = vpop.f32.mrf.mxu3  ;;  %v3912_v37 = vadd.f32 %v11863_v45, %v3911_v48  ;;  %vm3904_vm6 = vcmp.eq.f32.partialorder %v3903_v3, 8.507059e+37 }
 0x453   :  { %v11912_v57 = vpop.eup %6682  ;;  %v4360_v10 = vadd.f32 %v6679_v52, %v4359_v31  ;;  %6042 = vst [vmem:[#allocation9 + $0x220] sm:$0xff] %v5533_v12  ;;  %v5728_v38 = vunpack.c.l.b16 %v4858_v14  ;;  %v3920_v12 = vor.u32 1.1754944e-38, %v3919_v46 }
 0x454   :  { %v11915_v56 = vpop.eup %6684  ;;  %v3895_v0 = vmul.f32 %v11912_v57, %v11870_v47  ;;  %6090 = vst [vmem:[#allocation9 + $0x3a0] sm:$0xff] %v5944_v35  ;;  %v11921_v61 = vpop.xlane.xlu1 %2726  ;;  %v4584_v62 = vadd.f32 %v6681_v9, %v4583_v32  ;;  %vm3900_vm3 = vweird.f32 %v11912_v57  ;;  %v3916_v5 = vsel %vm11945_vm1, %v11863_v45, %v3912_v37 }
 0x455   :  { %v4364_v36 = vsel %vm4363_vm10, %v6679_v52, %v4360_v10  ;;  %6686 = vrcp.f32 %v11921_v61  ;;  %v4119_v63 = vmul.f32 %v11915_v56, %v11880_v11  ;;  %vm11953_vm2 = vmor %vm3899_vm5, %vm3900_vm3  ;;  %vm4124_vm9 = vweird.f32 %v11915_v56 }
 0x456   :  { %v4369_v29 = vsel %vm4366_vm12, %v4368_v8, %v4364_v36  ;;  %v3896_v20 = vsub.f32 1.0, %v3895_v0  ;;  %v4588_v4 = vsel %vm4587_vm14, %v6681_v9, %v4584_v62  ;;  %v4746_v9 = vmul.f32 %v11126_v54, %v4579_v43  ;;  %vm11980_vm10 = vmor %vm4123_vm8, %vm4124_vm9 }
 0x457   :  { %v4593_v19 = vsel %vm4590_vm15, %v4592_v28, %v4588_v4  ;;  %v4731_v40 = vmul.f32 %v11209_v39, %v4369_v29  ;;  %v3905_v39 = vand.u32 2147483648, %v11870_v47  ;;  %v4120_v21 = vsub.f32 1.0, %v4119_v63 }
 0x458   :  { %v3897_v52 = vmul.f32 %v11912_v57, %v3896_v20  ;;  %v5670_v53 = vpop.f32.mrf.mxu1  ;;  %v4747_v7 = vmul.f32 %v11228_v55, %v4593_v19  ;;  %v4874_v44 = vpack.c.bf16 %v4746_v9, %v4746_v9  ;;  %v3921_v8 = vsel %vm3918_vm7, %v3920_v12, %v3916_v5 }
 0x459   :  { %6058 = vst [vmem:[#allocation9 + $0x2a0] sm:$0xff] %v5670_v53  ;;  %v4859_v58 = vpack.c.bf16 %v4731_v40, %v4731_v40  ;;  %v3906_v10 = vor.u32 1.1754944e-38, %v3905_v39  ;;  %v4121_v47 = vmul.f32 %v11915_v56, %v4120_v21  ;;  %v4699_v29 = vmul.f32 %v10839_v50, %v3921_v8 }
 0x45a   :  { %v3898_v6 = vadd.f32 %v11912_v57, %v3897_v52  ;;  %v5535_v26 = vpop.f32.mrf.mxu0  ;;  %v5946_v54 = vpop.f32.mrf.mxu3  ;;  %v4875_v22 = vpack.c.bf16 %v4747_v7, %v4747_v7  ;;  %v5865_v42 = vunpack.c.l.b16 %v4874_v44  ;;  %v4129_v28 = vand.u32 2147483648, %v11880_v11 }
 0x45b   :  { %6043 = vst [vmem:[#allocation9 + $0x228] sm:$0xff] %v5535_v26  ;;  %v6687_v18 = vpop.eup %6686  ;;  %v5729_v43 = vunpack.c.l.b16 %v4859_v58  ;;  %v4122_v48 = vadd.f32 %v11915_v56, %v4121_v47  ;;  %v4143_v20 = vand.u32 2147483648, %v11921_v61  ;;  %v4127_v63 = vand.u32 2147483647, %v11880_v11 }
 0x45c   :  { %6091 = vst [vmem:[#allocation9 + $0x3a8] sm:$0xff] %v5946_v54  ;;  %v3902_v31 = vsel %vm11953_vm2, %v11912_v57, %v3898_v6  ;;  %v4133_v51 = vmul.f32 %v6687_v18, %v11921_v61  ;;  %v5866_v25 = vunpack.c.l.b16 %v4875_v22  ;;  %vm4138_vm11 = vweird.f32 %v6687_v18 }
 0x45d   :  { %v5738_v35 = vpack.c.b16 %v5729_v43, %v5728_v38  ;;  %v3907_v0 = vsel %vm3904_vm6, %v3906_v10, %v3902_v31  ;;  %vm4137_vm12 = vweird.f32 %v11921_v61  ;;  %v4827_v52 = vpack.c.bf16 %v4699_v29, %v4699_v29 }
 0x45e   :  { %v4134_v32 = vsub.f32 1.0, %v4133_v51  ;;  %v5875_v45 = vpack.c.b16 %v5866_v25, %v5865_v42  ;;  %v4698_v62 = vmul.f32 %v10804_v2, %v3907_v0  ;;  %v4141_v2 = vand.u32 2147483647, %v11921_v61  ;;  %vm11988_vm13 = vmor %vm4137_vm12, %vm4138_vm11 }
 0x45f   :  { %6176 = vmatmul.msk.bf16.gmra.mxu2 %vm1677_vm0, %v5738_v35  ;;  %v4126_v53 = vsel %vm11980_vm10, %v11915_v56, %v4122_v48  ;;  %v4130_v37 = vor.u32 1.1754944e-38, %v4129_v28  ;;  %v4144_v40 = vor.u32 1.1754944e-38, %v4143_v20  ;;  %vm4128_vm14 = vcmp.eq.f32.partialorder %v4127_v63, 8.507059e+37 }
 0x460   :  { %v5672_v1 = vpop.f32.mrf.mxu1  ;;  %v4135_v34 = vmul.f32 %v6687_v18, %v4134_v32  ;;  %6184 = vmatmul.msk.bf16.gmra.mxu3 %vm1677_vm0, %v5875_v45  ;;  %v4826_v19 = vpack.c.bf16 %v4698_v62, %v4698_v62  ;;  %vm4142_vm15 = vcmp.eq.f32.partialorder %v4141_v2, 8.507059e+37  ;;  %v5455_v26 = vunpack.c.l.b16 %v4827_v52 }
 0x461   :  { %6059 = vst [vmem:[#allocation9 + $0x2a8] sm:$0xff] %v5672_v1  ;;  %v4131_v14 = vsel %vm4128_vm14, %v4130_v37, %v4126_v53 }
 0x462   :  { %v11966_v57 = vpop.xlane.xlu1 %2825  ;;  %v4136_v36 = vadd.f32 %v6687_v18, %v4135_v34  ;;  %v5454_v61 = vunpack.c.l.b16 %v4826_v19  ;;  %v4714_v54 = vmul.f32 %v10785_v24, %v4131_v14 }
 0x463   :  { %6688 = vrcp.f32 %v11966_v57  ;;  %v4603_v3 = vand.u32 2147483647, %v11966_v57  ;;  %v4605_v38 = vand.u32 2147483648, %v11966_v57  ;;  %vm4599_vm5 = vweird.f32 %v11966_v57 }
 0x464   :  { %v4140_v60 = vsel %vm11988_vm13, %v6687_v18, %v4136_v36  ;;  %v5464_v59 = vpack.c.b16 %v5455_v26, %v5454_v61  ;;  %v4842_v51 = vpack.c.bf16 %v4714_v54, %v4714_v54 }
 0x465   :  { %v11978_v46 = vpop.xlane.xlu2 %2777  ;;  %v4145_v7 = vsel %vm4142_vm15, %v4144_v40, %v4140_v60  ;;  %vm12033_vm7 = vcmp.eq.f32.partialorder %v4603_v3, 8.507059e+37  ;;  %v4606_v48 = vor.u32 1.1754944e-38, %v4605_v38 }
 0x466   :  { %6690 = vrcp.f32 %v11978_v46  ;;  %6160 = vmatmul.msk.bf16.gmra.mxu0 %vm1677_vm0, %v5464_v59  ;;  %v4715_v58 = vmul.f32 %v10816_v13, %v4145_v7  ;;  %v4381_v42 = vand.u32 2147483648, %v11978_v46  ;;  %vm4375_vm3 = vweird.f32 %v11978_v46 }
 0x467   :  { %v4379_v12 = vand.u32 2147483647, %v11978_v46  ;;  %v5591_v8 = vunpack.c.l.b16 %v4842_v51 }
 0x468   :  { %v4843_v13 = vpack.c.bf16 %v4715_v58, %v4715_v58  ;;  %v4382_v36 = vor.u32 1.1754944e-38, %v4381_v42 }
 0x469   :  { %v11997_v11 = vpop.eup %6688  ;;  %vm4380_vm9 = vcmp.eq.f32.partialorder %v4379_v12, 8.507059e+37 }
 0x46a   :  { %v4595_v9 = vmul.f32 %v11997_v11, %v11966_v57  ;;  %v12001_v6 = vpop.xlane.xlu1 %2684  ;;  %vm4600_vm1 = vweird.f32 %v11997_v11  ;;  %v5592_v0 = vunpack.c.l.b16 %v4843_v13 }
 0x46b   :  { %6692 = vrcp.f32 %v12001_v6  ;;  %v3945_v10 = vand.u32 2147483647, %v12001_v6  ;;  %v3947_v29 = vand.u32 2147483648, %v12001_v6  ;;  %vm12043_vm6 = vmor %vm4599_vm5, %vm4600_vm1  ;;  %vm3941_vm11 = vweird.f32 %v12001_v6 }
 0x46c   :  { %v6691_v56 = vpop.eup %6690  ;;  %v4596_v39 = vsub.f32 1.0, %v4595_v9  ;;  %v5601_v4 = vpack.c.b16 %v5592_v0, %v5591_v8 }
 0x46d   :  { %v4371_v21 = vmul.f32 %v6691_v56, %v11978_v46  ;;  %vm4376_vm4 = vweird.f32 %v6691_v56  ;;  %vm12048_vm8 = vcmp.eq.f32.partialorder %v3945_v10, 8.507059e+37  ;;  %v3948_v9 = vor.u32 1.1754944e-38, %v3947_v29 }
 0x46e   :  { %v4597_v55 = vmul.f32 %v11997_v11, %v4596_v39  ;;  %vm12029_vm2 = vmor %vm4375_vm3, %vm4376_vm4  ;;  %6168 = vmatmul.msk.bf16.gmra.mxu1 %vm1677_vm0, %v5601_v4 }
 0x46f   :  { %v4372_v44 = vsub.f32 1.0, %v4371_v21 }
 0x470   :  { %v5812_v18 = vpop.f32.mrf.mxu2  ;;  %v4598_v47 = vadd.f32 %v11997_v11, %v4597_v55 }
 0x471   :  { %v12008_v17 = vpop.eup %6692  ;;  %v4373_v22 = vmul.f32 %v6691_v56, %v4372_v44  ;;  %v12012_v5 = vpop.xlane.xlu0 %2780  ;;  %6076 = vst [vmem:[#allocation9 + $0x330] sm:$0xff] %v5812_v18 }
 0x472   :  { %6694 = vrcp.f32 %v12012_v5  ;;  %v12015_v31 = vpop.xlane.xlu2 %2828  ;;  %v5538_v24 = vpop.f32.mrf.mxu0  ;;  %v3937_v25 = vmul.f32 %v12008_v17, %v12001_v6  ;;  %v4602_v2 = vsel %vm12043_vm6, %v11997_v11, %v4598_v47  ;;  %v4393_v19 = vand.u32 2147483647, %v12012_v5 }
 0x473   :  { %v4374_v43 = vadd.f32 %v6691_v56, %v4373_v22  ;;  %6044 = vst [vmem:[#allocation9 + $0x230] sm:$0xff] %v5538_v24  ;;  %6696 = vrcp.f32 %v12015_v31  ;;  %v4395_v60 = vand.u32 2147483648, %v12012_v5  ;;  %vm3942_vm10 = vweird.f32 %v12008_v17 }
 0x474   :  { %v3938_v1 = vsub.f32 1.0, %v3937_v25  ;;  %vm4389_vm12 = vweird.f32 %v12012_v5  ;;  %v4617_v7 = vand.u32 2147483647, %v12015_v31  ;;  %v4607_v39 = vsel %vm12033_vm7, %v4606_v48, %v4602_v2  ;;  %vm12078_vm14 = vmor %vm3941_vm11, %vm3942_vm10 }
 0x475   :  { %v4378_v45 = vsel %vm12029_vm2, %v6691_v56, %v4374_v43  ;;  %v4619_v56 = vand.u32 2147483648, %v12015_v31  ;;  %vm12082_vm15 = vcmp.eq.f32.partialorder %v4393_v19, 8.507059e+37  ;;  %v4396_v18 = vor.u32 1.1754944e-38, %v4395_v60 }
 0x476   :  { %v5949_v34 = vpop.f32.mrf.mxu3  ;;  %v3939_v62 = vmul.f32 %v12008_v17, %v3938_v1  ;;  %v4383_v50 = vsel %vm4380_vm9, %v4382_v36, %v4378_v45  ;;  %vm4613_vm4 = vweird.f32 %v12015_v31  ;;  %vm12093_vm1 = vcmp.eq.f32.partialorder %v4617_v7, 8.507059e+37 }
 0x477   :  { %6092 = vst [vmem:[#allocation9 + $0x3b0] sm:$0xff] %v5949_v34  ;;  %v4732_v59 = vmul.f32 %v11409_v27, %v4383_v50  ;;  %v4620_v13 = vor.u32 1.1754944e-38, %v4619_v56 }
 0x478   :  { %v6695_v28 = vpop.eup %6694  ;;  %v5814_v63 = vpop.f32.mrf.mxu2  ;;  %v3940_v37 = vadd.f32 %v12008_v17, %v3939_v62 }
 0x479   :  { %v4385_v57 = vmul.f32 %v6695_v28, %v12012_v5  ;;  %v12057_v52 = vpop.xlane.xlu0 %2681  ;;  %6077 = vst [vmem:[#allocation9 + $0x338] sm:$0xff] %v5814_v63  ;;  %v6697_v53 = vpop.eup %6696  ;;  %vm4390_vm13 = vweird.f32 %v6695_v28  ;;  %v4860_v38 = vpack.c.bf16 %v4732_v59, %v4732_v59 }
 0x47a   :  { %6698 = vrcp.f32 %v12057_v52  ;;  %v12063_v40 = vpop.xlane.xlu2 %2729  ;;  %v5540_v11 = vpop.f32.mrf.mxu0  ;;  %v4609_v26 = vmul.f32 %v6697_v53, %v12015_v31  ;;  %v3944_v27 = vsel %vm12078_vm14, %v12008_v17, %v3940_v37  ;;  %vm4614_vm3 = vweird.f32 %v6697_v53  ;;  %vm4391_vm5 = vmor %vm4389_vm12, %vm4390_vm13 }
 0x47b   :  { %v4386_v61 = vsub.f32 1.0, %v4385_v57  ;;  %v5675_v14 = vpop.f32.mrf.mxu1  ;;  %6045 = vst [vmem:[#allocation9 + $0x238] sm:$0xff] %v5540_v11  ;;  %6700 = vrcp.f32 %v12063_v40  ;;  %v3931_v6 = vand.u32 2147483647, %v12057_v52  ;;  %v4748_v17 = vmul.f32 %v11396_v41, %v4607_v39  ;;  %vm4615_vm2 = vmor %vm4613_vm4, %vm4614_vm3 }
 0x47c   :  { %6060 = vst [vmem:[#allocation9 + $0x2b0] sm:$0xff] %v5675_v14  ;;  %v4610_v58 = vsub.f32 1.0, %v4609_v26  ;;  %v3949_v42 = vsel %vm12048_vm8, %v3948_v9, %v3944_v27  ;;  %vm3927_vm7 = vweird.f32 %v12057_v52  ;;  %v3933_v41 = vand.u32 2147483648, %v12057_v52 }
 0x47d   :  { %v4387_v21 = vmul.f32 %v6695_v28, %v4386_v61  ;;  %vm12111_vm6 = vcmp.eq.f32.partialorder %v3931_v6, 8.507059e+37  ;;  %v4701_v0 = vmul.f32 %v11351_v33, %v3949_v42  ;;  %v4157_v34 = vand.u32 2147483648, %v12063_v40 }
 0x47e   :  { %v5951_v55 = vpop.f32.mrf.mxu3  ;;  %v4611_v22 = vmul.f32 %v6697_v53, %v4610_v58  ;;  %v4155_v20 = vand.u32 2147483647, %v12063_v40  ;;  %v4876_v4 = vpack.c.bf16 %v4748_v17, %v4748_v17  ;;  %vm4151_vm10 = vweird.f32 %v12063_v40 }
 0x47f   :  { %v4388_v3 = vadd.f32 %v6695_v28, %v4387_v21  ;;  %6093 = vst [vmem:[#allocation9 + $0x3b8] sm:$0xff] %v5951_v55  ;;  %v4829_v19 = vpack.c.bf16 %v4701_v0, %v4701_v0  ;;  %v4158_v60 = vor.u32 1.1754944e-38, %v4157_v34 }
 0x480   :  { %v6699_v24 = vpop.eup %6698  ;;  %v4612_v25 = vadd.f32 %v6697_v53, %v4611_v22  ;;  %v5867_v9 = vunpack.c.l.b16 %v4876_v4  ;;  %vm4156_vm13 = vcmp.eq.f32.partialorder %v4155_v20, 8.507059e+37 }
 0x481   :  { %v4392_v43 = vsel %vm4391_vm5, %v6695_v28, %v4388_v3  ;;  %v3923_v12 = vmul.f32 %v6699_v24, %v12057_v52  ;;  %v12101_v10 = vpop.xlane.xlu0 %2732  ;;  %v6701_v47 = vpop.eup %6700  ;;  %vm3928_vm9 = vweird.f32 %v6699_v24  ;;  %v3934_v28 = vor.u32 1.1754944e-38, %v3933_v41 }
 0x482   :  { %v4397_v5 = vsel %vm12082_vm15, %v4396_v18, %v4392_v43  ;;  %6702 = vrcp.f32 %v12101_v10  ;;  %v4616_v32 = vsel %vm4615_vm2, %v6697_v53, %v4612_v25  ;;  %v4147_v45 = vmul.f32 %v6701_v47, %v12063_v40  ;;  %vm3929_vm8 = vmor %vm3927_vm7, %vm3928_vm9 }
 0x483   :  { %v3924_v1 = vsub.f32 1.0, %v3923_v12  ;;  %v5677_v8 = vpop.f32.mrf.mxu1  ;;  %v4621_v31 = vsel %vm12093_vm1, %v4620_v13, %v4616_v32  ;;  %v4733_v48 = vmul.f32 %v11446_v15, %v4397_v5  ;;  %vm4152_vm11 = vweird.f32 %v6701_v47 }
 0x484   :  { %6061 = vst [vmem:[#allocation9 + $0x2b8] sm:$0xff] %v5677_v8  ;;  %v4148_v62 = vsub.f32 1.0, %v4147_v45  ;;  %v4749_v29 = vmul.f32 %v11449_v23, %v4621_v31  ;;  %v5730_v15 = vunpack.c.l.b16 %v4860_v38  ;;  %vm4153_vm12 = vmor %vm4151_vm10, %vm4152_vm11  ;;  %v4171_v56 = vand.u32 2147483648, %v12101_v10 }
 0x485   :  { %v3925_v36 = vmul.f32 %v6699_v24, %v3924_v1  ;;  %v4861_v46 = vpack.c.bf16 %v4733_v48, %v4733_v48  ;;  %v4169_v21 = vand.u32 2147483647, %v12101_v10  ;;  %vm4165_vm15 = vweird.f32 %v12101_v10 }
 0x486   :  { %v4149_v33 = vmul.f32 %v6701_v47, %v4148_v62  ;;  %v4877_v2 = vpack.c.bf16 %v4749_v29, %v4749_v29  ;;  %v4172_v27 = vor.u32 1.1754944e-38, %v4171_v56 }
 0x487   :  { %v3926_v63 = vadd.f32 %v6699_v24, %v3925_v36  ;;  %v5731_v57 = vunpack.c.l.b16 %v4861_v46  ;;  %vm4170_vm3 = vcmp.eq.f32.partialorder %v4169_v21, 8.507059e+37 }
 0x488   :  { %v6703_v50 = vpop.eup %6702  ;;  %v4150_v23 = vadd.f32 %v6701_v47, %v4149_v33  ;;  %v5868_v26 = vunpack.c.l.b16 %v4877_v2 }
 0x489   :  { %v3930_v53 = vsel %vm3929_vm8, %v6699_v24, %v3926_v63  ;;  %v4161_v37 = vmul.f32 %v6703_v50, %v12101_v10  ;;  %v5739_v61 = vpack.c.b16 %v5731_v57, %v5730_v15  ;;  %vm4166_vm14 = vweird.f32 %v6703_v50 }
 0x48a   :  { %v3935_v11 = vsel %vm12111_vm6, %v3934_v28, %v3930_v53  ;;  %v4154_v14 = vsel %vm4153_vm12, %v6701_v47, %v4150_v23  ;;  %v5876_v59 = vpack.c.b16 %v5868_v26, %v5867_v9  ;;  %vm4167_vm4 = vmor %vm4165_vm15, %vm4166_vm14 }
 0x48b   :  { %v4162_v52 = vsub.f32 1.0, %v4161_v37  ;;  %v4700_v40 = vmul.f32 %v11432_v30, %v3935_v11  ;;  %v4159_v7 = vsel %vm4156_vm13, %v4158_v60, %v4154_v14  ;;  %6177 = vmatmul.msk.bf16.gmra.mxu2 %vm1677_vm0, %v5739_v61  ;;  %v5457_v30 = vunpack.c.l.b16 %v4829_v19 }
 0x48c   :  { %6185 = vmatmul.msk.bf16.gmra.mxu3 %vm1677_vm0, %v5876_v59  ;;  %v4716_v58 = vmul.f32 %v11436_v16, %v4159_v7 }
 0x48d   :  { %v4163_v39 = vmul.f32 %v6703_v50, %v4162_v52  ;;  %v4828_v54 = vpack.c.bf16 %v4700_v40, %v4700_v40 }
 0x48e   :  { %v4844_v24 = vpack.c.bf16 %v4716_v58, %v4716_v58 }
 0x48f   :  { %v4164_v44 = vadd.f32 %v6703_v50, %v4163_v39  ;;  %v5456_v18 = vunpack.c.l.b16 %v4828_v54 }
 0x490   :  { %v5593_v13 = vunpack.c.l.b16 %v4844_v24 }
 0x491   :  { %v4168_v55 = vsel %vm4167_vm4, %v6703_v50, %v4164_v44  ;;  %v5465_v3 = vpack.c.b16 %v5457_v30, %v5456_v18 }
 0x492   :  { %v4173_v22 = vsel %vm4170_vm3, %v4172_v27, %v4168_v55 }
 0x493   :  { %v4717_v6 = vmul.f32 %v11441_v49, %v4173_v22  ;;  %6161 = vmatmul.msk.bf16.gmra.mxu0 %vm1677_vm0, %v5465_v3 }
 0x495   :  { %v4845_v51 = vpack.c.bf16 %v4717_v6, %v4717_v6 }
 0x497   :  { %v5594_v38 = vunpack.c.l.b16 %v4845_v51 }
 0x499   :  { %v5602_v17 = vpack.c.b16 %v5594_v38, %v5593_v13 }
 0x49b   :  { %6169 = vmatmul.msk.bf16.gmra.mxu1 %vm1677_vm0, %v5602_v17 }
 0x49c   :  { %v5817_v16 = vpop.f32.mrf.mxu2 }
 0x49d   :  { %v5543_v43 = vpop.f32.mrf.mxu0  ;;  %6078 = vst [vmem:[#allocation9 + $0x340] sm:$0xff] %v5817_v16 }
 0x49e   :  { %6046 = vst [vmem:[#allocation9 + $0x240] sm:$0xff] %v5543_v43 }
 0x4a1   :  { %v5954_v42 = vpop.f32.mrf.mxu3  ;;  %v5680_v25 = vpop.f32.mrf.mxu1 }
 0x4a2   :  { %6094 = vst [vmem:[#allocation9 + $0x3c0] sm:$0xff] %v5954_v42 }
 0x4a3   :  { %6062 = vst [vmem:[#allocation9 + $0x2c0] sm:$0xff] %v5680_v25 }
 0x4a4   :  { %v5819_v12 = vpop.f32.mrf.mxu2 }
 0x4a5   :  { %v5545_v10 = vpop.f32.mrf.mxu0  ;;  %6079 = vst [vmem:[#allocation9 + $0x348] sm:$0xff] %v5819_v12 }
 0x4a6   :  { %6047 = vst [vmem:[#allocation9 + $0x248] sm:$0xff] %v5545_v10 }
 0x4a9   :  { %v5956_v49 = vpop.f32.mrf.mxu3  ;;  %v5682_v47 = vpop.f32.mrf.mxu1 }
 0x4aa   :  { %6095 = vst [vmem:[#allocation9 + $0x3c8] sm:$0xff] %v5956_v49 }
 0x4ab   :  { %6063 = vst [vmem:[#allocation9 + $0x2c8] sm:$0xff] %v5682_v47 }
 0x4ac   :  { %v5822_v5 = vpop.f32.mrf.mxu2 }
 0x4ad   :  { %6080 = vst [vmem:[#allocation9 + $0x350] sm:$0xff] %v5822_v5 }
 0x4b4   :  { %v5824_v41 = vpop.f32.mrf.mxu2 }
 0x4b5   :  { %6081 = vst [vmem:[#allocation9 + $0x358] sm:$0xff] %v5824_v41 }
 0x4b8   :  { %v5548_v32 = vpop.f32.mrf.mxu0 }
 0x4b9   :  { %6048 = vst [vmem:[#allocation9 + $0x250] sm:$0xff] %v5548_v32 }
 0x4bf   :  { %v5685_v1 = vpop.f32.mrf.mxu1 }
 0x4c0   :  { %6064 = vst [vmem:[#allocation9 + $0x2d0] sm:$0xff] %v5685_v1  ;;  %v5550_v35 = vpop.f32.mrf.mxu0  ;;  %v5959_v45 = vpop.f32.mrf.mxu3 }
 0x4c1   :  { %6049 = vst [vmem:[#allocation9 + $0x258] sm:$0xff] %v5550_v35 }
 0x4c2   :  { %6096 = vst [vmem:[#allocation9 + $0x3d0] sm:$0xff] %v5959_v45 }
 0x4c7   :  { %v5687_v8 = vpop.f32.mrf.mxu1 }
 0x4c8   :  { %6065 = vst [vmem:[#allocation9 + $0x2d8] sm:$0xff] %v5687_v8  ;;  %v5961_v0 = vpop.f32.mrf.mxu3 }
 0x4c9   :  { %6097 = vst [vmem:[#allocation9 + $0x3d8] sm:$0xff] %v5961_v0 }
 0x4e2   :  { %v5827_v31 = vpop.f32.mrf.mxu2 }
 0x4e3   :  { %v5964_v34 = vpop.f32.mrf.mxu3  ;;  %6082 = vst [vmem:[#allocation9 + $0x360] sm:$0xff] %v5827_v31  ;;  %v5553_v48 = vpop.f32.mrf.mxu0 }
 0x4e4   :  { %6098 = vst [vmem:[#allocation9 + $0x3e0] sm:$0xff] %v5964_v34 }
 0x4e5   :  { %6050 = vst [vmem:[#allocation9 + $0x260] sm:$0xff] %v5553_v48 }
 0x4ea   :  { %v5829_v36 = vpop.f32.mrf.mxu2 }
 0x4eb   :  { %v5966_v62 = vpop.f32.mrf.mxu3  ;;  %6083 = vst [vmem:[#allocation9 + $0x368] sm:$0xff] %v5829_v36  ;;  %v5555_v29 = vpop.f32.mrf.mxu0 }
 0x4ec   :  { %6099 = vst [vmem:[#allocation9 + $0x3e8] sm:$0xff] %v5966_v62  ;;  %v5690_v28 = vpop.f32.mrf.mxu1 }
 0x4ed   :  { %6051 = vst [vmem:[#allocation9 + $0x268] sm:$0xff] %v5555_v29 }
 0x4ee   :  { %6066 = vst [vmem:[#allocation9 + $0x2e0] sm:$0xff] %v5690_v28 }
 0x4f4   :  { %v5692_v20 = vpop.f32.mrf.mxu1 }
 0x4f5   :  { %6067 = vst [vmem:[#allocation9 + $0x2e8] sm:$0xff] %v5692_v20 }
 0x50e   :  { %v5832_v46 = vpop.f32.mrf.mxu2 }
 0x50f   :  { %6084 = vst [vmem:[#allocation9 + $0x370] sm:$0xff] %v5832_v46  ;;  %v5969_v63 = vpop.f32.mrf.mxu3 }
 0x510   :  { %v5558_v4 = vpop.f32.mrf.mxu0  ;;  %6100 = vst [vmem:[#allocation9 + $0x3f0] sm:$0xff] %v5969_v63 }
 0x511   :  { %6052 = vst [vmem:[#allocation9 + $0x270] sm:$0xff] %v5558_v4 }
 0x516   :  { %v5834_v33 = vpop.f32.mrf.mxu2 }
 0x517   :  { %6085 = vst [vmem:[#allocation9 + $0x378] sm:$0xff] %v5834_v33  ;;  %v5971_v15 = vpop.f32.mrf.mxu3 }
 0x518   :  { %v5560_v2 = vpop.f32.mrf.mxu0  ;;  %v5695_v50 = vpop.f32.mrf.mxu1  ;;  %6101 = vst [vmem:[#allocation9 + $0x3f8] sm:$0xff] %v5971_v15 }
 0x519   :  { %6053 = vst [vmem:[#allocation9 + $0x278] sm:$0xff] %v5560_v2 }
 0x51a   :  { %6068 = vst [vmem:[#allocation9 + $0x2f0] sm:$0xff] %v5695_v50 }
 0x520   :  { %v5697_v57 = vpop.f32.mrf.mxu1 }
 0x521   :  { %6069 = vst [vmem:[#allocation9 + $0x2f8] sm:$0xff] %v5697_v57 }
 0x522   :  { %6114 = dma.vmem_to_hbm [thread:$0]  %s6107_s5, 16384, %s6109_s8, [#allocation5], %s6807_s23, %s6807_s23, %s6808_s24  }
 0x523   :  { %6804 = dma.done.wait [#allocation5], 16384  }
 0x524   :  { %6805 = vsyncadd [#allocation5], 4294950912 }
 0x525   :  { %6119 = vsyncpa [#allocation4], 1 }
 0x526   :  { %6120 = vsyncpa [#allocation7], 1 }
 0x527   :  { %6121 = vsyncpa [#allocation5], 1 }

</bundles_post_ra>
